<compile_context>
chip_gen: v7x
topology: tpu7x:2x2x1
jax: 0.10.0
libtpu: 0.0.40
codegen_flags: <defaults>
</compile_context>

<pallas_src>
import functools

import jax
import jax.numpy as jnp
from jax.experimental import pallas as pl
from jax.experimental.pallas import tpu as pltpu


# ----------------------------------------------------------------------------
# Fused kernel: batched NeRF field MLP + volume rendering + per-ray loss partials
# ----------------------------------------------------------------------------
def _fused_nerf_train_kernel(
    x_ref,      # [Din, S*TR] bf16  encoded samples, columns ordered (sample, ray)
    dt_ref,     # [1,   S*TR] f32   ray-marching step sizes, same column order
    gt_ref,     # [3,   TR]   f32   ground-truth rgb (rays on lanes)
    w1_ref,     # [H, Din]    bf16  field MLP layer 1 (pre-transposed)
    b1_ref,     # [H, 1]      f32
    w2_ref,     # [H, H]      bf16
    b2_ref,     # [H, 1]      f32
    w3_ref,     # [8, H]      bf16  head: rgb rows 0..2, density row 3, rows 4..7 zero pad
    b3_ref,     # [8, 1]      f32
    out_ref,    # [8, TR]     f32   rows 0-2 rgb, 3 acc, 4 sq-err, 5-7 zero
    *,
    num_samples,
    ray_tile,
):
    S = num_samples
    TR = ray_tile

    # ---- batched MLP over all S samples of the tile (3 big MXU matmuls) ----
    x = x_ref[...]                                                           # [Din, S*TR] bf16
    h1 = jnp.dot(w1_ref[...], x, preferred_element_type=jnp.float32) + b1_ref[...]
    h1 = jnp.maximum(h1, 0.0).astype(jnp.bfloat16)                           # [H, S*TR]
    h2 = jnp.dot(w2_ref[...], h1, preferred_element_type=jnp.float32) + b2_ref[...]
    h2 = jnp.maximum(h2, 0.0).astype(jnp.bfloat16)                           # [H, S*TR]
    raw = jnp.dot(w3_ref[...], h2, preferred_element_type=jnp.float32) + b3_ref[...]  # [8, S*TR]

    # ---- dense transcendental streams (EUP), hoisted off the recurrence ----
    colors = jax.nn.sigmoid(raw[0:3, :])                                     # [3, S*TR]
    sigma = jnp.maximum(raw[3:4, :], 0.0)                                    # [1, S*TR] density >= 0
    att = jnp.exp(-sigma * dt_ref[...])                                      # [1, S*TR] exp(-tau)
    alpha = 1.0 - att                                                        # [1, S*TR]

    # ---- sequential alpha compositing (the true data dependence), pure VPU ----
    trans = jnp.ones((1, TR), jnp.float32)     # running transmittance T_s
    rgb = jnp.zeros((3, TR), jnp.float32)
    acc = jnp.zeros((1, TR), jnp.float32)
    for s in range(S):                         # tiny live state; slices are 128-aligned, static
        lo = s * TR
        w_s = trans * alpha[:, lo:lo + TR]     # T_s * alpha_s
        rgb = rgb + w_s * colors[:, lo:lo + TR]
        acc = acc + w_s
        trans = trans * att[:, lo:lo + TR]

    # ---- per-ray loss partial + single aligned (8, TR) store ----
    diff = rgb - gt_ref[...]
    sq = jnp.sum(diff * diff, axis=0, keepdims=True)                         # [1, TR]
    out_ref[...] = jnp.concatenate(
        [rgb, acc, sq, jnp.zeros((3, TR), jnp.float32)], axis=0)             # [8, TR]


# ----------------------------------------------------------------------------
# Layout plumbing: tile-grouped, lane-dense inputs for the kernel
# ----------------------------------------------------------------------------
def _prepare_ray_inputs(encoded_samples, deltas, rgb_gt, ray_tile):
    R, S, Din = encoded_samples.shape
    grid_n = pl.cdiv(R, ray_tile)
    r_pad = grid_n * ray_tile
    if r_pad != R:
        pad = r_pad - R
        encoded_samples = jnp.pad(encoded_samples, ((0, pad), (0, 0), (0, 0)))
        deltas = jnp.pad(deltas, ((0, pad), (0, 0)))
        rgb_gt = jnp.pad(rgb_gt, ((0, pad), (0, 0)))

    # columns ordered (tile, sample, ray-within-tile) so each grid step gets one
    # contiguous MXU-ready [Din, S*TR] slab.
    x2d = (encoded_samples.reshape(grid_n, ray_tile, S, Din)
           .transpose(3, 0, 2, 1)
           .reshape(Din, grid_n * S * ray_tile)
           .astype(jnp.bfloat16))
    dt2d = (deltas.reshape(grid_n, ray_tile, S)
            .transpose(0, 2, 1)
            .reshape(1, grid_n * S * ray_tile)
            .astype(jnp.float32))
    gt2d = jnp.transpose(rgb_gt, (1, 0)).astype(jnp.float32)                 # [3, r_pad]
    return x2d, dt2d, gt2d, grid_n, r_pad


# ----------------------------------------------------------------------------
# Pipeline wrapper: mirrors VanillaPipeline.get_train_loss_dict()
# ----------------------------------------------------------------------------
def vanilla_pipeline_train_step(encoded_samples, params, deltas, rgb_gt, *, ray_tile=256):
    """encoded_samples: [R, S, Din] f32, deltas: [R, S] f32, rgb_gt: [R, 3] f32.

    Returns (model_outputs, loss_dict) like get_train_loss_dict().
    ray_tile: keep >= 2 tiles per TensorCore on v7x; raise to 512-1024 for very
    large R on v5e/v6e (128 MiB VMEM).
    """
    w1, b1, w2, b2, w3, b3 = params
    R, S, Din = encoded_samples.shape
    H = w1.shape[1]

    x2d, dt2d, gt2d, grid_n, r_pad = _prepare_ray_inputs(encoded_samples, deltas, rgb_gt, ray_tile)

    # bf16 MXU operands; biases / elementwise stay f32 (portable to v5e, no bf16 VPU/EUP there).
    w1t = w1.T.astype(jnp.bfloat16)                                          # [H, Din]
    w2t = w2.T.astype(jnp.bfloat16)                                          # [H, H]
    w3p = jnp.zeros((8, H), jnp.float32).at[:4, :].set(w3.T).astype(jnp.bfloat16)  # [8, H]
    b1c = b1.reshape(-1, 1).astype(jnp.float32)                              # [H, 1]
    b2c = b2.reshape(-1, 1).astype(jnp.float32)                              # [H, 1]
    b3p = jnp.zeros((8, 1), jnp.float32).at[:4, 0].set(b3.reshape(-1))       # [8, 1]

    kernel = functools.partial(_fused_nerf_train_kernel,
                               num_samples=S, ray_tile=ray_tile)

    flops = 2 * r_pad * S * (H * Din + H * H + 8 * H)
    transcendentals = 4 * r_pad * S                                          # 3 sigmoid + 1 exp per sample
    bytes_accessed = (x2d.size * 2 + dt2d.size * 4 + gt2d.size * 4 + 8 * r_pad * 4
                      + (w1t.size + w2t.size + w3p.size) * 2
                      + (b1c.size + b2c.size + b3p.size) * 4)

    const = lambda i: (0, 0)
    out2d = pl.pallas_call(
        kernel,
        out_shape=jax.ShapeDtypeStruct((8, r_pad), jnp.float32),
        grid=(grid_n,),
        in_specs=[
            pl.BlockSpec((Din, S * ray_tile), lambda i: (0, i)),
            pl.BlockSpec((1, S * ray_tile), lambda i: (0, i)),
            pl.BlockSpec((3, ray_tile), lambda i: (0, i)),
            pl.BlockSpec((H, Din), const),
            pl.BlockSpec((H, 1), const),
            pl.BlockSpec((H, H), const),
            pl.BlockSpec((H, 1), const),
            pl.BlockSpec((8, H), const),
            pl.BlockSpec((8, 1), const),
        ],
        out_specs=pl.BlockSpec((8, ray_tile), lambda i: (0, i)),
        compiler_params=pltpu.CompilerParams(
            dimension_semantics=("parallel",),
            vmem_limit_bytes=32 * 1024 * 1024,
        ),
        cost_estimate=pl.CostEstimate(
            flops=flops,
            transcendentals=transcendentals,
            bytes_accessed=bytes_accessed,
        ),
    )(x2d, dt2d, gt2d, w1t, b1c, w2t, b2c, w3p, b3p)

    rgb = jnp.transpose(out2d[0:3, :R], (1, 0))         # [R, 3]
    acc = jnp.transpose(out2d[3:4, :R], (1, 0))         # [R, 1]
    rgb_loss = jnp.sum(out2d[4, :R]) / (R * 3.0)        # == mean((rgb - gt)**2)

    model_outputs = {"rgb": rgb, "accumulation": acc}
    loss_dict = {"rgb_loss": rgb_loss}
    return model_outputs, loss_dict


# ----------------------------------------------------------------------------
# Pure-JAX f32 reference (same math, used for a loose numerical check)
# ----------------------------------------------------------------------------
def _reference_train_step(encoded_samples, params, deltas, rgb_gt):
    w1, b1, w2, b2, w3, b3 = params
    R, S, Din = encoded_samples.shape
    x = encoded_samples.reshape(R * S, Din)
    h1 = jnp.maximum(x @ w1 + b1, 0.0)
    h2 = jnp.maximum(h1 @ w2 + b2, 0.0)
    raw = (h2 @ w3 + b3).reshape(R, S, 4)
    sigma = jnp.maximum(raw[..., 3], 0.0)
    tau = sigma * deltas
    cum_excl = jnp.cumsum(tau, axis=1) - tau
    weights = jnp.exp(-cum_excl) * (1.0 - jnp.exp(-tau))
    colors = jax.nn.sigmoid(raw[..., :3])
    rgb = jnp.sum(weights[..., None] * colors, axis=1)
    acc = jnp.sum(weights, axis=1, keepdims=True)
    loss = jnp.mean((rgb - rgb_gt) ** 2)
    return rgb, acc, loss


if __name__ == "__main__":
    # Small deterministic shapes: R rays, S samples/ray, Din encoded features.
    R, S, Din, H = 1024, 32, 32, 64

    key = jax.random.PRNGKey(0)
    k_x, k_gt, k_w1, k_b1, k_w2, k_b2, k_w3, k_b3 = jax.random.split(key, 8)

    # Synthetic "datamanager.next_train" batch (ray samples already encoded).
    encoded_samples = jax.random.normal(k_x, (R, S, Din), dtype=jnp.float32)
    rgb_gt = jax.random.uniform(k_gt, (R, 3), dtype=jnp.float32)
    deltas = jnp.full((R, S), 1.0 / S, dtype=jnp.float32)

    # Deterministic NeRF field MLP parameters (rgb + density head).
    w1 = 0.1 * jax.random.normal(k_w1, (Din, H), dtype=jnp.float32)
    b1 = 0.01 * jax.random.normal(k_b1, (1, H), dtype=jnp.float32)
    w2 = 0.1 * jax.random.normal(k_w2, (H, H), dtype=jnp.float32)
    b2 = 0.01 * jax.random.normal(k_b2, (1, H), dtype=jnp.float32)
    w3 = 0.1 * jax.random.normal(k_w3, (H, 4), dtype=jnp.float32)
    b3 = 0.01 * jax.random.normal(k_b3, (1, 4), dtype=jnp.float32)
    params = (w1, b1, w2, b2, w3, b3)

    train_step = jax.jit(vanilla_pipeline_train_step)
    model_outputs, loss_dict = train_step(encoded_samples, params, deltas, rgb_gt)
    jax.block_until_ready(model_outputs["rgb"])
    jax.block_until_ready(loss_dict["rgb_loss"])

    assert model_outputs["rgb"].shape == (R, 3)
    assert model_outputs["accumulation"].shape == (R, 1)
    assert bool(jnp.isfinite(loss_dict["rgb_loss"]))

    # Loose numerical check vs the f32 reference (kernel uses bf16 MXU operands).
    rgb_ref, acc_ref, loss_ref = _reference_train_step(encoded_samples, params, deltas, rgb_gt)
    assert float(jnp.max(jnp.abs(model_outputs["rgb"] - rgb_ref))) < 5e-2
    assert float(jnp.max(jnp.abs(model_outputs["accumulation"] - acc_ref))) < 5e-2
    assert abs(float(loss_dict["rgb_loss"]) - float(loss_ref)) < 1e-2

    print("KERNEL_OK")
</pallas_src>

<mosaic_0001>
module attributes {stable_mosaic.version = 11 : i64} {
  func.func @_fused_nerf_train_kernel(%arg0: i32, %arg1: memref<32x8192xbf16, #tpu.memory_space<vmem>>, %arg2: memref<1x8192xf32, #tpu.memory_space<vmem>>, %arg3: memref<3x256xf32, #tpu.memory_space<vmem>>, %arg4: memref<64x32xbf16, #tpu.memory_space<vmem>>, %arg5: memref<64x1xf32, #tpu.memory_space<vmem>>, %arg6: memref<64x64xbf16, #tpu.memory_space<vmem>>, %arg7: memref<64x1xf32, #tpu.memory_space<vmem>>, %arg8: memref<8x64xbf16, #tpu.memory_space<vmem>>, %arg9: memref<8x1xf32, #tpu.memory_space<vmem>>, %arg10: memref<8x256xf32, #tpu.memory_space<vmem>>) attributes {dimension_semantics = [#tpu.dimension_semantics<parallel>], iteration_bounds = array<i64: 4>, scalar_prefetch = 0 : i64, scratch_operands = 0 : i64, tpu.core_type = #tpu.core_type<tc>, window_params = [{transform_indices = @transform_0, window_bounds = array<i64: 32, 8192>}, {transform_indices = @transform_1, window_bounds = array<i64: 1, 8192>}, {transform_indices = @transform_2, window_bounds = array<i64: 3, 256>}, {pipeline_mode = #tpu.pipeline_mode<synchronous>, transform_indices = @transform_3, window_bounds = array<i64: 64, 32>}, {pipeline_mode = #tpu.pipeline_mode<synchronous>, transform_indices = @transform_4, window_bounds = array<i64: 64, 1>}, {pipeline_mode = #tpu.pipeline_mode<synchronous>, transform_indices = @transform_5, window_bounds = array<i64: 64, 64>}, {pipeline_mode = #tpu.pipeline_mode<synchronous>, transform_indices = @transform_6, window_bounds = array<i64: 64, 1>}, {pipeline_mode = #tpu.pipeline_mode<synchronous>, transform_indices = @transform_7, window_bounds = array<i64: 8, 64>}, {pipeline_mode = #tpu.pipeline_mode<synchronous>, transform_indices = @transform_8, window_bounds = array<i64: 8, 1>}, {transform_indices = @transform_9, window_bounds = array<i64: 8, 256>}]} {
    %c0 = arith.constant 0 : index
    %c0_0 = arith.constant 0 : index
    %0 = vector.load %arg1[%c0, %c0_0] : memref<32x8192xbf16, #tpu.memory_space<vmem>>, vector<32x8192xbf16>
    %c0_1 = arith.constant 0 : index
    %c0_2 = arith.constant 0 : index
    %1 = vector.load %arg4[%c0_1, %c0_2] : memref<64x32xbf16, #tpu.memory_space<vmem>>, vector<64x32xbf16>
    %cst = arith.constant dense<0.000000e+00> : vector<64x8192xf32>
    %2 = tpu.matmul %1, %0, %cst {dimension_numbers = #tpu.dot_dimension_numbers<[1], [0], [0], [1], [0, 0, 1, 1], [], []>} : vector<64x32xbf16>, vector<32x8192xbf16>, vector<64x8192xf32> -> vector<64x8192xf32>
    %c0_3 = arith.constant 0 : index
    %c0_4 = arith.constant 0 : index
    %3 = vector.load %arg5[%c0_3, %c0_4] : memref<64x1xf32, #tpu.memory_space<vmem>>, vector<64x1xf32>
    %4 = vector.broadcast %3 : vector<64x1xf32> to vector<64x8192xf32>
    %5 = arith.addf %2, %4 : vector<64x8192xf32>
    %cst_5 = arith.constant 0.000000e+00 : f32
    %6 = vector.broadcast %cst_5 : f32 to vector<64x8192xf32>
    %7 = arith.maximumf %5, %6 : vector<64x8192xf32>
    %8 = arith.truncf %7 : vector<64x8192xf32> to vector<64x8192xbf16>
    %c0_6 = arith.constant 0 : index
    %c0_7 = arith.constant 0 : index
    %9 = vector.load %arg6[%c0_6, %c0_7] : memref<64x64xbf16, #tpu.memory_space<vmem>>, vector<64x64xbf16>
    %cst_8 = arith.constant dense<0.000000e+00> : vector<64x8192xf32>
    %10 = tpu.matmul %9, %8, %cst_8 {dimension_numbers = #tpu.dot_dimension_numbers<[1], [0], [0], [1], [0, 0, 1, 1], [], []>} : vector<64x64xbf16>, vector<64x8192xbf16>, vector<64x8192xf32> -> vector<64x8192xf32>
    %c0_9 = arith.constant 0 : index
    %c0_10 = arith.constant 0 : index
    %11 = vector.load %arg7[%c0_9, %c0_10] : memref<64x1xf32, #tpu.memory_space<vmem>>, vector<64x1xf32>
    %12 = vector.broadcast %11 : vector<64x1xf32> to vector<64x8192xf32>
    %13 = arith.addf %10, %12 : vector<64x8192xf32>
    %cst_11 = arith.constant 0.000000e+00 : f32
    %14 = vector.broadcast %cst_11 : f32 to vector<64x8192xf32>
    %15 = arith.maximumf %13, %14 : vector<64x8192xf32>
    %16 = arith.truncf %15 : vector<64x8192xf32> to vector<64x8192xbf16>
    %c0_12 = arith.constant 0 : index
    %c0_13 = arith.constant 0 : index
    %17 = vector.load %arg8[%c0_12, %c0_13] : memref<8x64xbf16, #tpu.memory_space<vmem>>, vector<8x64xbf16>
    %cst_14 = arith.constant dense<0.000000e+00> : vector<8x8192xf32>
    %18 = tpu.matmul %17, %16, %cst_14 {dimension_numbers = #tpu.dot_dimension_numbers<[1], [0], [0], [1], [0, 0, 1, 1], [], []>} : vector<8x64xbf16>, vector<64x8192xbf16>, vector<8x8192xf32> -> vector<8x8192xf32>
    %c0_15 = arith.constant 0 : index
    %c0_16 = arith.constant 0 : index
    %19 = vector.load %arg9[%c0_15, %c0_16] : memref<8x1xf32, #tpu.memory_space<vmem>>, vector<8x1xf32>
    %20 = vector.broadcast %19 : vector<8x1xf32> to vector<8x8192xf32>
    %21 = arith.addf %18, %20 : vector<8x8192xf32>
    %22 = vector.extract_strided_slice %21 {offsets = [0, 0], sizes = [3, 8192], strides = [1, 1]} : vector<8x8192xf32> to vector<3x8192xf32>
    %23 = arith.negf %22 : vector<3x8192xf32>
    %24 = math.exp %23 : vector<3x8192xf32>
    %cst_17 = arith.constant 1.000000e+00 : f32
    %25 = vector.broadcast %cst_17 : f32 to vector<3x8192xf32>
    %26 = arith.addf %25, %24 : vector<3x8192xf32>
    %27 = arith.divf %25, %26 : vector<3x8192xf32>
    %28 = vector.extract_strided_slice %21 {offsets = [3, 0], sizes = [1, 8192], strides = [1, 1]} : vector<8x8192xf32> to vector<1x8192xf32>
    %cst_18 = arith.constant 0.000000e+00 : f32
    %29 = vector.broadcast %cst_18 : f32 to vector<1x8192xf32>
    %30 = arith.maximumf %28, %29 : vector<1x8192xf32>
    %cst_19 = arith.constant 0.000000e+00 : f32
    %31 = vector.broadcast %cst_19 : f32 to vector<1x8192xf32>
    %32 = arith.subf %31, %30 : vector<1x8192xf32>
    %c0_20 = arith.constant 0 : index
    %c0_21 = arith.constant 0 : index
    %33 = vector.load %arg2[%c0_20, %c0_21] : memref<1x8192xf32, #tpu.memory_space<vmem>>, vector<1x8192xf32>
    %34 = arith.mulf %32, %33 : vector<1x8192xf32>
    %35 = math.exp %34 : vector<1x8192xf32>
    %cst_22 = arith.constant 1.000000e+00 : f32
    %36 = vector.broadcast %cst_22 : f32 to vector<1x8192xf32>
    %37 = arith.subf %36, %35 : vector<1x8192xf32>
    %cst_23 = arith.constant 1.000000e+00 : f32
    %38 = vector.broadcast %cst_23 : f32 to vector<1x256xf32>
    %cst_24 = arith.constant 0.000000e+00 : f32
    %39 = vector.broadcast %cst_24 : f32 to vector<3x256xf32>
    %cst_25 = arith.constant 0.000000e+00 : f32
    %40 = vector.broadcast %cst_25 : f32 to vector<1x256xf32>
    %41 = vector.extract_strided_slice %37 {offsets = [0, 0], sizes = [1, 256], strides = [1, 1]} : vector<1x8192xf32> to vector<1x256xf32>
    %42 = arith.mulf %38, %41 : vector<1x256xf32>
    %43 = vector.extract_strided_slice %27 {offsets = [0, 0], sizes = [3, 256], strides = [1, 1]} : vector<3x8192xf32> to vector<3x256xf32>
    %44 = vector.broadcast %42 : vector<1x256xf32> to vector<3x256xf32>
    %45 = arith.mulf %44, %43 : vector<3x256xf32>
    %46 = arith.addf %39, %45 : vector<3x256xf32>
    %47 = arith.addf %40, %42 : vector<1x256xf32>
    %48 = vector.extract_strided_slice %35 {offsets = [0, 0], sizes = [1, 256], strides = [1, 1]} : vector<1x8192xf32> to vector<1x256xf32>
    %49 = arith.mulf %38, %48 : vector<1x256xf32>
    %50 = vector.extract_strided_slice %37 {offsets = [0, 256], sizes = [1, 256], strides = [1, 1]} : vector<1x8192xf32> to vector<1x256xf32>
    %51 = arith.mulf %49, %50 : vector<1x256xf32>
    %52 = vector.extract_strided_slice %27 {offsets = [0, 256], sizes = [3, 256], strides = [1, 1]} : vector<3x8192xf32> to vector<3x256xf32>
    %53 = vector.broadcast %51 : vector<1x256xf32> to vector<3x256xf32>
    %54 = arith.mulf %53, %52 : vector<3x256xf32>
    %55 = arith.addf %46, %54 : vector<3x256xf32>
    %56 = arith.addf %47, %51 : vector<1x256xf32>
    %57 = vector.extract_strided_slice %35 {offsets = [0, 256], sizes = [1, 256], strides = [1, 1]} : vector<1x8192xf32> to vector<1x256xf32>
    %58 = arith.mulf %49, %57 : vector<1x256xf32>
    %59 = vector.extract_strided_slice %37 {offsets = [0, 512], sizes = [1, 256], strides = [1, 1]} : vector<1x8192xf32> to vector<1x256xf32>
    %60 = arith.mulf %58, %59 : vector<1x256xf32>
    %61 = vector.extract_strided_slice %27 {offsets = [0, 512], sizes = [3, 256], strides = [1, 1]} : vector<3x8192xf32> to vector<3x256xf32>
    %62 = vector.broadcast %60 : vector<1x256xf32> to vector<3x256xf32>
    %63 = arith.mulf %62, %61 : vector<3x256xf32>
    %64 = arith.addf %55, %63 : vector<3x256xf32>
    %65 = arith.addf %56, %60 : vector<1x256xf32>
    %66 = vector.extract_strided_slice %35 {offsets = [0, 512], sizes = [1, 256], strides = [1, 1]} : vector<1x8192xf32> to vector<1x256xf32>
    %67 = arith.mulf %58, %66 : vector<1x256xf32>
    %68 = vector.extract_strided_slice %37 {offsets = [0, 768], sizes = [1, 256], strides = [1, 1]} : vector<1x8192xf32> to vector<1x256xf32>
    %69 = arith.mulf %67, %68 : vector<1x256xf32>
    %70 = vector.extract_strided_slice %27 {offsets = [0, 768], sizes = [3, 256], strides = [1, 1]} : vector<3x8192xf32> to vector<3x256xf32>
    %71 = vector.broadcast %69 : vector<1x256xf32> to vector<3x256xf32>
    %72 = arith.mulf %71, %70 : vector<3x256xf32>
    %73 = arith.addf %64, %72 : vector<3x256xf32>
    %74 = arith.addf %65, %69 : vector<1x256xf32>
    %75 = vector.extract_strided_slice %35 {offsets = [0, 768], sizes = [1, 256], strides = [1, 1]} : vector<1x8192xf32> to vector<1x256xf32>
    %76 = arith.mulf %67, %75 : vector<1x256xf32>
    %77 = vector.extract_strided_slice %37 {offsets = [0, 1024], sizes = [1, 256], strides = [1, 1]} : vector<1x8192xf32> to vector<1x256xf32>
    %78 = arith.mulf %76, %77 : vector<1x256xf32>
    %79 = vector.extract_strided_slice %27 {offsets = [0, 1024], sizes = [3, 256], strides = [1, 1]} : vector<3x8192xf32> to vector<3x256xf32>
    %80 = vector.broadcast %78 : vector<1x256xf32> to vector<3x256xf32>
    %81 = arith.mulf %80, %79 : vector<3x256xf32>
    %82 = arith.addf %73, %81 : vector<3x256xf32>
    %83 = arith.addf %74, %78 : vector<1x256xf32>
    %84 = vector.extract_strided_slice %35 {offsets = [0, 1024], sizes = [1, 256], strides = [1, 1]} : vector<1x8192xf32> to vector<1x256xf32>
    %85 = arith.mulf %76, %84 : vector<1x256xf32>
    %86 = vector.extract_strided_slice %37 {offsets = [0, 1280], sizes = [1, 256], strides = [1, 1]} : vector<1x8192xf32> to vector<1x256xf32>
    %87 = arith.mulf %85, %86 : vector<1x256xf32>
    %88 = vector.extract_strided_slice %27 {offsets = [0, 1280], sizes = [3, 256], strides = [1, 1]} : vector<3x8192xf32> to vector<3x256xf32>
    %89 = vector.broadcast %87 : vector<1x256xf32> to vector<3x256xf32>
    %90 = arith.mulf %89, %88 : vector<3x256xf32>
    %91 = arith.addf %82, %90 : vector<3x256xf32>
    %92 = arith.addf %83, %87 : vector<1x256xf32>
    %93 = vector.extract_strided_slice %35 {offsets = [0, 1280], sizes = [1, 256], strides = [1, 1]} : vector<1x8192xf32> to vector<1x256xf32>
    %94 = arith.mulf %85, %93 : vector<1x256xf32>
    %95 = vector.extract_strided_slice %37 {offsets = [0, 1536], sizes = [1, 256], strides = [1, 1]} : vector<1x8192xf32> to vector<1x256xf32>
    %96 = arith.mulf %94, %95 : vector<1x256xf32>
    %97 = vector.extract_strided_slice %27 {offsets = [0, 1536], sizes = [3, 256], strides = [1, 1]} : vector<3x8192xf32> to vector<3x256xf32>
    %98 = vector.broadcast %96 : vector<1x256xf32> to vector<3x256xf32>
    %99 = arith.mulf %98, %97 : vector<3x256xf32>
    %100 = arith.addf %91, %99 : vector<3x256xf32>
    %101 = arith.addf %92, %96 : vector<1x256xf32>
    %102 = vector.extract_strided_slice %35 {offsets = [0, 1536], sizes = [1, 256], strides = [1, 1]} : vector<1x8192xf32> to vector<1x256xf32>
    %103 = arith.mulf %94, %102 : vector<1x256xf32>
    %104 = vector.extract_strided_slice %37 {offsets = [0, 1792], sizes = [1, 256], strides = [1, 1]} : vector<1x8192xf32> to vector<1x256xf32>
    %105 = arith.mulf %103, %104 : vector<1x256xf32>
    %106 = vector.extract_strided_slice %27 {offsets = [0, 1792], sizes = [3, 256], strides = [1, 1]} : vector<3x8192xf32> to vector<3x256xf32>
    %107 = vector.broadcast %105 : vector<1x256xf32> to vector<3x256xf32>
    %108 = arith.mulf %107, %106 : vector<3x256xf32>
    %109 = arith.addf %100, %108 : vector<3x256xf32>
    %110 = arith.addf %101, %105 : vector<1x256xf32>
    %111 = vector.extract_strided_slice %35 {offsets = [0, 1792], sizes = [1, 256], strides = [1, 1]} : vector<1x8192xf32> to vector<1x256xf32>
    %112 = arith.mulf %103, %111 : vector<1x256xf32>
    %113 = vector.extract_strided_slice %37 {offsets = [0, 2048], sizes = [1, 256], strides = [1, 1]} : vector<1x8192xf32> to vector<1x256xf32>
    %114 = arith.mulf %112, %113 : vector<1x256xf32>
    %115 = vector.extract_strided_slice %27 {offsets = [0, 2048], sizes = [3, 256], strides = [1, 1]} : vector<3x8192xf32> to vector<3x256xf32>
    %116 = vector.broadcast %114 : vector<1x256xf32> to vector<3x256xf32>
    %117 = arith.mulf %116, %115 : vector<3x256xf32>
    %118 = arith.addf %109, %117 : vector<3x256xf32>
    %119 = arith.addf %110, %114 : vector<1x256xf32>
    %120 = vector.extract_strided_slice %35 {offsets = [0, 2048], sizes = [1, 256], strides = [1, 1]} : vector<1x8192xf32> to vector<1x256xf32>
    %121 = arith.mulf %112, %120 : vector<1x256xf32>
    %122 = vector.extract_strided_slice %37 {offsets = [0, 2304], sizes = [1, 256], strides = [1, 1]} : vector<1x8192xf32> to vector<1x256xf32>
    %123 = arith.mulf %121, %122 : vector<1x256xf32>
    %124 = vector.extract_strided_slice %27 {offsets = [0, 2304], sizes = [3, 256], strides = [1, 1]} : vector<3x8192xf32> to vector<3x256xf32>
    %125 = vector.broadcast %123 : vector<1x256xf32> to vector<3x256xf32>
    %126 = arith.mulf %125, %124 : vector<3x256xf32>
    %127 = arith.addf %118, %126 : vector<3x256xf32>
    %128 = arith.addf %119, %123 : vector<1x256xf32>
    %129 = vector.extract_strided_slice %35 {offsets = [0, 2304], sizes = [1, 256], strides = [1, 1]} : vector<1x8192xf32> to vector<1x256xf32>
    %130 = arith.mulf %121, %129 : vector<1x256xf32>
    %131 = vector.extract_strided_slice %37 {offsets = [0, 2560], sizes = [1, 256], strides = [1, 1]} : vector<1x8192xf32> to vector<1x256xf32>
    %132 = arith.mulf %130, %131 : vector<1x256xf32>
    %133 = vector.extract_strided_slice %27 {offsets = [0, 2560], sizes = [3, 256], strides = [1, 1]} : vector<3x8192xf32> to vector<3x256xf32>
    %134 = vector.broadcast %132 : vector<1x256xf32> to vector<3x256xf32>
    %135 = arith.mulf %134, %133 : vector<3x256xf32>
    %136 = arith.addf %127, %135 : vector<3x256xf32>
    %137 = arith.addf %128, %132 : vector<1x256xf32>
    %138 = vector.extract_strided_slice %35 {offsets = [0, 2560], sizes = [1, 256], strides = [1, 1]} : vector<1x8192xf32> to vector<1x256xf32>
    %139 = arith.mulf %130, %138 : vector<1x256xf32>
    %140 = vector.extract_strided_slice %37 {offsets = [0, 2816], sizes = [1, 256], strides = [1, 1]} : vector<1x8192xf32> to vector<1x256xf32>
    %141 = arith.mulf %139, %140 : vector<1x256xf32>
    %142 = vector.extract_strided_slice %27 {offsets = [0, 2816], sizes = [3, 256], strides = [1, 1]} : vector<3x8192xf32> to vector<3x256xf32>
    %143 = vector.broadcast %141 : vector<1x256xf32> to vector<3x256xf32>
    %144 = arith.mulf %143, %142 : vector<3x256xf32>
    %145 = arith.addf %136, %144 : vector<3x256xf32>
    %146 = arith.addf %137, %141 : vector<1x256xf32>
    %147 = vector.extract_strided_slice %35 {offsets = [0, 2816], sizes = [1, 256], strides = [1, 1]} : vector<1x8192xf32> to vector<1x256xf32>
    %148 = arith.mulf %139, %147 : vector<1x256xf32>
    %149 = vector.extract_strided_slice %37 {offsets = [0, 3072], sizes = [1, 256], strides = [1, 1]} : vector<1x8192xf32> to vector<1x256xf32>
    %150 = arith.mulf %148, %149 : vector<1x256xf32>
    %151 = vector.extract_strided_slice %27 {offsets = [0, 3072], sizes = [3, 256], strides = [1, 1]} : vector<3x8192xf32> to vector<3x256xf32>
    %152 = vector.broadcast %150 : vector<1x256xf32> to vector<3x256xf32>
    %153 = arith.mulf %152, %151 : vector<3x256xf32>
    %154 = arith.addf %145, %153 : vector<3x256xf32>
    %155 = arith.addf %146, %150 : vector<1x256xf32>
    %156 = vector.extract_strided_slice %35 {offsets = [0, 3072], sizes = [1, 256], strides = [1, 1]} : vector<1x8192xf32> to vector<1x256xf32>
    %157 = arith.mulf %148, %156 : vector<1x256xf32>
    %158 = vector.extract_strided_slice %37 {offsets = [0, 3328], sizes = [1, 256], strides = [1, 1]} : vector<1x8192xf32> to vector<1x256xf32>
    %159 = arith.mulf %157, %158 : vector<1x256xf32>
    %160 = vector.extract_strided_slice %27 {offsets = [0, 3328], sizes = [3, 256], strides = [1, 1]} : vector<3x8192xf32> to vector<3x256xf32>
    %161 = vector.broadcast %159 : vector<1x256xf32> to vector<3x256xf32>
    %162 = arith.mulf %161, %160 : vector<3x256xf32>
    %163 = arith.addf %154, %162 : vector<3x256xf32>
    %164 = arith.addf %155, %159 : vector<1x256xf32>
    %165 = vector.extract_strided_slice %35 {offsets = [0, 3328], sizes = [1, 256], strides = [1, 1]} : vector<1x8192xf32> to vector<1x256xf32>
    %166 = arith.mulf %157, %165 : vector<1x256xf32>
    %167 = vector.extract_strided_slice %37 {offsets = [0, 3584], sizes = [1, 256], strides = [1, 1]} : vector<1x8192xf32> to vector<1x256xf32>
    %168 = arith.mulf %166, %167 : vector<1x256xf32>
    %169 = vector.extract_strided_slice %27 {offsets = [0, 3584], sizes = [3, 256], strides = [1, 1]} : vector<3x8192xf32> to vector<3x256xf32>
    %170 = vector.broadcast %168 : vector<1x256xf32> to vector<3x256xf32>
    %171 = arith.mulf %170, %169 : vector<3x256xf32>
    %172 = arith.addf %163, %171 : vector<3x256xf32>
    %173 = arith.addf %164, %168 : vector<1x256xf32>
    %174 = vector.extract_strided_slice %35 {offsets = [0, 3584], sizes = [1, 256], strides = [1, 1]} : vector<1x8192xf32> to vector<1x256xf32>
    %175 = arith.mulf %166, %174 : vector<1x256xf32>
    %176 = vector.extract_strided_slice %37 {offsets = [0, 3840], sizes = [1, 256], strides = [1, 1]} : vector<1x8192xf32> to vector<1x256xf32>
    %177 = arith.mulf %175, %176 : vector<1x256xf32>
    %178 = vector.extract_strided_slice %27 {offsets = [0, 3840], sizes = [3, 256], strides = [1, 1]} : vector<3x8192xf32> to vector<3x256xf32>
    %179 = vector.broadcast %177 : vector<1x256xf32> to vector<3x256xf32>
    %180 = arith.mulf %179, %178 : vector<3x256xf32>
    %181 = arith.addf %172, %180 : vector<3x256xf32>
    %182 = arith.addf %173, %177 : vector<1x256xf32>
    %183 = vector.extract_strided_slice %35 {offsets = [0, 3840], sizes = [1, 256], strides = [1, 1]} : vector<1x8192xf32> to vector<1x256xf32>
    %184 = arith.mulf %175, %183 : vector<1x256xf32>
    %185 = vector.extract_strided_slice %37 {offsets = [0, 4096], sizes = [1, 256], strides = [1, 1]} : vector<1x8192xf32> to vector<1x256xf32>
    %186 = arith.mulf %184, %185 : vector<1x256xf32>
    %187 = vector.extract_strided_slice %27 {offsets = [0, 4096], sizes = [3, 256], strides = [1, 1]} : vector<3x8192xf32> to vector<3x256xf32>
    %188 = vector.broadcast %186 : vector<1x256xf32> to vector<3x256xf32>
    %189 = arith.mulf %188, %187 : vector<3x256xf32>
    %190 = arith.addf %181, %189 : vector<3x256xf32>
    %191 = arith.addf %182, %186 : vector<1x256xf32>
    %192 = vector.extract_strided_slice %35 {offsets = [0, 4096], sizes = [1, 256], strides = [1, 1]} : vector<1x8192xf32> to vector<1x256xf32>
    %193 = arith.mulf %184, %192 : vector<1x256xf32>
    %194 = vector.extract_strided_slice %37 {offsets = [0, 4352], sizes = [1, 256], strides = [1, 1]} : vector<1x8192xf32> to vector<1x256xf32>
    %195 = arith.mulf %193, %194 : vector<1x256xf32>
    %196 = vector.extract_strided_slice %27 {offsets = [0, 4352], sizes = [3, 256], strides = [1, 1]} : vector<3x8192xf32> to vector<3x256xf32>
    %197 = vector.broadcast %195 : vector<1x256xf32> to vector<3x256xf32>
    %198 = arith.mulf %197, %196 : vector<3x256xf32>
    %199 = arith.addf %190, %198 : vector<3x256xf32>
    %200 = arith.addf %191, %195 : vector<1x256xf32>
    %201 = vector.extract_strided_slice %35 {offsets = [0, 4352], sizes = [1, 256], strides = [1, 1]} : vector<1x8192xf32> to vector<1x256xf32>
    %202 = arith.mulf %193, %201 : vector<1x256xf32>
    %203 = vector.extract_strided_slice %37 {offsets = [0, 4608], sizes = [1, 256], strides = [1, 1]} : vector<1x8192xf32> to vector<1x256xf32>
    %204 = arith.mulf %202, %203 : vector<1x256xf32>
    %205 = vector.extract_strided_slice %27 {offsets = [0, 4608], sizes = [3, 256], strides = [1, 1]} : vector<3x8192xf32> to vector<3x256xf32>
    %206 = vector.broadcast %204 : vector<1x256xf32> to vector<3x256xf32>
    %207 = arith.mulf %206, %205 : vector<3x256xf32>
    %208 = arith.addf %199, %207 : vector<3x256xf32>
    %209 = arith.addf %200, %204 : vector<1x256xf32>
    %210 = vector.extract_strided_slice %35 {offsets = [0, 4608], sizes = [1, 256], strides = [1, 1]} : vector<1x8192xf32> to vector<1x256xf32>
    %211 = arith.mulf %202, %210 : vector<1x256xf32>
    %212 = vector.extract_strided_slice %37 {offsets = [0, 4864], sizes = [1, 256], strides = [1, 1]} : vector<1x8192xf32> to vector<1x256xf32>
    %213 = arith.mulf %211, %212 : vector<1x256xf32>
    %214 = vector.extract_strided_slice %27 {offsets = [0, 4864], sizes = [3, 256], strides = [1, 1]} : vector<3x8192xf32> to vector<3x256xf32>
    %215 = vector.broadcast %213 : vector<1x256xf32> to vector<3x256xf32>
    %216 = arith.mulf %215, %214 : vector<3x256xf32>
    %217 = arith.addf %208, %216 : vector<3x256xf32>
    %218 = arith.addf %209, %213 : vector<1x256xf32>
    %219 = vector.extract_strided_slice %35 {offsets = [0, 4864], sizes = [1, 256], strides = [1, 1]} : vector<1x8192xf32> to vector<1x256xf32>
    %220 = arith.mulf %211, %219 : vector<1x256xf32>
    %221 = vector.extract_strided_slice %37 {offsets = [0, 5120], sizes = [1, 256], strides = [1, 1]} : vector<1x8192xf32> to vector<1x256xf32>
    %222 = arith.mulf %220, %221 : vector<1x256xf32>
    %223 = vector.extract_strided_slice %27 {offsets = [0, 5120], sizes = [3, 256], strides = [1, 1]} : vector<3x8192xf32> to vector<3x256xf32>
    %224 = vector.broadcast %222 : vector<1x256xf32> to vector<3x256xf32>
    %225 = arith.mulf %224, %223 : vector<3x256xf32>
    %226 = arith.addf %217, %225 : vector<3x256xf32>
    %227 = arith.addf %218, %222 : vector<1x256xf32>
    %228 = vector.extract_strided_slice %35 {offsets = [0, 5120], sizes = [1, 256], strides = [1, 1]} : vector<1x8192xf32> to vector<1x256xf32>
    %229 = arith.mulf %220, %228 : vector<1x256xf32>
    %230 = vector.extract_strided_slice %37 {offsets = [0, 5376], sizes = [1, 256], strides = [1, 1]} : vector<1x8192xf32> to vector<1x256xf32>
    %231 = arith.mulf %229, %230 : vector<1x256xf32>
    %232 = vector.extract_strided_slice %27 {offsets = [0, 5376], sizes = [3, 256], strides = [1, 1]} : vector<3x8192xf32> to vector<3x256xf32>
    %233 = vector.broadcast %231 : vector<1x256xf32> to vector<3x256xf32>
    %234 = arith.mulf %233, %232 : vector<3x256xf32>
    %235 = arith.addf %226, %234 : vector<3x256xf32>
    %236 = arith.addf %227, %231 : vector<1x256xf32>
    %237 = vector.extract_strided_slice %35 {offsets = [0, 5376], sizes = [1, 256], strides = [1, 1]} : vector<1x8192xf32> to vector<1x256xf32>
    %238 = arith.mulf %229, %237 : vector<1x256xf32>
    %239 = vector.extract_strided_slice %37 {offsets = [0, 5632], sizes = [1, 256], strides = [1, 1]} : vector<1x8192xf32> to vector<1x256xf32>
    %240 = arith.mulf %238, %239 : vector<1x256xf32>
    %241 = vector.extract_strided_slice %27 {offsets = [0, 5632], sizes = [3, 256], strides = [1, 1]} : vector<3x8192xf32> to vector<3x256xf32>
    %242 = vector.broadcast %240 : vector<1x256xf32> to vector<3x256xf32>
    %243 = arith.mulf %242, %241 : vector<3x256xf32>
    %244 = arith.addf %235, %243 : vector<3x256xf32>
    %245 = arith.addf %236, %240 : vector<1x256xf32>
    %246 = vector.extract_strided_slice %35 {offsets = [0, 5632], sizes = [1, 256], strides = [1, 1]} : vector<1x8192xf32> to vector<1x256xf32>
    %247 = arith.mulf %238, %246 : vector<1x256xf32>
    %248 = vector.extract_strided_slice %37 {offsets = [0, 5888], sizes = [1, 256], strides = [1, 1]} : vector<1x8192xf32> to vector<1x256xf32>
    %249 = arith.mulf %247, %248 : vector<1x256xf32>
    %250 = vector.extract_strided_slice %27 {offsets = [0, 5888], sizes = [3, 256], strides = [1, 1]} : vector<3x8192xf32> to vector<3x256xf32>
    %251 = vector.broadcast %249 : vector<1x256xf32> to vector<3x256xf32>
    %252 = arith.mulf %251, %250 : vector<3x256xf32>
    %253 = arith.addf %244, %252 : vector<3x256xf32>
    %254 = arith.addf %245, %249 : vector<1x256xf32>
    %255 = vector.extract_strided_slice %35 {offsets = [0, 5888], sizes = [1, 256], strides = [1, 1]} : vector<1x8192xf32> to vector<1x256xf32>
    %256 = arith.mulf %247, %255 : vector<1x256xf32>
    %257 = vector.extract_strided_slice %37 {offsets = [0, 6144], sizes = [1, 256], strides = [1, 1]} : vector<1x8192xf32> to vector<1x256xf32>
    %258 = arith.mulf %256, %257 : vector<1x256xf32>
    %259 = vector.extract_strided_slice %27 {offsets = [0, 6144], sizes = [3, 256], strides = [1, 1]} : vector<3x8192xf32> to vector<3x256xf32>
    %260 = vector.broadcast %258 : vector<1x256xf32> to vector<3x256xf32>
    %261 = arith.mulf %260, %259 : vector<3x256xf32>
    %262 = arith.addf %253, %261 : vector<3x256xf32>
    %263 = arith.addf %254, %258 : vector<1x256xf32>
    %264 = vector.extract_strided_slice %35 {offsets = [0, 6144], sizes = [1, 256], strides = [1, 1]} : vector<1x8192xf32> to vector<1x256xf32>
    %265 = arith.mulf %256, %264 : vector<1x256xf32>
    %266 = vector.extract_strided_slice %37 {offsets = [0, 6400], sizes = [1, 256], strides = [1, 1]} : vector<1x8192xf32> to vector<1x256xf32>
    %267 = arith.mulf %265, %266 : vector<1x256xf32>
    %268 = vector.extract_strided_slice %27 {offsets = [0, 6400], sizes = [3, 256], strides = [1, 1]} : vector<3x8192xf32> to vector<3x256xf32>
    %269 = vector.broadcast %267 : vector<1x256xf32> to vector<3x256xf32>
    %270 = arith.mulf %269, %268 : vector<3x256xf32>
    %271 = arith.addf %262, %270 : vector<3x256xf32>
    %272 = arith.addf %263, %267 : vector<1x256xf32>
    %273 = vector.extract_strided_slice %35 {offsets = [0, 6400], sizes = [1, 256], strides = [1, 1]} : vector<1x8192xf32> to vector<1x256xf32>
    %274 = arith.mulf %265, %273 : vector<1x256xf32>
    %275 = vector.extract_strided_slice %37 {offsets = [0, 6656], sizes = [1, 256], strides = [1, 1]} : vector<1x8192xf32> to vector<1x256xf32>
    %276 = arith.mulf %274, %275 : vector<1x256xf32>
    %277 = vector.extract_strided_slice %27 {offsets = [0, 6656], sizes = [3, 256], strides = [1, 1]} : vector<3x8192xf32> to vector<3x256xf32>
    %278 = vector.broadcast %276 : vector<1x256xf32> to vector<3x256xf32>
    %279 = arith.mulf %278, %277 : vector<3x256xf32>
    %280 = arith.addf %271, %279 : vector<3x256xf32>
    %281 = arith.addf %272, %276 : vector<1x256xf32>
    %282 = vector.extract_strided_slice %35 {offsets = [0, 6656], sizes = [1, 256], strides = [1, 1]} : vector<1x8192xf32> to vector<1x256xf32>
    %283 = arith.mulf %274, %282 : vector<1x256xf32>
    %284 = vector.extract_strided_slice %37 {offsets = [0, 6912], sizes = [1, 256], strides = [1, 1]} : vector<1x8192xf32> to vector<1x256xf32>
    %285 = arith.mulf %283, %284 : vector<1x256xf32>
    %286 = vector.extract_strided_slice %27 {offsets = [0, 6912], sizes = [3, 256], strides = [1, 1]} : vector<3x8192xf32> to vector<3x256xf32>
    %287 = vector.broadcast %285 : vector<1x256xf32> to vector<3x256xf32>
    %288 = arith.mulf %287, %286 : vector<3x256xf32>
    %289 = arith.addf %280, %288 : vector<3x256xf32>
    %290 = arith.addf %281, %285 : vector<1x256xf32>
    %291 = vector.extract_strided_slice %35 {offsets = [0, 6912], sizes = [1, 256], strides = [1, 1]} : vector<1x8192xf32> to vector<1x256xf32>
    %292 = arith.mulf %283, %291 : vector<1x256xf32>
    %293 = vector.extract_strided_slice %37 {offsets = [0, 7168], sizes = [1, 256], strides = [1, 1]} : vector<1x8192xf32> to vector<1x256xf32>
    %294 = arith.mulf %292, %293 : vector<1x256xf32>
    %295 = vector.extract_strided_slice %27 {offsets = [0, 7168], sizes = [3, 256], strides = [1, 1]} : vector<3x8192xf32> to vector<3x256xf32>
    %296 = vector.broadcast %294 : vector<1x256xf32> to vector<3x256xf32>
    %297 = arith.mulf %296, %295 : vector<3x256xf32>
    %298 = arith.addf %289, %297 : vector<3x256xf32>
    %299 = arith.addf %290, %294 : vector<1x256xf32>
    %300 = vector.extract_strided_slice %35 {offsets = [0, 7168], sizes = [1, 256], strides = [1, 1]} : vector<1x8192xf32> to vector<1x256xf32>
    %301 = arith.mulf %292, %300 : vector<1x256xf32>
    %302 = vector.extract_strided_slice %37 {offsets = [0, 7424], sizes = [1, 256], strides = [1, 1]} : vector<1x8192xf32> to vector<1x256xf32>
    %303 = arith.mulf %301, %302 : vector<1x256xf32>
    %304 = vector.extract_strided_slice %27 {offsets = [0, 7424], sizes = [3, 256], strides = [1, 1]} : vector<3x8192xf32> to vector<3x256xf32>
    %305 = vector.broadcast %303 : vector<1x256xf32> to vector<3x256xf32>
    %306 = arith.mulf %305, %304 : vector<3x256xf32>
    %307 = arith.addf %298, %306 : vector<3x256xf32>
    %308 = arith.addf %299, %303 : vector<1x256xf32>
    %309 = vector.extract_strided_slice %35 {offsets = [0, 7424], sizes = [1, 256], strides = [1, 1]} : vector<1x8192xf32> to vector<1x256xf32>
    %310 = arith.mulf %301, %309 : vector<1x256xf32>
    %311 = vector.extract_strided_slice %37 {offsets = [0, 7680], sizes = [1, 256], strides = [1, 1]} : vector<1x8192xf32> to vector<1x256xf32>
    %312 = arith.mulf %310, %311 : vector<1x256xf32>
    %313 = vector.extract_strided_slice %27 {offsets = [0, 7680], sizes = [3, 256], strides = [1, 1]} : vector<3x8192xf32> to vector<3x256xf32>
    %314 = vector.broadcast %312 : vector<1x256xf32> to vector<3x256xf32>
    %315 = arith.mulf %314, %313 : vector<3x256xf32>
    %316 = arith.addf %307, %315 : vector<3x256xf32>
    %317 = arith.addf %308, %312 : vector<1x256xf32>
    %318 = vector.extract_strided_slice %35 {offsets = [0, 7680], sizes = [1, 256], strides = [1, 1]} : vector<1x8192xf32> to vector<1x256xf32>
    %319 = arith.mulf %310, %318 : vector<1x256xf32>
    %320 = vector.extract_strided_slice %37 {offsets = [0, 7936], sizes = [1, 256], strides = [1, 1]} : vector<1x8192xf32> to vector<1x256xf32>
    %321 = arith.mulf %319, %320 : vector<1x256xf32>
    %322 = vector.extract_strided_slice %27 {offsets = [0, 7936], sizes = [3, 256], strides = [1, 1]} : vector<3x8192xf32> to vector<3x256xf32>
    %323 = vector.broadcast %321 : vector<1x256xf32> to vector<3x256xf32>
    %324 = arith.mulf %323, %322 : vector<3x256xf32>
    %325 = arith.addf %316, %324 : vector<3x256xf32>
    %326 = arith.addf %317, %321 : vector<1x256xf32>
    %c0_26 = arith.constant 0 : index
    %c0_27 = arith.constant 0 : index
    %327 = vector.load %arg3[%c0_26, %c0_27] : memref<3x256xf32, #tpu.memory_space<vmem>>, vector<3x256xf32>
    %328 = arith.subf %325, %327 : vector<3x256xf32>
    %329 = arith.mulf %328, %328 : vector<3x256xf32>
    %cst_28 = arith.constant dense<0.000000e+00> : vector<256xf32>
    %330 = vector.multi_reduction <add>, %329, %cst_28 [0] : vector<3x256xf32> to vector<256xf32>
    %331 = vector.shape_cast %330 : vector<256xf32> to vector<1x256xf32>
    %cst_29 = arith.constant 0.000000e+00 : f32
    %332 = vector.broadcast %cst_29 : f32 to vector<3x256xf32>
    %333 = tpu.concatenate %325, %326, %331, %332 in 0 : vector<3x256xf32>, vector<1x256xf32>, vector<1x256xf32>, vector<3x256xf32> -> vector<8x256xf32>
    %c0_30 = arith.constant 0 : index
    %c0_31 = arith.constant 0 : index
    %334 = vector.load %arg10[%c0_30, %c0_31] : memref<8x256xf32, #tpu.memory_space<vmem>>, vector<8x256xf32>
    tpu.vector_store %arg10[%c0_30, %c0_31], %333 {strides = array<i32>} : memref<8x256xf32, #tpu.memory_space<vmem>>, vector<8x256xf32>,
    return
  }
  func.func @transform_0(%arg0: i32) -> (i32, i32) {
    %c0_i32 = arith.constant 0 : i32
    %c0_i32_0 = arith.constant 0 : i32
    return %c0_i32, %arg0 : i32, i32
  }
  func.func @transform_1(%arg0: i32) -> (i32, i32) {
    %c0_i32 = arith.constant 0 : i32
    %c0_i32_0 = arith.constant 0 : i32
    return %c0_i32, %arg0 : i32, i32
  }
  func.func @transform_2(%arg0: i32) -> (i32, i32) {
    %c0_i32 = arith.constant 0 : i32
    %c0_i32_0 = arith.constant 0 : i32
    return %c0_i32, %arg0 : i32, i32
  }
  func.func @transform_3(%arg0: i32) -> (i32, i32) {
    %c0_i32 = arith.constant 0 : i32
    %c0_i32_0 = arith.constant 0 : i32
    %c0_i32_1 = arith.constant 0 : i32
    return %c0_i32, %c0_i32_0 : i32, i32
  }
  func.func @transform_4(%arg0: i32) -> (i32, i32) {
    %c0_i32 = arith.constant 0 : i32
    %c0_i32_0 = arith.constant 0 : i32
    %c0_i32_1 = arith.constant 0 : i32
    return %c0_i32, %c0_i32_0 : i32, i32
  }
  func.func @transform_5(%arg0: i32) -> (i32, i32) {
    %c0_i32 = arith.constant 0 : i32
    %c0_i32_0 = arith.constant 0 : i32
    %c0_i32_1 = arith.constant 0 : i32
    return %c0_i32, %c0_i32_0 : i32, i32
  }
  func.func @transform_6(%arg0: i32) -> (i32, i32) {
    %c0_i32 = arith.constant 0 : i32
    %c0_i32_0 = arith.constant 0 : i32
    %c0_i32_1 = arith.constant 0 : i32
    return %c0_i32, %c0_i32_0 : i32, i32
  }
  func.func @transform_7(%arg0: i32) -> (i32, i32) {
    %c0_i32 = arith.constant 0 : i32
    %c0_i32_0 = arith.constant 0 : i32
    %c0_i32_1 = arith.constant 0 : i32
    return %c0_i32, %c0_i32_0 : i32, i32
  }
  func.func @transform_8(%arg0: i32) -> (i32, i32) {
    %c0_i32 = arith.constant 0 : i32
    %c0_i32_0 = arith.constant 0 : i32
    %c0_i32_1 = arith.constant 0 : i32
    return %c0_i32, %c0_i32_0 : i32, i32
  }
  func.func @transform_9(%arg0: i32) -> (i32, i32) {
    %c0_i32 = arith.constant 0 : i32
    %c0_i32_0 = arith.constant 0 : i32
    return %c0_i32, %arg0 : i32, i32
  }
}

</mosaic_0001>

<bundles_post_ra>
// kernel: vanilla_pipeline_train_step.1
= control target key start
LH: loop header
LB: loop body
LE: loop exit
PB: predicated region body
PF: predicated region fallthrough
CT: control target
= control target key end

     0   :  { %s11940_s30 = smov 0   ;;  %s11942_s10 = smov 0   ;;  %s16966_s0 = inlined_call_operand.vmem [shape: bf16[32,32768], index: 0, kind: input, shape index: {}]   ;;  %s16967_s1 = inlined_call_operand.vmem [shape: f32[1,32768], index: 1, kind: input, shape index: {}]   ;;  %s16968_s2 = inlined_call_operand.vmem [shape: f32[3,1024], index: 2, kind: input, shape index: {}]   ;;  %s16969_s3 = inlined_call_operand.vmem [shape: bf16[64,32], index: 3, kind: input, shape index: {}]   ;;  %s16970_s4 = inlined_call_operand.vmem [shape: f32[64,1], index: 4, kind: input, shape index: {}]   ;;  %s16971_s5 = inlined_call_operand.vmem [shape: bf16[64,64], index: 5, kind: input, shape index: {}]   ;;  %s16972_s6 = inlined_call_operand.vmem [shape: f32[64,1], index: 6, kind: input, shape index: {}]   ;;  %s16973_s7 = inlined_call_operand.vmem [shape: bf16[8,64], index: 7, kind: input, shape index: {}]   ;;  %s16974_s8 = inlined_call_operand.vmem [shape: f32[8,1], index: 8, kind: input, shape index: {}]   ;;  %s16975_s9 = inlined_call_operand.vmem [shape: f32[8,1024], index: 9, kind: output, shape index: {}]  }
   0x1   :  { %s11944_s11 = smov 0  }
   0x2 LB: > { %s10917_s12 = sadd.s32 4294967295, %s11887_s11   ;;  %s11957_s13 = sadd.s32 1, %s11887_s11   ;;  %s11887_s11 = sphi %s11944_s11, %s17663_s11   ;;  %s11883_s10 = sphi %s11942_s10, %s17662_s10   ;;  %s11879_s30 = sphi %s11940_s30, %s17661_s30  }
   0x3   : > { %s23_s14 = ssub.s32 %s11887_s11, %s11957_s13  ;;  %s26_s15 = sadd.s32 1, %s11883_s10 }
   0x4   : > { %p24_p0 = scmp.eq.s32.totalorder %s23_s14, 0  ;;  %p33_p1 = scmp.ne.s32.totalorder %s11883_s10, %s11879_s30 }
   0x5   : > { %p34_p2 = scmp.eq.s32.totalorder %s11887_s11, 0  ;;  %p10920_p4 = scmp.ge.s32.totalorder %s11887_s11, 4 }
   0x6   : > { %s11966_s16 = scalar_select %p24_p0, %s11883_s10, %s26_s15  }
   0x7   : > { %p35_p3 = por %p34_p2, %p33_p1  ;;  %281 = sbr.rel (%p10920_p4) target bundleno = 82 (0x52), region = 40 }
   0xe   : > { %284 = sbr.rel (!%p35_p3) target bundleno = 82 (0x52), region = 44  ;;  %s286_s17 = sand.u32 (%p35_p3), 1, %s11883_s10  }
   0xf   : > { %s11421_s18 = sshll.u32 (%p35_p3), %s11887_s11, 8  ;;  %s10921_s19 = sshll.u32 (%p35_p3), %s286_s17, 10 }
  0x10   : > { %s11974_s22 = scalar_lea.vmem (%p35_p3), %s16966_s0, %s11421_s18  ;;  %s11979_s23 = scalar_lea.vmem (%p35_p3), [#allocation2], %s10921_s19 }
  0x11   : > { %v304_v0 = vld [vmem:[%s11974_s22] sm:$0xff] (%p35_p3)  ;;  %v306_v1 = vld [vmem:[%s11974_s22 + $0x8] sm:$0xff] (%p35_p3)  ;;  %v308_v2 = vld [vmem:[%s11974_s22 + $0x10] sm:$0xff] (%p35_p3) }
  0x12   : > { %305 = vst [vmem:[%s11979_s23] sm:$0xff] (%p35_p3), %v304_v0  ;;  %307 = vst [vmem:[%s11979_s23 + $0x8] sm:$0xff] (%p35_p3), %v306_v1  ;;  %v310_v3 = vld [vmem:[%s11974_s22 + $0x18] sm:$0xff] (%p35_p3)  ;;  %v312_v4 = vld [vmem:[%s11974_s22 + $0x20] sm:$0xff] (%p35_p3) }
  0x13   : > { %309 = vst [vmem:[%s11979_s23 + $0x10] sm:$0xff] (%p35_p3), %v308_v2  ;;  %v314_v5 = vld [vmem:[%s11974_s22 + $0x28] sm:$0xff] (%p35_p3)  ;;  %311 = vst [vmem:[%s11979_s23 + $0x18] sm:$0xff] (%p35_p3), %v310_v3  ;;  %v316_v6 = vld [vmem:[%s11974_s22 + $0x30] sm:$0xff] (%p35_p3) }
  0x14   : > { %313 = vst [vmem:[%s11979_s23 + $0x20] sm:$0xff] (%p35_p3), %v312_v4  ;;  %315 = vst [vmem:[%s11979_s23 + $0x28] sm:$0xff] (%p35_p3), %v314_v5  ;;  %v318_v7 = vld [vmem:[%s11974_s22 + $0x38] sm:$0xff] (%p35_p3)  ;;  %v320_v8 = vld [vmem:[%s11974_s22 + $0x40] sm:$0xff] (%p35_p3) }
  0x15   : > { %317 = vst [vmem:[%s11979_s23 + $0x30] sm:$0xff] %v316_v6  ;;  %319 = vst [vmem:[%s11979_s23 + $0x38] sm:$0xff] %v318_v7  ;;  %v322_v9 = vld [vmem:[%s11974_s22 + $0x48] sm:$0xff]  ;;  %v324_v10 = vld [vmem:[%s11974_s22 + $0x50] sm:$0xff] }
  0x16   : > { %321 = vst [vmem:[%s11979_s23 + $0x40] sm:$0xff] %v320_v8  ;;  %v326_v11 = vld [vmem:[%s11974_s22 + $0x58] sm:$0xff]  ;;  %323 = vst [vmem:[%s11979_s23 + $0x48] sm:$0xff] %v322_v9  ;;  %v328_v12 = vld [vmem:[%s11974_s22 + $0x60] sm:$0xff] }
  0x17   : > { %325 = vst [vmem:[%s11979_s23 + $0x50] sm:$0xff] %v324_v10  ;;  %327 = vst [vmem:[%s11979_s23 + $0x58] sm:$0xff] %v326_v11  ;;  %v330_v13 = vld [vmem:[%s11974_s22 + $0x68] sm:$0xff]  ;;  %v332_v14 = vld [vmem:[%s11974_s22 + $0x70] sm:$0xff] }
  0x18   : > { %329 = vst [vmem:[%s11979_s23 + $0x60] sm:$0xff] %v328_v12  ;;  %331 = vst [vmem:[%s11979_s23 + $0x68] sm:$0xff] %v330_v13  ;;  %v334_v15 = vld [vmem:[%s11974_s22 + $0x78] sm:$0xff]  ;;  %v336_v16 = vld [vmem:[%s11974_s22 + $0x80] sm:$0xff] }
  0x19   : > { %333 = vst [vmem:[%s11979_s23 + $0x70] sm:$0xff] %v332_v14  ;;  %v338_v17 = vld [vmem:[%s11974_s22 + $0x88] sm:$0xff]  ;;  %335 = vst [vmem:[%s11979_s23 + $0x78] sm:$0xff] %v334_v15  ;;  %v340_v18 = vld [vmem:[%s11974_s22 + $0x90] sm:$0xff] }
  0x1a   : > { %337 = vst [vmem:[%s11979_s23 + $0x80] sm:$0xff] %v336_v16  ;;  %339 = vst [vmem:[%s11979_s23 + $0x88] sm:$0xff] %v338_v17  ;;  %v342_v19 = vld [vmem:[%s11974_s22 + $0x98] sm:$0xff]  ;;  %v344_v20 = vld [vmem:[%s11974_s22 + $0xa0] sm:$0xff] }
  0x1b   : > { %341 = vst [vmem:[%s11979_s23 + $0x90] sm:$0xff] %v340_v18  ;;  %343 = vst [vmem:[%s11979_s23 + $0x98] sm:$0xff] %v342_v19  ;;  %v346_v21 = vld [vmem:[%s11974_s22 + $0xa8] sm:$0xff]  ;;  %v348_v22 = vld [vmem:[%s11974_s22 + $0xb0] sm:$0xff] }
  0x1c   : > { %345 = vst [vmem:[%s11979_s23 + $0xa0] sm:$0xff] %v344_v20  ;;  %v350_v23 = vld [vmem:[%s11974_s22 + $0xb8] sm:$0xff]  ;;  %347 = vst [vmem:[%s11979_s23 + $0xa8] sm:$0xff] %v346_v21  ;;  %v352_v24 = vld [vmem:[%s11974_s22 + $0xc0] sm:$0xff] }
  0x1d   : > { %349 = vst [vmem:[%s11979_s23 + $0xb0] sm:$0xff] %v348_v22  ;;  %351 = vst [vmem:[%s11979_s23 + $0xb8] sm:$0xff] %v350_v23  ;;  %v354_v25 = vld [vmem:[%s11974_s22 + $0xc8] sm:$0xff]  ;;  %v356_v26 = vld [vmem:[%s11974_s22 + $0xd0] sm:$0xff] }
  0x1e   : > { %353 = vst [vmem:[%s11979_s23 + $0xc0] sm:$0xff] %v352_v24  ;;  %355 = vst [vmem:[%s11979_s23 + $0xc8] sm:$0xff] %v354_v25  ;;  %v358_v27 = vld [vmem:[%s11974_s22 + $0xd8] sm:$0xff]  ;;  %v360_v28 = vld [vmem:[%s11974_s22 + $0xe0] sm:$0xff] }
  0x1f   : > { %357 = vst [vmem:[%s11979_s23 + $0xd0] sm:$0xff] %v356_v26  ;;  %v362_v29 = vld [vmem:[%s11974_s22 + $0xe8] sm:$0xff]  ;;  %359 = vst [vmem:[%s11979_s23 + $0xd8] sm:$0xff] %v358_v27  ;;  %v364_v30 = vld [vmem:[%s11974_s22 + $0xf0] sm:$0xff] }
  0x20   : > { %361 = vst [vmem:[%s11979_s23 + $0xe0] sm:$0xff] %v360_v28  ;;  %363 = vst [vmem:[%s11979_s23 + $0xe8] sm:$0xff] %v362_v29  ;;  %v366_v31 = vld [vmem:[%s11974_s22 + $0xf8] sm:$0xff]  ;;  %v368_v32 = vld [vmem:[%s11974_s22 + $0x400] sm:$0xff] }
  0x21   : > { %365 = vst [vmem:[%s11979_s23 + $0xf0] sm:$0xff] %v364_v30  ;;  %367 = vst [vmem:[%s11979_s23 + $0xf8] sm:$0xff] %v366_v31  ;;  %v370_v33 = vld [vmem:[%s11974_s22 + $0x408] sm:$0xff]  ;;  %v372_v34 = vld [vmem:[%s11974_s22 + $0x410] sm:$0xff] }
  0x22   : > { %369 = vst [vmem:[%s11979_s23 + $0x100] sm:$0xff] %v368_v32  ;;  %v374_v35 = vld [vmem:[%s11974_s22 + $0x418] sm:$0xff]  ;;  %371 = vst [vmem:[%s11979_s23 + $0x108] sm:$0xff] %v370_v33  ;;  %v376_v36 = vld [vmem:[%s11974_s22 + $0x420] sm:$0xff] }
  0x23   : > { %373 = vst [vmem:[%s11979_s23 + $0x110] sm:$0xff] %v372_v34  ;;  %375 = vst [vmem:[%s11979_s23 + $0x118] sm:$0xff] %v374_v35  ;;  %v378_v37 = vld [vmem:[%s11974_s22 + $0x428] sm:$0xff]  ;;  %v380_v38 = vld [vmem:[%s11974_s22 + $0x430] sm:$0xff] }
  0x24   : > { %377 = vst [vmem:[%s11979_s23 + $0x120] sm:$0xff] %v376_v36  ;;  %379 = vst [vmem:[%s11979_s23 + $0x128] sm:$0xff] %v378_v37  ;;  %v382_v39 = vld [vmem:[%s11974_s22 + $0x438] sm:$0xff]  ;;  %v384_v40 = vld [vmem:[%s11974_s22 + $0x440] sm:$0xff] }
  0x25   : > { %381 = vst [vmem:[%s11979_s23 + $0x130] sm:$0xff] %v380_v38  ;;  %v386_v41 = vld [vmem:[%s11974_s22 + $0x448] sm:$0xff]  ;;  %383 = vst [vmem:[%s11979_s23 + $0x138] sm:$0xff] %v382_v39  ;;  %v388_v42 = vld [vmem:[%s11974_s22 + $0x450] sm:$0xff] }
  0x26   : > { %385 = vst [vmem:[%s11979_s23 + $0x140] sm:$0xff] %v384_v40  ;;  %387 = vst [vmem:[%s11979_s23 + $0x148] sm:$0xff] %v386_v41  ;;  %v390_v43 = vld [vmem:[%s11974_s22 + $0x458] sm:$0xff]  ;;  %v392_v44 = vld [vmem:[%s11974_s22 + $0x460] sm:$0xff] }
  0x27   : > { %389 = vst [vmem:[%s11979_s23 + $0x150] sm:$0xff] %v388_v42  ;;  %391 = vst [vmem:[%s11979_s23 + $0x158] sm:$0xff] %v390_v43  ;;  %v394_v45 = vld [vmem:[%s11974_s22 + $0x468] sm:$0xff]  ;;  %v396_v46 = vld [vmem:[%s11974_s22 + $0x470] sm:$0xff] }
  0x28   : > { %393 = vst [vmem:[%s11979_s23 + $0x160] sm:$0xff] %v392_v44  ;;  %v398_v47 = vld [vmem:[%s11974_s22 + $0x478] sm:$0xff]  ;;  %395 = vst [vmem:[%s11979_s23 + $0x168] sm:$0xff] %v394_v45  ;;  %v400_v48 = vld [vmem:[%s11974_s22 + $0x480] sm:$0xff] }
  0x29   : > { %397 = vst [vmem:[%s11979_s23 + $0x170] sm:$0xff] %v396_v46  ;;  %399 = vst [vmem:[%s11979_s23 + $0x178] sm:$0xff] %v398_v47  ;;  %v402_v49 = vld [vmem:[%s11974_s22 + $0x488] sm:$0xff]  ;;  %v404_v50 = vld [vmem:[%s11974_s22 + $0x490] sm:$0xff] }
  0x2a   : > { %401 = vst [vmem:[%s11979_s23 + $0x180] sm:$0xff] %v400_v48  ;;  %403 = vst [vmem:[%s11979_s23 + $0x188] sm:$0xff] %v402_v49  ;;  %v406_v51 = vld [vmem:[%s11974_s22 + $0x498] sm:$0xff]  ;;  %v408_v52 = vld [vmem:[%s11974_s22 + $0x4a0] sm:$0xff] }
  0x2b   : > { %405 = vst [vmem:[%s11979_s23 + $0x190] sm:$0xff] %v404_v50  ;;  %v410_v53 = vld [vmem:[%s11974_s22 + $0x4a8] sm:$0xff]  ;;  %407 = vst [vmem:[%s11979_s23 + $0x198] sm:$0xff] %v406_v51  ;;  %v412_v54 = vld [vmem:[%s11974_s22 + $0x4b0] sm:$0xff] }
  0x2c   : > { %409 = vst [vmem:[%s11979_s23 + $0x1a0] sm:$0xff] %v408_v52  ;;  %411 = vst [vmem:[%s11979_s23 + $0x1a8] sm:$0xff] %v410_v53  ;;  %v414_v55 = vld [vmem:[%s11974_s22 + $0x4b8] sm:$0xff]  ;;  %v416_v56 = vld [vmem:[%s11974_s22 + $0x4c0] sm:$0xff] }
  0x2d   : > { %413 = vst [vmem:[%s11979_s23 + $0x1b0] sm:$0xff] %v412_v54  ;;  %415 = vst [vmem:[%s11979_s23 + $0x1b8] sm:$0xff] %v414_v55  ;;  %v418_v57 = vld [vmem:[%s11974_s22 + $0x4c8] sm:$0xff]  ;;  %v420_v58 = vld [vmem:[%s11974_s22 + $0x4d0] sm:$0xff] }
  0x2e   : > { %417 = vst [vmem:[%s11979_s23 + $0x1c0] sm:$0xff] %v416_v56  ;;  %v422_v59 = vld [vmem:[%s11974_s22 + $0x4d8] sm:$0xff]  ;;  %419 = vst [vmem:[%s11979_s23 + $0x1c8] sm:$0xff] %v418_v57  ;;  %v424_v60 = vld [vmem:[%s11974_s22 + $0x4e0] sm:$0xff] }
  0x2f   : > { %421 = vst [vmem:[%s11979_s23 + $0x1d0] sm:$0xff] %v420_v58  ;;  %423 = vst [vmem:[%s11979_s23 + $0x1d8] sm:$0xff] %v422_v59  ;;  %v426_v61 = vld [vmem:[%s11974_s22 + $0x4e8] sm:$0xff]  ;;  %v428_v62 = vld [vmem:[%s11974_s22 + $0x4f0] sm:$0xff] }
  0x30   : > { %425 = vst [vmem:[%s11979_s23 + $0x1e0] sm:$0xff] %v424_v60  ;;  %427 = vst [vmem:[%s11979_s23 + $0x1e8] sm:$0xff] %v426_v61  ;;  %v430_v63 = vld [vmem:[%s11974_s22 + $0x4f8] sm:$0xff]  ;;  %v432_v0 = vld [vmem:[%s11974_s22 + $0x800] sm:$0xff] }
  0x31   : > { %429 = vst [vmem:[%s11979_s23 + $0x1f0] sm:$0xff] %v428_v62  ;;  %v434_v1 = vld [vmem:[%s11974_s22 + $0x808] sm:$0xff]  ;;  %431 = vst [vmem:[%s11979_s23 + $0x1f8] sm:$0xff] %v430_v63  ;;  %v436_v2 = vld [vmem:[%s11974_s22 + $0x810] sm:$0xff] }
  0x32   : > { %433 = vst [vmem:[%s11979_s23 + $0x200] sm:$0xff] %v432_v0  ;;  %435 = vst [vmem:[%s11979_s23 + $0x208] sm:$0xff] %v434_v1  ;;  %v438_v3 = vld [vmem:[%s11974_s22 + $0x818] sm:$0xff]  ;;  %v440_v4 = vld [vmem:[%s11974_s22 + $0x820] sm:$0xff] }
  0x33   : > { %437 = vst [vmem:[%s11979_s23 + $0x210] sm:$0xff] %v436_v2  ;;  %439 = vst [vmem:[%s11979_s23 + $0x218] sm:$0xff] %v438_v3  ;;  %v442_v5 = vld [vmem:[%s11974_s22 + $0x828] sm:$0xff]  ;;  %v444_v6 = vld [vmem:[%s11974_s22 + $0x830] sm:$0xff] }
  0x34   : > { %441 = vst [vmem:[%s11979_s23 + $0x220] sm:$0xff] %v440_v4  ;;  %v446_v7 = vld [vmem:[%s11974_s22 + $0x838] sm:$0xff]  ;;  %443 = vst [vmem:[%s11979_s23 + $0x228] sm:$0xff] %v442_v5  ;;  %v448_v8 = vld [vmem:[%s11974_s22 + $0x840] sm:$0xff] }
  0x35   : > { %445 = vst [vmem:[%s11979_s23 + $0x230] sm:$0xff] %v444_v6  ;;  %447 = vst [vmem:[%s11979_s23 + $0x238] sm:$0xff] %v446_v7  ;;  %v450_v9 = vld [vmem:[%s11974_s22 + $0x848] sm:$0xff]  ;;  %v452_v10 = vld [vmem:[%s11974_s22 + $0x850] sm:$0xff] }
  0x36   : > { %449 = vst [vmem:[%s11979_s23 + $0x240] sm:$0xff] %v448_v8  ;;  %451 = vst [vmem:[%s11979_s23 + $0x248] sm:$0xff] %v450_v9  ;;  %v454_v11 = vld [vmem:[%s11974_s22 + $0x858] sm:$0xff]  ;;  %v456_v12 = vld [vmem:[%s11974_s22 + $0x860] sm:$0xff] }
  0x37   : > { %453 = vst [vmem:[%s11979_s23 + $0x250] sm:$0xff] %v452_v10  ;;  %v458_v13 = vld [vmem:[%s11974_s22 + $0x868] sm:$0xff]  ;;  %455 = vst [vmem:[%s11979_s23 + $0x258] sm:$0xff] %v454_v11  ;;  %v460_v14 = vld [vmem:[%s11974_s22 + $0x870] sm:$0xff] }
  0x38   : > { %457 = vst [vmem:[%s11979_s23 + $0x260] sm:$0xff] %v456_v12  ;;  %459 = vst [vmem:[%s11979_s23 + $0x268] sm:$0xff] %v458_v13  ;;  %v462_v15 = vld [vmem:[%s11974_s22 + $0x878] sm:$0xff]  ;;  %v464_v16 = vld [vmem:[%s11974_s22 + $0x880] sm:$0xff] }
  0x39   : > { %461 = vst [vmem:[%s11979_s23 + $0x270] sm:$0xff] %v460_v14  ;;  %463 = vst [vmem:[%s11979_s23 + $0x278] sm:$0xff] %v462_v15  ;;  %v466_v17 = vld [vmem:[%s11974_s22 + $0x888] sm:$0xff]  ;;  %v468_v18 = vld [vmem:[%s11974_s22 + $0x890] sm:$0xff] }
  0x3a   : > { %465 = vst [vmem:[%s11979_s23 + $0x280] sm:$0xff] %v464_v16  ;;  %v470_v19 = vld [vmem:[%s11974_s22 + $0x898] sm:$0xff]  ;;  %467 = vst [vmem:[%s11979_s23 + $0x288] sm:$0xff] %v466_v17  ;;  %v472_v20 = vld [vmem:[%s11974_s22 + $0x8a0] sm:$0xff] }
  0x3b   : > { %469 = vst [vmem:[%s11979_s23 + $0x290] sm:$0xff] %v468_v18  ;;  %471 = vst [vmem:[%s11979_s23 + $0x298] sm:$0xff] %v470_v19  ;;  %v474_v21 = vld [vmem:[%s11974_s22 + $0x8a8] sm:$0xff]  ;;  %v476_v22 = vld [vmem:[%s11974_s22 + $0x8b0] sm:$0xff] }
  0x3c   : > { %473 = vst [vmem:[%s11979_s23 + $0x2a0] sm:$0xff] %v472_v20  ;;  %475 = vst [vmem:[%s11979_s23 + $0x2a8] sm:$0xff] %v474_v21  ;;  %v478_v23 = vld [vmem:[%s11974_s22 + $0x8b8] sm:$0xff]  ;;  %v480_v24 = vld [vmem:[%s11974_s22 + $0x8c0] sm:$0xff] }
  0x3d   : > { %477 = vst [vmem:[%s11979_s23 + $0x2b0] sm:$0xff] %v476_v22  ;;  %v482_v25 = vld [vmem:[%s11974_s22 + $0x8c8] sm:$0xff]  ;;  %479 = vst [vmem:[%s11979_s23 + $0x2b8] sm:$0xff] %v478_v23  ;;  %v484_v26 = vld [vmem:[%s11974_s22 + $0x8d0] sm:$0xff] }
  0x3e   : > { %481 = vst [vmem:[%s11979_s23 + $0x2c0] sm:$0xff] %v480_v24  ;;  %483 = vst [vmem:[%s11979_s23 + $0x2c8] sm:$0xff] %v482_v25  ;;  %v486_v27 = vld [vmem:[%s11974_s22 + $0x8d8] sm:$0xff]  ;;  %v488_v28 = vld [vmem:[%s11974_s22 + $0x8e0] sm:$0xff] }
  0x3f   : > { %485 = vst [vmem:[%s11979_s23 + $0x2d0] sm:$0xff] %v484_v26  ;;  %487 = vst [vmem:[%s11979_s23 + $0x2d8] sm:$0xff] %v486_v27  ;;  %v490_v29 = vld [vmem:[%s11974_s22 + $0x8e8] sm:$0xff]  ;;  %v492_v30 = vld [vmem:[%s11974_s22 + $0x8f0] sm:$0xff] }
  0x40   : > { %489 = vst [vmem:[%s11979_s23 + $0x2e0] sm:$0xff] %v488_v28  ;;  %v494_v31 = vld [vmem:[%s11974_s22 + $0x8f8] sm:$0xff]  ;;  %491 = vst [vmem:[%s11979_s23 + $0x2e8] sm:$0xff] %v490_v29  ;;  %v496_v32 = vld [vmem:[%s11974_s22 + $0xc00] sm:$0xff] }
  0x41   : > { %493 = vst [vmem:[%s11979_s23 + $0x2f0] sm:$0xff] %v492_v30  ;;  %495 = vst [vmem:[%s11979_s23 + $0x2f8] sm:$0xff] %v494_v31  ;;  %v498_v33 = vld [vmem:[%s11974_s22 + $0xc08] sm:$0xff]  ;;  %v500_v34 = vld [vmem:[%s11974_s22 + $0xc10] sm:$0xff] }
  0x42   : > { %497 = vst [vmem:[%s11979_s23 + $0x300] sm:$0xff] %v496_v32  ;;  %499 = vst [vmem:[%s11979_s23 + $0x308] sm:$0xff] %v498_v33  ;;  %v502_v35 = vld [vmem:[%s11974_s22 + $0xc18] sm:$0xff]  ;;  %v504_v36 = vld [vmem:[%s11974_s22 + $0xc20] sm:$0xff] }
  0x43   : > { %501 = vst [vmem:[%s11979_s23 + $0x310] sm:$0xff] %v500_v34  ;;  %v506_v37 = vld [vmem:[%s11974_s22 + $0xc28] sm:$0xff]  ;;  %503 = vst [vmem:[%s11979_s23 + $0x318] sm:$0xff] %v502_v35  ;;  %v508_v38 = vld [vmem:[%s11974_s22 + $0xc30] sm:$0xff] }
  0x44   : > { %505 = vst [vmem:[%s11979_s23 + $0x320] sm:$0xff] %v504_v36  ;;  %507 = vst [vmem:[%s11979_s23 + $0x328] sm:$0xff] %v506_v37  ;;  %v510_v39 = vld [vmem:[%s11974_s22 + $0xc38] sm:$0xff]  ;;  %v512_v40 = vld [vmem:[%s11974_s22 + $0xc40] sm:$0xff] }
  0x45   : > { %509 = vst [vmem:[%s11979_s23 + $0x330] sm:$0xff] %v508_v38  ;;  %511 = vst [vmem:[%s11979_s23 + $0x338] sm:$0xff] %v510_v39  ;;  %v514_v41 = vld [vmem:[%s11974_s22 + $0xc48] sm:$0xff]  ;;  %v516_v42 = vld [vmem:[%s11974_s22 + $0xc50] sm:$0xff] }
  0x46   : > { %513 = vst [vmem:[%s11979_s23 + $0x340] sm:$0xff] %v512_v40  ;;  %v518_v43 = vld [vmem:[%s11974_s22 + $0xc58] sm:$0xff]  ;;  %515 = vst [vmem:[%s11979_s23 + $0x348] sm:$0xff] %v514_v41  ;;  %v520_v44 = vld [vmem:[%s11974_s22 + $0xc60] sm:$0xff] }
  0x47   : > { %517 = vst [vmem:[%s11979_s23 + $0x350] sm:$0xff] %v516_v42  ;;  %519 = vst [vmem:[%s11979_s23 + $0x358] sm:$0xff] %v518_v43  ;;  %v522_v45 = vld [vmem:[%s11974_s22 + $0xc68] sm:$0xff]  ;;  %v524_v46 = vld [vmem:[%s11974_s22 + $0xc70] sm:$0xff] }
  0x48   : > { %521 = vst [vmem:[%s11979_s23 + $0x360] sm:$0xff] %v520_v44  ;;  %523 = vst [vmem:[%s11979_s23 + $0x368] sm:$0xff] %v522_v45  ;;  %v526_v47 = vld [vmem:[%s11974_s22 + $0xc78] sm:$0xff]  ;;  %v528_v48 = vld [vmem:[%s11974_s22 + $0xc80] sm:$0xff] }
  0x49   : > { %525 = vst [vmem:[%s11979_s23 + $0x370] sm:$0xff] %v524_v46  ;;  %v530_v49 = vld [vmem:[%s11974_s22 + $0xc88] sm:$0xff]  ;;  %527 = vst [vmem:[%s11979_s23 + $0x378] sm:$0xff] %v526_v47  ;;  %v532_v50 = vld [vmem:[%s11974_s22 + $0xc90] sm:$0xff] }
  0x4a   : > { %529 = vst [vmem:[%s11979_s23 + $0x380] sm:$0xff] %v528_v48  ;;  %531 = vst [vmem:[%s11979_s23 + $0x388] sm:$0xff] %v530_v49  ;;  %v534_v51 = vld [vmem:[%s11974_s22 + $0xc98] sm:$0xff]  ;;  %v536_v52 = vld [vmem:[%s11974_s22 + $0xca0] sm:$0xff] }
  0x4b   : > { %533 = vst [vmem:[%s11979_s23 + $0x390] sm:$0xff] %v532_v50  ;;  %535 = vst [vmem:[%s11979_s23 + $0x398] sm:$0xff] %v534_v51  ;;  %v538_v53 = vld [vmem:[%s11974_s22 + $0xca8] sm:$0xff]  ;;  %v540_v54 = vld [vmem:[%s11974_s22 + $0xcb0] sm:$0xff] }
  0x4c   : > { %537 = vst [vmem:[%s11979_s23 + $0x3a0] sm:$0xff] %v536_v52  ;;  %v542_v55 = vld [vmem:[%s11974_s22 + $0xcb8] sm:$0xff]  ;;  %539 = vst [vmem:[%s11979_s23 + $0x3a8] sm:$0xff] %v538_v53  ;;  %v544_v56 = vld [vmem:[%s11974_s22 + $0xcc0] sm:$0xff] }
  0x4d   : > { %541 = vst [vmem:[%s11979_s23 + $0x3b0] sm:$0xff] %v540_v54  ;;  %543 = vst [vmem:[%s11979_s23 + $0x3b8] sm:$0xff] %v542_v55  ;;  %v546_v57 = vld [vmem:[%s11974_s22 + $0xcc8] sm:$0xff]  ;;  %v548_v58 = vld [vmem:[%s11974_s22 + $0xcd0] sm:$0xff] }
  0x4e   : > { %545 = vst [vmem:[%s11979_s23 + $0x3c0] sm:$0xff] %v544_v56  ;;  %547 = vst [vmem:[%s11979_s23 + $0x3c8] sm:$0xff] %v546_v57  ;;  %v550_v59 = vld [vmem:[%s11974_s22 + $0xcd8] sm:$0xff]  ;;  %v552_v60 = vld [vmem:[%s11974_s22 + $0xce0] sm:$0xff] }
  0x4f   : > { %549 = vst [vmem:[%s11979_s23 + $0x3d0] sm:$0xff] %v548_v58  ;;  %v554_v61 = vld [vmem:[%s11974_s22 + $0xce8] sm:$0xff]  ;;  %551 = vst [vmem:[%s11979_s23 + $0x3d8] sm:$0xff] %v550_v59  ;;  %v556_v62 = vld [vmem:[%s11974_s22 + $0xcf0] sm:$0xff] }
  0x50   : > { %553 = vst [vmem:[%s11979_s23 + $0x3e0] sm:$0xff] %v552_v60  ;;  %555 = vst [vmem:[%s11979_s23 + $0x3e8] sm:$0xff] %v554_v61  ;;  %v558_v63 = vld [vmem:[%s11974_s22 + $0xcf8] sm:$0xff] }
  0x51   : > { %557 = vst [vmem:[%s11979_s23 + $0x3f0] sm:$0xff] %v556_v62  ;;  %559 = vst [vmem:[%s11979_s23 + $0x3f8] sm:$0xff] %v558_v63 }
  0x52 PF: > { %p10924_p5 = scmp.ge.s32.totalorder %s11887_s11, 1  ;;  %p581_p6 = scmp.lt.s32.totalorder %s11887_s11, 5 }
  0x54   : > { %p582_p7 = pnand %p10924_p5, %p581_p6 }
  0x56   : > { %585 = sbr.rel (%p582_p7) target bundleno = 1670 (0x686), region = 75 }
  0x5d   : > { %s588_s24 = sand.u32 1, %s11879_s30   ;;  %v16976_v0 = vmov 0   ;;  %v12258_v23 = vld [vmem:[%s16969_s3] sm:$0xff]   ;;  %vm1495_vm0 = vcmask 261120   ;;  %v789_v40 = vld [vmem:[%s16970_s4 + $0x10] sm:$0xff]  ;;  %v12295_v42 = vld [vmem:[%s16969_s3 + $0x8] sm:$0xff]  }
  0x5e   : > { %s10925_s25 = sshll.u32 %s588_s24, 10  ;;  %1540 = vmatprep.mubr.bf16.mxu0 %v16976_v0  ;;  %1613 = vmatprep.mubr.bf16.mxu1 %v16976_v0  ;;  %v787_v37 = vld [vmem:[%s16970_s4] sm:$0xff]  ;;  %v788_v43 = vld [vmem:[%s16970_s4 + $0x8] sm:$0xff]  ;;  %v790_v44 = vld [vmem:[%s16970_s4 + $0x18] sm:$0xff]  ;;  %vm4688_vm1 = vcmask 523264   ;;  %s16077_s28 = sshll.u32 %s10917_s12, 6 }
  0x5f   : > { %11447 = vset.pattern.permute.xlu0 %v16976_v0  ;;  %11448 = vset.pattern.permute.xlu1 %v16976_v0  ;;  %s12241_s26 = scalar_lea.vmem [#allocation2], %s10925_s25  ;;  %v791_v45 = vld [vmem:[%s16970_s4 + $0x20] sm:$0xff]  ;;  %v792_v46 = vld [vmem:[%s16970_s4 + $0x28] sm:$0xff]  ;;  %v12318_v47 = vld [vmem:[%s16969_s3 + $0x10] sm:$0xff]   ;;  %p634_p8 = scmp.lt.s32.totalorder %s16077_s28, 255  ;;  %vm10809_vm2 = vcmask 1042432  }
  0x60   : > { %v651_v1 = vld [vmem:[%s12241_s26] sm:$0xff]  ;;  %v652_v3 = vld [vmem:[%s12241_s26 + $0x8] sm:$0xff]  ;;  %v653_v14 = vld [vmem:[%s12241_s26 + $0x10] sm:$0xff]  ;;  %797 = vperm.xlu0 %11447, %v787_v37   ;;  %807 = vperm.xlu1 %11448, %v789_v40   ;;  %s16925_s18 = sshll.u32 %s10917_s12, 1  ;;  %vm10826_vm3 = vcmask 1043456   ;;  %vm10829_vm4 = vcmask 1044480  }
  0x61   : > { %v683_v2 = vld [vmem:[%s12241_s26 + $0x100] sm:$0xff]  ;;  %v684_v5 = vld [vmem:[%s12241_s26 + $0x108] sm:$0xff]  ;;  %v685_v16 = vld [vmem:[%s12241_s26 + $0x110] sm:$0xff]  ;;  %s17665_s28 = smov (!%p634_p8, %s16077_s28), 255  ;;  %p639_p9 = scmp.lt.s32.totalorder %s16925_s18, 7 }
  0x62   : > { %v10936_v4 = vcombine.high %v651_v1, %v683_v2  ;;  %v10935_v6 = vcombine.low %v651_v1, %v683_v2  ;;  %v715_v7 = vld [vmem:[%s12241_s26 + $0x200] sm:$0xff]  ;;  %v10938_v9 = vcombine.high %v652_v3, %v684_v5  ;;  %v10937_v10 = vcombine.low %v652_v3, %v684_v5  ;;  %v716_v12 = vld [vmem:[%s12241_s26 + $0x208] sm:$0xff]  ;;  %v654_v17 = vld [vmem:[%s12241_s26 + $0x18] sm:$0xff]  ;;  %s16126_s14 = scalar_lea.vmem %s16967_s1, %s17665_s28 }
  0x63   : > { %v747_v8 = vld [vmem:[%s12241_s26 + $0x300] sm:$0xff]  ;;  %v748_v13 = vld [vmem:[%s12241_s26 + $0x308] sm:$0xff]  ;;  %v686_v18 = vld [vmem:[%s12241_s26 + $0x118] sm:$0xff]  ;;  %v10940_v21 = vcombine.high %v653_v14, %v685_v16  ;;  %v10939_v26 = vcombine.low %v653_v14, %v685_v16  ;;  %s17667_s18 = smov (!%p639_p9, %s16925_s18), 7 }
  0x64   : > { %v11000_v11 = vcombine.high %v715_v7, %v747_v8  ;;  %1508 = vmatprep.subr.bf16.mxu0 %v10936_v4  ;;  %v11002_v15 = vcombine.high %v716_v12, %v748_v13  ;;  %1581 = vmatprep.subr.bf16.mxu1 %v10938_v9  ;;  %v10999_v19 = vcombine.low %v715_v7, %v747_v8  ;;  %v717_v24 = vld [vmem:[%s12241_s26 + $0x210] sm:$0xff]  ;;  %v718_v27 = vld [vmem:[%s12241_s26 + $0x218] sm:$0xff]  ;;  %v12265_v31 = vld [vmem:[%s12241_s26 + $0x20] sm:$0xff]  ;;  %s10928_s11 = sshll.u32 %s17667_s18, 2  ;;  %s10930_s21 = sshll.u32 %s17667_s18, 3 }
  0x65   : > { %1509 = vmatpush1.bf16.msra.mxu0 %v10935_v6  ;;  %1582 = vmatpush1.bf16.msra.mxu1 %v10937_v10  ;;  %v11001_v20 = vcombine.low %v716_v12, %v748_v13  ;;  %v10942_v22 = vcombine.high %v654_v17, %v686_v18  ;;  %v749_v25 = vld [vmem:[%s12241_s26 + $0x310] sm:$0xff]  ;;  %v750_v28 = vld [vmem:[%s12241_s26 + $0x318] sm:$0xff]  ;;  %v10941_v29 = vcombine.low %v654_v17, %v686_v18  ;;  %v12268_v32 = vld [vmem:[%s12241_s26 + $0x120] sm:$0xff]  ;;  %s642_s20 = scalar_lea.vmem %s16968_s2, %s10928_s11 }
  0x66   : > { %1510 = vmatprep.subr.bf16.mxu0 %v11000_v11  ;;  %1583 = vmatprep.subr.bf16.mxu1 %v11002_v15  ;;  %v11004_v30 = vcombine.high %v717_v24, %v749_v25  ;;  %v11006_v33 = vcombine.high %v718_v27, %v750_v28  ;;  %v12273_v34 = vld [vmem:[%s12241_s26 + $0x28] sm:$0xff]  ;;  %v11003_v36 = vcombine.low %v717_v24, %v749_v25  ;;  %v793_v48 = vld [vmem:[%s16970_s4 + $0x30] sm:$0xff]  ;;  %v794_v49 = vld [vmem:[%s16970_s4 + $0x38] sm:$0xff] }
  0x67   : > { %v12276_v35 = vld [vmem:[%s12241_s26 + $0x128] sm:$0xff]  ;;  %v11005_v38 = vcombine.low %v718_v27, %v750_v28  ;;  %v10944_v39 = vcombine.high %v12265_v31, %v12268_v32  ;;  %802 = vperm.xlu0 %11447, %v788_v43   ;;  %812 = vperm.xlu1 %11448, %v790_v44   ;;  %v12335_v50 = vld [vmem:[%s16969_s3 + $0x18] sm:$0xff]   ;;  %v719_v51 = vld [vmem:[%s12241_s26 + $0x220] sm:$0xff]  ;;  %v10943_v53 = vcombine.low %v12265_v31, %v12268_v32 }
  0x68   : > { %v10946_v41 = vcombine.high %v12273_v34, %v12276_v35  ;;  %v751_v52 = vld [vmem:[%s12241_s26 + $0x320] sm:$0xff]  ;;  %v720_v54 = vld [vmem:[%s12241_s26 + $0x228] sm:$0xff]  ;;  %v10945_v56 = vcombine.low %v12273_v34, %v12276_v35  ;;  %v657_v58 = vld [vmem:[%s12241_s26 + $0x30] sm:$0xff] }
  0x69   : > { %1511 = vmatpush1.bf16.msra.mxu0 %v10999_v19  ;;  %1584 = vmatpush1.bf16.msra.mxu1 %v11001_v20  ;;  %v752_v55 = vld [vmem:[%s12241_s26 + $0x328] sm:$0xff]  ;;  %v11008_v57 = vcombine.high %v719_v51, %v751_v52  ;;  %v689_v59 = vld [vmem:[%s12241_s26 + $0x130] sm:$0xff]  ;;  %v658_v61 = vld [vmem:[%s12241_s26 + $0x38] sm:$0xff]  ;;  %v11007_v63 = vcombine.low %v719_v51, %v751_v52 }
  0x6a   : > { %1654 = vmatprep.subr.bf16.mxu0 %v10940_v21  ;;  %1727 = vmatprep.subr.bf16.mxu1 %v10942_v22  ;;  %v11010_v60 = vcombine.high %v720_v54, %v752_v55  ;;  %v690_v62 = vld [vmem:[%s12241_s26 + $0x138] sm:$0xff]  ;;  %v11009_v1 = vcombine.low %v720_v54, %v752_v55  ;;  %v10948_v2 = vcombine.high %v657_v58, %v689_v59  ;;  %v721_v4 = vld [vmem:[%s12241_s26 + $0x230] sm:$0xff]  ;;  %v659_v11 = vld [vmem:[%s12241_s26 + $0x40] sm:$0xff] }
  0x6b   : > { %817 = vperm.xlu0 %11447, %v791_v45   ;;  %822 = vperm.xlu1 %11448, %v792_v46   ;;  %v10950_v3 = vcombine.high %v658_v61, %v690_v62  ;;  %v753_v5 = vld [vmem:[%s12241_s26 + $0x330] sm:$0xff]  ;;  %v10947_v6 = vcombine.low %v657_v58, %v689_v59  ;;  %v722_v7 = vld [vmem:[%s12241_s26 + $0x238] sm:$0xff]  ;;  %v10949_v9 = vcombine.low %v658_v61, %v690_v62  ;;  %v691_v12 = vld [vmem:[%s12241_s26 + $0x140] sm:$0xff] }
  0x6c   : > { %11063 = vmatmul.mubr.msk.bf16.vlgmr.msra.gmra.mrb[0].mxu0 %vm1495_vm0, %v12258_v23  ;;  %11067 = vmatmul.mubr.msk.bf16.vlgmr.msra.gmra.mrb[0].mxu1 %vm1495_vm0, %v12258_v23  ;;  %v754_v8 = vld [vmem:[%s12241_s26 + $0x338] sm:$0xff]  ;;  %v11012_v10 = vcombine.high %v721_v4, %v753_v5  ;;  %v660_v14 = vld [vmem:[%s12241_s26 + $0x48] sm:$0xff]  ;;  %v11011_v16 = vcombine.low %v721_v4, %v753_v5  ;;  %v10952_v18 = vcombine.high %v659_v11, %v691_v12  ;;  %v723_v20 = vld [vmem:[%s12241_s26 + $0x240] sm:$0xff] }
  0x6d   : > { %1655 = vmatpush1.bf16.msra.mxu0 %v10939_v26  ;;  %1728 = vmatpush1.bf16.msra.mxu1 %v10941_v29  ;;  %v11014_v13 = vcombine.high %v722_v7, %v754_v8  ;;  %v692_v15 = vld [vmem:[%s12241_s26 + $0x148] sm:$0xff]  ;;  %v11013_v17 = vcombine.low %v722_v7, %v754_v8  ;;  %v755_v21 = vld [vmem:[%s12241_s26 + $0x340] sm:$0xff]  ;;  %v10951_v22 = vcombine.low %v659_v11, %v691_v12  ;;  %v661_v28 = vld [vmem:[%s12241_s26 + $0x50] sm:$0xff] }
  0x6e   : > { %1550 = vmatprep.mubr.bf16.mxu0 %v16976_v0  ;;  %1623 = vmatprep.mubr.bf16.mxu1 %v16976_v0  ;;  %v10954_v19 = vcombine.high %v660_v14, %v692_v15  ;;  %v724_v24 = vld [vmem:[%s12241_s26 + $0x248] sm:$0xff]  ;;  %v10953_v26 = vcombine.low %v660_v14, %v692_v15  ;;  %v11016_v27 = vcombine.high %v723_v20, %v755_v21  ;;  %v693_v29 = vld [vmem:[%s12241_s26 + $0x150] sm:$0xff]  ;;  %v662_v31 = vld [vmem:[%s12241_s26 + $0x58] sm:$0xff] }
  0x6f   : > { %1656 = vmatprep.subr.bf16.mxu0 %v11004_v30  ;;  %1729 = vmatprep.subr.bf16.mxu1 %v11006_v33  ;;  %v756_v25 = vld [vmem:[%s12241_s26 + $0x348] sm:$0xff]  ;;  %v694_v32 = vld [vmem:[%s12241_s26 + $0x158] sm:$0xff]  ;;  %v11015_v33 = vcombine.low %v723_v20, %v755_v21  ;;  %v10956_v35 = vcombine.high %v661_v28, %v693_v29  ;;  %v725_v37 = vld [vmem:[%s12241_s26 + $0x250] sm:$0xff] }
  0x70   : > { %827 = vperm.xlu0 %11447, %v793_v48   ;;  %832 = vperm.xlu1 %11448, %v794_v49   ;;  %v11018_v30 = vcombine.high %v724_v24, %v756_v25  ;;  %v11017_v34 = vcombine.low %v724_v24, %v756_v25  ;;  %v726_v40 = vld [vmem:[%s12241_s26 + $0x258] sm:$0xff]  ;;  %v10957_v43 = vcombine.low %v662_v31, %v694_v32  ;;  %v663_v45 = vld [vmem:[%s12241_s26 + $0x60] sm:$0xff]  ;;  %v664_v49 = vld [vmem:[%s12241_s26 + $0x68] sm:$0xff] }
  0x71   : > { %1657 = vmatpush1.bf16.msra.mxu0 %v11003_v36  ;;  %1730 = vmatpush1.bf16.msra.mxu1 %v11005_v38  ;;  %v10958_v36 = vcombine.high %v662_v31, %v694_v32  ;;  %v757_v38 = vld [vmem:[%s12241_s26 + $0x350] sm:$0xff]  ;;  %v695_v46 = vld [vmem:[%s12241_s26 + $0x160] sm:$0xff]  ;;  %v696_v51 = vld [vmem:[%s12241_s26 + $0x168] sm:$0xff] }
  0x72   : > { %1800 = vmatprep.subr.bf16.mxu0 %v10944_v39  ;;  %1873 = vmatprep.subr.bf16.mxu1 %v10946_v41  ;;  %v10955_v39 = vcombine.low %v661_v28, %v693_v29  ;;  %v758_v41 = vld [vmem:[%s12241_s26 + $0x358] sm:$0xff]  ;;  %v11020_v44 = vcombine.high %v725_v37, %v757_v38  ;;  %v11019_v52 = vcombine.low %v725_v37, %v757_v38  ;;  %v728_v59 = vld [vmem:[%s12241_s26 + $0x268] sm:$0xff]  ;;  %v4622_v28 = vld [vmem:[%s16972_s6 + $0x10] sm:$0xff] }
  0x73   : > { %v11022_v48 = vcombine.high %v726_v40, %v758_v41  ;;  %v10960_v54 = vcombine.high %v663_v45, %v695_v46  ;;  %v10962_v55 = vcombine.high %v664_v49, %v696_v51  ;;  %v10959_v58 = vcombine.low %v663_v45, %v695_v46  ;;  %v698_v4 = vld [vmem:[%s12241_s26 + $0x178] sm:$0xff]  ;;  %v12523_v20 = vld [vmem:[%s12241_s26 + $0x188] sm:$0xff]  ;;  %v4624_v32 = vld [vmem:[%s16972_s6 + $0x20] sm:$0xff] }
  0x74   : > { %11064 = vmatmul.mubr.msk.bf16.gmra.mrb[4].mxu0 %vm1495_vm0, %v12295_v42  ;;  %11068 = vmatmul.mubr.msk.bf16.gmra.mrb[4].mxu1 %vm1495_vm0, %v12295_v42  ;;  %v10961_v61 = vcombine.low %v664_v49, %v696_v51  ;;  %v730_v12 = vld [vmem:[%s12241_s26 + $0x278] sm:$0xff] }
  0x75   : > { %1560 = vmatprep.mubr.bf16.mxu0 %v16976_v0  ;;  %1633 = vmatprep.mubr.bf16.mxu1 %v16976_v0 }
  0x7c   : > { %11065 = vmatmul.mubr.msk.bf16.gmra.mrb[8].mxu0 %vm1495_vm0, %v12318_v47  ;;  %11069 = vmatmul.mubr.msk.bf16.gmra.mrb[8].mxu1 %vm1495_vm0, %v12318_v47 }
  0x7d   : > { %1570 = vmatprep.mubr.bf16.mxu0 %v16976_v0  ;;  %1643 = vmatprep.mubr.bf16.mxu1 %v16976_v0 }
  0x84   : > { %11066 = vmatmul.mubr.msk.bf16.gmra.mrb[12].mxu0 %vm1495_vm0, %v12335_v50  ;;  %11070 = vmatmul.mubr.msk.bf16.gmra.mrb[12].mxu1 %vm1495_vm0, %v12335_v50 }
  0x85   : > { %1686 = vmatprep.mubr.bf16.mxu0 %v16976_v0  ;;  %1759 = vmatprep.mubr.bf16.mxu1 %v16976_v0 }
  0x8c   : > { %11071 = vmatmul.mubr.msk.bf16.vlgmr.msra.gmra.mrb[16].mxu0 %vm1495_vm0, %v12258_v23  ;;  %11075 = vmatmul.mubr.msk.bf16.vlgmr.msra.gmra.mrb[16].mxu1 %vm1495_vm0, %v12258_v23 }
  0x8d   : > { %1801 = vmatpush1.bf16.msra.mxu0 %v10943_v53  ;;  %1874 = vmatpush1.bf16.msra.mxu1 %v10945_v56  ;;  %v11021_v53 = vcombine.low %v726_v40, %v758_v41  ;;  %v727_v56 = vld [vmem:[%s12241_s26 + $0x260] sm:$0xff]  ;;  %v4626_v41 = vld [vmem:[%s16972_s6 + $0x30] sm:$0xff] }
  0x8e   : > { %1696 = vmatprep.mubr.bf16.mxu0 %v16976_v0  ;;  %1769 = vmatprep.mubr.bf16.mxu1 %v16976_v0 }
  0x8f   : > { %1802 = vmatprep.subr.bf16.mxu0 %v11008_v57  ;;  %1875 = vmatprep.subr.bf16.mxu1 %v11010_v60  ;;  %v759_v57 = vld [vmem:[%s12241_s26 + $0x360] sm:$0xff]  ;;  %v760_v60 = vld [vmem:[%s12241_s26 + $0x368] sm:$0xff] }
  0x90   : > { %v11024_v62 = vcombine.high %v727_v56, %v759_v57  ;;  %v11023_v5 = vcombine.low %v727_v56, %v759_v57 }
  0x91   : > { %1803 = vmatpush1.bf16.msra.mxu0 %v11007_v63  ;;  %1876 = vmatpush1.bf16.msra.mxu1 %v11009_v1  ;;  %v665_v63 = vld [vmem:[%s12241_s26 + $0x70] sm:$0xff] }
  0x92   : > { %1946 = vmatprep.subr.bf16.mxu0 %v10948_v2  ;;  %2019 = vmatprep.subr.bf16.mxu1 %v10950_v3  ;;  %v697_v1 = vld [vmem:[%s12241_s26 + $0x170] sm:$0xff]  ;;  %v11026_v2 = vcombine.high %v728_v59, %v760_v60  ;;  %v666_v3 = vld [vmem:[%s12241_s26 + $0x78] sm:$0xff] }
  0x93   : > { %v10964_v7 = vcombine.high %v665_v63, %v697_v1  ;;  %v10966_v8 = vcombine.high %v666_v3, %v698_v4  ;;  %v10963_v11 = vcombine.low %v665_v63, %v697_v1  ;;  %v10965_v14 = vcombine.low %v666_v3, %v698_v4  ;;  %v12590_v3 = vld [vmem:[%s12241_s26 + $0x380] sm:$0xff]  ;;  %v4623_v4 = vld [vmem:[%s16972_s6 + $0x18] sm:$0xff] }
  0x94   : > { %11072 = vmatmul.mubr.msk.bf16.gmra.mrb[20].mxu0 %vm1495_vm0, %v12295_v42  ;;  %11076 = vmatmul.mubr.msk.bf16.gmra.mrb[20].mxu1 %vm1495_vm0, %v12295_v42 }
  0x95   : > { %1706 = vmatprep.mubr.bf16.mxu0 %v16976_v0  ;;  %1779 = vmatprep.mubr.bf16.mxu1 %v16976_v0 }
  0x9c   : > { %11073 = vmatmul.mubr.msk.bf16.gmra.mrb[24].mxu0 %vm1495_vm0, %v12318_v47  ;;  %11077 = vmatmul.mubr.msk.bf16.gmra.mrb[24].mxu1 %vm1495_vm0, %v12318_v47 }
  0x9d   : > { %1716 = vmatprep.mubr.bf16.mxu0 %v16976_v0  ;;  %1789 = vmatprep.mubr.bf16.mxu1 %v16976_v0 }
  0xa4   : > { %11074 = vmatmul.mubr.msk.bf16.gmra.mrb[28].mxu0 %vm1495_vm0, %v12335_v50  ;;  %11078 = vmatmul.mubr.msk.bf16.gmra.mrb[28].mxu1 %vm1495_vm0, %v12335_v50 }
  0xa5   : > { %1832 = vmatprep.mubr.bf16.mxu0 %v16976_v0  ;;  %1905 = vmatprep.mubr.bf16.mxu1 %v16976_v0 }
  0xac   : > { %11079 = vmatmul.mubr.msk.bf16.vlgmr.msra.gmra.mrb[32].mxu0 %vm1495_vm0, %v12258_v23  ;;  %11083 = vmatmul.mubr.msk.bf16.vlgmr.msra.gmra.mrb[32].mxu1 %vm1495_vm0, %v12258_v23 }
  0xad   : > { %1947 = vmatpush1.bf16.msra.mxu0 %v10947_v6  ;;  %2020 = vmatpush1.bf16.msra.mxu1 %v10949_v9  ;;  %v11025_v6 = vcombine.low %v728_v59, %v760_v60  ;;  %v729_v9 = vld [vmem:[%s12241_s26 + $0x270] sm:$0xff] }
  0xae   : > { %1842 = vmatprep.mubr.bf16.mxu0 %v16976_v0  ;;  %1915 = vmatprep.mubr.bf16.mxu1 %v16976_v0 }
  0xaf   : > { %1948 = vmatprep.subr.bf16.mxu0 %v11012_v10  ;;  %2021 = vmatprep.subr.bf16.mxu1 %v11014_v13  ;;  %v761_v10 = vld [vmem:[%s12241_s26 + $0x370] sm:$0xff]  ;;  %v762_v13 = vld [vmem:[%s12241_s26 + $0x378] sm:$0xff] }
  0xb0   : > { %v11028_v15 = vcombine.high %v729_v9, %v761_v10  ;;  %v11027_v21 = vcombine.low %v729_v9, %v761_v10 }
  0xb1   : > { %1949 = vmatpush1.bf16.msra.mxu0 %v11011_v16  ;;  %2022 = vmatpush1.bf16.msra.mxu1 %v11013_v17  ;;  %v12512_v16 = vld [vmem:[%s12241_s26 + $0x80] sm:$0xff] }
  0xb2   : > { %2092 = vmatprep.subr.bf16.mxu0 %v10952_v18  ;;  %2165 = vmatprep.subr.bf16.mxu1 %v10954_v19  ;;  %v12515_v17 = vld [vmem:[%s12241_s26 + $0x180] sm:$0xff]  ;;  %v11030_v18 = vcombine.high %v730_v12, %v762_v13  ;;  %v12520_v19 = vld [vmem:[%s12241_s26 + $0x88] sm:$0xff] }
  0xb3   : > { %v10968_v24 = vcombine.high %v12512_v16, %v12515_v17  ;;  %v10970_v25 = vcombine.high %v12520_v19, %v12523_v20 }
  0xb4   : > { %11080 = vmatmul.mubr.msk.bf16.gmra.mrb[36].mxu0 %vm1495_vm0, %v12295_v42  ;;  %11084 = vmatmul.mubr.msk.bf16.gmra.mrb[36].mxu1 %vm1495_vm0, %v12295_v42 }
  0xb5   : > { %1852 = vmatprep.mubr.bf16.mxu0 %v16976_v0  ;;  %1925 = vmatprep.mubr.bf16.mxu1 %v16976_v0 }
  0xbc   : > { %11081 = vmatmul.mubr.msk.bf16.gmra.mrb[40].mxu0 %vm1495_vm0, %v12318_v47  ;;  %11085 = vmatmul.mubr.msk.bf16.gmra.mrb[40].mxu1 %vm1495_vm0, %v12318_v47 }
  0xbd   : > { %1862 = vmatprep.mubr.bf16.mxu0 %v16976_v0  ;;  %1935 = vmatprep.mubr.bf16.mxu1 %v16976_v0 }
  0xc4   : > { %11082 = vmatmul.mubr.msk.bf16.gmra.mrb[44].mxu0 %vm1495_vm0, %v12335_v50  ;;  %11086 = vmatmul.mubr.msk.bf16.gmra.mrb[44].mxu1 %vm1495_vm0, %v12335_v50 }
  0xc5   : > { %1978 = vmatprep.mubr.bf16.mxu0 %v16976_v0  ;;  %2051 = vmatprep.mubr.bf16.mxu1 %v16976_v0 }
  0xcc   : > { %11087 = vmatmul.mubr.msk.bf16.vlgmr.msra.gmra.mrb[48].mxu0 %vm1495_vm0, %v12258_v23  ;;  %11091 = vmatmul.mubr.msk.bf16.vlgmr.msra.gmra.mrb[48].mxu1 %vm1495_vm0, %v12258_v23 }
  0xcd   : > { %2093 = vmatpush1.bf16.msra.mxu0 %v10951_v22  ;;  %2166 = vmatpush1.bf16.msra.mxu1 %v10953_v26  ;;  %v11029_v22 = vcombine.low %v730_v12, %v762_v13  ;;  %v4620_v26 = vld [vmem:[%s16972_s6] sm:$0xff] }
  0xce   : > { %1988 = vmatprep.mubr.bf16.mxu0 %v16976_v0  ;;  %2061 = vmatprep.mubr.bf16.mxu1 %v16976_v0 }
  0xcf   : > { %2094 = vmatprep.subr.bf16.mxu0 %v11016_v27  ;;  %2167 = vmatprep.subr.bf16.mxu1 %v11018_v30 }
  0xd0   : > { %4630 = vperm.xlu0 %11447, %v4620_v26  }
  0xd1   : > { %2095 = vmatpush1.bf16.msra.mxu0 %v11015_v33  ;;  %2168 = vmatpush1.bf16.msra.mxu1 %v11017_v34 }
  0xd2   : > { %2238 = vmatprep.subr.bf16.mxu0 %v10956_v35  ;;  %2311 = vmatprep.subr.bf16.mxu1 %v10958_v36  ;;  %v4621_v36 = vld [vmem:[%s16972_s6 + $0x8] sm:$0xff] }
  0xd3   : > { %4635 = vperm.xlu1 %11448, %v4621_v36   ;;  %v12623_v36 = vld [vmem:[%s12241_s26 + $0x90] sm:$0xff] }
  0xd4   : > { %11088 = vmatmul.mubr.msk.bf16.gmra.mrb[52].mxu0 %vm1495_vm0, %v12295_v42  ;;  %11092 = vmatmul.mubr.msk.bf16.gmra.mrb[52].mxu1 %vm1495_vm0, %v12295_v42 }
  0xd5   : > { %1998 = vmatprep.mubr.bf16.mxu0 %v16976_v0  ;;  %2071 = vmatprep.mubr.bf16.mxu1 %v16976_v0 }
  0xd6   : > { %4640 = vperm.xlu0 %11447, %v4622_v28  }
  0xd7   : > { %4645 = vperm.xlu1 %11448, %v4623_v4  }
  0xda   : > { %4650 = vperm.xlu0 %11447, %v4624_v32  }
  0xdc   : > { %11089 = vmatmul.mubr.msk.bf16.gmra.mrb[56].mxu0 %vm1495_vm0, %v12318_v47  ;;  %11093 = vmatmul.mubr.msk.bf16.gmra.mrb[56].mxu1 %vm1495_vm0, %v12318_v47 }
  0xdd   : > { %2008 = vmatprep.mubr.bf16.mxu0 %v16976_v0  ;;  %2081 = vmatprep.mubr.bf16.mxu1 %v16976_v0 }
  0xde   : > { %4660 = vperm.xlu0 %11447, %v4626_v41   ;;  %v12635_v41 = vld [vmem:[%s12241_s26 + $0x198] sm:$0xff] }
  0xdf   : > { %v12542_v27 = vpop.permute.xlu0 %797  ;;  %v12553_v29 = vpop.permute.xlu1 %807 }
  0xe4   : > { %11090 = vmatmul.mubr.msk.bf16.gmra.mrb[60].mxu0 %vm1495_vm0, %v12335_v50  ;;  %11094 = vmatmul.mubr.msk.bf16.gmra.mrb[60].mxu1 %vm1495_vm0, %v12335_v50 }
  0xe5   : > { %2124 = vmatprep.mubr.bf16.mxu0 %v16976_v0  ;;  %2197 = vmatprep.mubr.bf16.mxu1 %v16976_v0 }
  0xe6   : > { %v12555_v31 = vpop.permute.xlu0 %802 }
  0xec   : > { %11095 = vmatmul.mubr.msk.bf16.vlgmr.msra.gmra.mrb[64].mxu0 %vm1495_vm0, %v12258_v23  ;;  %11099 = vmatmul.mubr.msk.bf16.vlgmr.msra.gmra.mrb[64].mxu1 %vm1495_vm0, %v12258_v23 }
  0xed   : > { %2239 = vmatpush1.bf16.msra.mxu0 %v10955_v39  ;;  %2312 = vmatpush1.bf16.msra.mxu1 %v10957_v43 }
  0xee   : > { %2134 = vmatprep.mubr.bf16.mxu0 %v16976_v0  ;;  %2207 = vmatprep.mubr.bf16.mxu1 %v16976_v0 }
  0xef   : > { %2240 = vmatprep.subr.bf16.mxu0 %v11020_v44  ;;  %2313 = vmatprep.subr.bf16.mxu1 %v11022_v48 }
  0xf1   : > { %2241 = vmatpush1.bf16.msra.mxu0 %v11019_v52  ;;  %2314 = vmatpush1.bf16.msra.mxu1 %v11021_v53 }
  0xf2   : > { %2384 = vmatprep.subr.bf16.mxu0 %v10960_v54  ;;  %2457 = vmatprep.subr.bf16.mxu1 %v10962_v55 }
  0xf4   : > { %11096 = vmatmul.mubr.msk.bf16.gmra.mrb[68].mxu0 %vm1495_vm0, %v12295_v42  ;;  %11100 = vmatmul.mubr.msk.bf16.gmra.mrb[68].mxu1 %vm1495_vm0, %v12295_v42 }
  0xf5   : > { %2144 = vmatprep.mubr.bf16.mxu0 %v16976_v0  ;;  %2217 = vmatprep.mubr.bf16.mxu1 %v16976_v0 }
  0xfc   : > { %11097 = vmatmul.mubr.msk.bf16.gmra.mrb[72].mxu0 %vm1495_vm0, %v12318_v47  ;;  %11101 = vmatmul.mubr.msk.bf16.gmra.mrb[72].mxu1 %vm1495_vm0, %v12318_v47 }
  0xfd   : > { %2154 = vmatprep.mubr.bf16.mxu0 %v16976_v0  ;;  %2227 = vmatprep.mubr.bf16.mxu1 %v16976_v0 }
 0x104   : > { %11098 = vmatmul.mubr.msk.bf16.gmra.mrb[76].mxu0 %vm1495_vm0, %v12335_v50  ;;  %11102 = vmatmul.mubr.msk.bf16.gmra.mrb[76].mxu1 %vm1495_vm0, %v12335_v50 }
 0x105   : > { %2270 = vmatprep.mubr.bf16.mxu0 %v16976_v0  ;;  %2343 = vmatprep.mubr.bf16.mxu1 %v16976_v0 }
 0x10c   : > { %11103 = vmatmul.mubr.msk.bf16.vlgmr.msra.gmra.mrb[80].mxu0 %vm1495_vm0, %v12258_v23  ;;  %11107 = vmatmul.mubr.msk.bf16.vlgmr.msra.gmra.mrb[80].mxu1 %vm1495_vm0, %v12258_v23 }
 0x10d   : > { %2385 = vmatpush1.bf16.msra.mxu0 %v10959_v58  ;;  %2458 = vmatpush1.bf16.msra.mxu1 %v10961_v61 }
 0x10e   : > { %2280 = vmatprep.mubr.bf16.mxu0 %v16976_v0  ;;  %2353 = vmatprep.mubr.bf16.mxu1 %v16976_v0 }
 0x10f   : > { %2386 = vmatprep.subr.bf16.mxu0 %v11024_v62  ;;  %2459 = vmatprep.subr.bf16.mxu1 %v11026_v2  ;;  %v12583_v62 = vld [vmem:[%s12241_s26 + $0x280] sm:$0xff]  ;;  %v12587_v2 = vpop.permute.xlu1 %812 }
 0x111   : > { %2387 = vmatpush1.bf16.msra.mxu0 %v11023_v5  ;;  %2460 = vmatpush1.bf16.msra.mxu1 %v11025_v6  ;;  %v7806_v5 = vld [vmem:[%s16974_s8] sm:$0xff] }
 0x112   : > { %2530 = vmatprep.subr.bf16.mxu0 %v10964_v7  ;;  %2603 = vmatprep.subr.bf16.mxu1 %v10966_v8 }
 0x113   : > { %7809 = vperm.xlu0 %11447, %v7806_v5  }
 0x114   : > { %11104 = vmatmul.mubr.msk.bf16.gmra.mrb[84].mxu0 %vm1495_vm0, %v12295_v42  ;;  %11108 = vmatmul.mubr.msk.bf16.gmra.mrb[84].mxu1 %vm1495_vm0, %v12295_v42 }
 0x115   : > { %2290 = vmatprep.mubr.bf16.mxu0 %v16976_v0  ;;  %2363 = vmatprep.mubr.bf16.mxu1 %v16976_v0 }
 0x11c   : > { %11105 = vmatmul.mubr.msk.bf16.gmra.mrb[88].mxu0 %vm1495_vm0, %v12318_v47  ;;  %11109 = vmatmul.mubr.msk.bf16.gmra.mrb[88].mxu1 %vm1495_vm0, %v12318_v47 }
 0x11d   : > { %2300 = vmatprep.mubr.bf16.mxu0 %v16976_v0  ;;  %2373 = vmatprep.mubr.bf16.mxu1 %v16976_v0 }
 0x124   : > { %11106 = vmatmul.mubr.msk.bf16.gmra.mrb[92].mxu0 %vm1495_vm0, %v12335_v50  ;;  %11110 = vmatmul.mubr.msk.bf16.gmra.mrb[92].mxu1 %vm1495_vm0, %v12335_v50 }
 0x125   : > { %2416 = vmatprep.mubr.bf16.mxu0 %v16976_v0  ;;  %2489 = vmatprep.mubr.bf16.mxu1 %v16976_v0 }
 0x12c   : > { %11111 = vmatmul.mubr.msk.bf16.vlgmr.msra.gmra.mrb[96].mxu0 %vm1495_vm0, %v12258_v23  ;;  %11115 = vmatmul.mubr.msk.bf16.vlgmr.msra.gmra.mrb[96].mxu1 %vm1495_vm0, %v12258_v23 }
 0x12d   : > { %2531 = vmatpush1.bf16.msra.mxu0 %v10963_v11  ;;  %2604 = vmatpush1.bf16.msra.mxu1 %v10965_v14 }
 0x12e   : > { %2426 = vmatprep.mubr.bf16.mxu0 %v16976_v0  ;;  %2499 = vmatprep.mubr.bf16.mxu1 %v16976_v0 }
 0x12f   : > { %2532 = vmatprep.subr.bf16.mxu0 %v11028_v15  ;;  %2605 = vmatprep.subr.bf16.mxu1 %v11030_v18  ;;  %v10967_v15 = vcombine.low %v12512_v16, %v12515_v17  ;;  %v732_v18 = vld [vmem:[%s12241_s26 + $0x288] sm:$0xff]  ;;  %v11031_v16 = vcombine.low %v12583_v62, %v12590_v3 }
 0x131   : > { %2533 = vmatpush1.bf16.msra.mxu0 %v11027_v21  ;;  %2606 = vmatpush1.bf16.msra.mxu1 %v11029_v22  ;;  %v764_v21 = vld [vmem:[%s12241_s26 + $0x388] sm:$0xff] }
 0x132   : > { %2676 = vmatprep.subr.bf16.mxu0 %v10968_v24  ;;  %2749 = vmatprep.subr.bf16.mxu1 %v10970_v25  ;;  %v4625_v22 = vld [vmem:[%s16972_s6 + $0x28] sm:$0xff] }
 0x133   : > { %4655 = vperm.xlu1 %11448, %v4625_v22  }
 0x134   : > { %11112 = vmatmul.mubr.msk.bf16.gmra.mrb[100].mxu0 %vm1495_vm0, %v12295_v42  ;;  %11116 = vmatmul.mubr.msk.bf16.gmra.mrb[100].mxu1 %vm1495_vm0, %v12295_v42 }
 0x135   : > { %2436 = vmatprep.mubr.bf16.mxu0 %v16976_v0  ;;  %2509 = vmatprep.mubr.bf16.mxu1 %v16976_v0 }
 0x13c   : > { %11113 = vmatmul.mubr.msk.bf16.gmra.mrb[104].mxu0 %vm1495_vm0, %v12318_v47  ;;  %11117 = vmatmul.mubr.msk.bf16.gmra.mrb[104].mxu1 %vm1495_vm0, %v12318_v47 }
 0x13d   : > { %2446 = vmatprep.mubr.bf16.mxu0 %v16976_v0  ;;  %2519 = vmatprep.mubr.bf16.mxu1 %v16976_v0 }
 0x13f   : > { %v1542_v30 = vpop.f32.mrb[0].mxu0  ;;  %v1615_v34 = vpop.f32.mrb[0].mxu1 }
 0x140   : > { %v1543_v33 = vadd.f32 %v1542_v30, %v12542_v27  ;;  %v1544_v35 = vpop.f32.mrb[1].mxu0  ;;  %v1616_v37 = vadd.f32 %v1615_v34, %v12542_v27  ;;  %v1617_v39 = vpop.f32.mrb[1].mxu1  ;;  %v10969_v30 = vcombine.low %v12520_v19, %v12523_v20  ;;  %v11034_v20 = vcombine.high %v732_v18, %v764_v21 }
 0x141   : > { %v1545_v38 = vadd.f32 %v1544_v35, %v12542_v27  ;;  %v1546_v40 = vpop.f32.mrb[2].mxu0  ;;  %v1618_v43 = vadd.f32 %v1617_v39, %v12542_v27  ;;  %v1619_v45 = vpop.f32.mrb[2].mxu1  ;;  %v11032_v35 = vcombine.high %v12583_v62, %v12590_v3 }
 0x142   : > { %v1547_v44 = vadd.f32 %v1546_v40, %v12555_v31  ;;  %v1548_v46 = vpop.f32.mrb[3].mxu0  ;;  %v3846_v48 = vmax.f32 %v1616_v37, 0.0  ;;  %v1620_v49 = vadd.f32 %v1619_v45, %v12555_v31  ;;  %v1621_v52 = vpop.f32.mrb[3].mxu1  ;;  %v3844_v53 = vmax.f32 %v1543_v33, 0.0  ;;  %v12626_v37 = vld [vmem:[%s12241_s26 + $0x190] sm:$0xff]  ;;  %v12632_v40 = vld [vmem:[%s12241_s26 + $0x98] sm:$0xff] }
 0x143   : > { %v1549_v51 = vadd.f32 %v1548_v46, %v12555_v31  ;;  %v3847_v54 = vmax.f32 %v1618_v43, 0.0  ;;  %v1622_v56 = vadd.f32 %v1621_v52, %v12555_v31  ;;  %v3845_v57 = vmax.f32 %v1545_v38, 0.0  ;;  %v12639_v46 = vpop.permute.xlu0 %817 }
 0x144   : > { %v3908_v55 = vmax.f32 %v1547_v44, 0.0  ;;  %11114 = vmatmul.mubr.msk.bf16.gmra.mrb[108].mxu0 %vm1495_vm0, %v12335_v50  ;;  %v3910_v58 = vmax.f32 %v1620_v49, 0.0  ;;  %11118 = vmatmul.mubr.msk.bf16.gmra.mrb[108].mxu1 %vm1495_vm0, %v12335_v50 }
 0x145   : > { %v3909_v59 = vmax.f32 %v1549_v51, 0.0  ;;  %2562 = vmatprep.mubr.bf16.mxu0 %v16976_v0  ;;  %v3911_v61 = vmax.f32 %v1622_v56, 0.0  ;;  %2635 = vmatprep.mubr.bf16.mxu1 %v16976_v0  ;;  %v12648_v56 = vpop.permute.xlu1 %822 }
 0x146   : > { %v12579_v60 = vpack.c.bf16 %v3908_v55, %v3844_v53  ;;  %v12585_v63 = vpack.c.bf16 %v3910_v58, %v3846_v48  ;;  %v11033_v48 = vcombine.low %v732_v18, %v764_v21  ;;  %v10972_v53 = vcombine.high %v12623_v36, %v12626_v37 }
 0x147   : > { %v1552_v1 = vpop.f32.mrb[4].mxu0  ;;  %v12598_v6 = vpack.c.bf16 %v3909_v59, %v3845_v57  ;;  %v1625_v8 = vpop.f32.mrb[4].mxu1  ;;  %v12601_v10 = vpack.c.bf16 %v3911_v61, %v3847_v54  ;;  %v4627_v57 = vld [vmem:[%s16972_s6 + $0x38] sm:$0xff] }
 0x148   : > { %v1553_v7 = vadd.f32 %v1552_v1, %v12553_v29  ;;  %v1554_v9 = vpop.f32.mrb[5].mxu0  ;;  %v1626_v11 = vadd.f32 %v1625_v8, %v12553_v29  ;;  %v1627_v13 = vpop.f32.mrb[5].mxu1  ;;  %4665 = vperm.xlu1 %11448, %v4627_v57  }
 0x149   : > { %v1555_v12 = vadd.f32 %v1554_v9, %v12553_v29  ;;  %v1556_v14 = vpop.f32.mrb[6].mxu0  ;;  %v1628_v24 = vadd.f32 %v1627_v13, %v12553_v29  ;;  %v1629_v26 = vpop.f32.mrb[6].mxu1 }
 0x14a   : > { %v1557_v25 = vadd.f32 %v1556_v14, %v12587_v2  ;;  %v1558_v28 = vpop.f32.mrb[7].mxu0  ;;  %v3974_v17 = vmax.f32 %v1626_v11, 0.0  ;;  %v1630_v32 = vadd.f32 %v1629_v26, %v12587_v2  ;;  %v1631_v34 = vpop.f32.mrb[7].mxu1  ;;  %v3972_v38 = vmax.f32 %v1553_v7, 0.0 }
 0x14b   : > { %v1559_v33 = vadd.f32 %v1558_v28, %v12587_v2  ;;  %v1632_v19 = vadd.f32 %v1631_v34, %v12587_v2  ;;  %v3973_v43 = vmax.f32 %v1555_v12, 0.0  ;;  %v3975_v49 = vmax.f32 %v1628_v24, 0.0 }
 0x14c   : > { %v4036_v39 = vmax.f32 %v1557_v25, 0.0  ;;  %11119 = vmatmul.mubr.msk.bf16.vlgmr.msra.gmra.mrb[112].mxu0 %vm1495_vm0, %v12258_v23  ;;  %v4038_v44 = vmax.f32 %v1630_v32, 0.0  ;;  %11123 = vmatmul.mubr.msk.bf16.vlgmr.msra.gmra.mrb[112].mxu1 %vm1495_vm0, %v12258_v23  ;;  %v10974_v23 = vcombine.high %v12632_v40, %v12635_v41 }
 0x14d   : > { %v4037_v45 = vmax.f32 %v1559_v33, 0.0  ;;  %2677 = vmatpush1.bf16.msra.mxu0 %v10967_v15  ;;  %v4039_v52 = vmax.f32 %v1632_v19, 0.0  ;;  %2750 = vmatpush1.bf16.msra.mxu1 %v10969_v30 }
 0x14e   : > { %v12641_v51 = vpack.c.bf16 %v4036_v39, %v3972_v38  ;;  %2572 = vmatprep.mubr.bf16.mxu0 %v16976_v0  ;;  %v12646_v54 = vpack.c.bf16 %v4038_v44, %v3974_v17  ;;  %2645 = vmatprep.mubr.bf16.mxu1 %v16976_v0 }
 0x14f   : > { %v1562_v55 = vpop.f32.mrb[8].mxu0  ;;  %2678 = vmatprep.subr.bf16.mxu0 %v11032_v35  ;;  %v12656_v58 = vpack.c.bf16 %v4037_v45, %v3973_v43  ;;  %v1635_v59 = vpop.f32.mrb[8].mxu1  ;;  %2751 = vmatprep.subr.bf16.mxu1 %v11034_v20  ;;  %v12663_v12 = vpack.c.bf16 %v4039_v52, %v3975_v49 }
 0x150   : > { %v1564_v61 = vpop.f32.mrb[9].mxu0  ;;  %v1563_v62 = vadd.f32 %v1562_v55, %v12639_v46  ;;  %v1637_v3 = vpop.f32.mrb[9].mxu1  ;;  %v1636_v5 = vadd.f32 %v1635_v59, %v12639_v46 }
 0x151   : > { %v1565_v1 = vadd.f32 %v1564_v61, %v12639_v46  ;;  %v1566_v4 = vpop.f32.mrb[10].mxu0  ;;  %2679 = vmatpush1.bf16.msra.mxu0 %v11031_v16  ;;  %v1638_v7 = vadd.f32 %v1637_v3, %v12639_v46  ;;  %v1639_v9 = vpop.f32.mrb[10].mxu1  ;;  %2752 = vmatpush1.bf16.msra.mxu1 %v11033_v48 }
 0x152   : > { %v1567_v8 = vadd.f32 %v1566_v4, %v12648_v56  ;;  %v1568_v11 = vpop.f32.mrb[11].mxu0  ;;  %2822 = vmatprep.subr.bf16.mxu0 %v10972_v53  ;;  %v1640_v13 = vadd.f32 %v1639_v9, %v12648_v56  ;;  %v4102_v14 = vmax.f32 %v1636_v5, 0.0  ;;  %v1641_v18 = vpop.f32.mrb[11].mxu1  ;;  %2895 = vmatprep.subr.bf16.mxu1 %v10974_v23  ;;  %v4100_v22 = vmax.f32 %v1563_v62, 0.0 }
 0x153   : > { %v1569_v15 = vadd.f32 %v1568_v11, %v12648_v56  ;;  %v4103_v21 = vmax.f32 %v1638_v7, 0.0  ;;  %v1642_v25 = vadd.f32 %v1641_v18, %v12648_v56  ;;  %v4101_v26 = vmax.f32 %v1565_v1, 0.0  ;;  %v12672_v16 = vpop.permute.xlu0 %827  ;;  %v12680_v35 = vpop.permute.xlu1 %832 }
 0x154   : > { %v4164_v24 = vmax.f32 %v1567_v8, 0.0  ;;  %11120 = vmatmul.mubr.msk.bf16.gmra.mrb[116].mxu0 %vm1495_vm0, %v12295_v42  ;;  %v4166_v28 = vmax.f32 %v1640_v13, 0.0  ;;  %11124 = vmatmul.mubr.msk.bf16.gmra.mrb[116].mxu1 %vm1495_vm0, %v12295_v42 }
 0x155   : > { %v4165_v30 = vmax.f32 %v1569_v15, 0.0  ;;  %2582 = vmatprep.mubr.bf16.mxu0 %v16976_v0  ;;  %v4167_v32 = vmax.f32 %v1642_v25, 0.0  ;;  %2655 = vmatprep.mubr.bf16.mxu1 %v16976_v0 }
 0x156   : > { %v12675_v17 = vpack.c.bf16 %v4164_v24, %v4100_v22  ;;  %v12678_v33 = vpack.c.bf16 %v4166_v28, %v4102_v14 }
 0x157   : > { %v1572_v34 = vpop.f32.mrb[12].mxu0  ;;  %v12682_v38 = vpack.c.bf16 %v4165_v30, %v4101_v26  ;;  %v1645_v39 = vpop.f32.mrb[12].mxu1  ;;  %v12685_v20 = vpack.c.bf16 %v4167_v32, %v4103_v21 }
 0x158   : > { %v1574_v19 = vpop.f32.mrb[13].mxu0  ;;  %v1573_v42 = vadd.f32 %v1572_v34, %v12672_v16  ;;  %v1647_v44 = vpop.f32.mrb[13].mxu1  ;;  %v1646_v48 = vadd.f32 %v1645_v39, %v12672_v16 }
 0x159   : > { %v1575_v43 = vadd.f32 %v1574_v19, %v12672_v16  ;;  %v1576_v45 = vpop.f32.mrb[14].mxu0  ;;  %v1648_v49 = vadd.f32 %v1647_v44, %v12672_v16  ;;  %v1649_v53 = vpop.f32.mrb[14].mxu1 }
 0x15a   : > { %v1577_v52 = vadd.f32 %v1576_v45, %v12680_v35  ;;  %v1578_v55 = vpop.f32.mrb[15].mxu0  ;;  %v1650_v23 = vadd.f32 %v1649_v53, %v12680_v35  ;;  %v4230_v57 = vmax.f32 %v1646_v48, 0.0  ;;  %v1651_v61 = vpop.f32.mrb[15].mxu1  ;;  %v4228_v1 = vmax.f32 %v1573_v42, 0.0 }
 0x15b   : > { %v1579_v59 = vadd.f32 %v1578_v55, %v12680_v35  ;;  %v4231_v62 = vmax.f32 %v1648_v49, 0.0  ;;  %v1652_v4 = vadd.f32 %v1651_v61, %v12680_v35  ;;  %v4229_v5 = vmax.f32 %v1575_v43, 0.0 }
 0x15c   : > { %v4292_v3 = vmax.f32 %v1577_v52, 0.0  ;;  %11121 = vmatmul.mubr.msk.bf16.gmra.mrb[120].mxu0 %vm1495_vm0, %v12318_v47  ;;  %v4294_v7 = vmax.f32 %v1650_v23, 0.0  ;;  %11125 = vmatmul.mubr.msk.bf16.gmra.mrb[120].mxu1 %vm1495_vm0, %v12318_v47 }
 0x15d   : > { %v4293_v8 = vmax.f32 %v1579_v59, 0.0  ;;  %2592 = vmatprep.mubr.bf16.mxu0 %v16976_v0  ;;  %v4295_v11 = vmax.f32 %v1652_v4, 0.0  ;;  %2665 = vmatprep.mubr.bf16.mxu1 %v16976_v0 }
 0x15e   : > { %v12699_v9 = vpack.c.bf16 %v4292_v3, %v4228_v1  ;;  %v12702_v13 = vpack.c.bf16 %v4294_v7, %v4230_v57  ;;  %v733_v1 = vld [vmem:[%s12241_s26 + $0x290] sm:$0xff] }
 0x15f   : > { %v1688_v14 = vpop.f32.mrb[16].mxu0  ;;  %v12704_v15 = vpack.c.bf16 %v4293_v8, %v4229_v5  ;;  %v1761_v21 = vpop.f32.mrb[16].mxu1  ;;  %v12707_v24 = vpack.c.bf16 %v4295_v11, %v4231_v62  ;;  %v765_v3 = vld [vmem:[%s12241_s26 + $0x390] sm:$0xff]  ;;  %v734_v11 = vld [vmem:[%s12241_s26 + $0x298] sm:$0xff] }
 0x160   : > { %v1689_v18 = vadd.f32 %v1688_v14, %v12542_v27  ;;  %v1690_v22 = vpop.f32.mrb[17].mxu0  ;;  %v1762_v47 = vadd.f32 %v1761_v21, %v12542_v27  ;;  %v1763_v26 = vpop.f32.mrb[17].mxu1 }
 0x161   : > { %v1691_v25 = vadd.f32 %v1690_v22, %v12542_v27  ;;  %v1692_v28 = vpop.f32.mrb[18].mxu0  ;;  %v1764_v30 = vadd.f32 %v1763_v26, %v12542_v27  ;;  %v1765_v34 = vpop.f32.mrb[18].mxu1 }
 0x162   : > { %v1693_v32 = vadd.f32 %v1692_v28, %v12555_v31  ;;  %v1694_v39 = vpop.f32.mrb[19].mxu0  ;;  %v3850_v19 = vmax.f32 %v1762_v47, 0.0  ;;  %v1766_v42 = vadd.f32 %v1765_v34, %v12555_v31  ;;  %v1767_v44 = vpop.f32.mrb[19].mxu1  ;;  %v3848_v45 = vmax.f32 %v1689_v18, 0.0 }
 0x163   : > { %v1695_v43 = vadd.f32 %v1694_v39, %v12555_v31  ;;  %v3851_v48 = vmax.f32 %v1764_v30, 0.0  ;;  %v1768_v52 = vadd.f32 %v1767_v44, %v12555_v31  ;;  %v3849_v53 = vmax.f32 %v1691_v25, 0.0 }
 0x164   : > { %v3912_v49 = vmax.f32 %v1693_v32, 0.0  ;;  %11122 = vmatmul.mubr.msk.bf16.gmra.mrb[124].mxu0 %vm1495_vm0, %v12335_v50  ;;  %v3914_v55 = vmax.f32 %v1766_v42, 0.0  ;;  %11126 = vmatmul.mubr.msk.bf16.gmra.mrb[124].mxu1 %vm1495_vm0, %v12335_v50  ;;  %v766_v50 = vld [vmem:[%s12241_s26 + $0x398] sm:$0xff]  ;;  %v10971_v25 = vcombine.low %v12623_v36, %v12626_v37  ;;  %v10973_v34 = vcombine.low %v12632_v40, %v12635_v41  ;;  %v12746_v36 = vld [vmem:[%s12241_s26 + $0xa0] sm:$0xff]  ;;  %v12760_v41 = vld [vmem:[%s12241_s26 + $0xa8] sm:$0xff] }
 0x165   : > { %v3913_v23 = vmax.f32 %v1695_v43, 0.0  ;;  %2708 = vmatprep.mubr.bf16.mxu0 %v16976_v0  ;;  %v3915_v59 = vmax.f32 %v1768_v52, 0.0  ;;  %2781 = vmatprep.mubr.bf16.mxu1 %v16976_v0  ;;  %v11036_v39 = vcombine.high %v733_v1, %v765_v3  ;;  %v12749_v37 = vld [vmem:[%s12241_s26 + $0x1a0] sm:$0xff] }
 0x166   : > { %v12721_v57 = vpack.c.bf16 %v3912_v49, %v3848_v45  ;;  %v12724_v61 = vpack.c.bf16 %v3914_v55, %v3850_v19  ;;  %v11038_v45 = vcombine.high %v734_v11, %v766_v50  ;;  %v12755_v40 = vld [vmem:[%s16969_s3] sm:$0xff]   ;;  %v12763_v55 = vld [vmem:[%s12241_s26 + $0x1a8] sm:$0xff] }
 0x167   : > { %v1698_v62 = vpop.f32.mrb[20].mxu0  ;;  %v12728_v4 = vpack.c.bf16 %v3913_v23, %v3849_v53  ;;  %v1771_v7 = vpop.f32.mrb[20].mxu1  ;;  %v12733_v14 = vpack.c.bf16 %v3915_v59, %v3851_v48 }
 0x168   : > { %v1699_v5 = vadd.f32 %v1698_v62, %v12553_v29  ;;  %v1700_v8 = vpop.f32.mrb[21].mxu0  ;;  %v1772_v18 = vadd.f32 %v1771_v7, %v12553_v29  ;;  %v1773_v22 = vpop.f32.mrb[21].mxu1 }
 0x169   : > { %v1701_v21 = vadd.f32 %v1700_v8, %v12553_v29  ;;  %v1702_v47 = vpop.f32.mrb[22].mxu0  ;;  %v1774_v26 = vadd.f32 %v1773_v22, %v12553_v29  ;;  %v1775_v30 = vpop.f32.mrb[22].mxu1  ;;  %v10976_v22 = vcombine.high %v12746_v36, %v12749_v37 }
 0x16a   : > { %v1703_v28 = vadd.f32 %v1702_v47, %v12587_v2  ;;  %v1704_v32 = vpop.f32.mrb[23].mxu0  ;;  %v3978_v19 = vmax.f32 %v1772_v18, 0.0  ;;  %v1776_v42 = vadd.f32 %v1775_v30, %v12587_v2  ;;  %v1777_v44 = vpop.f32.mrb[23].mxu1  ;;  %v3976_v48 = vmax.f32 %v1699_v5, 0.0 }
 0x16b   : > { %v1705_v43 = vadd.f32 %v1704_v32, %v12587_v2  ;;  %v3979_v49 = vmax.f32 %v1774_v26, 0.0  ;;  %v1778_v53 = vadd.f32 %v1777_v44, %v12587_v2  ;;  %v3977_v23 = vmax.f32 %v1701_v21, 0.0 }
 0x16c   : > { %v4040_v52 = vmax.f32 %v1703_v28, 0.0  ;;  %11127 = vmatmul.mubr.msk.bf16.vlgmr.msra.gmra.mrb[128].mxu0 %vm1495_vm0, %v12755_v40  ;;  %v4042_v59 = vmax.f32 %v1776_v42, 0.0  ;;  %11131 = vmatmul.mubr.msk.bf16.vlgmr.msra.gmra.mrb[128].mxu1 %vm1495_vm0, %v12755_v40  ;;  %v11035_v5 = vcombine.low %v733_v1, %v765_v3  ;;  %v11037_v18 = vcombine.low %v734_v11, %v766_v50 }
 0x16d   : > { %v4041_v62 = vmax.f32 %v1705_v43, 0.0  ;;  %2823 = vmatpush1.bf16.msra.mxu0 %v10971_v25  ;;  %v4043_v8 = vmax.f32 %v1778_v53, 0.0  ;;  %2896 = vmatpush1.bf16.msra.mxu1 %v10973_v34  ;;  %v10978_v25 = vcombine.high %v12760_v41, %v12763_v55 }
 0x16e   : > { %v12767_v7 = vpack.c.bf16 %v4040_v52, %v3976_v48  ;;  %2718 = vmatprep.mubr.bf16.mxu0 %v16976_v0  ;;  %v12772_v47 = vpack.c.bf16 %v4042_v59, %v3978_v19  ;;  %2791 = vmatprep.mubr.bf16.mxu1 %v16976_v0 }
 0x16f   : > { %v1708_v21 = vpop.f32.mrb[24].mxu0  ;;  %2824 = vmatprep.subr.bf16.mxu0 %v11036_v39  ;;  %v12777_v1 = vpack.c.bf16 %v4041_v62, %v3977_v23  ;;  %v1781_v26 = vpop.f32.mrb[24].mxu1  ;;  %2897 = vmatprep.subr.bf16.mxu1 %v11038_v45  ;;  %v12780_v11 = vpack.c.bf16 %v4043_v8, %v3979_v49  ;;  %v12792_v62 = vld [vmem:[%s16969_s3 + $0x8] sm:$0xff]  }
 0x170   : > { %16978 = vst [vmem:[#allocation3_spill] sm:$0xff] %v12767_v7  ;;  %16979 = vst [vmem:[#allocation4_spill] sm:$0xff] %v12772_v47  ;;  %v1709_v3 = vadd.f32 %v1708_v21, %v12639_v46  ;;  %v1710_v28 = vpop.f32.mrb[25].mxu0  ;;  %v1782_v50 = vadd.f32 %v1781_v26, %v12639_v46  ;;  %v1783_v32 = vpop.f32.mrb[25].mxu1 }
 0x171   : > { %v1711_v30 = vadd.f32 %v1710_v28, %v12639_v46  ;;  %v1712_v34 = vpop.f32.mrb[26].mxu0  ;;  %2825 = vmatpush1.bf16.msra.mxu0 %v11035_v5  ;;  %v1784_v39 = vadd.f32 %v1783_v32, %v12639_v46  ;;  %v1785_v42 = vpop.f32.mrb[26].mxu1  ;;  %2898 = vmatpush1.bf16.msra.mxu1 %v11037_v18 }
 0x172   : > { %v1713_v19 = vadd.f32 %v1712_v34, %v12648_v56  ;;  %v1714_v43 = vpop.f32.mrb[27].mxu0  ;;  %2968 = vmatprep.subr.bf16.mxu0 %v10976_v22  ;;  %v4106_v44 = vmax.f32 %v1782_v50, 0.0  ;;  %v1786_v45 = vadd.f32 %v1785_v42, %v12648_v56  ;;  %v1787_v49 = vpop.f32.mrb[27].mxu1  ;;  %3041 = vmatprep.subr.bf16.mxu1 %v10978_v25  ;;  %v4104_v52 = vmax.f32 %v1709_v3, 0.0 }
 0x173   : > { %v1715_v48 = vadd.f32 %v1714_v43, %v12648_v56  ;;  %v4107_v53 = vmax.f32 %v1784_v39, 0.0  ;;  %v1788_v59 = vadd.f32 %v1787_v49, %v12648_v56  ;;  %v4105_v5 = vmax.f32 %v1711_v30, 0.0 }
 0x174   : > { %v4168_v23 = vmax.f32 %v1713_v19, 0.0  ;;  %11128 = vmatmul.mubr.msk.bf16.gmra.mrb[132].mxu0 %vm1495_vm0, %v12792_v62  ;;  %v4170_v8 = vmax.f32 %v1786_v45, 0.0  ;;  %11132 = vmatmul.mubr.msk.bf16.gmra.mrb[132].mxu1 %vm1495_vm0, %v12792_v62 }
 0x175   : > { %v4169_v18 = vmax.f32 %v1715_v48, 0.0  ;;  %2728 = vmatprep.mubr.bf16.mxu0 %v16976_v0  ;;  %v4171_v21 = vmax.f32 %v1788_v59, 0.0  ;;  %2801 = vmatprep.mubr.bf16.mxu1 %v16976_v0 }
 0x176   : > { %v12799_v22 = vpack.c.bf16 %v4168_v23, %v4104_v52  ;;  %v12802_v25 = vpack.c.bf16 %v4170_v8, %v4106_v44 }
 0x177   : > { %v1718_v3 = vpop.f32.mrb[28].mxu0  ;;  %v12804_v26 = vpack.c.bf16 %v4169_v18, %v4105_v5  ;;  %v1791_v50 = vpop.f32.mrb[28].mxu1  ;;  %v12807_v32 = vpack.c.bf16 %v4171_v21, %v4107_v53  ;;  %v12819_v21 = vld [vmem:[%s16969_s3 + $0x10] sm:$0xff]  }
 0x178   : > { %16980 = vst [vmem:[#allocation5_spill] sm:$0xff] %v12799_v22  ;;  %16981 = vst [vmem:[#allocation6_spill] sm:$0xff] %v12802_v25  ;;  %v1719_v28 = vadd.f32 %v1718_v3, %v12672_v16  ;;  %v1720_v30 = vpop.f32.mrb[29].mxu0  ;;  %v1792_v34 = vadd.f32 %v1791_v50, %v12672_v16  ;;  %v1793_v19 = vpop.f32.mrb[29].mxu1  ;;  %v768_v25 = vld [vmem:[%s12241_s26 + $0x3a8] sm:$0xff] }
 0x179   : > { %16982 = vst [vmem:[#allocation7_spill] sm:$0xff] %v12804_v26  ;;  %16983 = vst [vmem:[#allocation8_spill] sm:$0xff] %v12807_v32  ;;  %v1721_v39 = vadd.f32 %v1720_v30, %v12672_v16  ;;  %v1722_v42 = vpop.f32.mrb[30].mxu0  ;;  %v1794_v43 = vadd.f32 %v1793_v19, %v12672_v16  ;;  %v1795_v45 = vpop.f32.mrb[30].mxu1 }
 0x17a   : > { %v1723_v44 = vadd.f32 %v1722_v42, %v12680_v35  ;;  %v1724_v48 = vpop.f32.mrb[31].mxu0  ;;  %v4234_v49 = vmax.f32 %v1792_v34, 0.0  ;;  %v1796_v52 = vadd.f32 %v1795_v45, %v12680_v35  ;;  %v1797_v59 = vpop.f32.mrb[31].mxu1  ;;  %v4232_v53 = vmax.f32 %v1719_v28, 0.0 }
 0x17b   : > { %v1725_v23 = vadd.f32 %v1724_v48, %v12680_v35  ;;  %v4235_v5 = vmax.f32 %v1794_v43, 0.0  ;;  %v1798_v18 = vadd.f32 %v1797_v59, %v12680_v35  ;;  %v4233_v3 = vmax.f32 %v1721_v39, 0.0 }
 0x17c   : > { %v4296_v8 = vmax.f32 %v1723_v44, 0.0  ;;  %11129 = vmatmul.mubr.msk.bf16.gmra.mrb[136].mxu0 %vm1495_vm0, %v12819_v21  ;;  %v4298_v50 = vmax.f32 %v1796_v52, 0.0  ;;  %11133 = vmatmul.mubr.msk.bf16.gmra.mrb[136].mxu1 %vm1495_vm0, %v12819_v21 }
 0x17d   : > { %v4297_v30 = vmax.f32 %v1725_v23, 0.0  ;;  %2738 = vmatprep.mubr.bf16.mxu0 %v16976_v0  ;;  %v4299_v34 = vmax.f32 %v1798_v18, 0.0  ;;  %2811 = vmatprep.mubr.bf16.mxu1 %v16976_v0 }
 0x17e   : > { %v12826_v28 = vpack.c.bf16 %v4296_v8, %v4232_v53  ;;  %v12829_v19 = vpack.c.bf16 %v4298_v50, %v4234_v49 }
 0x17f   : > { %v1834_v42 = vpop.f32.mrb[32].mxu0  ;;  %v12831_v43 = vpack.c.bf16 %v4297_v30, %v4233_v3  ;;  %v1907_v39 = vpop.f32.mrb[32].mxu1  ;;  %v12834_v48 = vpack.c.bf16 %v4299_v34, %v4235_v5 }
 0x180   : > { %16984 = vst [vmem:[#allocation9_spill] sm:$0xff] %v12826_v28  ;;  %16985 = vst [vmem:[#allocation10_spill] sm:$0xff] %v12829_v19  ;;  %v1835_v44 = vadd.f32 %v1834_v42, %v12542_v27  ;;  %v1836_v45 = vpop.f32.mrb[33].mxu0  ;;  %v1908_v52 = vadd.f32 %v1907_v39, %v12542_v27  ;;  %v1909_v59 = vpop.f32.mrb[33].mxu1  ;;  %v735_v19 = vld [vmem:[%s12241_s26 + $0x2a0] sm:$0xff] }
 0x181   : > { %16986 = vst [vmem:[#allocation11_spill] sm:$0xff] %v12831_v43  ;;  %16987 = vst [vmem:[#allocation12_spill] sm:$0xff] %v12834_v48  ;;  %v1837_v23 = vadd.f32 %v1836_v45, %v12542_v27  ;;  %v1838_v53 = vpop.f32.mrb[34].mxu0  ;;  %v1910_v8 = vadd.f32 %v1909_v59, %v12542_v27  ;;  %v1911_v18 = vpop.f32.mrb[34].mxu1  ;;  %v12846_v59 = vld [vmem:[%s16969_s3 + $0x18] sm:$0xff]   ;;  %v767_v28 = vld [vmem:[%s12241_s26 + $0x3a0] sm:$0xff] }
 0x182   : > { %v1839_v49 = vadd.f32 %v1838_v53, %v12555_v31  ;;  %v1840_v50 = vpop.f32.mrb[35].mxu0  ;;  %v3854_v3 = vmax.f32 %v1908_v52, 0.0  ;;  %v1912_v30 = vadd.f32 %v1911_v18, %v12555_v31  ;;  %v1913_v0 = vpop.f32.mrb[35].mxu1  ;;  %v3852_v5 = vmax.f32 %v1835_v44, 0.0  ;;  %v736_v43 = vld [vmem:[%s12241_s26 + $0x2a8] sm:$0xff] }
 0x183   : > { %v1841_v42 = vadd.f32 %v1840_v50, %v12555_v31  ;;  %v3855_v34 = vmax.f32 %v1910_v8, 0.0  ;;  %v1914_v45 = vadd.f32 %v1913_v0, %v12555_v31  ;;  %v3853_v52 = vmax.f32 %v1837_v23, 0.0 }
 0x184   : > { %v3916_v39 = vmax.f32 %v1839_v49, 0.0  ;;  %11130 = vmatmul.mubr.msk.bf16.gmra.mrb[140].mxu0 %vm1495_vm0, %v12846_v59  ;;  %v3918_v53 = vmax.f32 %v1912_v30, 0.0  ;;  %11134 = vmatmul.mubr.msk.bf16.gmra.mrb[140].mxu1 %vm1495_vm0, %v12846_v59  ;;  %v16988_v44 = vmov 0   ;;  %v11039_v47 = vcombine.low %v735_v19, %v767_v28 }
 0x185   : > { %v3917_v18 = vmax.f32 %v1841_v42, 0.0  ;;  %2854 = vmatprep.mubr.bf16.mxu0 %v16988_v44  ;;  %v3919_v0 = vmax.f32 %v1914_v45, 0.0  ;;  %2927 = vmatprep.mubr.bf16.mxu1 %v16988_v44 }
 0x186   : > { %v12853_v8 = vpack.c.bf16 %v3916_v39, %v3852_v5  ;;  %v12856_v49 = vpack.c.bf16 %v3918_v53, %v3854_v3 }
 0x187   : > { %v1844_v50 = vpop.f32.mrb[36].mxu0  ;;  %v12860_v23 = vpack.c.bf16 %v3917_v18, %v3853_v52  ;;  %v1917_v42 = vpop.f32.mrb[36].mxu1  ;;  %v12865_v22 = vpack.c.bf16 %v3919_v0, %v3855_v34  ;;  %v10975_v52 = vcombine.low %v12746_v36, %v12749_v37  ;;  %v10977_v34 = vcombine.low %v12760_v41, %v12763_v55  ;;  %v12878_v36 = vld [vmem:[%s12241_s26 + $0xb0] sm:$0xff]  ;;  %v12887_v41 = vld [vmem:[%s12241_s26 + $0xb8] sm:$0xff] }
 0x188   : > { %16989 = vst [vmem:[#allocation13_spill] sm:$0xff] %v12853_v8  ;;  %16990 = vst [vmem:[#allocation14_spill] sm:$0xff] %v12856_v49  ;;  %v1845_v30 = vadd.f32 %v1844_v50, %v12553_v29  ;;  %v1846_v48 = vpop.f32.mrb[37].mxu0  ;;  %v1918_v5 = vadd.f32 %v1917_v42, %v12553_v29  ;;  %v1919_v3 = vpop.f32.mrb[37].mxu1  ;;  %v11040_v0 = vcombine.high %v735_v19, %v767_v28  ;;  %v12881_v37 = vld [vmem:[%s12241_s26 + $0x1b0] sm:$0xff]  ;;  %v12890_v55 = vld [vmem:[%s12241_s26 + $0x1b8] sm:$0xff] }
 0x189   : > { %16991 = vst [vmem:[#allocation15_spill] sm:$0xff] %v12860_v23  ;;  %16992 = vst [vmem:[#allocation16_spill] sm:$0xff] %v12865_v22  ;;  %v1847_v39 = vadd.f32 %v1846_v48, %v12553_v29  ;;  %v1848_v45 = vpop.f32.mrb[38].mxu0  ;;  %v1920_v53 = vadd.f32 %v1919_v3, %v12553_v29  ;;  %v1921_v50 = vpop.f32.mrb[38].mxu1  ;;  %v11042_v23 = vcombine.high %v736_v43, %v768_v25 }
 0x18a   : > { %v1849_v18 = vadd.f32 %v1848_v45, %v12587_v2  ;;  %v1850_v49 = vpop.f32.mrb[39].mxu0  ;;  %v3982_v42 = vmax.f32 %v1918_v5, 0.0  ;;  %v1922_v48 = vadd.f32 %v1921_v50, %v12587_v2  ;;  %v1923_v22 = vpop.f32.mrb[39].mxu1  ;;  %v3980_v3 = vmax.f32 %v1845_v30, 0.0 }
 0x18b   : > { %v1851_v8 = vadd.f32 %v1850_v49, %v12587_v2  ;;  %v3983_v45 = vmax.f32 %v1920_v53, 0.0  ;;  %v1924_v26 = vadd.f32 %v1923_v22, %v12587_v2  ;;  %v3981_v5 = vmax.f32 %v1847_v39, 0.0 }
 0x18c   : > { %v4044_v32 = vmax.f32 %v1849_v18, 0.0  ;;  %11135 = vmatmul.mubr.msk.bf16.vlgmr.msra.gmra.mrb[144].mxu0 %vm1495_vm0, %v12755_v40  ;;  %v4046_v49 = vmax.f32 %v1922_v48, 0.0  ;;  %11139 = vmatmul.mubr.msk.bf16.vlgmr.msra.gmra.mrb[144].mxu1 %vm1495_vm0, %v12755_v40  ;;  %v11041_v22 = vcombine.low %v736_v43, %v768_v25  ;;  %v10980_v18 = vcombine.high %v12878_v36, %v12881_v37 }
 0x18d   : > { %v4045_v50 = vmax.f32 %v1851_v8, 0.0  ;;  %2969 = vmatpush1.bf16.msra.mxu0 %v10975_v52  ;;  %v4047_v53 = vmax.f32 %v1924_v26, 0.0  ;;  %3042 = vmatpush1.bf16.msra.mxu1 %v10977_v34  ;;  %v10982_v8 = vcombine.high %v12887_v41, %v12890_v55 }
 0x18e   : > { %v12894_v30 = vpack.c.bf16 %v4044_v32, %v3980_v3  ;;  %2864 = vmatprep.mubr.bf16.mxu0 %v16988_v44  ;;  %v12899_v7 = vpack.c.bf16 %v4046_v49, %v3982_v42  ;;  %2937 = vmatprep.mubr.bf16.mxu1 %v16988_v44 }
 0x18f   : > { %v1854_v39 = vpop.f32.mrb[40].mxu0  ;;  %2970 = vmatprep.subr.bf16.mxu0 %v11040_v0  ;;  %v12904_v28 = vpack.c.bf16 %v4045_v50, %v3981_v5  ;;  %v1927_v32 = vpop.f32.mrb[40].mxu1  ;;  %3043 = vmatprep.subr.bf16.mxu1 %v11042_v23  ;;  %v12907_v25 = vpack.c.bf16 %v4047_v53, %v3983_v45 }
 0x190   : > { %16993 = vst [vmem:[#allocation17_spill] sm:$0xff] %v12894_v30  ;;  %16994 = vst [vmem:[#allocation18_spill] sm:$0xff] %v12899_v7  ;;  %v1855_v26 = vadd.f32 %v1854_v39, %v12639_v46  ;;  %v1856_v19 = vpop.f32.mrb[41].mxu0  ;;  %v1928_v43 = vadd.f32 %v1927_v32, %v12639_v46  ;;  %v1929_v34 = vpop.f32.mrb[41].mxu1 }
 0x191   : > { %16995 = vst [vmem:[#allocation19_spill] sm:$0xff] %v12904_v28  ;;  %16996 = vst [vmem:[#allocation20_spill] sm:$0xff] %v12907_v25  ;;  %v1857_v52 = vadd.f32 %v1856_v19, %v12639_v46  ;;  %v1858_v42 = vpop.f32.mrb[42].mxu0  ;;  %2971 = vmatpush1.bf16.msra.mxu0 %v11039_v47  ;;  %v1930_v0 = vadd.f32 %v1929_v34, %v12639_v46  ;;  %v1931_v3 = vpop.f32.mrb[42].mxu1  ;;  %3044 = vmatpush1.bf16.msra.mxu1 %v11041_v22 }
 0x192   : > { %v1859_v48 = vadd.f32 %v1858_v42, %v12648_v56  ;;  %v1860_v5 = vpop.f32.mrb[43].mxu0  ;;  %3114 = vmatprep.subr.bf16.mxu0 %v10980_v18  ;;  %v4110_v49 = vmax.f32 %v1928_v43, 0.0  ;;  %v1932_v23 = vadd.f32 %v1931_v3, %v12648_v56  ;;  %v1933_v50 = vpop.f32.mrb[43].mxu1  ;;  %3187 = vmatprep.subr.bf16.mxu1 %v10982_v8  ;;  %v4108_v53 = vmax.f32 %v1855_v26, 0.0 }
 0x193   : > { %v1861_v45 = vadd.f32 %v1860_v5, %v12648_v56  ;;  %v4111_v39 = vmax.f32 %v1930_v0, 0.0  ;;  %v1934_v47 = vadd.f32 %v1933_v50, %v12648_v56  ;;  %v4109_v19 = vmax.f32 %v1857_v52, 0.0 }
 0x194   : > { %v4172_v32 = vmax.f32 %v1859_v48, 0.0  ;;  %11136 = vmatmul.mubr.msk.bf16.gmra.mrb[148].mxu0 %vm1495_vm0, %v12792_v62  ;;  %v4174_v34 = vmax.f32 %v1932_v23, 0.0  ;;  %11140 = vmatmul.mubr.msk.bf16.gmra.mrb[148].mxu1 %vm1495_vm0, %v12792_v62 }
 0x195   : > { %v4173_v42 = vmax.f32 %v1861_v45, 0.0  ;;  %2874 = vmatprep.mubr.bf16.mxu0 %v16988_v44  ;;  %v4175_v18 = vmax.f32 %v1934_v47, 0.0  ;;  %2947 = vmatprep.mubr.bf16.mxu1 %v16988_v44 }
 0x196   : > { %v12921_v22 = vpack.c.bf16 %v4172_v32, %v4108_v53  ;;  %v12924_v8 = vpack.c.bf16 %v4174_v34, %v4110_v49 }
 0x197   : > { %v1864_v26 = vpop.f32.mrb[44].mxu0  ;;  %v12926_v43 = vpack.c.bf16 %v4173_v42, %v4109_v19  ;;  %v1937_v52 = vpop.f32.mrb[44].mxu1  ;;  %v12929_v3 = vpack.c.bf16 %v4175_v18, %v4111_v39 }
 0x198   : > { %16997 = vst [vmem:[#allocation21_spill] sm:$0xff] %v12921_v22  ;;  %16998 = vst [vmem:[#allocation22_spill] sm:$0xff] %v12924_v8  ;;  %v1865_v0 = vadd.f32 %v1864_v26, %v12672_v16  ;;  %v1866_v48 = vpop.f32.mrb[45].mxu0  ;;  %v1938_v5 = vadd.f32 %v1937_v52, %v12672_v16  ;;  %v1939_v45 = vpop.f32.mrb[45].mxu1 }
 0x199   : > { %16999 = vst [vmem:[#allocation23_spill] sm:$0xff] %v12926_v43  ;;  %17000 = vst [vmem:[#allocation24_spill] sm:$0xff] %v12929_v3  ;;  %v1867_v23 = vadd.f32 %v1866_v48, %v12672_v16  ;;  %v1868_v50 = vpop.f32.mrb[46].mxu0  ;;  %v1940_v53 = vadd.f32 %v1939_v45, %v12672_v16  ;;  %v1941_v32 = vpop.f32.mrb[46].mxu1  ;;  %v12990_v3 = vld [vmem:[%s12241_s26 + $0xc0] sm:$0xff] }
 0x19a   : > { %v1869_v49 = vadd.f32 %v1868_v50, %v12680_v35  ;;  %v1870_v47 = vpop.f32.mrb[47].mxu0  ;;  %v4238_v19 = vmax.f32 %v1938_v5, 0.0  ;;  %v1942_v34 = vadd.f32 %v1941_v32, %v12680_v35  ;;  %v1943_v26 = vpop.f32.mrb[47].mxu1  ;;  %v4236_v39 = vmax.f32 %v1865_v0, 0.0 }
 0x19b   : > { %v1871_v42 = vadd.f32 %v1870_v47, %v12680_v35  ;;  %v4239_v18 = vmax.f32 %v1940_v53, 0.0  ;;  %v1944_v52 = vadd.f32 %v1943_v26, %v12680_v35  ;;  %v4237_v48 = vmax.f32 %v1867_v23, 0.0 }
 0x19c   : > { %v4300_v8 = vmax.f32 %v1869_v49, 0.0  ;;  %11137 = vmatmul.mubr.msk.bf16.gmra.mrb[152].mxu0 %vm1495_vm0, %v12819_v21  ;;  %v4302_v45 = vmax.f32 %v1942_v34, 0.0  ;;  %11141 = vmatmul.mubr.msk.bf16.gmra.mrb[152].mxu1 %vm1495_vm0, %v12819_v21 }
 0x19d   : > { %v4301_v22 = vmax.f32 %v1871_v42, 0.0  ;;  %2884 = vmatprep.mubr.bf16.mxu0 %v16988_v44  ;;  %v4303_v50 = vmax.f32 %v1944_v52, 0.0  ;;  %2957 = vmatprep.mubr.bf16.mxu1 %v16988_v44 }
 0x19e   : > { %v12943_v5 = vpack.c.bf16 %v4300_v8, %v4236_v39  ;;  %v12946_v0 = vpack.c.bf16 %v4302_v45, %v4238_v19 }
 0x19f   : > { %v1980_v53 = vpop.f32.mrb[48].mxu0  ;;  %v12948_v49 = vpack.c.bf16 %v4301_v22, %v4237_v48  ;;  %v2053_v23 = vpop.f32.mrb[48].mxu1  ;;  %v12951_v34 = vpack.c.bf16 %v4303_v50, %v4239_v18 }
 0x1a0   : > { %17001 = vst [vmem:[#allocation25_spill] sm:$0xff] %v12943_v5  ;;  %17002 = vst [vmem:[#allocation26_spill] sm:$0xff] %v12946_v0  ;;  %v1981_v32 = vadd.f32 %v1980_v53, %v12542_v27  ;;  %v1982_v47 = vpop.f32.mrb[49].mxu0  ;;  %v2054_v42 = vadd.f32 %v2053_v23, %v12542_v27  ;;  %v2055_v8 = vpop.f32.mrb[49].mxu1 }
 0x1a1   : > { %17003 = vst [vmem:[#allocation27_spill] sm:$0xff] %v12948_v49  ;;  %17004 = vst [vmem:[#allocation28_spill] sm:$0xff] %v12951_v34  ;;  %v1983_v26 = vadd.f32 %v1982_v47, %v12542_v27  ;;  %v1984_v39 = vpop.f32.mrb[50].mxu0  ;;  %v2056_v52 = vadd.f32 %v2055_v8, %v12542_v27  ;;  %v2057_v45 = vpop.f32.mrb[50].mxu1 }
 0x1a2   : > { %v1985_v19 = vadd.f32 %v1984_v39, %v12555_v31  ;;  %v1986_v0 = vpop.f32.mrb[51].mxu0  ;;  %v3858_v22 = vmax.f32 %v2054_v42, 0.0  ;;  %v2058_v48 = vadd.f32 %v2057_v45, %v12555_v31  ;;  %v2059_v5 = vpop.f32.mrb[51].mxu1  ;;  %v3856_v18 = vmax.f32 %v1981_v32, 0.0 }
 0x1a3   : > { %v1987_v53 = vadd.f32 %v1986_v0, %v12555_v31  ;;  %v3859_v50 = vmax.f32 %v2056_v52, 0.0  ;;  %v2060_v47 = vadd.f32 %v2059_v5, %v12555_v31  ;;  %v3857_v8 = vmax.f32 %v1983_v26, 0.0  ;;  %v737_v52 = vld [vmem:[%s12241_s26 + $0x2b0] sm:$0xff] }
 0x1a4   : > { %v3920_v23 = vmax.f32 %v1985_v19, 0.0  ;;  %11138 = vmatmul.mubr.msk.bf16.gmra.mrb[156].mxu0 %vm1495_vm0, %v12846_v59  ;;  %v3922_v39 = vmax.f32 %v2058_v48, 0.0  ;;  %11142 = vmatmul.mubr.msk.bf16.gmra.mrb[156].mxu1 %vm1495_vm0, %v12846_v59  ;;  %v769_v19 = vld [vmem:[%s12241_s26 + $0x3b0] sm:$0xff] }
 0x1a5   : > { %v3921_v34 = vmax.f32 %v1987_v53, 0.0  ;;  %3000 = vmatprep.mubr.bf16.mxu0 %v16988_v44  ;;  %v3923_v42 = vmax.f32 %v2060_v47, 0.0  ;;  %3073 = vmatprep.mubr.bf16.mxu1 %v16988_v44 }
 0x1a6   : > { %v12965_v0 = vpack.c.bf16 %v3920_v23, %v3856_v18  ;;  %v12968_v32 = vpack.c.bf16 %v3922_v39, %v3858_v22  ;;  %v10979_v22 = vcombine.low %v12878_v36, %v12881_v37  ;;  %v738_v39 = vld [vmem:[%s12241_s26 + $0x2b8] sm:$0xff]  ;;  %v11044_v37 = vcombine.high %v737_v52, %v769_v19 }
 0x1a7   : > { %v1990_v5 = vpop.f32.mrb[52].mxu0  ;;  %v12972_v26 = vpack.c.bf16 %v3921_v34, %v3857_v8  ;;  %v2063_v48 = vpop.f32.mrb[52].mxu1  ;;  %v12975_v49 = vpack.c.bf16 %v3923_v42, %v3859_v50  ;;  %v770_v34 = vld [vmem:[%s12241_s26 + $0x3b8] sm:$0xff]  ;;  %v10981_v42 = vcombine.low %v12887_v41, %v12890_v55  ;;  %v12999_v55 = vld [vmem:[%s12241_s26 + $0xc8] sm:$0xff] }
 0x1a8   : > { %17005 = vst [vmem:[#allocation29_spill] sm:$0xff] %v12965_v0  ;;  %17006 = vst [vmem:[#allocation30_spill] sm:$0xff] %v12968_v32  ;;  %v1991_v45 = vadd.f32 %v1990_v5, %v12553_v29  ;;  %v1992_v53 = vpop.f32.mrb[53].mxu0  ;;  %v2064_v18 = vadd.f32 %v2063_v48, %v12553_v29  ;;  %v2065_v47 = vpop.f32.mrb[53].mxu1  ;;  %v11043_v48 = vcombine.low %v737_v52, %v769_v19 }
 0x1a9   : > { %17007 = vst [vmem:[#allocation31_spill] sm:$0xff] %v12972_v26  ;;  %17008 = vst [vmem:[#allocation32_spill] sm:$0xff] %v12975_v49  ;;  %v1993_v23 = vadd.f32 %v1992_v53, %v12553_v29  ;;  %v1994_v0 = vpop.f32.mrb[54].mxu0  ;;  %v2066_v8 = vadd.f32 %v2065_v47, %v12553_v29  ;;  %v2067_v32 = vpop.f32.mrb[54].mxu1  ;;  %v12993_v47 = vld [vmem:[%s12241_s26 + $0x1c0] sm:$0xff]  ;;  %v11046_v41 = vcombine.high %v738_v39, %v770_v34 }
 0x1aa   : > { %v1995_v5 = vadd.f32 %v1994_v0, %v12587_v2  ;;  %v1996_v50 = vpop.f32.mrb[55].mxu0  ;;  %v3986_v53 = vmax.f32 %v2064_v18, 0.0  ;;  %v2068_v49 = vadd.f32 %v2067_v32, %v12587_v2  ;;  %v2069_v36 = vpop.f32.mrb[55].mxu1  ;;  %v3984_v0 = vmax.f32 %v1991_v45, 0.0  ;;  %v13002_v18 = vld [vmem:[%s12241_s26 + $0x1c8] sm:$0xff] }
 0x1ab   : > { %v1997_v26 = vadd.f32 %v1996_v50, %v12587_v2  ;;  %v2070_v7 = vadd.f32 %v2069_v36, %v12587_v2  ;;  %v3985_v32 = vmax.f32 %v1993_v23, 0.0  ;;  %v3987_v50 = vmax.f32 %v2066_v8, 0.0 }
 0x1ac   : > { %v4048_v43 = vmax.f32 %v1995_v5, 0.0  ;;  %11143 = vmatmul.mubr.msk.bf16.vlgmr.msra.gmra.mrb[160].mxu0 %vm1495_vm0, %v12755_v40  ;;  %v4050_v30 = vmax.f32 %v2068_v49, 0.0  ;;  %11147 = vmatmul.mubr.msk.bf16.vlgmr.msra.gmra.mrb[160].mxu1 %vm1495_vm0, %v12755_v40  ;;  %v11045_v5 = vcombine.low %v738_v39, %v770_v34  ;;  %v10984_v36 = vcombine.high %v12990_v3, %v12993_v47 }
 0x1ad   : > { %v4049_v52 = vmax.f32 %v1997_v26, 0.0  ;;  %3115 = vmatpush1.bf16.msra.mxu0 %v10979_v22  ;;  %v4051_v45 = vmax.f32 %v2070_v7, 0.0  ;;  %3188 = vmatpush1.bf16.msra.mxu1 %v10981_v42  ;;  %v10986_v49 = vcombine.high %v12999_v55, %v13002_v18 }
 0x1ae   : > { %v13006_v19 = vpack.c.bf16 %v4048_v43, %v3984_v0  ;;  %3010 = vmatprep.mubr.bf16.mxu0 %v16988_v44  ;;  %v13011_v25 = vpack.c.bf16 %v4050_v30, %v3986_v53  ;;  %3083 = vmatprep.mubr.bf16.mxu1 %v16988_v44 }
 0x1af   : > { %v2000_v23 = vpop.f32.mrb[56].mxu0  ;;  %3116 = vmatprep.subr.bf16.mxu0 %v11044_v37  ;;  %v13016_v26 = vpack.c.bf16 %v4049_v52, %v3985_v32  ;;  %v2073_v43 = vpop.f32.mrb[56].mxu1  ;;  %3189 = vmatprep.subr.bf16.mxu1 %v11046_v41  ;;  %v13021_v42 = vpack.c.bf16 %v4051_v45, %v3987_v50 }
 0x1b0   : > { %17009 = vst [vmem:[#allocation33_spill] sm:$0xff] %v13006_v19  ;;  %17010 = vst [vmem:[#allocation34_spill] sm:$0xff] %v13011_v25  ;;  %v2001_v7 = vadd.f32 %v2000_v23, %v12639_v46  ;;  %v2002_v22 = vpop.f32.mrb[57].mxu0  ;;  %v2074_v39 = vadd.f32 %v2073_v43, %v12639_v46  ;;  %v2075_v30 = vpop.f32.mrb[57].mxu1 }
 0x1b1   : > { %17011 = vst [vmem:[#allocation35_spill] sm:$0xff] %v13016_v26  ;;  %v2003_v34 = vadd.f32 %v2002_v22, %v12639_v46  ;;  %v2004_v8 = vpop.f32.mrb[58].mxu0  ;;  %3117 = vmatpush1.bf16.msra.mxu0 %v11043_v48  ;;  %17012 = vst [vmem:[#allocation36_spill] sm:$0xff] %v13021_v42  ;;  %v2076_v53 = vadd.f32 %v2075_v30, %v12639_v46  ;;  %v2077_v0 = vpop.f32.mrb[58].mxu1  ;;  %3190 = vmatpush1.bf16.msra.mxu1 %v11045_v5 }
 0x1b2   : > { %v2005_v37 = vadd.f32 %v2004_v8, %v12648_v56  ;;  %v2006_v32 = vpop.f32.mrb[59].mxu0  ;;  %3260 = vmatprep.subr.bf16.mxu0 %v10984_v36  ;;  %v4114_v52 = vmax.f32 %v2074_v39, 0.0  ;;  %v2078_v41 = vadd.f32 %v2077_v0, %v12648_v56  ;;  %v2079_v43 = vpop.f32.mrb[59].mxu1  ;;  %3333 = vmatprep.subr.bf16.mxu1 %v10986_v49  ;;  %v4112_v22 = vmax.f32 %v2001_v7, 0.0 }
 0x1b3   : > { %v2007_v23 = vadd.f32 %v2006_v32, %v12648_v56  ;;  %v4115_v25 = vmax.f32 %v2076_v53, 0.0  ;;  %v2080_v50 = vadd.f32 %v2079_v43, %v12648_v56  ;;  %v4113_v45 = vmax.f32 %v2003_v34, 0.0 }
 0x1b4   : > { %v4176_v48 = vmax.f32 %v2005_v37, 0.0  ;;  %11144 = vmatmul.mubr.msk.bf16.gmra.mrb[164].mxu0 %vm1495_vm0, %v12792_v62  ;;  %v4178_v30 = vmax.f32 %v2078_v41, 0.0  ;;  %11148 = vmatmul.mubr.msk.bf16.gmra.mrb[164].mxu1 %vm1495_vm0, %v12792_v62 }
 0x1b5   : > { %v4177_v8 = vmax.f32 %v2007_v23, 0.0  ;;  %3020 = vmatprep.mubr.bf16.mxu0 %v16988_v44  ;;  %v4179_v36 = vmax.f32 %v2080_v50, 0.0  ;;  %3093 = vmatprep.mubr.bf16.mxu1 %v16988_v44 }
 0x1b6   : > { %v13033_v5 = vpack.c.bf16 %v4176_v48, %v4112_v22  ;;  %v13036_v49 = vpack.c.bf16 %v4178_v30, %v4114_v52 }
 0x1b7   : > { %v2010_v7 = vpop.f32.mrb[60].mxu0  ;;  %v13038_v39 = vpack.c.bf16 %v4177_v8, %v4113_v45  ;;  %v2083_v34 = vpop.f32.mrb[60].mxu1  ;;  %v13041_v0 = vpack.c.bf16 %v4179_v36, %v4115_v25 }
 0x1b8   : > { %17013 = vst [vmem:[#allocation37_spill] sm:$0xff] %v13033_v5  ;;  %17014 = vst [vmem:[#allocation38_spill] sm:$0xff] %v13036_v49  ;;  %v2011_v53 = vadd.f32 %v2010_v7, %v12672_v16  ;;  %v2012_v37 = vpop.f32.mrb[61].mxu0  ;;  %v2084_v32 = vadd.f32 %v2083_v34, %v12672_v16  ;;  %v2085_v23 = vpop.f32.mrb[61].mxu1 }
 0x1b9   : > { %17015 = vst [vmem:[#allocation39_spill] sm:$0xff] %v13038_v39  ;;  %17016 = vst [vmem:[#allocation40_spill] sm:$0xff] %v13041_v0  ;;  %v2013_v41 = vadd.f32 %v2012_v37, %v12672_v16  ;;  %v2014_v43 = vpop.f32.mrb[62].mxu0  ;;  %v2086_v22 = vadd.f32 %v2085_v23, %v12672_v16  ;;  %v2087_v48 = vpop.f32.mrb[62].mxu1  ;;  %v772_v0 = vld [vmem:[%s12241_s26 + $0x3c8] sm:$0xff] }
 0x1ba   : > { %v2015_v52 = vadd.f32 %v2014_v43, %v12680_v35  ;;  %v2016_v50 = vpop.f32.mrb[63].mxu0  ;;  %v4242_v45 = vmax.f32 %v2084_v32, 0.0  ;;  %v2088_v30 = vadd.f32 %v2087_v48, %v12680_v35  ;;  %v2089_v7 = vpop.f32.mrb[63].mxu1  ;;  %v4240_v25 = vmax.f32 %v2011_v53, 0.0 }
 0x1bb   : > { %v2017_v8 = vadd.f32 %v2016_v50, %v12680_v35  ;;  %v4243_v36 = vmax.f32 %v2086_v22, 0.0  ;;  %v2090_v34 = vadd.f32 %v2089_v7, %v12680_v35  ;;  %v4241_v37 = vmax.f32 %v2013_v41, 0.0 }
 0x1bc   : > { %v4304_v49 = vmax.f32 %v2015_v52, 0.0  ;;  %11145 = vmatmul.mubr.msk.bf16.gmra.mrb[168].mxu0 %vm1495_vm0, %v12819_v21  ;;  %v4306_v23 = vmax.f32 %v2088_v30, 0.0  ;;  %11149 = vmatmul.mubr.msk.bf16.gmra.mrb[168].mxu1 %vm1495_vm0, %v12819_v21 }
 0x1bd   : > { %v4305_v5 = vmax.f32 %v2017_v8, 0.0  ;;  %3030 = vmatprep.mubr.bf16.mxu0 %v16988_v44  ;;  %v4307_v43 = vmax.f32 %v2090_v34, 0.0  ;;  %3103 = vmatprep.mubr.bf16.mxu1 %v16988_v44 }
 0x1be   : > { %v13055_v32 = vpack.c.bf16 %v4304_v49, %v4240_v25  ;;  %v13058_v53 = vpack.c.bf16 %v4306_v23, %v4242_v45 }
 0x1bf   : > { %v2126_v22 = vpop.f32.mrb[64].mxu0  ;;  %v13060_v52 = vpack.c.bf16 %v4305_v5, %v4241_v37  ;;  %v2199_v41 = vpop.f32.mrb[64].mxu1  ;;  %v13063_v30 = vpack.c.bf16 %v4307_v43, %v4243_v36 }
 0x1c0   : > { %17017 = vst [vmem:[#allocation41_spill] sm:$0xff] %v13055_v32  ;;  %17018 = vst [vmem:[#allocation42_spill] sm:$0xff] %v13058_v53  ;;  %v2127_v48 = vadd.f32 %v2126_v22, %v12542_v27  ;;  %v2128_v50 = vpop.f32.mrb[65].mxu0  ;;  %v2200_v8 = vadd.f32 %v2199_v41, %v12542_v27  ;;  %v2201_v49 = vpop.f32.mrb[65].mxu1 }
 0x1c1   : > { %17019 = vst [vmem:[#allocation43_spill] sm:$0xff] %v13060_v52  ;;  %17020 = vst [vmem:[#allocation44_spill] sm:$0xff] %v13063_v30  ;;  %v2129_v7 = vadd.f32 %v2128_v50, %v12542_v27  ;;  %v2130_v25 = vpop.f32.mrb[66].mxu0  ;;  %v2202_v34 = vadd.f32 %v2201_v49, %v12542_v27  ;;  %v2203_v23 = vpop.f32.mrb[66].mxu1  ;;  %v740_v52 = vld [vmem:[%s12241_s26 + $0x2c8] sm:$0xff] }
 0x1c2   : > { %v2131_v45 = vadd.f32 %v2130_v25, %v12555_v31  ;;  %v2132_v53 = vpop.f32.mrb[67].mxu0  ;;  %v3862_v5 = vmax.f32 %v2200_v8, 0.0  ;;  %v2204_v37 = vadd.f32 %v2203_v23, %v12555_v31  ;;  %v2205_v32 = vpop.f32.mrb[67].mxu1  ;;  %v3860_v36 = vmax.f32 %v2127_v48, 0.0  ;;  %v771_v23 = vld [vmem:[%s12241_s26 + $0x3c0] sm:$0xff] }
 0x1c3   : > { %v2133_v22 = vadd.f32 %v2132_v53, %v12555_v31  ;;  %v3863_v43 = vmax.f32 %v2202_v34, 0.0  ;;  %v2206_v50 = vadd.f32 %v2205_v32, %v12555_v31  ;;  %v3861_v49 = vmax.f32 %v2129_v7, 0.0 }
 0x1c4   : > { %v3924_v41 = vmax.f32 %v2131_v45, 0.0  ;;  %11146 = vmatmul.mubr.msk.bf16.gmra.mrb[172].mxu0 %vm1495_vm0, %v12846_v59  ;;  %v3926_v25 = vmax.f32 %v2204_v37, 0.0  ;;  %11150 = vmatmul.mubr.msk.bf16.gmra.mrb[172].mxu1 %vm1495_vm0, %v12846_v59  ;;  %v739_v45 = vld [vmem:[%s12241_s26 + $0x2c0] sm:$0xff] }
 0x1c5   : > { %v3925_v8 = vmax.f32 %v2133_v22, 0.0  ;;  %3146 = vmatprep.mubr.bf16.mxu0 %v16988_v44  ;;  %v3927_v48 = vmax.f32 %v2206_v50, 0.0  ;;  %3219 = vmatprep.mubr.bf16.mxu1 %v16988_v44  ;;  %v11047_v26 = vcombine.low %v739_v45, %v771_v23 }
 0x1c6   : > { %v13077_v53 = vpack.c.bf16 %v3924_v41, %v3860_v36  ;;  %v13080_v34 = vpack.c.bf16 %v3926_v25, %v3862_v5 }
 0x1c7   : > { %v2136_v32 = vpop.f32.mrb[68].mxu0  ;;  %v13084_v7 = vpack.c.bf16 %v3925_v8, %v3861_v49  ;;  %v2209_v22 = vpop.f32.mrb[68].mxu1  ;;  %v13089_v39 = vpack.c.bf16 %v3927_v48, %v3863_v43  ;;  %v10983_v49 = vcombine.low %v12990_v3, %v12993_v47  ;;  %v10985_v43 = vcombine.low %v12999_v55, %v13002_v18  ;;  %v13102_v3 = vld [vmem:[%s12241_s26 + $0xd0] sm:$0xff]  ;;  %v13111_v55 = vld [vmem:[%s12241_s26 + $0xd8] sm:$0xff] }
 0x1c8   : > { %17021 = vst [vmem:[#allocation45_spill] sm:$0xff] %v13077_v53  ;;  %17022 = vst [vmem:[#allocation46_spill] sm:$0xff] %v13080_v34  ;;  %v2137_v37 = vadd.f32 %v2136_v32, %v12553_v29  ;;  %v2138_v30 = vpop.f32.mrb[69].mxu0  ;;  %v2210_v36 = vadd.f32 %v2209_v22, %v12553_v29  ;;  %v2211_v5 = vpop.f32.mrb[69].mxu1  ;;  %v11048_v48 = vcombine.high %v739_v45, %v771_v23  ;;  %v13105_v47 = vld [vmem:[%s12241_s26 + $0x1d0] sm:$0xff]  ;;  %v13114_v18 = vld [vmem:[%s12241_s26 + $0x1d8] sm:$0xff] }
 0x1c9   : > { %17023 = vst [vmem:[#allocation47_spill] sm:$0xff] %v13084_v7  ;;  %17024 = vst [vmem:[#allocation48_spill] sm:$0xff] %v13089_v39  ;;  %v2139_v41 = vadd.f32 %v2138_v30, %v12553_v29  ;;  %v2140_v50 = vpop.f32.mrb[70].mxu0  ;;  %v2212_v25 = vadd.f32 %v2211_v5, %v12553_v29  ;;  %v2213_v32 = vpop.f32.mrb[70].mxu1  ;;  %v11050_v7 = vcombine.high %v740_v52, %v772_v0 }
 0x1ca   : > { %v2141_v8 = vadd.f32 %v2140_v50, %v12587_v2  ;;  %v2142_v34 = vpop.f32.mrb[71].mxu0  ;;  %v3990_v22 = vmax.f32 %v2210_v36, 0.0  ;;  %v2214_v30 = vadd.f32 %v2213_v32, %v12587_v2  ;;  %v2215_v39 = vpop.f32.mrb[71].mxu1  ;;  %v3988_v5 = vmax.f32 %v2137_v37, 0.0 }
 0x1cb   : > { %v2143_v53 = vadd.f32 %v2142_v34, %v12587_v2  ;;  %v3991_v50 = vmax.f32 %v2212_v25, 0.0  ;;  %v2216_v42 = vadd.f32 %v2215_v39, %v12587_v2  ;;  %v3989_v36 = vmax.f32 %v2139_v41, 0.0 }
 0x1cc   : > { %v4052_v19 = vmax.f32 %v2141_v8, 0.0  ;;  %11151 = vmatmul.mubr.msk.bf16.vlgmr.msra.gmra.mrb[176].mxu0 %vm1495_vm0, %v12755_v40  ;;  %v4054_v34 = vmax.f32 %v2214_v30, 0.0  ;;  %11155 = vmatmul.mubr.msk.bf16.vlgmr.msra.gmra.mrb[176].mxu1 %vm1495_vm0, %v12755_v40  ;;  %v11049_v39 = vcombine.low %v740_v52, %v772_v0  ;;  %v10988_v8 = vcombine.high %v13102_v3, %v13105_v47 }
 0x1cd   : > { %v4053_v32 = vmax.f32 %v2143_v53, 0.0  ;;  %3261 = vmatpush1.bf16.msra.mxu0 %v10983_v49  ;;  %v4055_v25 = vmax.f32 %v2216_v42, 0.0  ;;  %3334 = vmatpush1.bf16.msra.mxu1 %v10985_v43  ;;  %v10990_v40 = vcombine.high %v13111_v55, %v13114_v18 }
 0x1ce   : > { %v13118_v37 = vpack.c.bf16 %v4052_v19, %v3988_v5  ;;  %3156 = vmatprep.mubr.bf16.mxu0 %v16988_v44  ;;  %v13123_v28 = vpack.c.bf16 %v4054_v34, %v3990_v22  ;;  %3229 = vmatprep.mubr.bf16.mxu1 %v16988_v44 }
 0x1cf   : > { %v2146_v41 = vpop.f32.mrb[72].mxu0  ;;  %3262 = vmatprep.subr.bf16.mxu0 %v11048_v48  ;;  %v13128_v53 = vpack.c.bf16 %v4053_v32, %v3989_v36  ;;  %v2219_v42 = vpop.f32.mrb[72].mxu1  ;;  %3335 = vmatprep.subr.bf16.mxu1 %v11050_v7  ;;  %v13131_v0 = vpack.c.bf16 %v4055_v25, %v3991_v50 }
 0x1d0   : > { %17025 = vst [vmem:[#allocation49_spill] sm:$0xff] %v13118_v37  ;;  %17026 = vst [vmem:[#allocation50_spill] sm:$0xff] %v13123_v28  ;;  %v2147_v19 = vadd.f32 %v2146_v41, %v12639_v46  ;;  %v2148_v45 = vpop.f32.mrb[73].mxu0  ;;  %v2220_v52 = vadd.f32 %v2219_v42, %v12639_v46  ;;  %v2221_v49 = vpop.f32.mrb[73].mxu1 }
 0x1d1   : > { %17027 = vst [vmem:[#allocation51_spill] sm:$0xff] %v13128_v53  ;;  %17028 = vst [vmem:[#allocation52_spill] sm:$0xff] %v13131_v0  ;;  %v2149_v23 = vadd.f32 %v2148_v45, %v12639_v46  ;;  %v2150_v43 = vpop.f32.mrb[74].mxu0  ;;  %3263 = vmatpush1.bf16.msra.mxu0 %v11047_v26  ;;  %v2222_v48 = vadd.f32 %v2221_v49, %v12639_v46  ;;  %v2223_v30 = vpop.f32.mrb[74].mxu1  ;;  %3336 = vmatpush1.bf16.msra.mxu1 %v11049_v39 }
 0x1d2   : > { %v2151_v22 = vadd.f32 %v2150_v43, %v12648_v56  ;;  %v2152_v5 = vpop.f32.mrb[75].mxu0  ;;  %3406 = vmatprep.subr.bf16.mxu0 %v10988_v8  ;;  %v4118_v36 = vmax.f32 %v2220_v52, 0.0  ;;  %v2224_v7 = vadd.f32 %v2223_v30, %v12648_v56  ;;  %v2225_v34 = vpop.f32.mrb[75].mxu1  ;;  %3479 = vmatprep.subr.bf16.mxu1 %v10990_v40  ;;  %v4116_v32 = vmax.f32 %v2147_v19, 0.0 }
 0x1d3   : > { %v2153_v50 = vadd.f32 %v2152_v5, %v12648_v56  ;;  %v4119_v25 = vmax.f32 %v2222_v48, 0.0  ;;  %v2226_v26 = vadd.f32 %v2225_v34, %v12648_v56  ;;  %v4117_v42 = vmax.f32 %v2149_v23, 0.0 }
 0x1d4   : > { %v4180_v41 = vmax.f32 %v2151_v22, 0.0  ;;  %11152 = vmatmul.mubr.msk.bf16.gmra.mrb[180].mxu0 %vm1495_vm0, %v12792_v62  ;;  %v4182_v45 = vmax.f32 %v2224_v7, 0.0  ;;  %11156 = vmatmul.mubr.msk.bf16.gmra.mrb[180].mxu1 %vm1495_vm0, %v12792_v62 }
 0x1d5   : > { %v4181_v49 = vmax.f32 %v2153_v50, 0.0  ;;  %3166 = vmatprep.mubr.bf16.mxu0 %v16988_v44  ;;  %v4183_v8 = vmax.f32 %v2226_v26, 0.0  ;;  %3239 = vmatprep.mubr.bf16.mxu1 %v16988_v44 }
 0x1d6   : > { %v13145_v39 = vpack.c.bf16 %v4180_v41, %v4116_v32  ;;  %v13148_v40 = vpack.c.bf16 %v4182_v45, %v4118_v36 }
 0x1d7   : > { %v2156_v19 = vpop.f32.mrb[76].mxu0  ;;  %v13150_v52 = vpack.c.bf16 %v4181_v49, %v4117_v42  ;;  %v2229_v23 = vpop.f32.mrb[76].mxu1  ;;  %v13153_v22 = vpack.c.bf16 %v4183_v8, %v4119_v25 }
 0x1d8   : > { %17029 = vst [vmem:[#allocation53_spill] sm:$0xff] %v13145_v39  ;;  %17030 = vst [vmem:[#allocation54_spill] sm:$0xff] %v13148_v40  ;;  %v2157_v43 = vadd.f32 %v2156_v19, %v12672_v16  ;;  %v2158_v48 = vpop.f32.mrb[77].mxu0  ;;  %v2230_v62 = vadd.f32 %v2229_v23, %v12672_v16  ;;  %v2231_v5 = vpop.f32.mrb[77].mxu1 }
 0x1d9   : > { %17031 = vst [vmem:[#allocation55_spill] sm:$0xff] %v13150_v52  ;;  %17032 = vst [vmem:[#allocation56_spill] sm:$0xff] %v13153_v22  ;;  %v2159_v30 = vadd.f32 %v2158_v48, %v12672_v16  ;;  %v2160_v7 = vpop.f32.mrb[78].mxu0  ;;  %v2232_v50 = vadd.f32 %v2231_v5, %v12672_v16  ;;  %v2233_v34 = vpop.f32.mrb[78].mxu1 }
 0x1da   : > { %v2161_v36 = vadd.f32 %v2160_v7, %v12680_v35  ;;  %v2162_v32 = vpop.f32.mrb[79].mxu0  ;;  %v4246_v41 = vmax.f32 %v2230_v62, 0.0  ;;  %v2234_v26 = vadd.f32 %v2233_v34, %v12680_v35  ;;  %v2235_v45 = vpop.f32.mrb[79].mxu1  ;;  %v4244_v25 = vmax.f32 %v2157_v43, 0.0 }
 0x1db   : > { %v2163_v42 = vadd.f32 %v2162_v32, %v12680_v35  ;;  %v4247_v49 = vmax.f32 %v2232_v50, 0.0  ;;  %v2236_v19 = vadd.f32 %v2235_v45, %v12680_v35  ;;  %v4245_v23 = vmax.f32 %v2159_v30, 0.0 }
 0x1dc   : > { %v4308_v8 = vmax.f32 %v2161_v36, 0.0  ;;  %11153 = vmatmul.mubr.msk.bf16.gmra.mrb[184].mxu0 %vm1495_vm0, %v12819_v21  ;;  %v4310_v48 = vmax.f32 %v2234_v26, 0.0  ;;  %11157 = vmatmul.mubr.msk.bf16.gmra.mrb[184].mxu1 %vm1495_vm0, %v12819_v21 }
 0x1dd   : > { %v4309_v5 = vmax.f32 %v2163_v42, 0.0  ;;  %3176 = vmatprep.mubr.bf16.mxu0 %v16988_v44  ;;  %v4311_v7 = vmax.f32 %v2236_v19, 0.0  ;;  %3249 = vmatprep.mubr.bf16.mxu1 %v16988_v44 }
 0x1de   : > { %v13167_v62 = vpack.c.bf16 %v4308_v8, %v4244_v25  ;;  %v13170_v43 = vpack.c.bf16 %v4310_v48, %v4246_v41 }
 0x1df   : > { %v2272_v50 = vpop.f32.mrb[80].mxu0  ;;  %v13172_v36 = vpack.c.bf16 %v4309_v5, %v4245_v23  ;;  %v2345_v30 = vpop.f32.mrb[80].mxu1  ;;  %v13175_v26 = vpack.c.bf16 %v4311_v7, %v4247_v49 }
 0x1e0   : > { %17033 = vst [vmem:[#allocation57_spill] sm:$0xff] %v13167_v62  ;;  %17034 = vst [vmem:[#allocation58_spill] sm:$0xff] %v13170_v43  ;;  %v2273_v34 = vadd.f32 %v2272_v50, %v12542_v27  ;;  %v2274_v32 = vpop.f32.mrb[81].mxu0  ;;  %v2346_v21 = vadd.f32 %v2345_v30, %v12542_v27  ;;  %v2347_v45 = vpop.f32.mrb[81].mxu1 }
 0x1e1   : > { %17035 = vst [vmem:[#allocation59_spill] sm:$0xff] %v13172_v36  ;;  %17036 = vst [vmem:[#allocation60_spill] sm:$0xff] %v13175_v26  ;;  %v2275_v42 = vadd.f32 %v2274_v32, %v12542_v27  ;;  %v2276_v25 = vpop.f32.mrb[82].mxu0  ;;  %v2348_v8 = vadd.f32 %v2347_v45, %v12542_v27  ;;  %v2349_v19 = vpop.f32.mrb[82].mxu1  ;;  %v742_v26 = vld [vmem:[%s12241_s26 + $0x2d8] sm:$0xff] }
 0x1e2   : > { %v2277_v41 = vadd.f32 %v2276_v25, %v12555_v31  ;;  %v2278_v48 = vpop.f32.mrb[83].mxu0  ;;  %v3866_v23 = vmax.f32 %v2346_v21, 0.0  ;;  %v2350_v5 = vadd.f32 %v2349_v19, %v12555_v31  ;;  %v2351_v43 = vpop.f32.mrb[83].mxu1  ;;  %v3864_v49 = vmax.f32 %v2273_v34, 0.0 }
 0x1e3   : > { %v2279_v50 = vadd.f32 %v2278_v48, %v12555_v31  ;;  %v3867_v7 = vmax.f32 %v2348_v8, 0.0  ;;  %v2352_v32 = vadd.f32 %v2351_v43, %v12555_v31  ;;  %v3865_v45 = vmax.f32 %v2275_v42, 0.0  ;;  %v773_v48 = vld [vmem:[%s12241_s26 + $0x3d0] sm:$0xff] }
 0x1e4   : > { %v3928_v30 = vmax.f32 %v2277_v41, 0.0  ;;  %11154 = vmatmul.mubr.msk.bf16.gmra.mrb[188].mxu0 %vm1495_vm0, %v12846_v59  ;;  %v3930_v25 = vmax.f32 %v2350_v5, 0.0  ;;  %11158 = vmatmul.mubr.msk.bf16.gmra.mrb[188].mxu1 %vm1495_vm0, %v12846_v59  ;;  %v741_v41 = vld [vmem:[%s12241_s26 + $0x2d0] sm:$0xff]  ;;  %v774_v59 = vld [vmem:[%s12241_s26 + $0x3d8] sm:$0xff] }
 0x1e5   : > { %v3929_v21 = vmax.f32 %v2279_v50, 0.0  ;;  %3292 = vmatprep.mubr.bf16.mxu0 %v16988_v44  ;;  %v3931_v34 = vmax.f32 %v2352_v32, 0.0  ;;  %3365 = vmatprep.mubr.bf16.mxu1 %v16988_v44 }
 0x1e6   : > { %v13189_v19 = vpack.c.bf16 %v3928_v30, %v3864_v49  ;;  %v13192_v8 = vpack.c.bf16 %v3930_v25, %v3866_v23 }
 0x1e7   : > { %v2282_v43 = vpop.f32.mrb[84].mxu0  ;;  %v13196_v42 = vpack.c.bf16 %v3929_v21, %v3865_v45  ;;  %v2355_v50 = vpop.f32.mrb[84].mxu1  ;;  %v13201_v36 = vpack.c.bf16 %v3931_v34, %v3867_v7  ;;  %v10987_v45 = vcombine.low %v13102_v3, %v13105_v47  ;;  %v10989_v7 = vcombine.low %v13111_v55, %v13114_v18  ;;  %v13214_v3 = vld [vmem:[%s12241_s26 + $0xe0] sm:$0xff]  ;;  %v13228_v18 = vld [vmem:[%s12241_s26 + $0xe8] sm:$0xff] }
 0x1e8   : > { %17037 = vst [vmem:[#allocation61_spill] sm:$0xff] %v13189_v19  ;;  %17038 = vst [vmem:[#allocation62_spill] sm:$0xff] %v13192_v8  ;;  %v2283_v5 = vadd.f32 %v2282_v43, %v12553_v29  ;;  %v2284_v62 = vpop.f32.mrb[85].mxu0  ;;  %v2356_v49 = vadd.f32 %v2355_v50, %v12553_v29  ;;  %v2357_v23 = vpop.f32.mrb[85].mxu1  ;;  %v11052_v34 = vcombine.high %v741_v41, %v773_v48  ;;  %v13217_v47 = vld [vmem:[%s12241_s26 + $0x1e0] sm:$0xff] }
 0x1e9   : > { %17039 = vst [vmem:[#allocation63_spill] sm:$0xff] %v13196_v42  ;;  %17040 = vst [vmem:[#allocation64_spill] sm:$0xff] %v13201_v36  ;;  %v2285_v30 = vadd.f32 %v2284_v62, %v12553_v29  ;;  %v2286_v32 = vpop.f32.mrb[86].mxu0  ;;  %v2358_v25 = vadd.f32 %v2357_v23, %v12553_v29  ;;  %v2359_v43 = vpop.f32.mrb[86].mxu1  ;;  %v11054_v42 = vcombine.high %v742_v26, %v774_v59  ;;  %v13223_v55 = vld [vmem:[%s16969_s3] sm:$0xff]  }
 0x1ea   : > { %v2287_v21 = vadd.f32 %v2286_v32, %v12587_v2  ;;  %v2288_v8 = vpop.f32.mrb[87].mxu0  ;;  %v3994_v50 = vmax.f32 %v2356_v49, 0.0  ;;  %v2360_v62 = vadd.f32 %v2359_v43, %v12587_v2  ;;  %v2361_v36 = vpop.f32.mrb[87].mxu1  ;;  %v3992_v23 = vmax.f32 %v2283_v5, 0.0 }
 0x1eb   : > { %v2289_v19 = vadd.f32 %v2288_v8, %v12587_v2  ;;  %v3995_v32 = vmax.f32 %v2358_v25, 0.0  ;;  %v2362_v39 = vadd.f32 %v2361_v36, %v12587_v2  ;;  %v13231_v8 = vld [vmem:[%s12241_s26 + $0x1e8] sm:$0xff]  ;;  %v3993_v49 = vmax.f32 %v2285_v30, 0.0 }
 0x1ec   : > { %v4056_v40 = vmax.f32 %v2287_v21, 0.0  ;;  %11159 = vmatmul.mubr.msk.bf16.vlgmr.msra.gmra.mrb[192].mxu0 %vm1495_vm0, %v13223_v55  ;;  %v4058_v43 = vmax.f32 %v2360_v62, 0.0  ;;  %11163 = vmatmul.mubr.msk.bf16.vlgmr.msra.gmra.mrb[192].mxu1 %vm1495_vm0, %v13223_v55  ;;  %v11051_v36 = vcombine.low %v741_v41, %v773_v48  ;;  %v11053_v21 = vcombine.low %v742_v26, %v774_v59 }
 0x1ed   : > { %v4057_v22 = vmax.f32 %v2289_v19, 0.0  ;;  %3407 = vmatpush1.bf16.msra.mxu0 %v10987_v45  ;;  %v4059_v25 = vmax.f32 %v2362_v39, 0.0  ;;  %3480 = vmatpush1.bf16.msra.mxu1 %v10989_v7  ;;  %v10992_v52 = vcombine.high %v13214_v3, %v13217_v47  ;;  %v10994_v19 = vcombine.high %v13228_v18, %v13231_v8 }
 0x1ee   : > { %v13235_v5 = vpack.c.bf16 %v4056_v40, %v3992_v23  ;;  %3302 = vmatprep.mubr.bf16.mxu0 %v16988_v44  ;;  %v13240_v28 = vpack.c.bf16 %v4058_v43, %v3994_v50  ;;  %3375 = vmatprep.mubr.bf16.mxu1 %v16988_v44 }
 0x1ef   : > { %v2292_v30 = vpop.f32.mrb[88].mxu0  ;;  %3408 = vmatprep.subr.bf16.mxu0 %v11052_v34  ;;  %v13245_v41 = vpack.c.bf16 %v4057_v22, %v3993_v49  ;;  %v2365_v40 = vpop.f32.mrb[88].mxu1  ;;  %3481 = vmatprep.subr.bf16.mxu1 %v11054_v42  ;;  %v13248_v26 = vpack.c.bf16 %v4059_v25, %v3995_v32 }
 0x1f0   : > { %17041 = vst [vmem:[#allocation65_spill] sm:$0xff] %v13235_v5  ;;  %17042 = vst [vmem:[#allocation66_spill] sm:$0xff] %v13240_v28  ;;  %v2293_v39 = vadd.f32 %v2292_v30, %v12639_v46  ;;  %v2294_v48 = vpop.f32.mrb[89].mxu0  ;;  %v2366_v59 = vadd.f32 %v2365_v40, %v12639_v46  ;;  %v2367_v7 = vpop.f32.mrb[89].mxu1  ;;  %v744_v28 = vld [vmem:[%s12241_s26 + $0x2e8] sm:$0xff] }
 0x1f1   : > { %17043 = vst [vmem:[#allocation67_spill] sm:$0xff] %v13245_v41  ;;  %17044 = vst [vmem:[#allocation68_spill] sm:$0xff] %v13248_v26  ;;  %v2295_v45 = vadd.f32 %v2294_v48, %v12639_v46  ;;  %v2296_v50 = vpop.f32.mrb[90].mxu0  ;;  %3409 = vmatpush1.bf16.msra.mxu0 %v11051_v36  ;;  %v2368_v34 = vadd.f32 %v2367_v7, %v12639_v46  ;;  %v2369_v22 = vpop.f32.mrb[90].mxu1  ;;  %3482 = vmatpush1.bf16.msra.mxu1 %v11053_v21  ;;  %v13260_v48 = vld [vmem:[%s16969_s3 + $0x8] sm:$0xff]  }
 0x1f2   : > { %v2297_v62 = vadd.f32 %v2296_v50, %v12648_v56  ;;  %v2298_v23 = vpop.f32.mrb[91].mxu0  ;;  %3552 = vmatprep.subr.bf16.mxu0 %v10992_v52  ;;  %v4122_v49 = vmax.f32 %v2366_v59, 0.0  ;;  %v2370_v42 = vadd.f32 %v2369_v22, %v12648_v56  ;;  %v2371_v43 = vpop.f32.mrb[91].mxu1  ;;  %3625 = vmatprep.subr.bf16.mxu1 %v10994_v19  ;;  %v4120_v25 = vmax.f32 %v2293_v39, 0.0  ;;  %v776_v5 = vld [vmem:[%s12241_s26 + $0x3e8] sm:$0xff] }
 0x1f3   : > { %v2299_v32 = vadd.f32 %v2298_v23, %v12648_v56  ;;  %v4123_v30 = vmax.f32 %v2368_v34, 0.0  ;;  %v2372_v36 = vadd.f32 %v2371_v43, %v12648_v56  ;;  %v4121_v52 = vmax.f32 %v2295_v45, 0.0 }
 0x1f4   : > { %v4184_v40 = vmax.f32 %v2297_v62, 0.0  ;;  %11160 = vmatmul.mubr.msk.bf16.gmra.mrb[196].mxu0 %vm1495_vm0, %v13260_v48  ;;  %v4186_v21 = vmax.f32 %v2370_v42, 0.0  ;;  %11164 = vmatmul.mubr.msk.bf16.gmra.mrb[196].mxu1 %vm1495_vm0, %v13260_v48 }
 0x1f5   : > { %v4185_v59 = vmax.f32 %v2299_v32, 0.0  ;;  %3312 = vmatprep.mubr.bf16.mxu0 %v16988_v44  ;;  %v4187_v39 = vmax.f32 %v2372_v36, 0.0  ;;  %3385 = vmatprep.mubr.bf16.mxu1 %v16988_v44 }
 0x1f6   : > { %v13267_v19 = vpack.c.bf16 %v4184_v40, %v4120_v25  ;;  %v13270_v7 = vpack.c.bf16 %v4186_v21, %v4122_v49 }
 0x1f7   : > { %v2302_v50 = vpop.f32.mrb[92].mxu0  ;;  %v13272_v34 = vpack.c.bf16 %v4185_v59, %v4121_v52  ;;  %v2375_v45 = vpop.f32.mrb[92].mxu1  ;;  %v13275_v23 = vpack.c.bf16 %v4187_v39, %v4123_v30 }
 0x1f8   : > { %17045 = vst [vmem:[#allocation69_spill] sm:$0xff] %v13267_v19  ;;  %17046 = vst [vmem:[#allocation70_spill] sm:$0xff] %v13270_v7  ;;  %v2303_v62 = vadd.f32 %v2302_v50, %v12672_v16  ;;  %v2304_v22 = vpop.f32.mrb[93].mxu0  ;;  %v2376_v42 = vadd.f32 %v2375_v45, %v12672_v16  ;;  %v2377_v43 = vpop.f32.mrb[93].mxu1 }
 0x1f9   : > { %17047 = vst [vmem:[#allocation71_spill] sm:$0xff] %v13272_v34  ;;  %17048 = vst [vmem:[#allocation72_spill] sm:$0xff] %v13275_v23  ;;  %v2305_v32 = vadd.f32 %v2304_v22, %v12672_v16  ;;  %v2306_v25 = vpop.f32.mrb[94].mxu0  ;;  %v2378_v40 = vadd.f32 %v2377_v43, %v12672_v16  ;;  %v2379_v36 = vpop.f32.mrb[94].mxu1  ;;  %v13287_v22 = vld [vmem:[%s16969_s3 + $0x10] sm:$0xff]  }
 0x1fa   : > { %v2307_v49 = vadd.f32 %v2306_v25, %v12680_v35  ;;  %v2308_v21 = vpop.f32.mrb[95].mxu0  ;;  %v4250_v52 = vmax.f32 %v2376_v42, 0.0  ;;  %v2380_v59 = vadd.f32 %v2379_v36, %v12680_v35  ;;  %v2381_v7 = vpop.f32.mrb[95].mxu1  ;;  %v4248_v30 = vmax.f32 %v2303_v62, 0.0 }
 0x1fb   : > { %v2309_v50 = vadd.f32 %v2308_v21, %v12680_v35  ;;  %v4251_v39 = vmax.f32 %v2378_v40, 0.0  ;;  %v2382_v45 = vadd.f32 %v2381_v7, %v12680_v35  ;;  %v4249_v43 = vmax.f32 %v2305_v32, 0.0 }
 0x1fc   : > { %v4312_v19 = vmax.f32 %v2307_v49, 0.0  ;;  %11161 = vmatmul.mubr.msk.bf16.gmra.mrb[200].mxu0 %vm1495_vm0, %v13287_v22  ;;  %v4314_v42 = vmax.f32 %v2380_v59, 0.0  ;;  %11165 = vmatmul.mubr.msk.bf16.gmra.mrb[200].mxu1 %vm1495_vm0, %v13287_v22 }
 0x1fd   : > { %v4313_v25 = vmax.f32 %v2309_v50, 0.0  ;;  %3322 = vmatprep.mubr.bf16.mxu0 %v16988_v44  ;;  %v4315_v40 = vmax.f32 %v2382_v45, 0.0  ;;  %3395 = vmatprep.mubr.bf16.mxu1 %v16988_v44 }
 0x1fe   : > { %v13294_v62 = vpack.c.bf16 %v4312_v19, %v4248_v30  ;;  %v13297_v7 = vpack.c.bf16 %v4314_v42, %v4250_v52 }
 0x1ff   : > { %v2418_v49 = vpop.f32.mrb[96].mxu0  ;;  %v13299_v36 = vpack.c.bf16 %v4313_v25, %v4249_v43  ;;  %v2491_v32 = vpop.f32.mrb[96].mxu1  ;;  %v13302_v50 = vpack.c.bf16 %v4315_v40, %v4251_v39 }
 0x200   : > { %17049 = vst [vmem:[#allocation73_spill] sm:$0xff] %v13294_v62  ;;  %17050 = vst [vmem:[#allocation74_spill] sm:$0xff] %v13297_v7  ;;  %v2419_v21 = vadd.f32 %v2418_v49, %v12542_v27  ;;  %v2420_v59 = vpop.f32.mrb[97].mxu0  ;;  %v2492_v23 = vadd.f32 %v2491_v32, %v12542_v27  ;;  %v2493_v19 = vpop.f32.mrb[97].mxu1 }
 0x201   : > { %17051 = vst [vmem:[#allocation75_spill] sm:$0xff] %v13299_v36  ;;  %17052 = vst [vmem:[#allocation76_spill] sm:$0xff] %v13302_v50  ;;  %v2421_v34 = vadd.f32 %v2420_v59, %v12542_v27  ;;  %v2422_v30 = vpop.f32.mrb[98].mxu0  ;;  %v2494_v45 = vadd.f32 %v2493_v19, %v12542_v27  ;;  %v2495_v42 = vpop.f32.mrb[98].mxu1  ;;  %v13314_v19 = vld [vmem:[%s16969_s3 + $0x18] sm:$0xff]   ;;  %v775_v50 = vld [vmem:[%s12241_s26 + $0x3e0] sm:$0xff] }
 0x202   : > { %v2423_v52 = vadd.f32 %v2422_v30, %v12555_v31  ;;  %v2424_v7 = vpop.f32.mrb[99].mxu0  ;;  %v3870_v43 = vmax.f32 %v2492_v23, 0.0  ;;  %v2496_v25 = vadd.f32 %v2495_v42, %v12555_v31  ;;  %v2497_v62 = vpop.f32.mrb[99].mxu1  ;;  %v3868_v39 = vmax.f32 %v2419_v21, 0.0  ;;  %v743_v42 = vld [vmem:[%s12241_s26 + $0x2e0] sm:$0xff] }
 0x203   : > { %v2425_v49 = vadd.f32 %v2424_v7, %v12555_v31  ;;  %v3871_v40 = vmax.f32 %v2494_v45, 0.0  ;;  %v2498_v59 = vadd.f32 %v2497_v62, %v12555_v31  ;;  %v3869_v23 = vmax.f32 %v2421_v34, 0.0 }
 0x204   : > { %v3932_v32 = vmax.f32 %v2423_v52, 0.0  ;;  %11162 = vmatmul.mubr.msk.bf16.gmra.mrb[204].mxu0 %vm1495_vm0, %v13314_v19  ;;  %v3934_v30 = vmax.f32 %v2496_v25, 0.0  ;;  %11166 = vmatmul.mubr.msk.bf16.gmra.mrb[204].mxu1 %vm1495_vm0, %v13314_v19  ;;  %v11055_v0 = vcombine.low %v743_v42, %v775_v50 }
 0x205   : > { %v3933_v7 = vmax.f32 %v2425_v49, 0.0  ;;  %3438 = vmatprep.mubr.bf16.mxu0 %v16988_v44  ;;  %v3935_v62 = vmax.f32 %v2498_v59, 0.0  ;;  %3511 = vmatprep.mubr.bf16.mxu1 %v16988_v44 }
 0x206   : > { %v13321_v21 = vpack.c.bf16 %v3932_v32, %v3868_v39  ;;  %v13324_v45 = vpack.c.bf16 %v3934_v30, %v3870_v43 }
 0x207   : > { %v2428_v52 = vpop.f32.mrb[100].mxu0  ;;  %v13328_v34 = vpack.c.bf16 %v3933_v7, %v3869_v23  ;;  %v2501_v49 = vpop.f32.mrb[100].mxu1  ;;  %v13333_v26 = vpack.c.bf16 %v3935_v62, %v3871_v40  ;;  %v10991_v23 = vcombine.low %v13214_v3, %v13217_v47  ;;  %v10993_v40 = vcombine.low %v13228_v18, %v13231_v8  ;;  %v13346_v3 = vld [vmem:[%s12241_s26 + $0xf0] sm:$0xff]  ;;  %v13355_v18 = vld [vmem:[%s12241_s26 + $0xf8] sm:$0xff] }
 0x208   : > { %17053 = vst [vmem:[#allocation77_spill] sm:$0xff] %v13321_v21  ;;  %17054 = vst [vmem:[#allocation78_spill] sm:$0xff] %v13324_v45  ;;  %v2429_v25 = vadd.f32 %v2428_v52, %v12553_v29  ;;  %v2430_v36 = vpop.f32.mrb[101].mxu0  ;;  %v2502_v39 = vadd.f32 %v2501_v49, %v12553_v29  ;;  %v2503_v43 = vpop.f32.mrb[101].mxu1  ;;  %v11056_v62 = vcombine.high %v743_v42, %v775_v50  ;;  %v13349_v47 = vld [vmem:[%s12241_s26 + $0x1f0] sm:$0xff]  ;;  %v13358_v8 = vld [vmem:[%s12241_s26 + $0x1f8] sm:$0xff] }
 0x209   : > { %17055 = vst [vmem:[#allocation79_spill] sm:$0xff] %v13328_v34  ;;  %17056 = vst [vmem:[#allocation80_spill] sm:$0xff] %v13333_v26  ;;  %v2431_v32 = vadd.f32 %v2430_v36, %v12553_v29  ;;  %v2432_v59 = vpop.f32.mrb[102].mxu0  ;;  %v2504_v30 = vadd.f32 %v2503_v43, %v12553_v29  ;;  %v2505_v52 = vpop.f32.mrb[102].mxu1  ;;  %v11058_v34 = vcombine.high %v744_v28, %v776_v5 }
 0x20a   : > { %v2433_v7 = vadd.f32 %v2432_v59, %v12587_v2  ;;  %v2434_v45 = vpop.f32.mrb[103].mxu0  ;;  %v3998_v49 = vmax.f32 %v2502_v39, 0.0  ;;  %v2506_v36 = vadd.f32 %v2505_v52, %v12587_v2  ;;  %v2507_v26 = vpop.f32.mrb[103].mxu1  ;;  %v3996_v43 = vmax.f32 %v2429_v25, 0.0 }
 0x20b   : > { %v2435_v21 = vadd.f32 %v2434_v45, %v12587_v2  ;;  %v3999_v59 = vmax.f32 %v2504_v30, 0.0  ;;  %v2508_v37 = vadd.f32 %v2507_v26, %v12587_v2  ;;  %v3997_v39 = vmax.f32 %v2431_v32, 0.0 }
 0x20c   : > { %v4060_v41 = vmax.f32 %v2433_v7, 0.0  ;;  %11167 = vmatmul.mubr.msk.bf16.vlgmr.msra.gmra.mrb[208].mxu0 %vm1495_vm0, %v13223_v55  ;;  %v4062_v45 = vmax.f32 %v2506_v36, 0.0  ;;  %11171 = vmatmul.mubr.msk.bf16.vlgmr.msra.gmra.mrb[208].mxu1 %vm1495_vm0, %v13223_v55  ;;  %v11057_v26 = vcombine.low %v744_v28, %v776_v5  ;;  %v10996_v7 = vcombine.high %v13346_v3, %v13349_v47 }
 0x20d   : > { %v4061_v52 = vmax.f32 %v2435_v21, 0.0  ;;  %3553 = vmatpush1.bf16.msra.mxu0 %v10991_v23  ;;  %v4063_v30 = vmax.f32 %v2508_v37, 0.0  ;;  %3626 = vmatpush1.bf16.msra.mxu1 %v10993_v40  ;;  %v10998_v21 = vcombine.high %v13355_v18, %v13358_v8 }
 0x20e   : > { %v13362_v25 = vpack.c.bf16 %v4060_v41, %v3996_v43  ;;  %3448 = vmatprep.mubr.bf16.mxu0 %v16988_v44  ;;  %v13367_v53 = vpack.c.bf16 %v4062_v45, %v3998_v49  ;;  %3521 = vmatprep.mubr.bf16.mxu1 %v16988_v44 }
 0x20f   : > { %v2438_v32 = vpop.f32.mrb[104].mxu0  ;;  %3554 = vmatprep.subr.bf16.mxu0 %v11056_v62  ;;  %v13372_v50 = vpack.c.bf16 %v4061_v52, %v3997_v39  ;;  %v2511_v41 = vpop.f32.mrb[104].mxu1  ;;  %3627 = vmatprep.subr.bf16.mxu1 %v11058_v34  ;;  %v13375_v28 = vpack.c.bf16 %v4063_v30, %v3999_v59 }
 0x210   : > { %17057 = vst [vmem:[#allocation81_spill] sm:$0xff] %v13362_v25  ;;  %17058 = vst [vmem:[#allocation82_spill] sm:$0xff] %v13367_v53  ;;  %v2439_v37 = vadd.f32 %v2438_v32, %v12639_v46  ;;  %v2440_v42 = vpop.f32.mrb[105].mxu0  ;;  %v2512_v5 = vadd.f32 %v2511_v41, %v12639_v46  ;;  %v2513_v40 = vpop.f32.mrb[105].mxu1 }
 0x211   : > { %17059 = vst [vmem:[#allocation83_spill] sm:$0xff] %v13375_v28  ;;  %v2441_v23 = vadd.f32 %v2440_v42, %v12639_v46  ;;  %v2442_v49 = vpop.f32.mrb[106].mxu0  ;;  %3555 = vmatpush1.bf16.msra.mxu0 %v11055_v0  ;;  %v2514_v62 = vadd.f32 %v2513_v40, %v12639_v46  ;;  %v2515_v43 = vpop.f32.mrb[106].mxu1  ;;  %3628 = vmatpush1.bf16.msra.mxu1 %v11057_v26 }
 0x212   : > { %v2443_v36 = vadd.f32 %v2442_v49, %v12648_v56  ;;  %v2444_v39 = vpop.f32.mrb[107].mxu0  ;;  %3698 = vmatprep.subr.bf16.mxu0 %v10996_v7  ;;  %v4126_v45 = vmax.f32 %v2512_v5, 0.0  ;;  %v2516_v34 = vadd.f32 %v2515_v43, %v12648_v56  ;;  %v2517_v52 = vpop.f32.mrb[107].mxu1  ;;  %3771 = vmatprep.subr.bf16.mxu1 %v10998_v21  ;;  %v4124_v30 = vmax.f32 %v2439_v37, 0.0 }
 0x213   : > { %v2445_v59 = vadd.f32 %v2444_v39, %v12648_v56  ;;  %v4127_v32 = vmax.f32 %v2514_v62, 0.0  ;;  %v2518_v0 = vadd.f32 %v2517_v52, %v12648_v56  ;;  %v4125_v42 = vmax.f32 %v2441_v23, 0.0 }
 0x214   : > { %v4188_v41 = vmax.f32 %v2443_v36, 0.0  ;;  %11168 = vmatmul.mubr.msk.bf16.gmra.mrb[212].mxu0 %vm1495_vm0, %v13260_v48  ;;  %v4190_v40 = vmax.f32 %v2516_v34, 0.0  ;;  %11172 = vmatmul.mubr.msk.bf16.gmra.mrb[212].mxu1 %vm1495_vm0, %v13260_v48 }
 0x215   : > { %v4189_v49 = vmax.f32 %v2445_v59, 0.0  ;;  %3458 = vmatprep.mubr.bf16.mxu0 %v16988_v44  ;;  %v4191_v7 = vmax.f32 %v2518_v0, 0.0  ;;  %3531 = vmatprep.mubr.bf16.mxu1 %v16988_v44 }
 0x216   : > { %v13389_v26 = vpack.c.bf16 %v4188_v41, %v4124_v30  ;;  %v13392_v21 = vpack.c.bf16 %v4190_v40, %v4126_v45 }
 0x217   : > { %v2448_v37 = vpop.f32.mrb[108].mxu0  ;;  %v13394_v5 = vpack.c.bf16 %v4189_v49, %v4125_v42  ;;  %v2521_v23 = vpop.f32.mrb[108].mxu1  ;;  %v13397_v43 = vpack.c.bf16 %v4191_v7, %v4127_v32 }
 0x218   : > { %17060 = vst [vmem:[#allocation84_spill] sm:$0xff] %v13389_v26  ;;  %17061 = vst [vmem:[#allocation85_spill] sm:$0xff] %v13392_v21  ;;  %v2449_v62 = vadd.f32 %v2448_v37, %v12672_v16  ;;  %v2450_v36 = vpop.f32.mrb[109].mxu0  ;;  %v2522_v39 = vadd.f32 %v2521_v23, %v12672_v16  ;;  %v2523_v59 = vpop.f32.mrb[109].mxu1 }
 0x219   : > { %17062 = vst [vmem:[#allocation86_spill] sm:$0xff] %v13394_v5  ;;  %17063 = vst [vmem:[#allocation87_spill] sm:$0xff] %v13397_v43  ;;  %v2451_v34 = vadd.f32 %v2450_v36, %v12672_v16  ;;  %v2452_v52 = vpop.f32.mrb[110].mxu0  ;;  %v2524_v30 = vadd.f32 %v2523_v59, %v12672_v16  ;;  %v2525_v41 = vpop.f32.mrb[110].mxu1  ;;  %v778_v43 = vld [vmem:[%s12241_s26 + $0x3f8] sm:$0xff] }
 0x21a   : > { %v2453_v45 = vadd.f32 %v2452_v52, %v12680_v35  ;;  %v2454_v0 = vpop.f32.mrb[111].mxu0  ;;  %v4254_v42 = vmax.f32 %v2522_v39, 0.0  ;;  %v2526_v40 = vadd.f32 %v2525_v41, %v12680_v35  ;;  %v2527_v37 = vpop.f32.mrb[111].mxu1  ;;  %v4252_v32 = vmax.f32 %v2449_v62, 0.0 }
 0x21b   : > { %v2455_v49 = vadd.f32 %v2454_v0, %v12680_v35  ;;  %v4255_v7 = vmax.f32 %v2524_v30, 0.0  ;;  %v2528_v23 = vadd.f32 %v2527_v37, %v12680_v35  ;;  %v4253_v36 = vmax.f32 %v2451_v34, 0.0 }
 0x21c   : > { %v4316_v21 = vmax.f32 %v2453_v45, 0.0  ;;  %11169 = vmatmul.mubr.msk.bf16.gmra.mrb[216].mxu0 %vm1495_vm0, %v13287_v22  ;;  %v4318_v59 = vmax.f32 %v2526_v40, 0.0  ;;  %11173 = vmatmul.mubr.msk.bf16.gmra.mrb[216].mxu1 %vm1495_vm0, %v13287_v22 }
 0x21d   : > { %v4317_v26 = vmax.f32 %v2455_v49, 0.0  ;;  %3468 = vmatprep.mubr.bf16.mxu0 %v16988_v44  ;;  %v4319_v52 = vmax.f32 %v2528_v23, 0.0  ;;  %3541 = vmatprep.mubr.bf16.mxu1 %v16988_v44 }
 0x21e   : > { %v13411_v39 = vpack.c.bf16 %v4316_v21, %v4252_v32  ;;  %v13414_v62 = vpack.c.bf16 %v4318_v59, %v4254_v42 }
 0x21f   : > { %v2564_v30 = vpop.f32.mrb[112].mxu0  ;;  %v13416_v45 = vpack.c.bf16 %v4317_v26, %v4253_v36  ;;  %v2637_v34 = vpop.f32.mrb[112].mxu1  ;;  %v13419_v40 = vpack.c.bf16 %v4319_v52, %v4255_v7 }
 0x220   : > { %17064 = vst [vmem:[#allocation88_spill] sm:$0xff] %v13411_v39  ;;  %17065 = vst [vmem:[#allocation89_spill] sm:$0xff] %v13414_v62  ;;  %v2565_v41 = vadd.f32 %v2564_v30, %v12542_v27  ;;  %v2566_v0 = vpop.f32.mrb[113].mxu0  ;;  %v2638_v49 = vadd.f32 %v2637_v34, %v12542_v27  ;;  %v2639_v21 = vpop.f32.mrb[113].mxu1 }
 0x221   : > { %17066 = vst [vmem:[#allocation90_spill] sm:$0xff] %v13416_v45  ;;  %17067 = vst [vmem:[#allocation91_spill] sm:$0xff] %v13419_v40  ;;  %v2567_v37 = vadd.f32 %v2566_v0, %v12542_v27  ;;  %v2568_v32 = vpop.f32.mrb[114].mxu0  ;;  %v2640_v23 = vadd.f32 %v2639_v21, %v12542_v27  ;;  %v2641_v59 = vpop.f32.mrb[114].mxu1  ;;  %v746_v45 = vld [vmem:[%s12241_s26 + $0x2f8] sm:$0xff] }
 0x222   : > { %v2569_v42 = vadd.f32 %v2568_v32, %v12555_v31  ;;  %v2570_v62 = vpop.f32.mrb[115].mxu0  ;;  %v3874_v26 = vmax.f32 %v2638_v49, 0.0  ;;  %v2642_v36 = vadd.f32 %v2641_v59, %v12555_v31  ;;  %v2643_v39 = vpop.f32.mrb[115].mxu1  ;;  %v3872_v7 = vmax.f32 %v2565_v41, 0.0  ;;  %v777_v59 = vld [vmem:[%s12241_s26 + $0x3f0] sm:$0xff] }
 0x223   : > { %v2571_v30 = vadd.f32 %v2570_v62, %v12555_v31  ;;  %v3875_v52 = vmax.f32 %v2640_v23, 0.0  ;;  %v2644_v0 = vadd.f32 %v2643_v39, %v12555_v31  ;;  %v3873_v21 = vmax.f32 %v2567_v37, 0.0 }
 0x224   : > { %v3936_v34 = vmax.f32 %v2569_v42, 0.0  ;;  %11170 = vmatmul.mubr.msk.bf16.gmra.mrb[220].mxu0 %vm1495_vm0, %v13314_v19  ;;  %v3938_v32 = vmax.f32 %v2642_v36, 0.0  ;;  %11174 = vmatmul.mubr.msk.bf16.gmra.mrb[220].mxu1 %vm1495_vm0, %v13314_v19  ;;  %v745_v42 = vld [vmem:[%s12241_s26 + $0x2f0] sm:$0xff]  ;;  %s648_s26 = scalar_lea.vmem %s16975_s9, %s10930_s21 }
 0x225   : > { %v3937_v49 = vmax.f32 %v2571_v30, 0.0  ;;  %3584 = vmatprep.mubr.bf16.mxu0 %v16988_v44  ;;  %v3939_v41 = vmax.f32 %v2644_v0, 0.0  ;;  %3657 = vmatprep.mubr.bf16.mxu1 %v16988_v44 }
 0x226   : > { %v13433_v62 = vpack.c.bf16 %v3936_v34, %v3872_v7  ;;  %v13436_v23 = vpack.c.bf16 %v3938_v32, %v3874_v26  ;;  %v10995_v32 = vcombine.low %v13346_v3, %v13349_v47 }
 0x227   : > { %v2574_v39 = vpop.f32.mrb[116].mxu0  ;;  %v13440_v37 = vpack.c.bf16 %v3937_v49, %v3873_v21  ;;  %v2647_v30 = vpop.f32.mrb[116].mxu1  ;;  %v13445_v5 = vpack.c.bf16 %v3939_v41, %v3875_v52  ;;  %v11060_v52 = vcombine.high %v745_v42, %v777_v59 }
 0x228   : > { %17068 = vst [vmem:[#allocation92_spill] sm:$0xff] %v13433_v62  ;;  %17069 = vst [vmem:[#allocation93_spill] sm:$0xff] %v13436_v23  ;;  %v2575_v36 = vadd.f32 %v2574_v39, %v12553_v29  ;;  %v2576_v40 = vpop.f32.mrb[117].mxu0  ;;  %v2648_v7 = vadd.f32 %v2647_v30, %v12553_v29  ;;  %v2649_v0 = vpop.f32.mrb[117].mxu1  ;;  %v10997_v62 = vcombine.low %v13355_v18, %v13358_v8 }
 0x229   : > { %17070 = vst [vmem:[#allocation94_spill] sm:$0xff] %v13440_v37  ;;  %17071 = vst [vmem:[#allocation95_spill] sm:$0xff] %v13445_v5  ;;  %v2577_v34 = vadd.f32 %v2576_v40, %v12553_v29  ;;  %v2578_v26 = vpop.f32.mrb[118].mxu0  ;;  %v2650_v21 = vadd.f32 %v2649_v0, %v12553_v29  ;;  %v2651_v39 = vpop.f32.mrb[118].mxu1  ;;  %v11062_v37 = vcombine.high %v746_v45, %v778_v43 }
 0x22a   : > { %v2579_v49 = vadd.f32 %v2578_v26, %v12587_v2  ;;  %v2580_v23 = vpop.f32.mrb[119].mxu0  ;;  %v4002_v41 = vmax.f32 %v2648_v7, 0.0  ;;  %v2652_v30 = vadd.f32 %v2651_v39, %v12587_v2  ;;  %v2653_v5 = vpop.f32.mrb[119].mxu1  ;;  %v4000_v53 = vmax.f32 %v2575_v36, 0.0 }
 0x22b   : > { %v2581_v40 = vadd.f32 %v2580_v23, %v12587_v2  ;;  %v4003_v25 = vmax.f32 %v2650_v21, 0.0  ;;  %v2654_v47 = vadd.f32 %v2653_v5, %v12587_v2  ;;  %v4001_v0 = vmax.f32 %v2577_v34, 0.0 }
 0x22c   : > { %v4064_v3 = vmax.f32 %v2579_v49, 0.0  ;;  %11175 = vmatmul.mubr.msk.bf16.vlgmr.msra.gmra.mrb[224].mxu0 %vm1495_vm0, %v13223_v55  ;;  %v4066_v26 = vmax.f32 %v2652_v30, 0.0  ;;  %11179 = vmatmul.mubr.msk.bf16.vlgmr.msra.gmra.mrb[224].mxu1 %vm1495_vm0, %v13223_v55  ;;  %v11059_v18 = vcombine.low %v745_v42, %v777_v59  ;;  %v11061_v36 = vcombine.low %v746_v45, %v778_v43 }
 0x22d   : > { %v4065_v28 = vmax.f32 %v2581_v40, 0.0  ;;  %3699 = vmatpush1.bf16.msra.mxu0 %v10995_v32  ;;  %v4067_v23 = vmax.f32 %v2654_v47, 0.0  ;;  %3772 = vmatpush1.bf16.msra.mxu1 %v10997_v62 }
 0x22e   : > { %v13462_v8 = vpack.c.bf16 %v4064_v3, %v4000_v53  ;;  %3700 = vmatprep.subr.bf16.mxu0 %v11060_v52  ;;  %v13464_v7 = vpack.c.bf16 %v4066_v26, %v4002_v41  ;;  %3773 = vmatprep.subr.bf16.mxu1 %v11062_v37 }
 0x22f   : > { %v2584_v5 = vpop.f32.mrb[120].mxu0  ;;  %3594 = vmatprep.mubr.bf16.mxu0 %v16988_v44  ;;  %v13467_v34 = vpack.c.bf16 %v4065_v28, %v4001_v0  ;;  %v2657_v49 = vpop.f32.mrb[120].mxu1  ;;  %3667 = vmatprep.mubr.bf16.mxu1 %v16988_v44  ;;  %v13471_v53 = vpack.c.bf16 %v4067_v23, %v4003_v25 }
 0x230   : > { %v2585_v21 = vadd.f32 %v2584_v5, %v12639_v46  ;;  %v2586_v39 = vpop.f32.mrb[121].mxu0  ;;  %v2658_v62 = vadd.f32 %v2657_v49, %v12639_v46  ;;  %v2659_v45 = vpop.f32.mrb[121].mxu1 }
 0x231   : > { %v2587_v43 = vadd.f32 %v2586_v39, %v12639_v46  ;;  %3701 = vmatpush1.bf16.msra.mxu0 %v11059_v18  ;;  %v2588_v42 = vpop.f32.mrb[122].mxu0  ;;  %v2660_v59 = vadd.f32 %v2659_v45, %v12639_v46  ;;  %3774 = vmatpush1.bf16.msra.mxu1 %v11061_v36  ;;  %v2661_v37 = vpop.f32.mrb[122].mxu1 }
 0x232   : > { %v2589_v28 = vadd.f32 %v2588_v42, %v12648_v56  ;;  %4701 = vmatprep.subr.bf16.mxu0 %v12598_v6  ;;  %v2590_v32 = vpop.f32.mrb[123].mxu0  ;;  %v4130_v52 = vmax.f32 %v2658_v62, 0.0  ;;  %v2662_v25 = vadd.f32 %v2661_v37, %v12648_v56  ;;  %4774 = vmatprep.subr.bf16.mxu1 %v12601_v10  ;;  %v2663_v30 = vpop.f32.mrb[123].mxu1  ;;  %v4128_v40 = vmax.f32 %v2585_v21, 0.0 }
 0x233   : > { %v2591_v41 = vadd.f32 %v2590_v32, %v12648_v56  ;;  %v4131_v3 = vmax.f32 %v2660_v59, 0.0  ;;  %v2664_v0 = vadd.f32 %v2663_v30, %v12648_v56  ;;  %v4129_v26 = vmax.f32 %v2587_v43, 0.0 }
 0x234   : > { %v4192_v47 = vmax.f32 %v2589_v28, 0.0  ;;  %11176 = vmatmul.mubr.msk.bf16.gmra.mrb[228].mxu0 %vm1495_vm0, %v13260_v48  ;;  %v4194_v18 = vmax.f32 %v2662_v25, 0.0  ;;  %11180 = vmatmul.mubr.msk.bf16.gmra.mrb[228].mxu1 %vm1495_vm0, %v13260_v48 }
 0x235   : > { %v4193_v6 = vmax.f32 %v2591_v41, 0.0  ;;  %3604 = vmatprep.mubr.bf16.mxu0 %v16988_v44  ;;  %v4195_v23 = vmax.f32 %v2664_v0, 0.0  ;;  %3677 = vmatprep.mubr.bf16.mxu1 %v16988_v44 }
 0x236   : > { %v13487_v10 = vpack.c.bf16 %v4192_v47, %v4128_v40  ;;  %v13490_v36 = vpack.c.bf16 %v4194_v18, %v4130_v52 }
 0x237   : > { %v2594_v5 = vpop.f32.mrb[124].mxu0  ;;  %v13492_v21 = vpack.c.bf16 %v4193_v6, %v4129_v26  ;;  %v2667_v39 = vpop.f32.mrb[124].mxu1  ;;  %v13495_v43 = vpack.c.bf16 %v4195_v23, %v4131_v3 }
 0x238   : > { %v2595_v49 = vadd.f32 %v2594_v5, %v12672_v16  ;;  %v2596_v62 = vpop.f32.mrb[125].mxu0  ;;  %v2668_v45 = vadd.f32 %v2667_v39, %v12672_v16  ;;  %v2669_v59 = vpop.f32.mrb[125].mxu1 }
 0x239   : > { %v2597_v42 = vadd.f32 %v2596_v62, %v12672_v16  ;;  %v2598_v28 = vpop.f32.mrb[126].mxu0  ;;  %v2670_v37 = vadd.f32 %v2669_v59, %v12672_v16  ;;  %v2671_v52 = vpop.f32.mrb[126].mxu1 }
 0x23a   : > { %v2599_v32 = vadd.f32 %v2598_v28, %v12680_v35  ;;  %v2600_v25 = vpop.f32.mrb[127].mxu0  ;;  %v4258_v41 = vmax.f32 %v2668_v45, 0.0  ;;  %v2672_v30 = vadd.f32 %v2671_v52, %v12680_v35  ;;  %v2673_v47 = vpop.f32.mrb[127].mxu1  ;;  %v4256_v3 = vmax.f32 %v2595_v49, 0.0 }
 0x23b   : > { %v2601_v40 = vadd.f32 %v2600_v25, %v12680_v35  ;;  %v4259_v0 = vmax.f32 %v2670_v37, 0.0  ;;  %v2674_v18 = vadd.f32 %v2673_v47, %v12680_v35  ;;  %v4257_v6 = vmax.f32 %v2597_v42, 0.0 }
 0x23c   : > { %v4320_v26 = vmax.f32 %v2599_v32, 0.0  ;;  %11177 = vmatmul.mubr.msk.bf16.gmra.mrb[232].mxu0 %vm1495_vm0, %v13287_v22  ;;  %v4322_v23 = vmax.f32 %v2672_v30, 0.0  ;;  %11181 = vmatmul.mubr.msk.bf16.gmra.mrb[232].mxu1 %vm1495_vm0, %v13287_v22 }
 0x23d   : > { %v4321_v5 = vmax.f32 %v2601_v40, 0.0  ;;  %3614 = vmatprep.mubr.bf16.mxu0 %v16988_v44  ;;  %v4323_v62 = vmax.f32 %v2674_v18, 0.0  ;;  %3687 = vmatprep.mubr.bf16.mxu1 %v16988_v44 }
 0x23e   : > { %v13509_v39 = vpack.c.bf16 %v4320_v26, %v4256_v3  ;;  %v13512_v49 = vpack.c.bf16 %v4322_v23, %v4258_v41 }
 0x23f   : > { %v2710_v45 = vpop.f32.mrb[128].mxu0  ;;  %v13514_v59 = vpack.c.bf16 %v4321_v5, %v4257_v6  ;;  %v2783_v42 = vpop.f32.mrb[128].mxu1  ;;  %v13517_v32 = vpack.c.bf16 %v4323_v62, %v4259_v0 }
 0x240   : > { %17072 = vst [vmem:[#allocation96_spill] sm:$0xff] %v13512_v49  ;;  %v2711_v28 = vadd.f32 %v2710_v45, %v12542_v27  ;;  %v2712_v37 = vpop.f32.mrb[129].mxu0  ;;  %v2784_v52 = vadd.f32 %v2783_v42, %v12542_v27  ;;  %v2785_v30 = vpop.f32.mrb[129].mxu1 }
 0x241   : > { %v2713_v25 = vadd.f32 %v2712_v37, %v12542_v27  ;;  %v2714_v40 = vpop.f32.mrb[130].mxu0  ;;  %v2786_v47 = vadd.f32 %v2785_v30, %v12542_v27  ;;  %v2787_v3 = vpop.f32.mrb[130].mxu1 }
 0x242   : > { %v2715_v41 = vadd.f32 %v2714_v40, %v12555_v31  ;;  %v2716_v26 = vpop.f32.mrb[131].mxu0  ;;  %v3878_v18 = vmax.f32 %v2784_v52, 0.0  ;;  %v2788_v6 = vadd.f32 %v2787_v3, %v12555_v31  ;;  %v2789_v5 = vpop.f32.mrb[131].mxu1  ;;  %v3876_v0 = vmax.f32 %v2711_v28, 0.0 }
 0x243   : > { %v2717_v23 = vadd.f32 %v2716_v26, %v12555_v31  ;;  %v3879_v62 = vmax.f32 %v2786_v47, 0.0  ;;  %v2790_v42 = vadd.f32 %v2789_v5, %v12555_v31  ;;  %v3877_v37 = vmax.f32 %v2713_v25, 0.0 }
 0x244   : > { %v3940_v45 = vmax.f32 %v2715_v41, 0.0  ;;  %11178 = vmatmul.mubr.msk.bf16.gmra.mrb[236].mxu0 %vm1495_vm0, %v13314_v19  ;;  %v3942_v30 = vmax.f32 %v2788_v6, 0.0  ;;  %11182 = vmatmul.mubr.msk.bf16.gmra.mrb[236].mxu1 %vm1495_vm0, %v13314_v19 }
 0x245   : > { %v3941_v49 = vmax.f32 %v2717_v23, 0.0  ;;  %3730 = vmatprep.mubr.bf16.mxu0 %v16988_v44  ;;  %v3943_v40 = vmax.f32 %v2790_v42, 0.0  ;;  %3803 = vmatprep.mubr.bf16.mxu1 %v16988_v44 }
 0x246   : > { %v13531_v52 = vpack.c.bf16 %v3940_v45, %v3876_v0  ;;  %v13534_v28 = vpack.c.bf16 %v3942_v30, %v3878_v18 }
 0x247   : > { %v2720_v47 = vpop.f32.mrb[132].mxu0  ;;  %v13536_v41 = vpack.c.bf16 %v3941_v49, %v3877_v37  ;;  %v2793_v25 = vpop.f32.mrb[132].mxu1  ;;  %v13539_v6 = vpack.c.bf16 %v3943_v40, %v3879_v62 }
 0x248   : > { %17073 = vst [vmem:[#allocation97_spill] sm:$0xff] %v13531_v52  ;;  %17074 = vst [vmem:[#allocation98_spill] sm:$0xff] %v13534_v28  ;;  %v2721_v3 = vadd.f32 %v2720_v47, %v12553_v29  ;;  %v2722_v26 = vpop.f32.mrb[133].mxu0  ;;  %v2794_v23 = vadd.f32 %v2793_v25, %v12553_v29  ;;  %v2795_v0 = vpop.f32.mrb[133].mxu1 }
 0x249   : > { %17075 = vst [vmem:[#allocation99_spill] sm:$0xff] %v13536_v41  ;;  %17076 = vst [vmem:[#allocation100_spill] sm:$0xff] %v13539_v6  ;;  %v2723_v5 = vadd.f32 %v2722_v26, %v12553_v29  ;;  %v2724_v45 = vpop.f32.mrb[134].mxu0  ;;  %v2796_v42 = vadd.f32 %v2795_v0, %v12553_v29  ;;  %v2797_v30 = vpop.f32.mrb[134].mxu1 }
 0x24a   : > { %v2725_v18 = vadd.f32 %v2724_v45, %v12587_v2  ;;  %v2726_v28 = vpop.f32.mrb[135].mxu0  ;;  %v4006_v49 = vmax.f32 %v2794_v23, 0.0  ;;  %v2798_v37 = vadd.f32 %v2797_v30, %v12587_v2  ;;  %v2799_v52 = vpop.f32.mrb[135].mxu1  ;;  %v4004_v62 = vmax.f32 %v2721_v3, 0.0 }
 0x24b   : > { %v2727_v47 = vadd.f32 %v2726_v28, %v12587_v2  ;;  %v4007_v40 = vmax.f32 %v2796_v42, 0.0  ;;  %v2800_v25 = vadd.f32 %v2799_v52, %v12587_v2  ;;  %v4005_v26 = vmax.f32 %v2723_v5, 0.0 }
 0x24c   : > { %v4068_v6 = vmax.f32 %v2725_v18, 0.0  ;;  %11183 = vmatmul.mubr.msk.bf16.vlgmr.msra.gmra.mrb[240].mxu0 %vm1495_vm0, %v13223_v55  ;;  %v4070_v0 = vmax.f32 %v2798_v37, 0.0  ;;  %11187 = vmatmul.mubr.msk.bf16.vlgmr.msra.gmra.mrb[240].mxu1 %vm1495_vm0, %v13223_v55 }
 0x24d   : > { %v4069_v41 = vmax.f32 %v2727_v47, 0.0  ;;  %4702 = vmatpush1.bf16.msra.mxu0 %v12579_v60  ;;  %v4071_v28 = vmax.f32 %v2800_v25, 0.0  ;;  %4775 = vmatpush1.bf16.msra.mxu1 %v12585_v63 }
 0x24e   : > { %v13553_v23 = vpack.c.bf16 %v4068_v6, %v4004_v62  ;;  %4703 = vmatprep.subr.bf16.mxu0 %v12656_v58  ;;  %v13557_v3 = vpack.c.bf16 %v4070_v0, %v4006_v49  ;;  %4776 = vmatprep.subr.bf16.mxu1 %v12663_v12 }
 0x24f   : > { %v2730_v52 = vpop.f32.mrb[136].mxu0  ;;  %3740 = vmatprep.mubr.bf16.mxu0 %v16988_v44  ;;  %v13561_v5 = vpack.c.bf16 %v4069_v41, %v4005_v26  ;;  %v2803_v45 = vpop.f32.mrb[136].mxu1  ;;  %3813 = vmatprep.mubr.bf16.mxu1 %v16988_v44  ;;  %v13565_v6 = vpack.c.bf16 %v4071_v28, %v4007_v40 }
 0x250   : > { %v2731_v55 = vadd.f32 %v2730_v52, %v12639_v46  ;;  %v2732_v60 = vpop.f32.mrb[137].mxu0  ;;  %v2804_v63 = vadd.f32 %v2803_v45, %v12639_v46  ;;  %v2805_v42 = vpop.f32.mrb[137].mxu1 }
 0x251   : > { %v2733_v58 = vadd.f32 %v2732_v60, %v12639_v46  ;;  %4704 = vmatpush1.bf16.msra.mxu0 %v12641_v51  ;;  %v2734_v12 = vpop.f32.mrb[138].mxu0  ;;  %v2806_v18 = vadd.f32 %v2805_v42, %v12639_v46  ;;  %4777 = vmatpush1.bf16.msra.mxu1 %v12646_v54  ;;  %v2807_v30 = vpop.f32.mrb[138].mxu1 }
 0x252   : > { %v2735_v41 = vadd.f32 %v2734_v12, %v12648_v56  ;;  %4705 = vmatprep.subr.bf16.mxu0 %v12682_v38  ;;  %v2736_v49 = vpop.f32.mrb[139].mxu0  ;;  %v4134_v37 = vmax.f32 %v2804_v63, 0.0  ;;  %v2808_v47 = vadd.f32 %v2807_v30, %v12648_v56  ;;  %4778 = vmatprep.subr.bf16.mxu1 %v12685_v20  ;;  %v2809_v40 = vpop.f32.mrb[139].mxu1  ;;  %v4132_v51 = vmax.f32 %v2731_v55, 0.0 }
 0x253   : > { %v2737_v62 = vadd.f32 %v2736_v49, %v12648_v56  ;;  %v4135_v25 = vmax.f32 %v2806_v18, 0.0  ;;  %v2810_v0 = vadd.f32 %v2809_v40, %v12648_v56  ;;  %v4133_v54 = vmax.f32 %v2733_v58, 0.0 }
 0x254   : > { %v4196_v26 = vmax.f32 %v2735_v41, 0.0  ;;  %11184 = vmatmul.mubr.msk.bf16.gmra.mrb[244].mxu0 %vm1495_vm0, %v13260_v48  ;;  %v4198_v28 = vmax.f32 %v2808_v47, 0.0  ;;  %11188 = vmatmul.mubr.msk.bf16.gmra.mrb[244].mxu1 %vm1495_vm0, %v13260_v48 }
 0x255   : > { %v4197_v38 = vmax.f32 %v2737_v62, 0.0  ;;  %4706 = vmatpush1.bf16.msra.mxu0 %v12675_v17  ;;  %v4199_v52 = vmax.f32 %v2810_v0, 0.0  ;;  %4779 = vmatpush1.bf16.msra.mxu1 %v12678_v33 }
 0x256   : > { %v13583_v20 = vpack.c.bf16 %v4196_v26, %v4132_v51  ;;  %4707 = vmatprep.subr.bf16.mxu0 %v12704_v15  ;;  %v13587_v55 = vpack.c.bf16 %v4198_v28, %v4134_v37  ;;  %4780 = vmatprep.subr.bf16.mxu1 %v12707_v24 }
 0x257   : > { %v2740_v45 = vpop.f32.mrb[140].mxu0  ;;  %3750 = vmatprep.mubr.bf16.mxu0 %v16988_v44  ;;  %v13591_v60 = vpack.c.bf16 %v4197_v38, %v4133_v54  ;;  %v2813_v63 = vpop.f32.mrb[140].mxu1  ;;  %3823 = vmatprep.mubr.bf16.mxu1 %v16988_v44  ;;  %v13595_v58 = vpack.c.bf16 %v4199_v52, %v4135_v25 }
 0x258   : > { %v2741_v48 = vadd.f32 %v2740_v45, %v12672_v16  ;;  %v2742_v17 = vpop.f32.mrb[141].mxu0  ;;  %v2814_v33 = vadd.f32 %v2813_v63, %v12672_v16  ;;  %v2815_v42 = vpop.f32.mrb[141].mxu1 }
 0x259   : > { %v2743_v15 = vadd.f32 %v2742_v17, %v12672_v16  ;;  %4708 = vmatpush1.bf16.msra.mxu0 %v12699_v9  ;;  %v2744_v24 = vpop.f32.mrb[142].mxu0  ;;  %v2816_v12 = vadd.f32 %v2815_v42, %v12672_v16  ;;  %4781 = vmatpush1.bf16.msra.mxu1 %v12702_v13  ;;  %v2817_v41 = vpop.f32.mrb[142].mxu1 }
 0x25a   : > { %v2745_v18 = vadd.f32 %v2744_v24, %v12680_v35  ;;  %4847 = vmatprep.subr.bf16.mxu0 %v12728_v4  ;;  %v2746_v30 = vpop.f32.mrb[143].mxu0  ;;  %v2818_v49 = vadd.f32 %v2817_v41, %v12680_v35  ;;  %4920 = vmatprep.subr.bf16.mxu1 %v12733_v14  ;;  %v2819_v47 = vpop.f32.mrb[143].mxu1  ;;  %v4260_v62 = vmax.f32 %v2741_v48, 0.0  ;;  %v4262_v13 = vmax.f32 %v2814_v33, 0.0 }
 0x25b   : > { %v2747_v37 = vadd.f32 %v2746_v30, %v12680_v35  ;;  %v2820_v40 = vadd.f32 %v2819_v47, %v12680_v35  ;;  %v4261_v51 = vmax.f32 %v2743_v15, 0.0  ;;  %v4263_v4 = vmax.f32 %v2816_v12, 0.0 }
 0x25c   : > { %v4324_v9 = vmax.f32 %v2745_v18, 0.0  ;;  %11185 = vmatmul.mubr.msk.bf16.gmra.mrb[248].mxu0 %vm1495_vm0, %v13287_v22  ;;  %v4326_v25 = vmax.f32 %v2818_v49, 0.0  ;;  %11189 = vmatmul.mubr.msk.bf16.gmra.mrb[248].mxu1 %vm1495_vm0, %v13287_v22 }
 0x25d   : > { %v4325_v26 = vmax.f32 %v2747_v37, 0.0  ;;  %3760 = vmatprep.mubr.bf16.mxu0 %v16988_v44  ;;  %v4327_v0 = vmax.f32 %v2820_v40, 0.0  ;;  %3833 = vmatprep.mubr.bf16.mxu1 %v16988_v44 }
 0x25e   : > { %v13613_v14 = vpack.c.bf16 %v4324_v9, %v4260_v62  ;;  %v13616_v54 = vpack.c.bf16 %v4326_v25, %v4262_v13 }
 0x25f   : > { %v2856_v28 = vpop.f32.mrb[144].mxu0  ;;  %v13618_v38 = vpack.c.bf16 %v4325_v26, %v4261_v51  ;;  %v2929_v45 = vpop.f32.mrb[144].mxu1  ;;  %v13621_v63 = vpack.c.bf16 %v4327_v0, %v4263_v4 }
 0x260   : > { %v2857_v52 = vadd.f32 %v2856_v28, %v12542_v27  ;;  %v2858_v48 = vpop.f32.mrb[145].mxu0  ;;  %v2930_v22 = vadd.f32 %v2929_v45, %v12542_v27  ;;  %v2931_v33 = vpop.f32.mrb[145].mxu1 }
 0x261   : > { %v2859_v17 = vadd.f32 %v2858_v48, %v12542_v27  ;;  %v2860_v15 = vpop.f32.mrb[146].mxu0  ;;  %v2932_v42 = vadd.f32 %v2931_v33, %v12542_v27  ;;  %v2933_v12 = vpop.f32.mrb[146].mxu1 }
 0x262   : > { %v2861_v24 = vadd.f32 %v2860_v15, %v12555_v31  ;;  %v2862_v18 = vpop.f32.mrb[147].mxu0  ;;  %v2934_v41 = vadd.f32 %v2933_v12, %v12555_v31  ;;  %v2935_v49 = vpop.f32.mrb[147].mxu1  ;;  %v3880_v37 = vmax.f32 %v2857_v52, 0.0  ;;  %v3882_v9 = vmax.f32 %v2930_v22, 0.0 }
 0x263   : > { %v2863_v30 = vadd.f32 %v2862_v18, %v12555_v31  ;;  %v2936_v62 = vadd.f32 %v2935_v49, %v12555_v31  ;;  %v3881_v40 = vmax.f32 %v2859_v17, 0.0  ;;  %v3883_v25 = vmax.f32 %v2932_v42, 0.0 }
 0x264   : > { %v3944_v47 = vmax.f32 %v2861_v24, 0.0  ;;  %11186 = vmatmul.mubr.msk.bf16.gmra.mrb[252].mxu0 %vm1495_vm0, %v13314_v19  ;;  %v3946_v13 = vmax.f32 %v2934_v41, 0.0  ;;  %11190 = vmatmul.mubr.msk.bf16.gmra.mrb[252].mxu1 %vm1495_vm0, %v13314_v19  ;;  %v13646_v19 = vld [vmem:[%s16971_s5] sm:$0xff]  }
 0x265   : > { %v3945_v51 = vmax.f32 %v2863_v30, 0.0  ;;  %4733 = vmatprep.mubr.bf16.mxu0 %v16988_v44  ;;  %v3947_v4 = vmax.f32 %v2936_v62, 0.0  ;;  %4806 = vmatprep.mubr.bf16.mxu1 %v16988_v44 }
 0x266   : > { %v13635_v26 = vpack.c.bf16 %v3944_v47, %v3880_v37  ;;  %v13638_v0 = vpack.c.bf16 %v3946_v13, %v3882_v9 }
 0x267   : > { %v2866_v28 = vpop.f32.mrb[148].mxu0  ;;  %v13640_v52 = vpack.c.bf16 %v3945_v51, %v3881_v40  ;;  %v2939_v48 = vpop.f32.mrb[148].mxu1  ;;  %v13648_v17 = vpack.c.bf16 %v3947_v4, %v3883_v25 }
 0x268   : > { %v2867_v45 = vadd.f32 %v2866_v28, %v12553_v29  ;;  %v2868_v22 = vpop.f32.mrb[149].mxu0  ;;  %v2940_v33 = vadd.f32 %v2939_v48, %v12553_v29  ;;  %v2941_v42 = vpop.f32.mrb[149].mxu1 }
 0x269   : > { %v2869_v15 = vadd.f32 %v2868_v22, %v12553_v29  ;;  %v2870_v24 = vpop.f32.mrb[150].mxu0  ;;  %v2942_v12 = vadd.f32 %v2941_v42, %v12553_v29  ;;  %v2943_v41 = vpop.f32.mrb[150].mxu1 }
 0x26a   : > { %v2871_v18 = vadd.f32 %v2870_v24, %v12587_v2  ;;  %v2872_v30 = vpop.f32.mrb[151].mxu0  ;;  %v2944_v49 = vadd.f32 %v2943_v41, %v12587_v2  ;;  %v2945_v47 = vpop.f32.mrb[151].mxu1  ;;  %v4008_v62 = vmax.f32 %v2867_v45, 0.0  ;;  %v4010_v13 = vmax.f32 %v2940_v33, 0.0  ;;  %v17078_v41 = vld [vmem:[#allocation3_spill] sm:$0xff] }
 0x26b   : > { %v2873_v37 = vadd.f32 %v2872_v30, %v12587_v2  ;;  %v2946_v40 = vadd.f32 %v2945_v47, %v12587_v2  ;;  %v4009_v51 = vmax.f32 %v2869_v15, 0.0  ;;  %v4011_v28 = vmax.f32 %v2942_v12, 0.0 }
 0x26c   : > { %v4072_v9 = vmax.f32 %v2871_v18, 0.0  ;;  %11195 = vmatmul.mubr.msk.bf16.vlgmr.msra.gmra.mrb[0].mxu0 %vm4688_vm1, %v13646_v19  ;;  %v4074_v25 = vmax.f32 %v2944_v49, 0.0  ;;  %11199 = vmatmul.mubr.msk.bf16.vlgmr.msra.gmra.mrb[0].mxu1 %vm4688_vm1, %v13646_v19 }
 0x26d   : > { %v4073_v4 = vmax.f32 %v2873_v37, 0.0  ;;  %4848 = vmatpush1.bf16.msra.mxu0 %v12721_v57  ;;  %v4075_v22 = vmax.f32 %v2946_v40, 0.0  ;;  %4921 = vmatpush1.bf16.msra.mxu1 %v12724_v61  ;;  %v13677_v61 = vld [vmem:[%s16971_s5 + $0x8] sm:$0xff]  }
 0x26e   : > { %v13662_v48 = vpack.c.bf16 %v4072_v9, %v4008_v62  ;;  %4849 = vmatprep.subr.bf16.mxu0 %v12777_v1  ;;  %v13666_v45 = vpack.c.bf16 %v4074_v25, %v4010_v13  ;;  %4922 = vmatprep.subr.bf16.mxu1 %v12780_v11  ;;  %v17079_v37 = vld [vmem:[#allocation4_spill] sm:$0xff]  ;;  %v17080_v9 = vld [vmem:[#allocation7_spill] sm:$0xff] }
 0x26f   : > { %v2876_v33 = vpop.f32.mrb[152].mxu0  ;;  %4743 = vmatprep.mubr.bf16.mxu0 %v16988_v44  ;;  %v13670_v15 = vpack.c.bf16 %v4073_v4, %v4009_v51  ;;  %v2949_v57 = vpop.f32.mrb[152].mxu1  ;;  %4816 = vmatprep.mubr.bf16.mxu1 %v16988_v44  ;;  %v13679_v1 = vpack.c.bf16 %v4075_v22, %v4011_v28  ;;  %v17081_v51 = vld [vmem:[#allocation8_spill] sm:$0xff] }
 0x270   : > { %17077 = vst [vmem:[#allocation101_spill] sm:$0xff] %v13666_v45  ;;  %v2877_v42 = vadd.f32 %v2876_v33, %v12639_v46  ;;  %v2878_v24 = vpop.f32.mrb[153].mxu0  ;;  %v2950_v11 = vadd.f32 %v2949_v57, %v12639_v46  ;;  %v2951_v18 = vpop.f32.mrb[153].mxu1  ;;  %v17107_v45 = vld [vmem:[#allocation20_spill] sm:$0xff] }
 0x271   : > { %v2879_v12 = vadd.f32 %v2878_v24, %v12639_v46  ;;  %4850 = vmatpush1.bf16.msra.mxu0 %v17078_v41  ;;  %v2880_v30 = vpop.f32.mrb[154].mxu0  ;;  %v2952_v49 = vadd.f32 %v2951_v18, %v12639_v46  ;;  %4923 = vmatpush1.bf16.msra.mxu1 %v17079_v37  ;;  %v2953_v62 = vpop.f32.mrb[154].mxu1 }
 0x272   : > { %v2881_v47 = vadd.f32 %v2880_v30, %v12648_v56  ;;  %4851 = vmatprep.subr.bf16.mxu0 %v17080_v9  ;;  %v2882_v40 = vpop.f32.mrb[155].mxu0  ;;  %v2954_v13 = vadd.f32 %v2953_v62, %v12648_v56  ;;  %4924 = vmatprep.subr.bf16.mxu1 %v17081_v51  ;;  %v2955_v4 = vpop.f32.mrb[155].mxu1  ;;  %v4136_v28 = vmax.f32 %v2877_v42, 0.0  ;;  %v4138_v57 = vmax.f32 %v2950_v11, 0.0  ;;  %v17082_v30 = vld [vmem:[#allocation5_spill] sm:$0xff]  ;;  %v17084_v42 = vld [vmem:[#allocation6_spill] sm:$0xff] }
 0x273   : > { %v2883_v25 = vadd.f32 %v2882_v40, %v12648_v56  ;;  %v2956_v33 = vadd.f32 %v2955_v4, %v12648_v56  ;;  %v4137_v24 = vmax.f32 %v2879_v12, 0.0  ;;  %v4139_v37 = vmax.f32 %v2952_v49, 0.0  ;;  %v17087_v51 = vld [vmem:[#allocation12_spill] sm:$0xff]  ;;  %v13712_v4 = vld [vmem:[%s16971_s5 + $0x10] sm:$0xff]  }
 0x274   : > { %v4200_v22 = vmax.f32 %v2881_v47, 0.0  ;;  %11196 = vmatmul.mubr.msk.bf16.gmra.mrb[4].mxu0 %vm4688_vm1, %v13677_v61  ;;  %v4202_v18 = vmax.f32 %v2954_v13, 0.0  ;;  %11200 = vmatmul.mubr.msk.bf16.gmra.mrb[4].mxu1 %vm4688_vm1, %v13677_v61  ;;  %v17085_v47 = vld [vmem:[#allocation11_spill] sm:$0xff] }
 0x275   : > { %v4201_v41 = vmax.f32 %v2883_v25, 0.0  ;;  %4852 = vmatpush1.bf16.msra.mxu0 %v17082_v30  ;;  %v4203_v9 = vmax.f32 %v2956_v33, 0.0  ;;  %4925 = vmatpush1.bf16.msra.mxu1 %v17084_v42  ;;  %v17091_v30 = vld [vmem:[#allocation10_spill] sm:$0xff] }
 0x276   : > { %v13697_v62 = vpack.c.bf16 %v4200_v22, %v4136_v28  ;;  %4853 = vmatprep.subr.bf16.mxu0 %v17085_v47  ;;  %v13701_v40 = vpack.c.bf16 %v4202_v18, %v4138_v57  ;;  %4926 = vmatprep.subr.bf16.mxu1 %v17087_v51  ;;  %v17092_v51 = vld [vmem:[#allocation15_spill] sm:$0xff] }
 0x277   : > { %v2886_v11 = vpop.f32.mrb[156].mxu0  ;;  %4753 = vmatprep.mubr.bf16.mxu0 %v16988_v44  ;;  %v13705_v12 = vpack.c.bf16 %v4201_v41, %v4137_v24  ;;  %v2959_v25 = vpop.f32.mrb[156].mxu1  ;;  %4826 = vmatprep.mubr.bf16.mxu1 %v16988_v44  ;;  %v13714_v28 = vpack.c.bf16 %v4203_v9, %v4139_v37  ;;  %v17090_v24 = vld [vmem:[#allocation9_spill] sm:$0xff]  ;;  %v17093_v9 = vld [vmem:[#allocation16_spill] sm:$0xff] }
 0x278   : > { %17083 = vst [vmem:[#allocation3_spill] sm:$0xff] %v13697_v62  ;;  %17086 = vst [vmem:[#allocation4_spill] sm:$0xff] %v13701_v40  ;;  %v2887_v13 = vadd.f32 %v2886_v11, %v12672_v16  ;;  %v2888_v49 = vpop.f32.mrb[157].mxu0  ;;  %v2960_v22 = vadd.f32 %v2959_v25, %v12672_v16  ;;  %v2961_v57 = vpop.f32.mrb[157].mxu1 }
 0x279   : > { %17088 = vst [vmem:[#allocation7_spill] sm:$0xff] %v13705_v12  ;;  %17089 = vst [vmem:[#allocation8_spill] sm:$0xff] %v13714_v28  ;;  %v2889_v33 = vadd.f32 %v2888_v49, %v12672_v16  ;;  %4854 = vmatpush1.bf16.msra.mxu0 %v17090_v24  ;;  %v2890_v18 = vpop.f32.mrb[158].mxu0  ;;  %v2962_v41 = vadd.f32 %v2961_v57, %v12672_v16  ;;  %4927 = vmatpush1.bf16.msra.mxu1 %v17091_v30  ;;  %v2963_v47 = vpop.f32.mrb[158].mxu1 }
 0x27a   : > { %v2891_v42 = vadd.f32 %v2890_v18, %v12680_v35  ;;  %4993 = vmatprep.subr.bf16.mxu0 %v17092_v51  ;;  %v2892_v11 = vpop.f32.mrb[159].mxu0  ;;  %v2964_v37 = vadd.f32 %v2963_v47, %v12680_v35  ;;  %5066 = vmatprep.subr.bf16.mxu1 %v17093_v9  ;;  %v2965_v49 = vpop.f32.mrb[159].mxu1  ;;  %v4264_v40 = vmax.f32 %v2887_v13, 0.0  ;;  %v4266_v57 = vmax.f32 %v2960_v22, 0.0 }
 0x27b   : > { %v2893_v25 = vadd.f32 %v2892_v11, %v12680_v35  ;;  %v2966_v62 = vadd.f32 %v2965_v49, %v12680_v35  ;;  %v4265_v18 = vmax.f32 %v2889_v33, 0.0  ;;  %v4267_v47 = vmax.f32 %v2962_v41, 0.0 }
 0x27c   : > { %v4328_v24 = vmax.f32 %v2891_v42, 0.0  ;;  %11197 = vmatmul.mubr.msk.bf16.gmra.mrb[8].mxu0 %vm4688_vm1, %v13712_v4  ;;  %v4330_v30 = vmax.f32 %v2964_v37, 0.0  ;;  %11201 = vmatmul.mubr.msk.bf16.gmra.mrb[8].mxu1 %vm4688_vm1, %v13712_v4 }
 0x27d   : > { %v4329_v28 = vmax.f32 %v2893_v25, 0.0  ;;  %4763 = vmatprep.mubr.bf16.mxu0 %v16988_v44  ;;  %v4331_v11 = vmax.f32 %v2966_v62, 0.0  ;;  %4836 = vmatprep.mubr.bf16.mxu1 %v16988_v44  ;;  %v13743_v25 = vld [vmem:[%s16971_s5 + $0x18] sm:$0xff]  }
 0x27e   : > { %v13732_v51 = vpack.c.bf16 %v4328_v24, %v4264_v40  ;;  %v13735_v13 = vpack.c.bf16 %v4330_v30, %v4266_v57 }
 0x27f   : > { %v3002_v42 = vpop.f32.mrb[160].mxu0  ;;  %v13737_v9 = vpack.c.bf16 %v4329_v28, %v4265_v18  ;;  %v3075_v33 = vpop.f32.mrb[160].mxu1  ;;  %v13745_v41 = vpack.c.bf16 %v4331_v11, %v4267_v47 }
 0x280   : > { %17094 = vst [vmem:[#allocation5_spill] sm:$0xff] %v13732_v51  ;;  %17095 = vst [vmem:[#allocation6_spill] sm:$0xff] %v13735_v13  ;;  %v3003_v22 = vadd.f32 %v3002_v42, %v12542_v27  ;;  %v3004_v37 = vpop.f32.mrb[161].mxu0  ;;  %v3076_v62 = vadd.f32 %v3075_v33, %v12542_v27  ;;  %v3077_v49 = vpop.f32.mrb[161].mxu1 }
 0x281   : > { %17096 = vst [vmem:[#allocation11_spill] sm:$0xff] %v13737_v9  ;;  %17097 = vst [vmem:[#allocation12_spill] sm:$0xff] %v13745_v41  ;;  %v3005_v40 = vadd.f32 %v3004_v37, %v12542_v27  ;;  %v3006_v24 = vpop.f32.mrb[162].mxu0  ;;  %v3078_v28 = vadd.f32 %v3077_v49, %v12542_v27  ;;  %v3079_v18 = vpop.f32.mrb[162].mxu1 }
 0x282   : > { %v3007_v57 = vadd.f32 %v3006_v24, %v12555_v31  ;;  %v3008_v30 = vpop.f32.mrb[163].mxu0  ;;  %v3080_v42 = vadd.f32 %v3079_v18, %v12555_v31  ;;  %v3081_v51 = vpop.f32.mrb[163].mxu1  ;;  %v3884_v9 = vmax.f32 %v3003_v22, 0.0  ;;  %v3886_v33 = vmax.f32 %v3076_v62, 0.0 }
 0x283   : > { %v3009_v13 = vadd.f32 %v3008_v30, %v12555_v31  ;;  %v3082_v11 = vadd.f32 %v3081_v51, %v12555_v31  ;;  %v3885_v37 = vmax.f32 %v3005_v40, 0.0  ;;  %v3887_v24 = vmax.f32 %v3078_v28, 0.0 }
 0x284   : > { %v3948_v47 = vmax.f32 %v3007_v57, 0.0  ;;  %11198 = vmatmul.mubr.msk.bf16.gmra.mrb[12].mxu0 %vm4688_vm1, %v13743_v25  ;;  %v3950_v41 = vmax.f32 %v3080_v42, 0.0  ;;  %11202 = vmatmul.mubr.msk.bf16.gmra.mrb[12].mxu1 %vm4688_vm1, %v13743_v25 }
 0x285   : > { %v3949_v49 = vmax.f32 %v3009_v13, 0.0  ;;  %4879 = vmatprep.mubr.bf16.mxu0 %v16988_v44  ;;  %v3951_v30 = vmax.f32 %v3082_v11, 0.0  ;;  %4952 = vmatprep.mubr.bf16.mxu1 %v16988_v44 }
 0x286   : > { %v13759_v18 = vpack.c.bf16 %v3948_v47, %v3884_v9  ;;  %v13762_v22 = vpack.c.bf16 %v3950_v41, %v3886_v33 }
 0x287   : > { %v3012_v51 = vpop.f32.mrb[164].mxu0  ;;  %v13764_v57 = vpack.c.bf16 %v3949_v49, %v3885_v37  ;;  %v3085_v40 = vpop.f32.mrb[164].mxu1  ;;  %v13767_v42 = vpack.c.bf16 %v3951_v30, %v3887_v24 }
 0x288   : > { %17098 = vst [vmem:[#allocation9_spill] sm:$0xff] %v13759_v18  ;;  %17099 = vst [vmem:[#allocation10_spill] sm:$0xff] %v13762_v22  ;;  %v3013_v62 = vadd.f32 %v3012_v51, %v12553_v29  ;;  %v3014_v13 = vpop.f32.mrb[165].mxu0  ;;  %v3086_v12 = vadd.f32 %v3085_v40, %v12553_v29  ;;  %v3087_v9 = vpop.f32.mrb[165].mxu1 }
 0x289   : > { %17100 = vst [vmem:[#allocation15_spill] sm:$0xff] %v13764_v57  ;;  %17101 = vst [vmem:[#allocation16_spill] sm:$0xff] %v13767_v42  ;;  %v3015_v28 = vadd.f32 %v3014_v13, %v12553_v29  ;;  %v3016_v47 = vpop.f32.mrb[166].mxu0  ;;  %v3088_v11 = vadd.f32 %v3087_v9, %v12553_v29  ;;  %v3089_v33 = vpop.f32.mrb[166].mxu1 }
 0x28a   : > { %v3017_v41 = vadd.f32 %v3016_v47, %v12587_v2  ;;  %v3018_v22 = vpop.f32.mrb[167].mxu0  ;;  %v3090_v37 = vadd.f32 %v3089_v33, %v12587_v2  ;;  %v3091_v51 = vpop.f32.mrb[167].mxu1  ;;  %v4012_v18 = vmax.f32 %v3013_v62, 0.0  ;;  %v4014_v40 = vmax.f32 %v3086_v12, 0.0  ;;  %v17102_v47 = vld [vmem:[#allocation13_spill] sm:$0xff]  ;;  %v17104_v62 = vld [vmem:[#allocation14_spill] sm:$0xff] }
 0x28b   : > { %v3019_v49 = vadd.f32 %v3018_v22, %v12587_v2  ;;  %v3092_v30 = vadd.f32 %v3091_v51, %v12587_v2  ;;  %v4013_v13 = vmax.f32 %v3015_v28, 0.0  ;;  %v4015_v33 = vmax.f32 %v3088_v11, 0.0 }
 0x28c   : > { %v4076_v24 = vmax.f32 %v3017_v41, 0.0  ;;  %11203 = vmatmul.mubr.msk.bf16.vlgmr.msra.gmra.mrb[16].mxu0 %vm4688_vm1, %v13646_v19  ;;  %v4078_v42 = vmax.f32 %v3090_v37, 0.0  ;;  %11207 = vmatmul.mubr.msk.bf16.vlgmr.msra.gmra.mrb[16].mxu1 %vm4688_vm1, %v13646_v19  ;;  %v17105_v41 = vld [vmem:[#allocation19_spill] sm:$0xff] }
 0x28d   : > { %v4077_v9 = vmax.f32 %v3019_v49, 0.0  ;;  %4994 = vmatpush1.bf16.msra.mxu0 %v17102_v47  ;;  %v4079_v22 = vmax.f32 %v3092_v30, 0.0  ;;  %5067 = vmatpush1.bf16.msra.mxu1 %v17104_v62 }
 0x28e   : > { %v13781_v57 = vpack.c.bf16 %v4076_v24, %v4012_v18  ;;  %4995 = vmatprep.subr.bf16.mxu0 %v17105_v41  ;;  %v13785_v51 = vpack.c.bf16 %v4078_v42, %v4014_v40  ;;  %5068 = vmatprep.subr.bf16.mxu1 %v17107_v45  ;;  %v17110_v40 = vld [vmem:[#allocation17_spill] sm:$0xff]  ;;  %v17112_v41 = vld [vmem:[#allocation23_spill] sm:$0xff] }
 0x28f   : > { %v3022_v12 = vpop.f32.mrb[168].mxu0  ;;  %4889 = vmatprep.mubr.bf16.mxu0 %v16988_v44  ;;  %v13789_v28 = vpack.c.bf16 %v4077_v9, %v4013_v13  ;;  %v3095_v49 = vpop.f32.mrb[168].mxu1  ;;  %4962 = vmatprep.mubr.bf16.mxu1 %v16988_v44  ;;  %v13793_v18 = vpack.c.bf16 %v4079_v22, %v4015_v33  ;;  %v17111_v13 = vld [vmem:[#allocation18_spill] sm:$0xff]  ;;  %v17113_v22 = vld [vmem:[#allocation24_spill] sm:$0xff] }
 0x290   : > { %17103 = vst [vmem:[#allocation13_spill] sm:$0xff] %v13781_v57  ;;  %17106 = vst [vmem:[#allocation14_spill] sm:$0xff] %v13785_v51  ;;  %v3023_v37 = vadd.f32 %v3022_v12, %v12639_v46  ;;  %v3024_v11 = vpop.f32.mrb[169].mxu0  ;;  %v3096_v24 = vadd.f32 %v3095_v49, %v12639_v46  ;;  %v3097_v30 = vpop.f32.mrb[169].mxu1 }
 0x291   : > { %17108 = vst [vmem:[#allocation19_spill] sm:$0xff] %v13789_v28  ;;  %17109 = vst [vmem:[#allocation20_spill] sm:$0xff] %v13793_v18  ;;  %v3025_v42 = vadd.f32 %v3024_v11, %v12639_v46  ;;  %4996 = vmatpush1.bf16.msra.mxu0 %v17110_v40  ;;  %v3026_v45 = vpop.f32.mrb[170].mxu0  ;;  %v3098_v47 = vadd.f32 %v3097_v30, %v12639_v46  ;;  %5069 = vmatpush1.bf16.msra.mxu1 %v17111_v13  ;;  %v3099_v62 = vpop.f32.mrb[170].mxu1  ;;  %v17119_v28 = vld [vmem:[#allocation28_spill] sm:$0xff] }
 0x292   : > { %v3027_v9 = vadd.f32 %v3026_v45, %v12648_v56  ;;  %4997 = vmatprep.subr.bf16.mxu0 %v17112_v41  ;;  %v3028_v12 = vpop.f32.mrb[171].mxu0  ;;  %v3100_v33 = vadd.f32 %v3099_v62, %v12648_v56  ;;  %5070 = vmatprep.subr.bf16.mxu1 %v17113_v22  ;;  %v3101_v11 = vpop.f32.mrb[171].mxu1  ;;  %v4140_v51 = vmax.f32 %v3023_v37, 0.0  ;;  %v4142_v30 = vmax.f32 %v3096_v24, 0.0  ;;  %v17114_v62 = vld [vmem:[#allocation21_spill] sm:$0xff]  ;;  %v17116_v37 = vld [vmem:[#allocation22_spill] sm:$0xff] }
 0x293   : > { %v3029_v49 = vadd.f32 %v3028_v12, %v12648_v56  ;;  %v3102_v57 = vadd.f32 %v3101_v11, %v12648_v56  ;;  %v4141_v45 = vmax.f32 %v3025_v42, 0.0  ;;  %v4143_v41 = vmax.f32 %v3098_v47, 0.0 }
 0x294   : > { %v4204_v40 = vmax.f32 %v3027_v9, 0.0  ;;  %11204 = vmatmul.mubr.msk.bf16.gmra.mrb[20].mxu0 %vm4688_vm1, %v13677_v61  ;;  %v4206_v13 = vmax.f32 %v3100_v33, 0.0  ;;  %11208 = vmatmul.mubr.msk.bf16.gmra.mrb[20].mxu1 %vm4688_vm1, %v13677_v61  ;;  %v17117_v9 = vld [vmem:[#allocation27_spill] sm:$0xff] }
 0x295   : > { %v4205_v18 = vmax.f32 %v3029_v49, 0.0  ;;  %4998 = vmatpush1.bf16.msra.mxu0 %v17114_v62  ;;  %v4207_v12 = vmax.f32 %v3102_v57, 0.0  ;;  %5071 = vmatpush1.bf16.msra.mxu1 %v17116_v37 }
 0x296   : > { %v13811_v22 = vpack.c.bf16 %v4204_v40, %v4140_v51  ;;  %4999 = vmatprep.subr.bf16.mxu0 %v17117_v9  ;;  %v13815_v11 = vpack.c.bf16 %v4206_v13, %v4142_v30  ;;  %5072 = vmatprep.subr.bf16.mxu1 %v17119_v28  ;;  %v17122_v13 = vld [vmem:[#allocation25_spill] sm:$0xff]  ;;  %v17124_v9 = vld [vmem:[#allocation31_spill] sm:$0xff] }
 0x297   : > { %v3032_v24 = vpop.f32.mrb[172].mxu0  ;;  %4899 = vmatprep.mubr.bf16.mxu0 %v16988_v44  ;;  %v13819_v42 = vpack.c.bf16 %v4205_v18, %v4141_v45  ;;  %v3105_v49 = vpop.f32.mrb[172].mxu1  ;;  %4972 = vmatprep.mubr.bf16.mxu1 %v16988_v44  ;;  %v13823_v57 = vpack.c.bf16 %v4207_v12, %v4143_v41  ;;  %v17123_v18 = vld [vmem:[#allocation26_spill] sm:$0xff]  ;;  %v17125_v12 = vld [vmem:[#allocation32_spill] sm:$0xff] }
 0x298   : > { %17115 = vst [vmem:[#allocation17_spill] sm:$0xff] %v13811_v22  ;;  %17118 = vst [vmem:[#allocation18_spill] sm:$0xff] %v13815_v11  ;;  %v3033_v33 = vadd.f32 %v3032_v24, %v12672_v16  ;;  %v3034_v47 = vpop.f32.mrb[173].mxu0  ;;  %v3106_v51 = vadd.f32 %v3105_v49, %v12672_v16  ;;  %v3107_v30 = vpop.f32.mrb[173].mxu1 }
 0x299   : > { %17120 = vst [vmem:[#allocation23_spill] sm:$0xff] %v13819_v42  ;;  %17121 = vst [vmem:[#allocation24_spill] sm:$0xff] %v13823_v57  ;;  %v3035_v40 = vadd.f32 %v3034_v47, %v12672_v16  ;;  %5000 = vmatpush1.bf16.msra.mxu0 %v17122_v13  ;;  %v3036_v28 = vpop.f32.mrb[174].mxu0  ;;  %v3108_v62 = vadd.f32 %v3107_v30, %v12672_v16  ;;  %5073 = vmatpush1.bf16.msra.mxu1 %v17123_v18  ;;  %v3109_v37 = vpop.f32.mrb[174].mxu1  ;;  %v17139_v42 = vld [vmem:[#allocation36_spill] sm:$0xff] }
 0x29a   : > { %v3037_v45 = vadd.f32 %v3036_v28, %v12680_v35  ;;  %5139 = vmatprep.subr.bf16.mxu0 %v17124_v9  ;;  %v3038_v24 = vpop.f32.mrb[175].mxu0  ;;  %v3110_v41 = vadd.f32 %v3109_v37, %v12680_v35  ;;  %5212 = vmatprep.subr.bf16.mxu1 %v17125_v12  ;;  %v3111_v47 = vpop.f32.mrb[175].mxu1  ;;  %v4268_v11 = vmax.f32 %v3033_v33, 0.0  ;;  %v4270_v30 = vmax.f32 %v3106_v51, 0.0 }
 0x29b   : > { %v3039_v49 = vadd.f32 %v3038_v24, %v12680_v35  ;;  %v3112_v22 = vadd.f32 %v3111_v47, %v12680_v35  ;;  %v4269_v28 = vmax.f32 %v3035_v40, 0.0  ;;  %v4271_v37 = vmax.f32 %v3108_v62, 0.0 }
 0x29c   : > { %v4332_v13 = vmax.f32 %v3037_v45, 0.0  ;;  %11205 = vmatmul.mubr.msk.bf16.gmra.mrb[24].mxu0 %vm4688_vm1, %v13712_v4  ;;  %v4334_v18 = vmax.f32 %v3110_v41, 0.0  ;;  %11209 = vmatmul.mubr.msk.bf16.gmra.mrb[24].mxu1 %vm4688_vm1, %v13712_v4 }
 0x29d   : > { %v4333_v57 = vmax.f32 %v3039_v49, 0.0  ;;  %4909 = vmatprep.mubr.bf16.mxu0 %v16988_v44  ;;  %v4335_v24 = vmax.f32 %v3112_v22, 0.0  ;;  %4982 = vmatprep.mubr.bf16.mxu1 %v16988_v44 }
 0x29e   : > { %v13841_v9 = vpack.c.bf16 %v4332_v13, %v4268_v11  ;;  %v13844_v33 = vpack.c.bf16 %v4334_v18, %v4270_v30 }
 0x29f   : > { %v3148_v45 = vpop.f32.mrb[176].mxu0  ;;  %v13846_v12 = vpack.c.bf16 %v4333_v57, %v4269_v28  ;;  %v3221_v40 = vpop.f32.mrb[176].mxu1  ;;  %v13849_v49 = vpack.c.bf16 %v4335_v24, %v4271_v37 }
 0x2a0   : > { %17126 = vst [vmem:[#allocation21_spill] sm:$0xff] %v13841_v9  ;;  %17127 = vst [vmem:[#allocation22_spill] sm:$0xff] %v13844_v33  ;;  %v3149_v51 = vadd.f32 %v3148_v45, %v12542_v27  ;;  %v3150_v41 = vpop.f32.mrb[177].mxu0  ;;  %v3222_v47 = vadd.f32 %v3221_v40, %v12542_v27  ;;  %v3223_v11 = vpop.f32.mrb[177].mxu1 }
 0x2a1   : > { %17128 = vst [vmem:[#allocation27_spill] sm:$0xff] %v13846_v12  ;;  %17129 = vst [vmem:[#allocation28_spill] sm:$0xff] %v13849_v49  ;;  %v3151_v62 = vadd.f32 %v3150_v41, %v12542_v27  ;;  %v3152_v13 = vpop.f32.mrb[178].mxu0  ;;  %v3224_v22 = vadd.f32 %v3223_v11, %v12542_v27  ;;  %v3225_v18 = vpop.f32.mrb[178].mxu1 }
 0x2a2   : > { %v3153_v30 = vadd.f32 %v3152_v13, %v12555_v31  ;;  %v3154_v33 = vpop.f32.mrb[179].mxu0  ;;  %v3226_v57 = vadd.f32 %v3225_v18, %v12555_v31  ;;  %v3227_v45 = vpop.f32.mrb[179].mxu1  ;;  %v3888_v9 = vmax.f32 %v3149_v51, 0.0  ;;  %v3890_v40 = vmax.f32 %v3222_v47, 0.0 }
 0x2a3   : > { %v3155_v28 = vadd.f32 %v3154_v33, %v12555_v31  ;;  %v3228_v24 = vadd.f32 %v3227_v45, %v12555_v31  ;;  %v3889_v41 = vmax.f32 %v3151_v62, 0.0  ;;  %v3891_v13 = vmax.f32 %v3224_v22, 0.0 }
 0x2a4   : > { %v3952_v37 = vmax.f32 %v3153_v30, 0.0  ;;  %11206 = vmatmul.mubr.msk.bf16.gmra.mrb[28].mxu0 %vm4688_vm1, %v13743_v25  ;;  %v3954_v49 = vmax.f32 %v3226_v57, 0.0  ;;  %11210 = vmatmul.mubr.msk.bf16.gmra.mrb[28].mxu1 %vm4688_vm1, %v13743_v25 }
 0x2a5   : > { %v3953_v11 = vmax.f32 %v3155_v28, 0.0  ;;  %5025 = vmatprep.mubr.bf16.mxu0 %v16988_v44  ;;  %v3955_v33 = vmax.f32 %v3228_v24, 0.0  ;;  %5098 = vmatprep.mubr.bf16.mxu1 %v16988_v44 }
 0x2a6   : > { %v13863_v18 = vpack.c.bf16 %v3952_v37, %v3888_v9  ;;  %v13866_v51 = vpack.c.bf16 %v3954_v49, %v3890_v40 }
 0x2a7   : > { %v3158_v30 = vpop.f32.mrb[180].mxu0  ;;  %v13868_v45 = vpack.c.bf16 %v3953_v11, %v3889_v41  ;;  %v3231_v62 = vpop.f32.mrb[180].mxu1  ;;  %v13871_v28 = vpack.c.bf16 %v3955_v33, %v3891_v13 }
 0x2a8   : > { %17130 = vst [vmem:[#allocation25_spill] sm:$0xff] %v13863_v18  ;;  %17131 = vst [vmem:[#allocation26_spill] sm:$0xff] %v13866_v51  ;;  %v3159_v47 = vadd.f32 %v3158_v30, %v12553_v29  ;;  %v3160_v57 = vpop.f32.mrb[181].mxu0  ;;  %v3232_v12 = vadd.f32 %v3231_v62, %v12553_v29  ;;  %v3233_v9 = vpop.f32.mrb[181].mxu1 }
 0x2a9   : > { %17132 = vst [vmem:[#allocation31_spill] sm:$0xff] %v13868_v45  ;;  %17133 = vst [vmem:[#allocation32_spill] sm:$0xff] %v13871_v28  ;;  %v3161_v22 = vadd.f32 %v3160_v57, %v12553_v29  ;;  %v3162_v37 = vpop.f32.mrb[182].mxu0  ;;  %v3234_v24 = vadd.f32 %v3233_v9, %v12553_v29  ;;  %v3235_v40 = vpop.f32.mrb[182].mxu1 }
 0x2aa   : > { %v3163_v49 = vadd.f32 %v3162_v37, %v12587_v2  ;;  %v3164_v51 = vpop.f32.mrb[183].mxu0  ;;  %v3236_v41 = vadd.f32 %v3235_v40, %v12587_v2  ;;  %v3237_v30 = vpop.f32.mrb[183].mxu1  ;;  %v4016_v18 = vmax.f32 %v3159_v47, 0.0  ;;  %v4018_v62 = vmax.f32 %v3232_v12, 0.0  ;;  %v17134_v37 = vld [vmem:[#allocation29_spill] sm:$0xff]  ;;  %v17136_v47 = vld [vmem:[#allocation30_spill] sm:$0xff] }
 0x2ab   : > { %v3165_v11 = vadd.f32 %v3164_v51, %v12587_v2  ;;  %v3238_v33 = vadd.f32 %v3237_v30, %v12587_v2  ;;  %v4017_v57 = vmax.f32 %v3161_v22, 0.0  ;;  %v4019_v40 = vmax.f32 %v3234_v24, 0.0 }
 0x2ac   : > { %v4080_v13 = vmax.f32 %v3163_v49, 0.0  ;;  %11211 = vmatmul.mubr.msk.bf16.vlgmr.msra.gmra.mrb[32].mxu0 %vm4688_vm1, %v13646_v19  ;;  %v4082_v28 = vmax.f32 %v3236_v41, 0.0  ;;  %11215 = vmatmul.mubr.msk.bf16.vlgmr.msra.gmra.mrb[32].mxu1 %vm4688_vm1, %v13646_v19  ;;  %v17137_v49 = vld [vmem:[#allocation35_spill] sm:$0xff] }
 0x2ad   : > { %v4081_v9 = vmax.f32 %v3165_v11, 0.0  ;;  %5140 = vmatpush1.bf16.msra.mxu0 %v17134_v37  ;;  %v4083_v51 = vmax.f32 %v3238_v33, 0.0  ;;  %5213 = vmatpush1.bf16.msra.mxu1 %v17136_v47 }
 0x2ae   : > { %v13885_v45 = vpack.c.bf16 %v4080_v13, %v4016_v18  ;;  %5141 = vmatprep.subr.bf16.mxu0 %v17137_v49  ;;  %v13889_v30 = vpack.c.bf16 %v4082_v28, %v4018_v62  ;;  %5214 = vmatprep.subr.bf16.mxu1 %v17139_v42  ;;  %v17142_v62 = vld [vmem:[#allocation33_spill] sm:$0xff]  ;;  %v17144_v49 = vld [vmem:[#allocation39_spill] sm:$0xff] }
 0x2af   : > { %v3168_v12 = vpop.f32.mrb[184].mxu0  ;;  %5035 = vmatprep.mubr.bf16.mxu0 %v16988_v44  ;;  %v13893_v22 = vpack.c.bf16 %v4081_v9, %v4017_v57  ;;  %v3241_v11 = vpop.f32.mrb[184].mxu1  ;;  %5108 = vmatprep.mubr.bf16.mxu1 %v16988_v44  ;;  %v13897_v18 = vpack.c.bf16 %v4083_v51, %v4019_v40  ;;  %v17143_v57 = vld [vmem:[#allocation34_spill] sm:$0xff]  ;;  %v17145_v51 = vld [vmem:[#allocation40_spill] sm:$0xff] }
 0x2b0   : > { %17135 = vst [vmem:[#allocation29_spill] sm:$0xff] %v13885_v45  ;;  %17138 = vst [vmem:[#allocation30_spill] sm:$0xff] %v13889_v30  ;;  %v3169_v41 = vadd.f32 %v3168_v12, %v12639_v46  ;;  %v3170_v24 = vpop.f32.mrb[185].mxu0  ;;  %v3242_v13 = vadd.f32 %v3241_v11, %v12639_v46  ;;  %v3243_v33 = vpop.f32.mrb[185].mxu1 }
 0x2b1   : > { %17140 = vst [vmem:[#allocation35_spill] sm:$0xff] %v13893_v22  ;;  %17141 = vst [vmem:[#allocation36_spill] sm:$0xff] %v13897_v18  ;;  %v3171_v28 = vadd.f32 %v3170_v24, %v12639_v46  ;;  %5142 = vmatpush1.bf16.msra.mxu0 %v17142_v62  ;;  %v3172_v42 = vpop.f32.mrb[186].mxu0  ;;  %v3244_v37 = vadd.f32 %v3243_v33, %v12639_v46  ;;  %5215 = vmatpush1.bf16.msra.mxu1 %v17143_v57  ;;  %v3245_v47 = vpop.f32.mrb[186].mxu1  ;;  %v17151_v22 = vld [vmem:[#allocation44_spill] sm:$0xff] }
 0x2b2   : > { %v3173_v9 = vadd.f32 %v3172_v42, %v12648_v56  ;;  %5143 = vmatprep.subr.bf16.mxu0 %v17144_v49  ;;  %v3174_v12 = vpop.f32.mrb[187].mxu0  ;;  %v3246_v40 = vadd.f32 %v3245_v47, %v12648_v56  ;;  %5216 = vmatprep.subr.bf16.mxu1 %v17145_v51  ;;  %v3247_v24 = vpop.f32.mrb[187].mxu1  ;;  %v4144_v30 = vmax.f32 %v3169_v41, 0.0  ;;  %v4146_v33 = vmax.f32 %v3242_v13, 0.0  ;;  %v17146_v47 = vld [vmem:[#allocation37_spill] sm:$0xff]  ;;  %v17148_v41 = vld [vmem:[#allocation38_spill] sm:$0xff] }
 0x2b3   : > { %v3175_v11 = vadd.f32 %v3174_v12, %v12648_v56  ;;  %v3248_v45 = vadd.f32 %v3247_v24, %v12648_v56  ;;  %v4145_v42 = vmax.f32 %v3171_v28, 0.0  ;;  %v4147_v49 = vmax.f32 %v3244_v37, 0.0 }
 0x2b4   : > { %v4208_v62 = vmax.f32 %v3173_v9, 0.0  ;;  %11212 = vmatmul.mubr.msk.bf16.gmra.mrb[36].mxu0 %vm4688_vm1, %v13677_v61  ;;  %v4210_v57 = vmax.f32 %v3246_v40, 0.0  ;;  %11216 = vmatmul.mubr.msk.bf16.gmra.mrb[36].mxu1 %vm4688_vm1, %v13677_v61  ;;  %v17149_v9 = vld [vmem:[#allocation43_spill] sm:$0xff] }
 0x2b5   : > { %v4209_v18 = vmax.f32 %v3175_v11, 0.0  ;;  %5144 = vmatpush1.bf16.msra.mxu0 %v17146_v47  ;;  %v4211_v12 = vmax.f32 %v3248_v45, 0.0  ;;  %5217 = vmatpush1.bf16.msra.mxu1 %v17148_v41 }
 0x2b6   : > { %v13915_v51 = vpack.c.bf16 %v4208_v62, %v4144_v30  ;;  %5145 = vmatprep.subr.bf16.mxu0 %v17149_v9  ;;  %v13919_v24 = vpack.c.bf16 %v4210_v57, %v4146_v33  ;;  %5218 = vmatprep.subr.bf16.mxu1 %v17151_v22  ;;  %v17154_v57 = vld [vmem:[#allocation41_spill] sm:$0xff]  ;;  %v17156_v9 = vld [vmem:[#allocation47_spill] sm:$0xff] }
 0x2b7   : > { %v3178_v13 = vpop.f32.mrb[188].mxu0  ;;  %5045 = vmatprep.mubr.bf16.mxu0 %v16988_v44  ;;  %v13923_v28 = vpack.c.bf16 %v4209_v18, %v4145_v42  ;;  %v3251_v11 = vpop.f32.mrb[188].mxu1  ;;  %5118 = vmatprep.mubr.bf16.mxu1 %v16988_v44  ;;  %v13927_v45 = vpack.c.bf16 %v4211_v12, %v4147_v49  ;;  %v17155_v18 = vld [vmem:[#allocation42_spill] sm:$0xff]  ;;  %v17157_v12 = vld [vmem:[#allocation48_spill] sm:$0xff] }
 0x2b8   : > { %17147 = vst [vmem:[#allocation33_spill] sm:$0xff] %v13915_v51  ;;  %17150 = vst [vmem:[#allocation34_spill] sm:$0xff] %v13919_v24  ;;  %v3179_v40 = vadd.f32 %v3178_v13, %v12672_v16  ;;  %v3180_v37 = vpop.f32.mrb[189].mxu0  ;;  %v3252_v30 = vadd.f32 %v3251_v11, %v12672_v16  ;;  %v3253_v33 = vpop.f32.mrb[189].mxu1 }
 0x2b9   : > { %17152 = vst [vmem:[#allocation39_spill] sm:$0xff] %v13923_v28  ;;  %17153 = vst [vmem:[#allocation40_spill] sm:$0xff] %v13927_v45  ;;  %v3181_v62 = vadd.f32 %v3180_v37, %v12672_v16  ;;  %5146 = vmatpush1.bf16.msra.mxu0 %v17154_v57  ;;  %v3182_v22 = vpop.f32.mrb[190].mxu0  ;;  %v3254_v47 = vadd.f32 %v3253_v33, %v12672_v16  ;;  %5219 = vmatpush1.bf16.msra.mxu1 %v17155_v18  ;;  %v3255_v41 = vpop.f32.mrb[190].mxu1  ;;  %v17171_v28 = vld [vmem:[#allocation52_spill] sm:$0xff] }
 0x2ba   : > { %v3183_v42 = vadd.f32 %v3182_v22, %v12680_v35  ;;  %5285 = vmatprep.subr.bf16.mxu0 %v17156_v9  ;;  %v3184_v13 = vpop.f32.mrb[191].mxu0  ;;  %v3256_v49 = vadd.f32 %v3255_v41, %v12680_v35  ;;  %5358 = vmatprep.subr.bf16.mxu1 %v17157_v12  ;;  %v3257_v37 = vpop.f32.mrb[191].mxu1  ;;  %v4272_v24 = vmax.f32 %v3179_v40, 0.0  ;;  %v4274_v33 = vmax.f32 %v3252_v30, 0.0 }
 0x2bb   : > { %v3185_v11 = vadd.f32 %v3184_v13, %v12680_v35  ;;  %v3258_v51 = vadd.f32 %v3257_v37, %v12680_v35  ;;  %v4273_v22 = vmax.f32 %v3181_v62, 0.0  ;;  %v4275_v41 = vmax.f32 %v3254_v47, 0.0 }
 0x2bc   : > { %v4336_v57 = vmax.f32 %v3183_v42, 0.0  ;;  %11213 = vmatmul.mubr.msk.bf16.gmra.mrb[40].mxu0 %vm4688_vm1, %v13712_v4  ;;  %v4338_v18 = vmax.f32 %v3256_v49, 0.0  ;;  %11217 = vmatmul.mubr.msk.bf16.gmra.mrb[40].mxu1 %vm4688_vm1, %v13712_v4 }
 0x2bd   : > { %v4337_v45 = vmax.f32 %v3185_v11, 0.0  ;;  %5055 = vmatprep.mubr.bf16.mxu0 %v16988_v44  ;;  %v4339_v13 = vmax.f32 %v3258_v51, 0.0  ;;  %5128 = vmatprep.mubr.bf16.mxu1 %v16988_v44 }
 0x2be   : > { %v13945_v9 = vpack.c.bf16 %v4336_v57, %v4272_v24  ;;  %v13948_v40 = vpack.c.bf16 %v4338_v18, %v4274_v33 }
 0x2bf   : > { %v3294_v42 = vpop.f32.mrb[192].mxu0  ;;  %v13950_v12 = vpack.c.bf16 %v4337_v45, %v4273_v22  ;;  %v3367_v62 = vpop.f32.mrb[192].mxu1  ;;  %v13953_v11 = vpack.c.bf16 %v4339_v13, %v4275_v41 }
 0x2c0   : > { %17158 = vst [vmem:[#allocation37_spill] sm:$0xff] %v13945_v9  ;;  %17159 = vst [vmem:[#allocation38_spill] sm:$0xff] %v13948_v40  ;;  %v3295_v30 = vadd.f32 %v3294_v42, %v12542_v27  ;;  %v3296_v49 = vpop.f32.mrb[193].mxu0  ;;  %v3368_v37 = vadd.f32 %v3367_v62, %v12542_v27  ;;  %v3369_v24 = vpop.f32.mrb[193].mxu1 }
 0x2c1   : > { %17160 = vst [vmem:[#allocation43_spill] sm:$0xff] %v13950_v12  ;;  %17161 = vst [vmem:[#allocation44_spill] sm:$0xff] %v13953_v11  ;;  %v3297_v47 = vadd.f32 %v3296_v49, %v12542_v27  ;;  %v3298_v57 = vpop.f32.mrb[194].mxu0  ;;  %v3370_v51 = vadd.f32 %v3369_v24, %v12542_v27  ;;  %v3371_v18 = vpop.f32.mrb[194].mxu1 }
 0x2c2   : > { %v3299_v33 = vadd.f32 %v3298_v57, %v12555_v31  ;;  %v3300_v40 = vpop.f32.mrb[195].mxu0  ;;  %v3372_v45 = vadd.f32 %v3371_v18, %v12555_v31  ;;  %v3373_v42 = vpop.f32.mrb[195].mxu1  ;;  %v3892_v9 = vmax.f32 %v3295_v30, 0.0  ;;  %v3894_v62 = vmax.f32 %v3368_v37, 0.0 }
 0x2c3   : > { %v3301_v22 = vadd.f32 %v3300_v40, %v12555_v31  ;;  %v3374_v13 = vadd.f32 %v3373_v42, %v12555_v31  ;;  %v3893_v49 = vmax.f32 %v3297_v47, 0.0  ;;  %v3895_v57 = vmax.f32 %v3370_v51, 0.0 }
 0x2c4   : > { %v3956_v41 = vmax.f32 %v3299_v33, 0.0  ;;  %11214 = vmatmul.mubr.msk.bf16.gmra.mrb[44].mxu0 %vm4688_vm1, %v13743_v25  ;;  %v3958_v11 = vmax.f32 %v3372_v45, 0.0  ;;  %11218 = vmatmul.mubr.msk.bf16.gmra.mrb[44].mxu1 %vm4688_vm1, %v13743_v25 }
 0x2c5   : > { %v3957_v24 = vmax.f32 %v3301_v22, 0.0  ;;  %5171 = vmatprep.mubr.bf16.mxu0 %v16988_v44  ;;  %v3959_v40 = vmax.f32 %v3374_v13, 0.0  ;;  %5244 = vmatprep.mubr.bf16.mxu1 %v16988_v44 }
 0x2c6   : > { %v13967_v18 = vpack.c.bf16 %v3956_v41, %v3892_v9  ;;  %v13970_v30 = vpack.c.bf16 %v3958_v11, %v3894_v62 }
 0x2c7   : > { %v3304_v33 = vpop.f32.mrb[196].mxu0  ;;  %v13972_v42 = vpack.c.bf16 %v3957_v24, %v3893_v49  ;;  %v3377_v47 = vpop.f32.mrb[196].mxu1  ;;  %v13975_v22 = vpack.c.bf16 %v3959_v40, %v3895_v57 }
 0x2c8   : > { %17162 = vst [vmem:[#allocation41_spill] sm:$0xff] %v13967_v18  ;;  %17163 = vst [vmem:[#allocation42_spill] sm:$0xff] %v13970_v30  ;;  %v3305_v37 = vadd.f32 %v3304_v33, %v12553_v29  ;;  %v3306_v45 = vpop.f32.mrb[197].mxu0  ;;  %v3378_v12 = vadd.f32 %v3377_v47, %v12553_v29  ;;  %v3379_v9 = vpop.f32.mrb[197].mxu1 }
 0x2c9   : > { %17164 = vst [vmem:[#allocation47_spill] sm:$0xff] %v13972_v42  ;;  %17165 = vst [vmem:[#allocation48_spill] sm:$0xff] %v13975_v22  ;;  %v3307_v51 = vadd.f32 %v3306_v45, %v12553_v29  ;;  %v3308_v41 = vpop.f32.mrb[198].mxu0  ;;  %v3380_v13 = vadd.f32 %v3379_v9, %v12553_v29  ;;  %v3381_v62 = vpop.f32.mrb[198].mxu1 }
 0x2ca   : > { %v3309_v11 = vadd.f32 %v3308_v41, %v12587_v2  ;;  %v3310_v30 = vpop.f32.mrb[199].mxu0  ;;  %v3382_v49 = vadd.f32 %v3381_v62, %v12587_v2  ;;  %v3383_v33 = vpop.f32.mrb[199].mxu1  ;;  %v4020_v18 = vmax.f32 %v3305_v37, 0.0  ;;  %v4022_v47 = vmax.f32 %v3378_v12, 0.0  ;;  %v17166_v41 = vld [vmem:[#allocation45_spill] sm:$0xff]  ;;  %v17168_v37 = vld [vmem:[#allocation46_spill] sm:$0xff] }
 0x2cb   : > { %v3311_v24 = vadd.f32 %v3310_v30, %v12587_v2  ;;  %v3384_v40 = vadd.f32 %v3383_v33, %v12587_v2  ;;  %v4021_v45 = vmax.f32 %v3307_v51, 0.0  ;;  %v4023_v62 = vmax.f32 %v3380_v13, 0.0 }
 0x2cc   : > { %v4084_v57 = vmax.f32 %v3309_v11, 0.0  ;;  %11219 = vmatmul.mubr.msk.bf16.vlgmr.msra.gmra.mrb[48].mxu0 %vm4688_vm1, %v13646_v19  ;;  %v4086_v22 = vmax.f32 %v3382_v49, 0.0  ;;  %11223 = vmatmul.mubr.msk.bf16.vlgmr.msra.gmra.mrb[48].mxu1 %vm4688_vm1, %v13646_v19  ;;  %v17169_v11 = vld [vmem:[#allocation51_spill] sm:$0xff] }
 0x2cd   : > { %v4085_v9 = vmax.f32 %v3311_v24, 0.0  ;;  %5286 = vmatpush1.bf16.msra.mxu0 %v17166_v41  ;;  %v4087_v30 = vmax.f32 %v3384_v40, 0.0  ;;  %5359 = vmatpush1.bf16.msra.mxu1 %v17168_v37  ;;  %v17173_v40 = vld [vmem:[#allocation49_spill] sm:$0xff]  ;;  %v17175_v37 = vld [vmem:[#allocation55_spill] sm:$0xff] }
 0x2ce   : > { %v13989_v42 = vpack.c.bf16 %v4084_v57, %v4020_v18  ;;  %5287 = vmatprep.subr.bf16.mxu0 %v17169_v11  ;;  %v13993_v33 = vpack.c.bf16 %v4086_v22, %v4022_v47  ;;  %5360 = vmatprep.subr.bf16.mxu1 %v17171_v28 }
 0x2cf   : > { %v3314_v12 = vpop.f32.mrb[200].mxu0  ;;  %5181 = vmatprep.mubr.bf16.mxu0 %v16988_v44  ;;  %v13997_v51 = vpack.c.bf16 %v4085_v9, %v4021_v45  ;;  %v3387_v49 = vpop.f32.mrb[200].mxu1  ;;  %5254 = vmatprep.mubr.bf16.mxu1 %v16988_v44  ;;  %v14001_v18 = vpack.c.bf16 %v4087_v30, %v4023_v62  ;;  %v17174_v45 = vld [vmem:[#allocation50_spill] sm:$0xff]  ;;  %v17176_v30 = vld [vmem:[#allocation56_spill] sm:$0xff] }
 0x2d0   : > { %17167 = vst [vmem:[#allocation45_spill] sm:$0xff] %v13989_v42  ;;  %17170 = vst [vmem:[#allocation46_spill] sm:$0xff] %v13993_v33  ;;  %v3315_v19 = vadd.f32 %v3314_v12, %v12639_v46  ;;  %v3316_v13 = vpop.f32.mrb[201].mxu0  ;;  %v3388_v24 = vadd.f32 %v3387_v49, %v12639_v46  ;;  %v3389_v57 = vpop.f32.mrb[201].mxu1 }
 0x2d1   : > { %17172 = vst [vmem:[#allocation51_spill] sm:$0xff] %v14001_v18  ;;  %v3317_v22 = vadd.f32 %v3316_v13, %v12639_v46  ;;  %5288 = vmatpush1.bf16.msra.mxu0 %v17173_v40  ;;  %v3318_v28 = vpop.f32.mrb[202].mxu0  ;;  %v3390_v47 = vadd.f32 %v3389_v57, %v12639_v46  ;;  %5361 = vmatpush1.bf16.msra.mxu1 %v17174_v45  ;;  %v3391_v41 = vpop.f32.mrb[202].mxu1  ;;  %v17182_v18 = vld [vmem:[#allocation60_spill] sm:$0xff] }
 0x2d2   : > { %v3319_v9 = vadd.f32 %v3318_v28, %v12648_v56  ;;  %5289 = vmatprep.subr.bf16.mxu0 %v17175_v37  ;;  %v3320_v11 = vpop.f32.mrb[203].mxu0  ;;  %v3392_v62 = vadd.f32 %v3391_v41, %v12648_v56  ;;  %5362 = vmatprep.subr.bf16.mxu1 %v17176_v30  ;;  %v3393_v49 = vpop.f32.mrb[203].mxu1  ;;  %v4148_v13 = vmax.f32 %v3315_v19, 0.0  ;;  %v4150_v57 = vmax.f32 %v3388_v24, 0.0  ;;  %v17177_v41 = vld [vmem:[#allocation53_spill] sm:$0xff]  ;;  %v17179_v19 = vld [vmem:[#allocation54_spill] sm:$0xff] }
 0x2d3   : > { %v3321_v12 = vadd.f32 %v3320_v11, %v12648_v56  ;;  %v3394_v33 = vadd.f32 %v3393_v49, %v12648_v56  ;;  %v4149_v28 = vmax.f32 %v3317_v22, 0.0  ;;  %v4151_v37 = vmax.f32 %v3390_v47, 0.0 }
 0x2d4   : > { %v4212_v40 = vmax.f32 %v3319_v9, 0.0  ;;  %11220 = vmatmul.mubr.msk.bf16.gmra.mrb[52].mxu0 %vm4688_vm1, %v13677_v61  ;;  %v4214_v45 = vmax.f32 %v3392_v62, 0.0  ;;  %11224 = vmatmul.mubr.msk.bf16.gmra.mrb[52].mxu1 %vm4688_vm1, %v13677_v61  ;;  %v17180_v9 = vld [vmem:[#allocation59_spill] sm:$0xff] }
 0x2d5   : > { %v4213_v42 = vmax.f32 %v3321_v12, 0.0  ;;  %5290 = vmatpush1.bf16.msra.mxu0 %v17177_v41  ;;  %v4215_v11 = vmax.f32 %v3394_v33, 0.0  ;;  %5363 = vmatpush1.bf16.msra.mxu1 %v17179_v19  ;;  %v17187_v19 = vld [vmem:[#allocation63_spill] sm:$0xff] }
 0x2d6   : > { %v14019_v30 = vpack.c.bf16 %v4212_v40, %v4148_v13  ;;  %5291 = vmatprep.subr.bf16.mxu0 %v17180_v9  ;;  %v14023_v49 = vpack.c.bf16 %v4214_v45, %v4150_v57  ;;  %5364 = vmatprep.subr.bf16.mxu1 %v17182_v18  ;;  %v17185_v57 = vld [vmem:[#allocation57_spill] sm:$0xff] }
 0x2d7   : > { %v3324_v24 = vpop.f32.mrb[204].mxu0  ;;  %5191 = vmatprep.mubr.bf16.mxu0 %v16988_v44  ;;  %v14027_v22 = vpack.c.bf16 %v4213_v42, %v4149_v28  ;;  %v3397_v62 = vpop.f32.mrb[204].mxu1  ;;  %5264 = vmatprep.mubr.bf16.mxu1 %v16988_v44  ;;  %v14031_v33 = vpack.c.bf16 %v4215_v11, %v4151_v37  ;;  %v17186_v42 = vld [vmem:[#allocation58_spill] sm:$0xff]  ;;  %v17188_v11 = vld [vmem:[#allocation64_spill] sm:$0xff] }
 0x2d8   : > { %17178 = vst [vmem:[#allocation52_spill] sm:$0xff] %v14019_v30  ;;  %17181 = vst [vmem:[#allocation49_spill] sm:$0xff] %v14023_v49  ;;  %v3325_v61 = vadd.f32 %v3324_v24, %v12672_v16  ;;  %v3326_v47 = vpop.f32.mrb[205].mxu0  ;;  %v3398_v12 = vadd.f32 %v3397_v62, %v12672_v16  ;;  %v3399_v40 = vpop.f32.mrb[205].mxu1 }
 0x2d9   : > { %17183 = vst [vmem:[#allocation50_spill] sm:$0xff] %v14027_v22  ;;  %17184 = vst [vmem:[#allocation55_spill] sm:$0xff] %v14031_v33  ;;  %v3327_v13 = vadd.f32 %v3326_v47, %v12672_v16  ;;  %5292 = vmatpush1.bf16.msra.mxu0 %v17185_v57  ;;  %v3328_v18 = vpop.f32.mrb[206].mxu0  ;;  %v3400_v45 = vadd.f32 %v3399_v40, %v12672_v16  ;;  %5365 = vmatpush1.bf16.msra.mxu1 %v17186_v42  ;;  %v3401_v41 = vpop.f32.mrb[206].mxu1  ;;  %v17214_v33 = vld [vmem:[#allocation76_spill] sm:$0xff] }
 0x2da   : > { %v3329_v28 = vadd.f32 %v3328_v18, %v12680_v35  ;;  %5431 = vmatprep.subr.bf16.mxu0 %v17187_v19  ;;  %v3330_v9 = vpop.f32.mrb[207].mxu0  ;;  %v3402_v37 = vadd.f32 %v3401_v41, %v12680_v35  ;;  %5504 = vmatprep.subr.bf16.mxu1 %v17188_v11  ;;  %v3403_v62 = vpop.f32.mrb[207].mxu1  ;;  %v4276_v47 = vmax.f32 %v3325_v61, 0.0  ;;  %v4278_v40 = vmax.f32 %v3398_v12, 0.0 }
 0x2db   : > { %v3331_v24 = vadd.f32 %v3330_v9, %v12680_v35  ;;  %v3404_v49 = vadd.f32 %v3403_v62, %v12680_v35  ;;  %v4277_v18 = vmax.f32 %v3327_v13, 0.0  ;;  %v4279_v41 = vmax.f32 %v3400_v45, 0.0 }
 0x2dc   : > { %v4340_v57 = vmax.f32 %v3329_v28, 0.0  ;;  %11221 = vmatmul.mubr.msk.bf16.gmra.mrb[56].mxu0 %vm4688_vm1, %v13712_v4  ;;  %v4342_v42 = vmax.f32 %v3402_v37, 0.0  ;;  %11225 = vmatmul.mubr.msk.bf16.gmra.mrb[56].mxu1 %vm4688_vm1, %v13712_v4 }
 0x2dd   : > { %v4341_v30 = vmax.f32 %v3331_v24, 0.0  ;;  %5201 = vmatprep.mubr.bf16.mxu0 %v16988_v44  ;;  %v4343_v9 = vmax.f32 %v3404_v49, 0.0  ;;  %5274 = vmatprep.mubr.bf16.mxu1 %v16988_v44 }
 0x2de   : > { %v14049_v19 = vpack.c.bf16 %v4340_v57, %v4276_v47  ;;  %v14052_v61 = vpack.c.bf16 %v4342_v42, %v4278_v40 }
 0x2df   : > { %v3440_v28 = vpop.f32.mrb[208].mxu0  ;;  %v14054_v11 = vpack.c.bf16 %v4341_v30, %v4277_v18  ;;  %v3513_v13 = vpop.f32.mrb[208].mxu1  ;;  %v14057_v24 = vpack.c.bf16 %v4343_v9, %v4279_v41 }
 0x2e0   : > { %17189 = vst [vmem:[#allocation56_spill] sm:$0xff] %v14049_v19  ;;  %17190 = vst [vmem:[#allocation53_spill] sm:$0xff] %v14052_v61  ;;  %v3441_v12 = vadd.f32 %v3440_v28, %v12542_v27  ;;  %v3442_v37 = vpop.f32.mrb[209].mxu0  ;;  %v3514_v4 = vadd.f32 %v3513_v13, %v12542_v27  ;;  %v3515_v62 = vpop.f32.mrb[209].mxu1 }
 0x2e1   : > { %17191 = vst [vmem:[#allocation54_spill] sm:$0xff] %v14054_v11  ;;  %17192 = vst [vmem:[#allocation59_spill] sm:$0xff] %v14057_v24  ;;  %v3443_v45 = vadd.f32 %v3442_v37, %v12542_v27  ;;  %v3444_v47 = vpop.f32.mrb[210].mxu0  ;;  %v3516_v49 = vadd.f32 %v3515_v62, %v12542_v27  ;;  %v3517_v40 = vpop.f32.mrb[210].mxu1  ;;  %v17202_v11 = vld [vmem:[#allocation68_spill] sm:$0xff] }
 0x2e2   : > { %v3445_v57 = vadd.f32 %v3444_v47, %v12555_v31  ;;  %v3446_v42 = vpop.f32.mrb[211].mxu0  ;;  %v3518_v30 = vadd.f32 %v3517_v40, %v12555_v31  ;;  %v3519_v28 = vpop.f32.mrb[211].mxu1  ;;  %v3896_v61 = vmax.f32 %v3441_v12, 0.0  ;;  %v3898_v13 = vmax.f32 %v3514_v4, 0.0 }
 0x2e3   : > { %v3447_v18 = vadd.f32 %v3446_v42, %v12555_v31  ;;  %v3520_v9 = vadd.f32 %v3519_v28, %v12555_v31  ;;  %v3897_v37 = vmax.f32 %v3443_v45, 0.0  ;;  %v3899_v47 = vmax.f32 %v3516_v49, 0.0 }
 0x2e4   : > { %v3960_v41 = vmax.f32 %v3445_v57, 0.0  ;;  %11222 = vmatmul.mubr.msk.bf16.gmra.mrb[60].mxu0 %vm4688_vm1, %v13743_v25  ;;  %v3962_v19 = vmax.f32 %v3518_v30, 0.0  ;;  %11226 = vmatmul.mubr.msk.bf16.gmra.mrb[60].mxu1 %vm4688_vm1, %v13743_v25 }
 0x2e5   : > { %v3961_v62 = vmax.f32 %v3447_v18, 0.0  ;;  %5317 = vmatprep.mubr.bf16.mxu0 %v16988_v44  ;;  %v3963_v42 = vmax.f32 %v3520_v9, 0.0  ;;  %5390 = vmatprep.mubr.bf16.mxu1 %v16988_v44 }
 0x2e6   : > { %v14071_v40 = vpack.c.bf16 %v3960_v41, %v3896_v61  ;;  %v14074_v12 = vpack.c.bf16 %v3962_v19, %v3898_v13 }
 0x2e7   : > { %v3450_v57 = vpop.f32.mrb[212].mxu0  ;;  %v14076_v28 = vpack.c.bf16 %v3961_v62, %v3897_v37  ;;  %v3523_v45 = vpop.f32.mrb[212].mxu1  ;;  %v14079_v18 = vpack.c.bf16 %v3963_v42, %v3899_v47 }
 0x2e8   : > { %17193 = vst [vmem:[#allocation60_spill] sm:$0xff] %v14071_v40  ;;  %17194 = vst [vmem:[#allocation57_spill] sm:$0xff] %v14074_v12  ;;  %v3451_v4 = vadd.f32 %v3450_v57, %v12553_v29  ;;  %v3452_v30 = vpop.f32.mrb[213].mxu0  ;;  %v3524_v25 = vadd.f32 %v3523_v45, %v12553_v29  ;;  %v3525_v61 = vpop.f32.mrb[213].mxu1  ;;  %v14091_v45 = vld [vmem:[%s16971_s5] sm:$0xff]  }
 0x2e9   : > { %17195 = vst [vmem:[#allocation58_spill] sm:$0xff] %v14076_v28  ;;  %17196 = vst [vmem:[#allocation63_spill] sm:$0xff] %v14079_v18  ;;  %v3453_v49 = vadd.f32 %v3452_v30, %v12553_v29  ;;  %v3454_v41 = vpop.f32.mrb[214].mxu0  ;;  %v3526_v9 = vadd.f32 %v3525_v61, %v12553_v29  ;;  %v3527_v13 = vpop.f32.mrb[214].mxu1  ;;  %v17200_v28 = vld [vmem:[#allocation67_spill] sm:$0xff] }
 0x2ea   : > { %v3455_v19 = vadd.f32 %v3454_v41, %v12587_v2  ;;  %v3456_v12 = vpop.f32.mrb[215].mxu0  ;;  %v3528_v37 = vadd.f32 %v3527_v13, %v12587_v2  ;;  %v3529_v57 = vpop.f32.mrb[215].mxu1  ;;  %v4024_v40 = vmax.f32 %v3451_v4, 0.0  ;;  %v4026_v30 = vmax.f32 %v3524_v25, 0.0 }
 0x2eb   : > { %v3457_v62 = vadd.f32 %v3456_v12, %v12587_v2  ;;  %v3530_v42 = vadd.f32 %v3529_v57, %v12587_v2  ;;  %v4025_v61 = vmax.f32 %v3453_v49, 0.0  ;;  %v17197_v12 = vld [vmem:[#allocation61_spill] sm:$0xff]  ;;  %v4027_v4 = vmax.f32 %v3526_v9, 0.0  ;;  %v17199_v57 = vld [vmem:[#allocation62_spill] sm:$0xff] }
 0x2ec   : > { %v4088_v47 = vmax.f32 %v3455_v19, 0.0  ;;  %11227 = vmatmul.mubr.msk.bf16.vlgmr.msra.gmra.mrb[64].mxu0 %vm4688_vm1, %v14091_v45  ;;  %v4090_v41 = vmax.f32 %v3528_v37, 0.0  ;;  %11231 = vmatmul.mubr.msk.bf16.vlgmr.msra.gmra.mrb[64].mxu1 %vm4688_vm1, %v14091_v45 }
 0x2ed   : > { %v4089_v18 = vmax.f32 %v3457_v62, 0.0  ;;  %5432 = vmatpush1.bf16.msra.mxu0 %v17197_v12  ;;  %v4091_v13 = vmax.f32 %v3530_v42, 0.0  ;;  %5505 = vmatpush1.bf16.msra.mxu1 %v17199_v57  ;;  %v17207_v57 = vld [vmem:[#allocation71_spill] sm:$0xff] }
 0x2ee   : > { %v14098_v19 = vpack.c.bf16 %v4088_v47, %v4024_v40  ;;  %5433 = vmatprep.subr.bf16.mxu0 %v17200_v28  ;;  %v14102_v24 = vpack.c.bf16 %v4090_v41, %v4026_v30  ;;  %5506 = vmatprep.subr.bf16.mxu1 %v17202_v11  ;;  %v17205_v30 = vld [vmem:[#allocation65_spill] sm:$0xff] }
 0x2ef   : > { %v3460_v25 = vpop.f32.mrb[216].mxu0  ;;  %5327 = vmatprep.mubr.bf16.mxu0 %v16988_v44  ;;  %v14106_v49 = vpack.c.bf16 %v4089_v18, %v4025_v61  ;;  %v3533_v62 = vpop.f32.mrb[216].mxu1  ;;  %5400 = vmatprep.mubr.bf16.mxu1 %v16988_v44  ;;  %v14110_v40 = vpack.c.bf16 %v4091_v13, %v4027_v4  ;;  %v17206_v18 = vld [vmem:[#allocation66_spill] sm:$0xff]  ;;  %v17208_v13 = vld [vmem:[#allocation72_spill] sm:$0xff] }
 0x2f0   : > { %17198 = vst [vmem:[#allocation64_spill] sm:$0xff] %v14098_v19  ;;  %17201 = vst [vmem:[#allocation61_spill] sm:$0xff] %v14102_v24  ;;  %v3461_v37 = vadd.f32 %v3460_v25, %v12639_v46  ;;  %v3462_v9 = vpop.f32.mrb[217].mxu0  ;;  %v3534_v47 = vadd.f32 %v3533_v62, %v12639_v46  ;;  %v3535_v42 = vpop.f32.mrb[217].mxu1 }
 0x2f1   : > { %17203 = vst [vmem:[#allocation62_spill] sm:$0xff] %v14106_v49  ;;  %17204 = vst [vmem:[#allocation67_spill] sm:$0xff] %v14110_v40  ;;  %v3463_v28 = vadd.f32 %v3462_v9, %v12639_v46  ;;  %5434 = vmatpush1.bf16.msra.mxu0 %v17205_v30  ;;  %v3464_v11 = vpop.f32.mrb[218].mxu0  ;;  %v3536_v41 = vadd.f32 %v3535_v42, %v12639_v46  ;;  %5507 = vmatpush1.bf16.msra.mxu1 %v17206_v18  ;;  %v3537_v12 = vpop.f32.mrb[218].mxu1  ;;  %v14126_v42 = vld [vmem:[%s16971_s5 + $0x8] sm:$0xff]   ;;  %v17212_v40 = vld [vmem:[#allocation75_spill] sm:$0xff] }
 0x2f2   : > { %v3465_v61 = vadd.f32 %v3464_v11, %v12648_v56  ;;  %5435 = vmatprep.subr.bf16.mxu0 %v17207_v57  ;;  %v3466_v25 = vpop.f32.mrb[219].mxu0  ;;  %v3538_v4 = vadd.f32 %v3537_v12, %v12648_v56  ;;  %5508 = vmatprep.subr.bf16.mxu1 %v17208_v13  ;;  %v3539_v9 = vpop.f32.mrb[219].mxu1  ;;  %v4152_v24 = vmax.f32 %v3461_v37, 0.0  ;;  %v4154_v11 = vmax.f32 %v3534_v47, 0.0 }
 0x2f3   : > { %v3467_v62 = vadd.f32 %v3466_v25, %v12648_v56  ;;  %v3540_v19 = vadd.f32 %v3539_v9, %v12648_v56  ;;  %v4153_v18 = vmax.f32 %v3463_v28, 0.0  ;;  %v17209_v25 = vld [vmem:[#allocation69_spill] sm:$0xff]  ;;  %v4155_v37 = vmax.f32 %v3536_v41, 0.0  ;;  %v17211_v9 = vld [vmem:[#allocation70_spill] sm:$0xff] }
 0x2f4   : > { %v4216_v30 = vmax.f32 %v3465_v61, 0.0  ;;  %11228 = vmatmul.mubr.msk.bf16.gmra.mrb[68].mxu0 %vm4688_vm1, %v14126_v42  ;;  %v4218_v12 = vmax.f32 %v3538_v4, 0.0  ;;  %11232 = vmatmul.mubr.msk.bf16.gmra.mrb[68].mxu1 %vm4688_vm1, %v14126_v42 }
 0x2f5   : > { %v4217_v57 = vmax.f32 %v3467_v62, 0.0  ;;  %5436 = vmatpush1.bf16.msra.mxu0 %v17209_v25  ;;  %v4219_v13 = vmax.f32 %v3540_v19, 0.0  ;;  %5509 = vmatpush1.bf16.msra.mxu1 %v17211_v9  ;;  %v17219_v9 = vld [vmem:[#allocation79_spill] sm:$0xff] }
 0x2f6   : > { %v14133_v61 = vpack.c.bf16 %v4216_v30, %v4152_v24  ;;  %5437 = vmatprep.subr.bf16.mxu0 %v17212_v40  ;;  %v14137_v49 = vpack.c.bf16 %v4218_v12, %v4154_v11  ;;  %5510 = vmatprep.subr.bf16.mxu1 %v17214_v33  ;;  %v17217_v11 = vld [vmem:[#allocation73_spill] sm:$0xff] }
 0x2f7   : > { %v3470_v47 = vpop.f32.mrb[220].mxu0  ;;  %5337 = vmatprep.mubr.bf16.mxu0 %v16988_v44  ;;  %v14141_v28 = vpack.c.bf16 %v4217_v57, %v4153_v18  ;;  %v3543_v62 = vpop.f32.mrb[220].mxu1  ;;  %5410 = vmatprep.mubr.bf16.mxu1 %v16988_v44  ;;  %v14145_v24 = vpack.c.bf16 %v4219_v13, %v4155_v37  ;;  %v17218_v18 = vld [vmem:[#allocation74_spill] sm:$0xff]  ;;  %v17220_v13 = vld [vmem:[#allocation80_spill] sm:$0xff] }
 0x2f8   : > { %17210 = vst [vmem:[#allocation68_spill] sm:$0xff] %v14133_v61  ;;  %17213 = vst [vmem:[#allocation65_spill] sm:$0xff] %v14137_v49  ;;  %v3471_v4 = vadd.f32 %v3470_v47, %v12672_v16  ;;  %v3472_v41 = vpop.f32.mrb[221].mxu0  ;;  %v3544_v19 = vadd.f32 %v3543_v62, %v12672_v16  ;;  %v3545_v30 = vpop.f32.mrb[221].mxu1 }
 0x2f9   : > { %17215 = vst [vmem:[#allocation66_spill] sm:$0xff] %v14141_v28  ;;  %17216 = vst [vmem:[#allocation71_spill] sm:$0xff] %v14145_v24  ;;  %v3473_v40 = vadd.f32 %v3472_v41, %v12672_v16  ;;  %5438 = vmatpush1.bf16.msra.mxu0 %v17217_v11  ;;  %v3474_v33 = vpop.f32.mrb[222].mxu0  ;;  %v3546_v12 = vadd.f32 %v3545_v30, %v12672_v16  ;;  %5511 = vmatpush1.bf16.msra.mxu1 %v17218_v18  ;;  %v3547_v25 = vpop.f32.mrb[222].mxu1  ;;  %v14161_v30 = vld [vmem:[%s16971_s5 + $0x10] sm:$0xff]  }
 0x2fa   : > { %v3475_v57 = vadd.f32 %v3474_v33, %v12680_v35  ;;  %5577 = vmatprep.subr.bf16.mxu0 %v17219_v9  ;;  %v3476_v47 = vpop.f32.mrb[223].mxu0  ;;  %v3548_v37 = vadd.f32 %v3547_v25, %v12680_v35  ;;  %5650 = vmatprep.subr.bf16.mxu1 %v17220_v13  ;;  %v3549_v41 = vpop.f32.mrb[223].mxu1  ;;  %v4280_v49 = vmax.f32 %v3471_v4, 0.0  ;;  %v4282_v33 = vmax.f32 %v3544_v19, 0.0 }
 0x2fb   : > { %v3477_v62 = vadd.f32 %v3476_v47, %v12680_v35  ;;  %v3550_v61 = vadd.f32 %v3549_v41, %v12680_v35  ;;  %v4281_v18 = vmax.f32 %v3473_v40, 0.0  ;;  %v4283_v4 = vmax.f32 %v3546_v12, 0.0 }
 0x2fc   : > { %v4344_v11 = vmax.f32 %v3475_v57, 0.0  ;;  %11229 = vmatmul.mubr.msk.bf16.gmra.mrb[72].mxu0 %vm4688_vm1, %v14161_v30  ;;  %v4346_v25 = vmax.f32 %v3548_v37, 0.0  ;;  %11233 = vmatmul.mubr.msk.bf16.gmra.mrb[72].mxu1 %vm4688_vm1, %v14161_v30 }
 0x2fd   : > { %v4345_v9 = vmax.f32 %v3477_v62, 0.0  ;;  %5347 = vmatprep.mubr.bf16.mxu0 %v16988_v44  ;;  %v4347_v47 = vmax.f32 %v3550_v61, 0.0  ;;  %5420 = vmatprep.mubr.bf16.mxu1 %v16988_v44 }
 0x2fe   : > { %v14168_v57 = vpack.c.bf16 %v4344_v11, %v4280_v49  ;;  %v14171_v13 = vpack.c.bf16 %v4346_v25, %v4282_v33 }
 0x2ff   : > { %v3586_v41 = vpop.f32.mrb[224].mxu0  ;;  %v14173_v24 = vpack.c.bf16 %v4345_v9, %v4281_v18  ;;  %v3659_v40 = vpop.f32.mrb[224].mxu1  ;;  %v14176_v62 = vpack.c.bf16 %v4347_v47, %v4283_v4 }
 0x300   : > { %17221 = vst [vmem:[#allocation72_spill] sm:$0xff] %v14168_v57  ;;  %17222 = vst [vmem:[#allocation69_spill] sm:$0xff] %v14171_v13  ;;  %v3587_v19 = vadd.f32 %v3586_v41, %v12542_v27  ;;  %v3588_v37 = vpop.f32.mrb[225].mxu0  ;;  %v3660_v28 = vadd.f32 %v3659_v40, %v12542_v27  ;;  %v3661_v49 = vpop.f32.mrb[225].mxu1  ;;  %v14188_v40 = vld [vmem:[%s16971_s5 + $0x18] sm:$0xff]  }
 0x301   : > { %17223 = vst [vmem:[#allocation70_spill] sm:$0xff] %v14173_v24  ;;  %17224 = vst [vmem:[#allocation75_spill] sm:$0xff] %v14176_v62  ;;  %v3589_v12 = vadd.f32 %v3588_v37, %v12542_v27  ;;  %v3590_v11 = vpop.f32.mrb[226].mxu0  ;;  %v3662_v61 = vadd.f32 %v3661_v49, %v12542_v27  ;;  %v3663_v25 = vpop.f32.mrb[226].mxu1 }
 0x302   : > { %v3591_v33 = vadd.f32 %v3590_v11, %v12555_v31  ;;  %v3592_v13 = vpop.f32.mrb[227].mxu0  ;;  %v3664_v18 = vadd.f32 %v3663_v25, %v12555_v31  ;;  %v3665_v41 = vpop.f32.mrb[227].mxu1  ;;  %v3900_v57 = vmax.f32 %v3587_v19, 0.0  ;;  %v3902_v37 = vmax.f32 %v3660_v28, 0.0 }
 0x303   : > { %v3593_v9 = vadd.f32 %v3592_v13, %v12555_v31  ;;  %v3666_v47 = vadd.f32 %v3665_v41, %v12555_v31  ;;  %v3901_v49 = vmax.f32 %v3589_v12, 0.0  ;;  %v3903_v13 = vmax.f32 %v3662_v61, 0.0 }
 0x304   : > { %v3964_v4 = vmax.f32 %v3591_v33, 0.0  ;;  %11230 = vmatmul.mubr.msk.bf16.gmra.mrb[76].mxu0 %vm4688_vm1, %v14188_v40  ;;  %v3966_v11 = vmax.f32 %v3664_v18, 0.0  ;;  %11234 = vmatmul.mubr.msk.bf16.gmra.mrb[76].mxu1 %vm4688_vm1, %v14188_v40 }
 0x305   : > { %v3965_v62 = vmax.f32 %v3593_v9, 0.0  ;;  %5463 = vmatprep.mubr.bf16.mxu0 %v16988_v44  ;;  %v3967_v33 = vmax.f32 %v3666_v47, 0.0  ;;  %5536 = vmatprep.mubr.bf16.mxu1 %v16988_v44 }
 0x306   : > { %v14195_v19 = vpack.c.bf16 %v3964_v4, %v3900_v57  ;;  %v14198_v25 = vpack.c.bf16 %v3966_v11, %v3902_v37 }
 0x307   : > { %v3596_v41 = vpop.f32.mrb[228].mxu0  ;;  %v14200_v24 = vpack.c.bf16 %v3965_v62, %v3901_v49  ;;  %v3669_v12 = vpop.f32.mrb[228].mxu1  ;;  %v14203_v9 = vpack.c.bf16 %v3967_v33, %v3903_v13 }
 0x308   : > { %17225 = vst [vmem:[#allocation76_spill] sm:$0xff] %v14195_v19  ;;  %17226 = vst [vmem:[#allocation73_spill] sm:$0xff] %v14198_v25  ;;  %v3597_v28 = vadd.f32 %v3596_v41, %v12553_v29  ;;  %v3598_v18 = vpop.f32.mrb[229].mxu0  ;;  %v3670_v22 = vadd.f32 %v3669_v12, %v12553_v29  ;;  %v3671_v57 = vpop.f32.mrb[229].mxu1 }
 0x309   : > { %17227 = vst [vmem:[#allocation74_spill] sm:$0xff] %v14200_v24  ;;  %17228 = vst [vmem:[#allocation79_spill] sm:$0xff] %v14203_v9  ;;  %v3599_v61 = vadd.f32 %v3598_v18, %v12553_v29  ;;  %v3600_v4 = vpop.f32.mrb[230].mxu0  ;;  %v3672_v47 = vadd.f32 %v3671_v57, %v12553_v29  ;;  %v3673_v11 = vpop.f32.mrb[230].mxu1 }
 0x30a   : > { %v3601_v37 = vadd.f32 %v3600_v4, %v12587_v2  ;;  %v3602_v25 = vpop.f32.mrb[231].mxu0  ;;  %v3674_v62 = vadd.f32 %v3673_v11, %v12587_v2  ;;  %v3675_v41 = vpop.f32.mrb[231].mxu1  ;;  %v4028_v19 = vmax.f32 %v3597_v28, 0.0  ;;  %v4030_v12 = vmax.f32 %v3670_v22, 0.0  ;;  %v17229_v4 = vld [vmem:[#allocation77_spill] sm:$0xff]  ;;  %v17231_v28 = vld [vmem:[#allocation78_spill] sm:$0xff] }
 0x30b   : > { %v3603_v49 = vadd.f32 %v3602_v25, %v12587_v2  ;;  %v3676_v33 = vadd.f32 %v3675_v41, %v12587_v2  ;;  %v4029_v18 = vmax.f32 %v3599_v61, 0.0  ;;  %v4031_v11 = vmax.f32 %v3672_v47, 0.0  ;;  %v17233_v41 = vld [vmem:[#allocation83_spill] sm:$0xff] }
 0x30c   : > { %v4092_v13 = vmax.f32 %v3601_v37, 0.0  ;;  %11235 = vmatmul.mubr.msk.bf16.vlgmr.msra.gmra.mrb[80].mxu0 %vm4688_vm1, %v14091_v45  ;;  %v4094_v9 = vmax.f32 %v3674_v62, 0.0  ;;  %11239 = vmatmul.mubr.msk.bf16.vlgmr.msra.gmra.mrb[80].mxu1 %vm4688_vm1, %v14091_v45 }
 0x30d   : > { %v4093_v57 = vmax.f32 %v3603_v49, 0.0  ;;  %5578 = vmatpush1.bf16.msra.mxu0 %v17229_v4  ;;  %v4095_v25 = vmax.f32 %v3676_v33, 0.0  ;;  %5651 = vmatpush1.bf16.msra.mxu1 %v17231_v28  ;;  %v17236_v33 = vld [vmem:[#allocation81_spill] sm:$0xff] }
 0x30e   : > { %v14217_v24 = vpack.c.bf16 %v4092_v13, %v4028_v19  ;;  %5579 = vmatprep.subr.bf16.mxu0 %v13372_v50  ;;  %v14221_v37 = vpack.c.bf16 %v4094_v9, %v4030_v12  ;;  %5652 = vmatprep.subr.bf16.mxu1 %v17233_v41  ;;  %v17238_v41 = vld [vmem:[#allocation86_spill] sm:$0xff] }
 0x30f   : > { %v3606_v22 = vpop.f32.mrb[232].mxu0  ;;  %5473 = vmatprep.mubr.bf16.mxu0 %v16988_v44  ;;  %v14225_v61 = vpack.c.bf16 %v4093_v57, %v4029_v18  ;;  %v3679_v49 = vpop.f32.mrb[232].mxu1  ;;  %5546 = vmatprep.mubr.bf16.mxu1 %v16988_v44  ;;  %v14229_v19 = vpack.c.bf16 %v4095_v25, %v4031_v11  ;;  %v17237_v18 = vld [vmem:[#allocation82_spill] sm:$0xff]  ;;  %v17239_v25 = vld [vmem:[#allocation87_spill] sm:$0xff] }
 0x310   : > { %17230 = vst [vmem:[#allocation80_spill] sm:$0xff] %v14217_v24  ;;  %17232 = vst [vmem:[#allocation77_spill] sm:$0xff] %v14221_v37  ;;  %v3607_v62 = vadd.f32 %v3606_v22, %v12639_v46  ;;  %v3608_v47 = vpop.f32.mrb[233].mxu0  ;;  %v3680_v13 = vadd.f32 %v3679_v49, %v12639_v46  ;;  %v3681_v9 = vpop.f32.mrb[233].mxu1 }
 0x311   : > { %17234 = vst [vmem:[#allocation78_spill] sm:$0xff] %v14225_v61  ;;  %17235 = vst [vmem:[#allocation83_spill] sm:$0xff] %v14229_v19  ;;  %v3609_v50 = vadd.f32 %v3608_v47, %v12639_v46  ;;  %5580 = vmatpush1.bf16.msra.mxu0 %v17236_v33  ;;  %v3610_v12 = vpop.f32.mrb[234].mxu0  ;;  %v3682_v4 = vadd.f32 %v3681_v9, %v12639_v46  ;;  %5653 = vmatpush1.bf16.msra.mxu1 %v17237_v18  ;;  %v3683_v28 = vpop.f32.mrb[234].mxu1  ;;  %v17245_v61 = vld [vmem:[#allocation91_spill] sm:$0xff] }
 0x312   : > { %v3611_v57 = vadd.f32 %v3610_v12, %v12648_v56  ;;  %5581 = vmatprep.subr.bf16.mxu0 %v17238_v41  ;;  %v3612_v22 = vpop.f32.mrb[235].mxu0  ;;  %v3684_v11 = vadd.f32 %v3683_v28, %v12648_v56  ;;  %5654 = vmatprep.subr.bf16.mxu1 %v17239_v25  ;;  %v3685_v47 = vpop.f32.mrb[235].mxu1  ;;  %v4156_v37 = vmax.f32 %v3607_v62, 0.0  ;;  %v4158_v9 = vmax.f32 %v3680_v13, 0.0  ;;  %v17240_v28 = vld [vmem:[#allocation84_spill] sm:$0xff]  ;;  %v17242_v62 = vld [vmem:[#allocation85_spill] sm:$0xff] }
 0x313   : > { %v3613_v49 = vadd.f32 %v3612_v22, %v12648_v56  ;;  %v3686_v24 = vadd.f32 %v3685_v47, %v12648_v56  ;;  %v4157_v12 = vmax.f32 %v3609_v50, 0.0  ;;  %v4159_v41 = vmax.f32 %v3682_v4, 0.0 }
 0x314   : > { %v4220_v33 = vmax.f32 %v3611_v57, 0.0  ;;  %11236 = vmatmul.mubr.msk.bf16.gmra.mrb[84].mxu0 %vm4688_vm1, %v14126_v42  ;;  %v4222_v18 = vmax.f32 %v3684_v11, 0.0  ;;  %11240 = vmatmul.mubr.msk.bf16.gmra.mrb[84].mxu1 %vm4688_vm1, %v14126_v42  ;;  %v17243_v57 = vld [vmem:[#allocation90_spill] sm:$0xff] }
 0x315   : > { %v4221_v19 = vmax.f32 %v3613_v49, 0.0  ;;  %5582 = vmatpush1.bf16.msra.mxu0 %v17240_v28  ;;  %v4223_v22 = vmax.f32 %v3686_v24, 0.0  ;;  %5655 = vmatpush1.bf16.msra.mxu1 %v17242_v62 }
 0x316   : > { %v14247_v25 = vpack.c.bf16 %v4220_v33, %v4156_v37  ;;  %5583 = vmatprep.subr.bf16.mxu0 %v17243_v57  ;;  %v14251_v47 = vpack.c.bf16 %v4222_v18, %v4158_v9  ;;  %5656 = vmatprep.subr.bf16.mxu1 %v17245_v61  ;;  %v17247_v18 = vld [vmem:[#allocation88_spill] sm:$0xff]  ;;  %v17249_v57 = vld [vmem:[#allocation94_spill] sm:$0xff] }
 0x317   : > { %v3616_v13 = vpop.f32.mrb[236].mxu0  ;;  %5483 = vmatprep.mubr.bf16.mxu0 %v16988_v44  ;;  %v14255_v50 = vpack.c.bf16 %v4221_v19, %v4157_v12  ;;  %v3689_v49 = vpop.f32.mrb[236].mxu1  ;;  %5556 = vmatprep.mubr.bf16.mxu1 %v16988_v44  ;;  %v14259_v24 = vpack.c.bf16 %v4223_v22, %v4159_v41  ;;  %v17248_v19 = vld [vmem:[#allocation89_spill] sm:$0xff]  ;;  %v17250_v22 = vld [vmem:[#allocation95_spill] sm:$0xff] }
 0x318   : > { %17241 = vst [vmem:[#allocation81_spill] sm:$0xff] %v14247_v25  ;;  %17244 = vst [vmem:[#allocation82_spill] sm:$0xff] %v14251_v47  ;;  %v3617_v11 = vadd.f32 %v3616_v13, %v12672_v16  ;;  %v3618_v4 = vpop.f32.mrb[237].mxu0  ;;  %v3690_v37 = vadd.f32 %v3689_v49, %v12672_v16  ;;  %v3691_v9 = vpop.f32.mrb[237].mxu1 }
 0x319   : > { %17246 = vst [vmem:[#allocation86_spill] sm:$0xff] %v14259_v24  ;;  %v3619_v33 = vadd.f32 %v3618_v4, %v12672_v16  ;;  %5584 = vmatpush1.bf16.msra.mxu0 %v17247_v18  ;;  %v3620_v61 = vpop.f32.mrb[238].mxu0  ;;  %v3692_v28 = vadd.f32 %v3691_v9, %v12672_v16  ;;  %5657 = vmatpush1.bf16.msra.mxu1 %v17248_v19  ;;  %v3693_v62 = vpop.f32.mrb[238].mxu1 }
 0x31a   : > { %v3621_v12 = vadd.f32 %v3620_v61, %v12680_v35  ;;  %5723 = vmatprep.subr.bf16.mxu0 %v17249_v57  ;;  %v3622_v13 = vpop.f32.mrb[239].mxu0  ;;  %v3694_v41 = vadd.f32 %v3693_v62, %v12680_v35  ;;  %5796 = vmatprep.subr.bf16.mxu1 %v17250_v22  ;;  %v3695_v4 = vpop.f32.mrb[239].mxu1  ;;  %v4284_v47 = vmax.f32 %v3617_v11, 0.0  ;;  %v4286_v9 = vmax.f32 %v3690_v37, 0.0 }
 0x31b   : > { %v3623_v49 = vadd.f32 %v3622_v13, %v12680_v35  ;;  %v3696_v25 = vadd.f32 %v3695_v4, %v12680_v35  ;;  %v4285_v61 = vmax.f32 %v3619_v33, 0.0  ;;  %v4287_v62 = vmax.f32 %v3692_v28, 0.0 }
 0x31c   : > { %v4348_v18 = vmax.f32 %v3621_v12, 0.0  ;;  %11237 = vmatmul.mubr.msk.bf16.gmra.mrb[88].mxu0 %vm4688_vm1, %v14161_v30  ;;  %v4350_v19 = vmax.f32 %v3694_v41, 0.0  ;;  %11241 = vmatmul.mubr.msk.bf16.gmra.mrb[88].mxu1 %vm4688_vm1, %v14161_v30 }
 0x31d   : > { %v4349_v24 = vmax.f32 %v3623_v49, 0.0  ;;  %5493 = vmatprep.mubr.bf16.mxu0 %v16988_v44  ;;  %v4351_v13 = vmax.f32 %v3696_v25, 0.0  ;;  %5566 = vmatprep.mubr.bf16.mxu1 %v16988_v44 }
 0x31e   : > { %v14277_v57 = vpack.c.bf16 %v4348_v18, %v4284_v47  ;;  %v14280_v11 = vpack.c.bf16 %v4350_v19, %v4286_v9 }
 0x31f   : > { %v3732_v12 = vpop.f32.mrb[240].mxu0  ;;  %v14282_v22 = vpack.c.bf16 %v4349_v24, %v4285_v61  ;;  %v3805_v33 = vpop.f32.mrb[240].mxu1  ;;  %v14285_v49 = vpack.c.bf16 %v4351_v13, %v4287_v62 }
 0x320   : > { %17251 = vst [vmem:[#allocation87_spill] sm:$0xff] %v14277_v57  ;;  %17252 = vst [vmem:[#allocation84_spill] sm:$0xff] %v14280_v11  ;;  %v3733_v37 = vadd.f32 %v3732_v12, %v12542_v27  ;;  %v3734_v41 = vpop.f32.mrb[241].mxu0  ;;  %v3806_v4 = vadd.f32 %v3805_v33, %v12542_v27  ;;  %v3807_v47 = vpop.f32.mrb[241].mxu1 }
 0x321   : > { %17253 = vst [vmem:[#allocation85_spill] sm:$0xff] %v14285_v49  ;;  %v3735_v28 = vadd.f32 %v3734_v41, %v12542_v27  ;;  %v3736_v18 = vpop.f32.mrb[242].mxu0  ;;  %v3808_v25 = vadd.f32 %v3807_v47, %v12542_v27  ;;  %v3809_v19 = vpop.f32.mrb[242].mxu1 }
 0x322   : > { %v3737_v9 = vadd.f32 %v3736_v18, %v12555_v31  ;;  %v3738_v11 = vpop.f32.mrb[243].mxu0  ;;  %v3810_v24 = vadd.f32 %v3809_v19, %v12555_v31  ;;  %v3811_v12 = vpop.f32.mrb[243].mxu1  ;;  %v3904_v57 = vmax.f32 %v3733_v37, 0.0  ;;  %v3906_v33 = vmax.f32 %v3806_v4, 0.0 }
 0x323   : > { %v3739_v61 = vadd.f32 %v3738_v11, %v12555_v31  ;;  %v3812_v13 = vadd.f32 %v3811_v12, %v12555_v31  ;;  %v3905_v41 = vmax.f32 %v3735_v28, 0.0  ;;  %v3907_v47 = vmax.f32 %v3808_v25, 0.0 }
 0x324   : > { %v3968_v62 = vmax.f32 %v3737_v9, 0.0  ;;  %11238 = vmatmul.mubr.msk.bf16.gmra.mrb[92].mxu0 %vm4688_vm1, %v14188_v40  ;;  %v3970_v49 = vmax.f32 %v3810_v24, 0.0  ;;  %11242 = vmatmul.mubr.msk.bf16.gmra.mrb[92].mxu1 %vm4688_vm1, %v14188_v40 }
 0x325   : > { %v3969_v27 = vmax.f32 %v3739_v61, 0.0  ;;  %5609 = vmatprep.mubr.bf16.mxu0 %v16988_v44  ;;  %v3971_v11 = vmax.f32 %v3812_v13, 0.0  ;;  %5682 = vmatprep.mubr.bf16.mxu1 %v16988_v44 }
 0x326   : > { %v14299_v18 = vpack.c.bf16 %v3968_v62, %v3904_v57  ;;  %v14302_v37 = vpack.c.bf16 %v3970_v49, %v3906_v33 }
 0x327   : > { %v3742_v31 = vpop.f32.mrb[244].mxu0  ;;  %v14304_v9 = vpack.c.bf16 %v3969_v27, %v3905_v41  ;;  %v3815_v28 = vpop.f32.mrb[244].mxu1  ;;  %v14307_v24 = vpack.c.bf16 %v3971_v11, %v3907_v47 }
 0x328   : > { %17254 = vst [vmem:[#allocation90_spill] sm:$0xff] %v14299_v18  ;;  %17255 = vst [vmem:[#allocation91_spill] sm:$0xff] %v14302_v37  ;;  %v3743_v4 = vadd.f32 %v3742_v31, %v12553_v29  ;;  %v3744_v19 = vpop.f32.mrb[245].mxu0  ;;  %v3816_v61 = vadd.f32 %v3815_v28, %v12553_v29  ;;  %v3817_v57 = vpop.f32.mrb[245].mxu1 }
 0x329   : > { %v3745_v25 = vadd.f32 %v3744_v19, %v12553_v29  ;;  %v3746_v12 = vpop.f32.mrb[246].mxu0  ;;  %v3818_v62 = vadd.f32 %v3817_v57, %v12553_v29  ;;  %v3819_v13 = vpop.f32.mrb[246].mxu1  ;;  %v17256_v57 = vld [vmem:[#allocation92_spill] sm:$0xff] }
 0x32a   : > { %v3747_v49 = vadd.f32 %v3746_v12, %v12587_v2  ;;  %v3748_v33 = vpop.f32.mrb[247].mxu0  ;;  %v3820_v41 = vadd.f32 %v3819_v13, %v12587_v2  ;;  %v3821_v31 = vpop.f32.mrb[247].mxu1  ;;  %v4032_v37 = vmax.f32 %v3743_v4, 0.0  ;;  %v4034_v28 = vmax.f32 %v3816_v61, 0.0  ;;  %v17257_v4 = vld [vmem:[#allocation93_spill] sm:$0xff] }
 0x32b   : > { %v3749_v27 = vadd.f32 %v3748_v33, %v12587_v2  ;;  %v3822_v11 = vadd.f32 %v3821_v31, %v12587_v2  ;;  %v4033_v19 = vmax.f32 %v3745_v25, 0.0  ;;  %v4035_v12 = vmax.f32 %v3818_v62, 0.0 }
 0x32c   : > { %v4096_v47 = vmax.f32 %v3747_v49, 0.0  ;;  %11243 = vmatmul.mubr.msk.bf16.vlgmr.msra.gmra.mrb[96].mxu0 %vm4688_vm1, %v14091_v45  ;;  %v4098_v18 = vmax.f32 %v3820_v41, 0.0  ;;  %11247 = vmatmul.mubr.msk.bf16.vlgmr.msra.gmra.mrb[96].mxu1 %vm4688_vm1, %v14091_v45 }
 0x32d   : > { %v4097_v29 = vmax.f32 %v3749_v27, 0.0  ;;  %5724 = vmatpush1.bf16.msra.mxu0 %v17256_v57  ;;  %v4099_v33 = vmax.f32 %v3822_v11, 0.0  ;;  %5797 = vmatpush1.bf16.msra.mxu1 %v17257_v4 }
 0x32e   : > { %v14321_v13 = vpack.c.bf16 %v4096_v47, %v4032_v37  ;;  %5725 = vmatprep.subr.bf16.mxu0 %v13467_v34  ;;  %v14325_v2 = vpack.c.bf16 %v4098_v18, %v4034_v28  ;;  %5798 = vmatprep.subr.bf16.mxu1 %v13471_v53 }
 0x32f   : > { %v3752_v61 = vpop.f32.mrb[248].mxu0  ;;  %5619 = vmatprep.mubr.bf16.mxu0 %v16988_v44  ;;  %v14329_v25 = vpack.c.bf16 %v4097_v29, %v4033_v19  ;;  %v3825_v41 = vpop.f32.mrb[248].mxu1  ;;  %5692 = vmatprep.mubr.bf16.mxu1 %v16988_v44  ;;  %v14333_v37 = vpack.c.bf16 %v4099_v33, %v4035_v12 }
 0x330   : > { %v3753_v49 = vadd.f32 %v3752_v61, %v12639_v46  ;;  %v3754_v62 = vpop.f32.mrb[249].mxu0  ;;  %v3826_v27 = vadd.f32 %v3825_v41, %v12639_v46  ;;  %v3827_v18 = vpop.f32.mrb[249].mxu1 }
 0x331   : > { %v3755_v34 = vadd.f32 %v3754_v62, %v12639_v46  ;;  %5726 = vmatpush1.bf16.msra.mxu0 %v13462_v8  ;;  %v3756_v53 = vpop.f32.mrb[250].mxu0  ;;  %v3828_v31 = vadd.f32 %v3827_v18, %v12639_v46  ;;  %5799 = vmatpush1.bf16.msra.mxu1 %v13464_v7  ;;  %v3829_v11 = vpop.f32.mrb[250].mxu1 }
 0x332   : > { %v3757_v47 = vadd.f32 %v3756_v53, %v12648_v56  ;;  %5727 = vmatprep.subr.bf16.mxu0 %v13492_v21  ;;  %v3758_v28 = vpop.f32.mrb[251].mxu0  ;;  %v3830_v19 = vadd.f32 %v3829_v11, %v12648_v56  ;;  %5800 = vmatprep.subr.bf16.mxu1 %v13495_v43  ;;  %v3831_v57 = vpop.f32.mrb[251].mxu1  ;;  %v4160_v12 = vmax.f32 %v3753_v49, 0.0  ;;  %v4162_v46 = vmax.f32 %v3826_v27, 0.0 }
 0x333   : > { %v3759_v29 = vadd.f32 %v3758_v28, %v12648_v56  ;;  %v3832_v33 = vadd.f32 %v3831_v57, %v12648_v56  ;;  %v4161_v7 = vmax.f32 %v3755_v34, 0.0  ;;  %v4163_v21 = vmax.f32 %v3828_v31, 0.0 }
 0x334   : > { %v4224_v8 = vmax.f32 %v3757_v47, 0.0  ;;  %11244 = vmatmul.mubr.msk.bf16.gmra.mrb[100].mxu0 %vm4688_vm1, %v14126_v42  ;;  %v4226_v4 = vmax.f32 %v3830_v19, 0.0  ;;  %11248 = vmatmul.mubr.msk.bf16.gmra.mrb[100].mxu1 %vm4688_vm1, %v14126_v42  ;;  %v17258_v47 = vld [vmem:[#allocation96_spill] sm:$0xff]  ;;  %v17259_v19 = vld [vmem:[#allocation99_spill] sm:$0xff] }
 0x335   : > { %v4225_v61 = vmax.f32 %v3759_v29, 0.0  ;;  %5728 = vmatpush1.bf16.msra.mxu0 %v13487_v10  ;;  %v4227_v41 = vmax.f32 %v3832_v33, 0.0  ;;  %5801 = vmatpush1.bf16.msra.mxu1 %v13490_v36 }
 0x336   : > { %v14351_v43 = vpack.c.bf16 %v4224_v8, %v4160_v12  ;;  %5729 = vmatprep.subr.bf16.mxu0 %v13514_v59  ;;  %v14355_v56 = vpack.c.bf16 %v4226_v4, %v4162_v46  ;;  %5802 = vmatprep.subr.bf16.mxu1 %v13517_v32  ;;  %v17260_v12 = vld [vmem:[#allocation100_spill] sm:$0xff] }
 0x337   : > { %v3762_v49 = vpop.f32.mrb[252].mxu0  ;;  %5629 = vmatprep.mubr.bf16.mxu0 %v16988_v44  ;;  %v14359_v62 = vpack.c.bf16 %v4225_v61, %v4161_v7  ;;  %v3835_v10 = vpop.f32.mrb[252].mxu1  ;;  %5702 = vmatprep.mubr.bf16.mxu1 %v16988_v44  ;;  %v14363_v18 = vpack.c.bf16 %v4227_v41, %v4163_v21 }
 0x338   : > { %v3763_v27 = vadd.f32 %v3762_v49, %v12672_v16  ;;  %v3764_v34 = vpop.f32.mrb[253].mxu0  ;;  %v3836_v36 = vadd.f32 %v3835_v10, %v12672_v16  ;;  %v3837_v53 = vpop.f32.mrb[253].mxu1 }
 0x339   : > { %v3765_v59 = vadd.f32 %v3764_v34, %v12672_v16  ;;  %5730 = vmatpush1.bf16.msra.mxu0 %v13509_v39  ;;  %v3766_v32 = vpop.f32.mrb[254].mxu0  ;;  %v3838_v31 = vadd.f32 %v3837_v53, %v12672_v16  ;;  %5803 = vmatpush1.bf16.msra.mxu1 %v17258_v47  ;;  %v3839_v28 = vpop.f32.mrb[254].mxu1 }
 0x33a   : > { %v3767_v11 = vadd.f32 %v3766_v32, %v12680_v35  ;;  %5869 = vmatprep.subr.bf16.mxu0 %v17259_v19  ;;  %v3768_v29 = vpop.f32.mrb[255].mxu0  ;;  %v3840_v57 = vadd.f32 %v3839_v28, %v12680_v35  ;;  %5942 = vmatprep.subr.bf16.mxu1 %v17260_v12  ;;  %v3841_v33 = vpop.f32.mrb[255].mxu1  ;;  %v4288_v46 = vmax.f32 %v3763_v27, 0.0  ;;  %v4290_v16 = vmax.f32 %v3836_v36, 0.0 }
 0x33b   : > { %v3769_v8 = vadd.f32 %v3768_v29, %v12680_v35  ;;  %v3842_v7 = vadd.f32 %v3841_v33, %v12680_v35  ;;  %v4289_v4 = vmax.f32 %v3765_v59, 0.0  ;;  %v14381_v41 = vpop.permute.xlu0 %4630  ;;  %v4291_v49 = vmax.f32 %v3838_v31, 0.0  ;;  %v14386_v35 = vpop.permute.xlu1 %4635 }
 0x33c   : > { %v4352_v39 = vmax.f32 %v3767_v11, 0.0  ;;  %11245 = vmatmul.mubr.msk.bf16.gmra.mrb[104].mxu0 %vm4688_vm1, %v14161_v30  ;;  %v4354_v61 = vmax.f32 %v3840_v57, 0.0  ;;  %11249 = vmatmul.mubr.msk.bf16.gmra.mrb[104].mxu1 %vm4688_vm1, %v14161_v30 }
 0x33d   : > { %v4353_v21 = vmax.f32 %v3769_v8, 0.0  ;;  %5639 = vmatprep.mubr.bf16.mxu0 %v16988_v44  ;;  %v4355_v27 = vmax.f32 %v3842_v7, 0.0  ;;  %5712 = vmatprep.mubr.bf16.mxu1 %v16988_v44 }
 0x33e   : > { %v14383_v10 = vpack.c.bf16 %v4352_v39, %v4288_v46  ;;  %v14388_v34 = vpack.c.bf16 %v4354_v61, %v4290_v16 }
 0x33f   : > { %v4735_v36 = vpop.f32.mrb[0].mxu0  ;;  %v14390_v59 = vpack.c.bf16 %v4353_v21, %v4289_v4  ;;  %v4808_v32 = vpop.f32.mrb[0].mxu1  ;;  %v14393_v11 = vpack.c.bf16 %v4355_v27, %v4291_v49 }
 0x340   : > { %v4736_v53 = vadd.f32 %v4735_v36, %v14381_v41  ;;  %v4737_v47 = vpop.f32.mrb[1].mxu0  ;;  %v4809_v31 = vadd.f32 %v4808_v32, %v14381_v41  ;;  %v4810_v19 = vpop.f32.mrb[1].mxu1 }
 0x341   : > { %v4738_v28 = vadd.f32 %v4737_v47, %v14381_v41  ;;  %v4739_v29 = vpop.f32.mrb[2].mxu0  ;;  %v4811_v57 = vadd.f32 %v4810_v19, %v14381_v41  ;;  %v4812_v8 = vpop.f32.mrb[2].mxu1 }
 0x342   : > { %v4740_v12 = vadd.f32 %v4739_v29, %v14386_v35  ;;  %v4741_v33 = vpop.f32.mrb[3].mxu0  ;;  %v4813_v46 = vadd.f32 %v4812_v8, %v14386_v35  ;;  %v4814_v7 = vpop.f32.mrb[3].mxu1  ;;  %v7037_v16 = vmax.f32 %v4736_v53, 0.0  ;;  %v7039_v21 = vmax.f32 %v4809_v31, 0.0 }
 0x343   : > { %v4742_v39 = vadd.f32 %v4741_v33, %v14386_v35  ;;  %v4815_v61 = vadd.f32 %v4814_v7, %v14386_v35  ;;  %v7038_v49 = vmax.f32 %v4738_v28, 0.0  ;;  %v14407_v32 = vpop.permute.xlu0 %4640  ;;  %v7040_v47 = vmax.f32 %v4811_v57, 0.0  ;;  %v14412_v29 = vpop.permute.xlu1 %4645 }
 0x344   : > { %v7101_v4 = vmax.f32 %v4740_v12, 0.0  ;;  %11246 = vmatmul.mubr.msk.bf16.gmra.mrb[108].mxu0 %vm4688_vm1, %v14188_v40  ;;  %v7103_v27 = vmax.f32 %v4813_v46, 0.0  ;;  %11250 = vmatmul.mubr.msk.bf16.gmra.mrb[108].mxu1 %vm4688_vm1, %v14188_v40 }
 0x345   : > { %v7102_v36 = vmax.f32 %v4742_v39, 0.0  ;;  %5755 = vmatprep.mubr.bf16.mxu0 %v16988_v44  ;;  %v7104_v53 = vmax.f32 %v4815_v61, 0.0  ;;  %5828 = vmatprep.mubr.bf16.mxu1 %v16988_v44 }
 0x346   : > { %v14409_v19 = vpack.c.bf16 %v7101_v4, %v7037_v16  ;;  %v14414_v12 = vpack.c.bf16 %v7103_v27, %v7039_v21 }
 0x347   : > { %v4745_v31 = vpop.f32.mrb[4].mxu0  ;;  %v14416_v28 = vpack.c.bf16 %v7102_v36, %v7038_v49  ;;  %v4818_v33 = vpop.f32.mrb[4].mxu1  ;;  %v14419_v39 = vpack.c.bf16 %v7104_v53, %v7040_v47 }
 0x348   : > { %17261 = vst [vmem:[#allocation88_spill] sm:$0xff] %v14409_v19  ;;  %17262 = vst [vmem:[#allocation89_spill] sm:$0xff] %v14414_v12  ;;  %v4746_v8 = vadd.f32 %v4745_v31, %v14407_v32  ;;  %v4747_v46 = vpop.f32.mrb[5].mxu0  ;;  %v4819_v57 = vadd.f32 %v4818_v33, %v14407_v32  ;;  %v4820_v16 = vpop.f32.mrb[5].mxu1 }
 0x349   : > { %17263 = vst [vmem:[#allocation94_spill] sm:$0xff] %v14416_v28  ;;  %17264 = vst [vmem:[#allocation95_spill] sm:$0xff] %v14419_v39  ;;  %v4748_v7 = vadd.f32 %v4747_v46, %v14407_v32  ;;  %v4749_v4 = vpop.f32.mrb[6].mxu0  ;;  %v4821_v61 = vadd.f32 %v4820_v16, %v14407_v32  ;;  %v4822_v27 = vpop.f32.mrb[6].mxu1 }
 0x34a   : > { %v4750_v21 = vadd.f32 %v4749_v4, %v14412_v29  ;;  %v4751_v12 = vpop.f32.mrb[7].mxu0  ;;  %v4823_v49 = vadd.f32 %v4822_v27, %v14412_v29  ;;  %v4824_v31 = vpop.f32.mrb[7].mxu1  ;;  %v7165_v19 = vmax.f32 %v4746_v8, 0.0  ;;  %v7167_v33 = vmax.f32 %v4819_v57, 0.0  ;;  %v17265_v4 = vld [vmem:[#allocation97_spill] sm:$0xff] }
 0x34b   : > { %v4752_v36 = vadd.f32 %v4751_v12, %v14412_v29  ;;  %v4825_v53 = vadd.f32 %v4824_v31, %v14412_v29  ;;  %v7166_v46 = vmax.f32 %v4748_v7, 0.0  ;;  %v14433_v27 = vpop.permute.xlu0 %4650  ;;  %v7168_v12 = vmax.f32 %v4821_v61, 0.0  ;;  %v14439_v31 = vpop.permute.xlu1 %4655 }
 0x34c   : > { %v7229_v47 = vmax.f32 %v4750_v21, 0.0  ;;  %11251 = vmatmul.mubr.msk.bf16.vlgmr.msra.gmra.mrb[112].mxu0 %vm4688_vm1, %v14091_v45  ;;  %v7231_v39 = vmax.f32 %v4823_v49, 0.0  ;;  %11255 = vmatmul.mubr.msk.bf16.vlgmr.msra.gmra.mrb[112].mxu1 %vm4688_vm1, %v14091_v45  ;;  %v17266_v21 = vld [vmem:[#allocation98_spill] sm:$0xff] }
 0x34d   : > { %v7230_v16 = vmax.f32 %v4752_v36, 0.0  ;;  %5870 = vmatpush1.bf16.msra.mxu0 %v17265_v4  ;;  %v7232_v8 = vmax.f32 %v4825_v53, 0.0  ;;  %5943 = vmatpush1.bf16.msra.mxu1 %v17266_v21 }
 0x34e   : > { %v14435_v28 = vpack.c.bf16 %v7229_v47, %v7165_v19  ;;  %5871 = vmatprep.subr.bf16.mxu0 %v13561_v5  ;;  %v14441_v57 = vpack.c.bf16 %v7231_v39, %v7167_v33  ;;  %5944 = vmatprep.subr.bf16.mxu1 %v13565_v6 }
 0x34f   : > { %v4755_v7 = vpop.f32.mrb[8].mxu0  ;;  %5765 = vmatprep.mubr.bf16.mxu0 %v16988_v44  ;;  %v14445_v45 = vpack.c.bf16 %v7230_v16, %v7166_v46  ;;  %v4828_v19 = vpop.f32.mrb[8].mxu1  ;;  %5838 = vmatprep.mubr.bf16.mxu1 %v16988_v44  ;;  %v14449_v36 = vpack.c.bf16 %v7232_v8, %v7168_v12 }
 0x350   : > { %v4756_v61 = vadd.f32 %v4755_v7, %v14433_v27  ;;  %v4757_v49 = vpop.f32.mrb[9].mxu0  ;;  %v4829_v5 = vadd.f32 %v4828_v19, %v14433_v27  ;;  %v4830_v47 = vpop.f32.mrb[9].mxu1 }
 0x351   : > { %v4758_v39 = vadd.f32 %v4757_v49, %v14433_v27  ;;  %5872 = vmatpush1.bf16.msra.mxu0 %v13553_v23  ;;  %v4759_v6 = vpop.f32.mrb[10].mxu0  ;;  %v4831_v53 = vadd.f32 %v4830_v47, %v14433_v27  ;;  %5945 = vmatpush1.bf16.msra.mxu1 %v13557_v3  ;;  %v4832_v46 = vpop.f32.mrb[10].mxu1 }
 0x352   : > { %v4760_v33 = vadd.f32 %v4759_v6, %v14439_v31  ;;  %5873 = vmatprep.subr.bf16.mxu0 %v13591_v60  ;;  %v4761_v16 = vpop.f32.mrb[11].mxu0  ;;  %v4833_v4 = vadd.f32 %v4832_v46, %v14439_v31  ;;  %5946 = vmatprep.subr.bf16.mxu1 %v13595_v58  ;;  %v4834_v8 = vpop.f32.mrb[11].mxu1  ;;  %v7293_v21 = vmax.f32 %v4756_v61, 0.0  ;;  %v7295_v3 = vmax.f32 %v4829_v5, 0.0 }
 0x353   : > { %v4762_v12 = vadd.f32 %v4761_v16, %v14439_v31  ;;  %v4835_v7 = vadd.f32 %v4834_v8, %v14439_v31  ;;  %v7294_v19 = vmax.f32 %v4758_v39, 0.0  ;;  %v14467_v60 = vpop.permute.xlu0 %4660  ;;  %v7296_v58 = vmax.f32 %v4831_v53, 0.0 }
 0x354   : > { %v7357_v23 = vmax.f32 %v4760_v33, 0.0  ;;  %11252 = vmatmul.mubr.msk.bf16.gmra.mrb[116].mxu0 %vm4688_vm1, %v14126_v42  ;;  %v7359_v49 = vmax.f32 %v4833_v4, 0.0  ;;  %11256 = vmatmul.mubr.msk.bf16.gmra.mrb[116].mxu1 %vm4688_vm1, %v14126_v42  ;;  %v14473_v33 = vpop.permute.xlu1 %4665 }
 0x355   : > { %v7358_v47 = vmax.f32 %v4762_v12, 0.0  ;;  %5874 = vmatpush1.bf16.msra.mxu0 %v13583_v20  ;;  %v7360_v61 = vmax.f32 %v4835_v7, 0.0  ;;  %5947 = vmatpush1.bf16.msra.mxu1 %v13587_v55 }
 0x356   : > { %v14469_v6 = vpack.c.bf16 %v7357_v23, %v7293_v21  ;;  %5875 = vmatprep.subr.bf16.mxu0 %v13618_v38  ;;  %v14475_v5 = vpack.c.bf16 %v7359_v49, %v7295_v3  ;;  %5948 = vmatprep.subr.bf16.mxu1 %v13621_v63 }
 0x357   : > { %v4765_v39 = vpop.f32.mrb[12].mxu0  ;;  %5775 = vmatprep.mubr.bf16.mxu0 %v16988_v44  ;;  %v14479_v20 = vpack.c.bf16 %v7358_v47, %v7294_v19  ;;  %v4838_v53 = vpop.f32.mrb[12].mxu1  ;;  %5848 = vmatprep.mubr.bf16.mxu1 %v16988_v44  ;;  %v14483_v55 = vpack.c.bf16 %v7360_v61, %v7296_v58 }
 0x358   : > { %v4766_v42 = vadd.f32 %v4765_v39, %v14467_v60  ;;  %v4767_v46 = vpop.f32.mrb[13].mxu0  ;;  %v4839_v38 = vadd.f32 %v4838_v53, %v14467_v60  ;;  %v4840_v4 = vpop.f32.mrb[13].mxu1 }
 0x359   : > { %v4768_v16 = vadd.f32 %v4767_v46, %v14467_v60  ;;  %5876 = vmatpush1.bf16.msra.mxu0 %v13613_v14  ;;  %v4769_v63 = vpop.f32.mrb[14].mxu0  ;;  %v4841_v12 = vadd.f32 %v4840_v4, %v14467_v60  ;;  %5949 = vmatpush1.bf16.msra.mxu1 %v13616_v54  ;;  %v4842_v21 = vpop.f32.mrb[14].mxu1 }
 0x35a   : > { %v4770_v8 = vadd.f32 %v4769_v63, %v14473_v33  ;;  %6015 = vmatprep.subr.bf16.mxu0 %v13640_v52  ;;  %v4771_v23 = vpop.f32.mrb[15].mxu0  ;;  %v4843_v7 = vadd.f32 %v4842_v21, %v14473_v33  ;;  %6088 = vmatprep.subr.bf16.mxu1 %v13648_v17  ;;  %v4844_v19 = vpop.f32.mrb[15].mxu1  ;;  %v7421_v49 = vmax.f32 %v4766_v42, 0.0  ;;  %v7423_v54 = vmax.f32 %v4839_v38, 0.0 }
 0x35b   : > { %v4772_v3 = vadd.f32 %v4771_v23, %v14473_v33  ;;  %v4845_v47 = vadd.f32 %v4844_v19, %v14473_v33  ;;  %v7422_v58 = vmax.f32 %v4768_v16, 0.0  ;;  %v7424_v52 = vmax.f32 %v4841_v12, 0.0 }
 0x35c   : > { %v7485_v14 = vmax.f32 %v4770_v8, 0.0  ;;  %11253 = vmatmul.mubr.msk.bf16.gmra.mrb[120].mxu0 %vm4688_vm1, %v14161_v30  ;;  %v7487_v61 = vmax.f32 %v4843_v7, 0.0  ;;  %11257 = vmatmul.mubr.msk.bf16.gmra.mrb[120].mxu1 %vm4688_vm1, %v14161_v30 }
 0x35d   : > { %v7486_v39 = vmax.f32 %v4772_v3, 0.0  ;;  %5785 = vmatprep.mubr.bf16.mxu0 %v16988_v44  ;;  %v7488_v53 = vmax.f32 %v4845_v47, 0.0  ;;  %5858 = vmatprep.mubr.bf16.mxu1 %v16988_v44 }
 0x35e   : > { %v14501_v17 = vpack.c.bf16 %v7485_v14, %v7421_v49  ;;  %v14504_v42 = vpack.c.bf16 %v7487_v61, %v7423_v54 }
 0x35f   : > { %v4881_v46 = vpop.f32.mrb[16].mxu0  ;;  %v14506_v4 = vpack.c.bf16 %v7486_v39, %v7422_v58  ;;  %v4954_v16 = vpop.f32.mrb[16].mxu1  ;;  %v14509_v8 = vpack.c.bf16 %v7488_v53, %v7424_v52 }
 0x360   : > { %v4882_v38 = vadd.f32 %v4881_v46, %v14381_v41  ;;  %v4883_v63 = vpop.f32.mrb[17].mxu0  ;;  %v4955_v30 = vadd.f32 %v4954_v16, %v14381_v41  ;;  %v4956_v21 = vpop.f32.mrb[17].mxu1 }
 0x361   : > { %v4884_v12 = vadd.f32 %v4883_v63, %v14381_v41  ;;  %v4885_v23 = vpop.f32.mrb[18].mxu0  ;;  %v4957_v7 = vadd.f32 %v4956_v21, %v14381_v41  ;;  %v4958_v19 = vpop.f32.mrb[18].mxu1 }
 0x362   : > { %v4886_v3 = vadd.f32 %v4885_v23, %v14386_v35  ;;  %v4887_v49 = vpop.f32.mrb[19].mxu0  ;;  %v4959_v14 = vadd.f32 %v4958_v19, %v14386_v35  ;;  %v4960_v54 = vpop.f32.mrb[19].mxu1  ;;  %v7041_v58 = vmax.f32 %v4882_v38, 0.0  ;;  %v7043_v52 = vmax.f32 %v4955_v30, 0.0 }
 0x363   : > { %v4888_v47 = vadd.f32 %v4887_v49, %v14386_v35  ;;  %v4961_v39 = vadd.f32 %v4960_v54, %v14386_v35  ;;  %v7042_v53 = vmax.f32 %v4884_v12, 0.0  ;;  %v7044_v63 = vmax.f32 %v4957_v7, 0.0 }
 0x364   : > { %v7105_v61 = vmax.f32 %v4886_v3, 0.0  ;;  %11254 = vmatmul.mubr.msk.bf16.gmra.mrb[124].mxu0 %vm4688_vm1, %v14188_v40  ;;  %v7107_v46 = vmax.f32 %v4959_v14, 0.0  ;;  %11258 = vmatmul.mubr.msk.bf16.gmra.mrb[124].mxu1 %vm4688_vm1, %v14188_v40 }
 0x365   : > { %v7106_v16 = vmax.f32 %v4888_v47, 0.0  ;;  %5901 = vmatprep.mubr.bf16.mxu0 %v16988_v44  ;;  %v7108_v23 = vmax.f32 %v4961_v39, 0.0  ;;  %5974 = vmatprep.mubr.bf16.mxu1 %v16988_v44 }
 0x366   : > { %v14523_v21 = vpack.c.bf16 %v7105_v61, %v7041_v58  ;;  %v14526_v38 = vpack.c.bf16 %v7107_v46, %v7043_v52 }
 0x367   : > { %v4891_v3 = vpop.f32.mrb[20].mxu0  ;;  %v14528_v19 = vpack.c.bf16 %v7106_v16, %v7042_v53  ;;  %v4964_v12 = vpop.f32.mrb[20].mxu1  ;;  %v14531_v14 = vpack.c.bf16 %v7108_v23, %v7044_v63 }
 0x368   : > { %17267 = vst [vmem:[#allocation92_spill] sm:$0xff] %v14523_v21  ;;  %17268 = vst [vmem:[#allocation93_spill] sm:$0xff] %v14526_v38  ;;  %v4892_v30 = vadd.f32 %v4891_v3, %v14407_v32  ;;  %v4893_v49 = vpop.f32.mrb[21].mxu0  ;;  %v4965_v40 = vadd.f32 %v4964_v12, %v14407_v32  ;;  %v4966_v47 = vpop.f32.mrb[21].mxu1  ;;  %v14543_v12 = vld [vmem:[%s16971_s5] sm:$0xff]   ;;  %v17301_v21 = vld [vmem:[#allocation20_spill] sm:$0xff] }
 0x369   : > { %v4894_v7 = vadd.f32 %v4893_v49, %v14407_v32  ;;  %v4895_v54 = vpop.f32.mrb[22].mxu0  ;;  %v4967_v58 = vadd.f32 %v4966_v47, %v14407_v32  ;;  %v4968_v39 = vpop.f32.mrb[22].mxu1 }
 0x36a   : > { %v4896_v61 = vadd.f32 %v4895_v54, %v14412_v29  ;;  %v4897_v52 = vpop.f32.mrb[23].mxu0  ;;  %v4969_v53 = vadd.f32 %v4968_v39, %v14412_v29  ;;  %v4970_v16 = vpop.f32.mrb[23].mxu1  ;;  %v7169_v3 = vmax.f32 %v4892_v30, 0.0  ;;  %v7171_v49 = vmax.f32 %v4965_v40, 0.0 }
 0x36b   : > { %v4898_v46 = vadd.f32 %v4897_v52, %v14412_v29  ;;  %v4971_v23 = vadd.f32 %v4970_v16, %v14412_v29  ;;  %v7170_v47 = vmax.f32 %v4894_v7, 0.0  ;;  %v7172_v30 = vmax.f32 %v4967_v58, 0.0 }
 0x36c   : > { %v7233_v63 = vmax.f32 %v4896_v61, 0.0  ;;  %11259 = vmatmul.mubr.msk.bf16.vlgmr.msra.gmra.mrb[128].mxu0 %vm4688_vm1, %v14543_v12  ;;  %v7235_v54 = vmax.f32 %v4969_v53, 0.0  ;;  %11263 = vmatmul.mubr.msk.bf16.vlgmr.msra.gmra.mrb[128].mxu1 %vm4688_vm1, %v14543_v12 }
 0x36d   : > { %v7234_v38 = vmax.f32 %v4898_v46, 0.0  ;;  %6016 = vmatpush1.bf16.msra.mxu0 %v13635_v26  ;;  %v7236_v39 = vmax.f32 %v4971_v23, 0.0  ;;  %6089 = vmatpush1.bf16.msra.mxu1 %v13638_v0 }
 0x36e   : > { %v14550_v61 = vpack.c.bf16 %v7233_v63, %v7169_v3  ;;  %6017 = vmatprep.subr.bf16.mxu0 %v13670_v15  ;;  %v14554_v52 = vpack.c.bf16 %v7235_v54, %v7171_v49  ;;  %6090 = vmatprep.subr.bf16.mxu1 %v13679_v1  ;;  %v17274_v49 = vld [vmem:[#allocation7_spill] sm:$0xff] }
 0x36f   : > { %v4901_v40 = vpop.f32.mrb[24].mxu0  ;;  %5911 = vmatprep.mubr.bf16.mxu0 %v16988_v44  ;;  %v14558_v7 = vpack.c.bf16 %v7234_v38, %v7170_v47  ;;  %v4974_v26 = vpop.f32.mrb[24].mxu1  ;;  %5984 = vmatprep.mubr.bf16.mxu1 %v16988_v44  ;;  %v14562_v46 = vpack.c.bf16 %v7236_v39, %v7172_v30  ;;  %v17273_v38 = vld [vmem:[#allocation101_spill] sm:$0xff]  ;;  %v17275_v30 = vld [vmem:[#allocation8_spill] sm:$0xff] }
 0x370   : > { %17269 = vst [vmem:[#allocation96_spill] sm:$0xff] %v14550_v61  ;;  %17270 = vst [vmem:[#allocation99_spill] sm:$0xff] %v14554_v52  ;;  %v4902_v53 = vadd.f32 %v4901_v40, %v14433_v27  ;;  %v4903_v58 = vpop.f32.mrb[25].mxu0  ;;  %v4975_v0 = vadd.f32 %v4974_v26, %v14433_v27  ;;  %v4976_v16 = vpop.f32.mrb[25].mxu1  ;;  %v17279_v52 = vld [vmem:[#allocation11_spill] sm:$0xff] }
 0x371   : > { %17271 = vst [vmem:[#allocation100_spill] sm:$0xff] %v14558_v7  ;;  %17272 = vst [vmem:[#allocation97_spill] sm:$0xff] %v14562_v46  ;;  %v4904_v15 = vadd.f32 %v4903_v58, %v14433_v27  ;;  %6018 = vmatpush1.bf16.msra.mxu0 %v13662_v48  ;;  %v4905_v1 = vpop.f32.mrb[26].mxu0  ;;  %v4977_v3 = vadd.f32 %v4976_v16, %v14433_v27  ;;  %6091 = vmatpush1.bf16.msra.mxu1 %v17273_v38  ;;  %v4978_v23 = vpop.f32.mrb[26].mxu1  ;;  %v14578_v16 = vld [vmem:[%s16971_s5 + $0x8] sm:$0xff]  }
 0x372   : > { %v4906_v63 = vadd.f32 %v4905_v1, %v14439_v31  ;;  %6019 = vmatprep.subr.bf16.mxu0 %v17274_v49  ;;  %v4907_v47 = vpop.f32.mrb[27].mxu0  ;;  %v4979_v54 = vadd.f32 %v4978_v23, %v14439_v31  ;;  %6092 = vmatprep.subr.bf16.mxu1 %v17275_v30  ;;  %v4980_v40 = vpop.f32.mrb[27].mxu1  ;;  %v7297_v26 = vmax.f32 %v4902_v53, 0.0  ;;  %v7299_v1 = vmax.f32 %v4975_v0, 0.0  ;;  %v17281_v46 = vld [vmem:[#allocation12_spill] sm:$0xff] }
 0x373   : > { %v4908_v39 = vadd.f32 %v4907_v47, %v14439_v31  ;;  %v4981_v58 = vadd.f32 %v4980_v40, %v14439_v31  ;;  %v7298_v38 = vmax.f32 %v4904_v15, 0.0  ;;  %v17276_v47 = vld [vmem:[#allocation3_spill] sm:$0xff]  ;;  %v7300_v53 = vmax.f32 %v4977_v3, 0.0  ;;  %v17278_v40 = vld [vmem:[#allocation4_spill] sm:$0xff] }
 0x374   : > { %v7361_v48 = vmax.f32 %v4906_v63, 0.0  ;;  %11260 = vmatmul.mubr.msk.bf16.gmra.mrb[132].mxu0 %vm4688_vm1, %v14578_v16  ;;  %v7363_v23 = vmax.f32 %v4979_v54, 0.0  ;;  %11264 = vmatmul.mubr.msk.bf16.gmra.mrb[132].mxu1 %vm4688_vm1, %v14578_v16 }
 0x375   : > { %v7362_v49 = vmax.f32 %v4908_v39, 0.0  ;;  %6020 = vmatpush1.bf16.msra.mxu0 %v17276_v47  ;;  %v7364_v30 = vmax.f32 %v4981_v58, 0.0  ;;  %6093 = vmatpush1.bf16.msra.mxu1 %v17278_v40  ;;  %v17286_v40 = vld [vmem:[#allocation15_spill] sm:$0xff] }
 0x376   : > { %v14585_v63 = vpack.c.bf16 %v7361_v48, %v7297_v26  ;;  %6021 = vmatprep.subr.bf16.mxu0 %v17279_v52  ;;  %v14589_v61 = vpack.c.bf16 %v7363_v23, %v7299_v1  ;;  %6094 = vmatprep.subr.bf16.mxu1 %v17281_v46  ;;  %v17284_v1 = vld [vmem:[#allocation5_spill] sm:$0xff] }
 0x377   : > { %v4911_v0 = vpop.f32.mrb[28].mxu0  ;;  %5921 = vmatprep.mubr.bf16.mxu0 %v16988_v44  ;;  %v14593_v15 = vpack.c.bf16 %v7362_v49, %v7298_v38  ;;  %v4984_v39 = vpop.f32.mrb[28].mxu1  ;;  %5994 = vmatprep.mubr.bf16.mxu1 %v16988_v44  ;;  %v14597_v26 = vpack.c.bf16 %v7364_v30, %v7300_v53  ;;  %v17285_v38 = vld [vmem:[#allocation6_spill] sm:$0xff]  ;;  %v17287_v30 = vld [vmem:[#allocation16_spill] sm:$0xff] }
 0x378   : > { %17277 = vst [vmem:[#allocation98_spill] sm:$0xff] %v14585_v63  ;;  %17280 = vst [vmem:[#allocation101_spill] sm:$0xff] %v14589_v61  ;;  %v4912_v54 = vadd.f32 %v4911_v0, %v14467_v60  ;;  %v4913_v3 = vpop.f32.mrb[29].mxu0  ;;  %v4985_v48 = vadd.f32 %v4984_v39, %v14467_v60  ;;  %v4986_v58 = vpop.f32.mrb[29].mxu1 }
 0x379   : > { %17282 = vst [vmem:[#allocation7_spill] sm:$0xff] %v14593_v15  ;;  %17283 = vst [vmem:[#allocation8_spill] sm:$0xff] %v14597_v26  ;;  %v4914_v52 = vadd.f32 %v4913_v3, %v14467_v60  ;;  %6022 = vmatpush1.bf16.msra.mxu0 %v17284_v1  ;;  %v4915_v46 = vpop.f32.mrb[30].mxu0  ;;  %v4987_v23 = vadd.f32 %v4986_v58, %v14467_v60  ;;  %6095 = vmatpush1.bf16.msra.mxu1 %v17285_v38  ;;  %v4988_v47 = vpop.f32.mrb[30].mxu1  ;;  %v14613_v58 = vld [vmem:[%s16971_s5 + $0x10] sm:$0xff]  }
 0x37a   : > { %v4916_v49 = vadd.f32 %v4915_v46, %v14473_v33  ;;  %6161 = vmatprep.subr.bf16.mxu0 %v17286_v40  ;;  %v4917_v0 = vpop.f32.mrb[31].mxu0  ;;  %v4989_v53 = vadd.f32 %v4988_v47, %v14473_v33  ;;  %6234 = vmatprep.subr.bf16.mxu1 %v17287_v30  ;;  %v4990_v3 = vpop.f32.mrb[31].mxu1  ;;  %v7425_v61 = vmax.f32 %v4912_v54, 0.0  ;;  %v7427_v46 = vmax.f32 %v4985_v48, 0.0 }
 0x37b   : > { %v4918_v39 = vadd.f32 %v4917_v0, %v14473_v33  ;;  %v4991_v63 = vadd.f32 %v4990_v3, %v14473_v33  ;;  %v7426_v38 = vmax.f32 %v4914_v52, 0.0  ;;  %v7428_v54 = vmax.f32 %v4987_v23, 0.0 }
 0x37c   : > { %v7489_v1 = vmax.f32 %v4916_v49, 0.0  ;;  %11261 = vmatmul.mubr.msk.bf16.gmra.mrb[136].mxu0 %vm4688_vm1, %v14613_v58  ;;  %v7491_v47 = vmax.f32 %v4989_v53, 0.0  ;;  %11265 = vmatmul.mubr.msk.bf16.gmra.mrb[136].mxu1 %vm4688_vm1, %v14613_v58 }
 0x37d   : > { %v7490_v40 = vmax.f32 %v4918_v39, 0.0  ;;  %5931 = vmatprep.mubr.bf16.mxu0 %v16988_v44  ;;  %v7492_v0 = vmax.f32 %v4991_v63, 0.0  ;;  %6004 = vmatprep.mubr.bf16.mxu1 %v16988_v44 }
 0x37e   : > { %v14620_v49 = vpack.c.bf16 %v7489_v1, %v7425_v61  ;;  %v14623_v30 = vpack.c.bf16 %v7491_v47, %v7427_v46 }
 0x37f   : > { %v5027_v3 = vpop.f32.mrb[32].mxu0  ;;  %v14625_v26 = vpack.c.bf16 %v7490_v40, %v7426_v38  ;;  %v5100_v52 = vpop.f32.mrb[32].mxu1  ;;  %v14628_v39 = vpack.c.bf16 %v7492_v0, %v7428_v54 }
 0x380   : > { %17288 = vst [vmem:[#allocation3_spill] sm:$0xff] %v14620_v49  ;;  %17289 = vst [vmem:[#allocation4_spill] sm:$0xff] %v14623_v30  ;;  %v5028_v48 = vadd.f32 %v5027_v3, %v14381_v41  ;;  %v5029_v53 = vpop.f32.mrb[33].mxu0  ;;  %v5101_v15 = vadd.f32 %v5100_v52, %v14381_v41  ;;  %v5102_v61 = vpop.f32.mrb[33].mxu1  ;;  %v14640_v52 = vld [vmem:[%s16971_s5 + $0x18] sm:$0xff]  }
 0x381   : > { %17290 = vst [vmem:[#allocation11_spill] sm:$0xff] %v14625_v26  ;;  %17291 = vst [vmem:[#allocation12_spill] sm:$0xff] %v14628_v39  ;;  %v5030_v23 = vadd.f32 %v5029_v53, %v14381_v41  ;;  %v5031_v1 = vpop.f32.mrb[34].mxu0  ;;  %v5103_v63 = vadd.f32 %v5102_v61, %v14381_v41  ;;  %v5104_v47 = vpop.f32.mrb[34].mxu1 }
 0x382   : > { %v5032_v46 = vadd.f32 %v5031_v1, %v14386_v35  ;;  %v5033_v30 = vpop.f32.mrb[35].mxu0  ;;  %v5105_v38 = vadd.f32 %v5104_v47, %v14386_v35  ;;  %v5106_v3 = vpop.f32.mrb[35].mxu1  ;;  %v7045_v49 = vmax.f32 %v5028_v48, 0.0  ;;  %v7047_v53 = vmax.f32 %v5101_v15, 0.0 }
 0x383   : > { %v5034_v40 = vadd.f32 %v5033_v30, %v14386_v35  ;;  %v5107_v0 = vadd.f32 %v5106_v3, %v14386_v35  ;;  %v7046_v61 = vmax.f32 %v5030_v23, 0.0  ;;  %v7048_v30 = vmax.f32 %v5103_v63, 0.0 }
 0x384   : > { %v7109_v54 = vmax.f32 %v5032_v46, 0.0  ;;  %11262 = vmatmul.mubr.msk.bf16.gmra.mrb[140].mxu0 %vm4688_vm1, %v14640_v52  ;;  %v7111_v1 = vmax.f32 %v5105_v38, 0.0  ;;  %11266 = vmatmul.mubr.msk.bf16.gmra.mrb[140].mxu1 %vm4688_vm1, %v14640_v52 }
 0x385   : > { %v7110_v39 = vmax.f32 %v5034_v40, 0.0  ;;  %6047 = vmatprep.mubr.bf16.mxu0 %v16988_v44  ;;  %v7112_v46 = vmax.f32 %v5107_v0, 0.0  ;;  %6120 = vmatprep.mubr.bf16.mxu1 %v16988_v44 }
 0x386   : > { %v14647_v48 = vpack.c.bf16 %v7109_v54, %v7045_v49  ;;  %v14650_v47 = vpack.c.bf16 %v7111_v1, %v7047_v53 }
 0x387   : > { %v5037_v3 = vpop.f32.mrb[36].mxu0  ;;  %v14652_v26 = vpack.c.bf16 %v7110_v39, %v7046_v61  ;;  %v5110_v23 = vpop.f32.mrb[36].mxu1  ;;  %v14655_v40 = vpack.c.bf16 %v7112_v46, %v7048_v30 }
 0x388   : > { %17292 = vst [vmem:[#allocation5_spill] sm:$0xff] %v14647_v48  ;;  %17293 = vst [vmem:[#allocation6_spill] sm:$0xff] %v14650_v47  ;;  %v5038_v15 = vadd.f32 %v5037_v3, %v14407_v32  ;;  %v5039_v38 = vpop.f32.mrb[37].mxu0  ;;  %v5111_v7 = vadd.f32 %v5110_v23, %v14407_v32  ;;  %v5112_v49 = vpop.f32.mrb[37].mxu1 }
 0x389   : > { %17294 = vst [vmem:[#allocation15_spill] sm:$0xff] %v14652_v26  ;;  %17295 = vst [vmem:[#allocation16_spill] sm:$0xff] %v14655_v40  ;;  %v5040_v63 = vadd.f32 %v5039_v38, %v14407_v32  ;;  %v5041_v54 = vpop.f32.mrb[38].mxu0  ;;  %v5113_v0 = vadd.f32 %v5112_v49, %v14407_v32  ;;  %v5114_v1 = vpop.f32.mrb[38].mxu1 }
 0x38a   : > { %v5042_v53 = vadd.f32 %v5041_v54, %v14412_v29  ;;  %v5043_v47 = vpop.f32.mrb[39].mxu0  ;;  %v5115_v39 = vadd.f32 %v5114_v1, %v14412_v29  ;;  %v5116_v3 = vpop.f32.mrb[39].mxu1  ;;  %v7173_v48 = vmax.f32 %v5038_v15, 0.0  ;;  %v7175_v23 = vmax.f32 %v5111_v7, 0.0  ;;  %v17296_v54 = vld [vmem:[#allocation9_spill] sm:$0xff]  ;;  %v17298_v15 = vld [vmem:[#allocation10_spill] sm:$0xff] }
 0x38b   : > { %v5044_v61 = vadd.f32 %v5043_v47, %v14412_v29  ;;  %v5117_v46 = vadd.f32 %v5116_v3, %v14412_v29  ;;  %v7174_v38 = vmax.f32 %v5040_v63, 0.0  ;;  %v7176_v1 = vmax.f32 %v5113_v0, 0.0 }
 0x38c   : > { %v7237_v30 = vmax.f32 %v5042_v53, 0.0  ;;  %11267 = vmatmul.mubr.msk.bf16.vlgmr.msra.gmra.mrb[144].mxu0 %vm4688_vm1, %v14543_v12  ;;  %v7239_v40 = vmax.f32 %v5115_v39, 0.0  ;;  %11271 = vmatmul.mubr.msk.bf16.vlgmr.msra.gmra.mrb[144].mxu1 %vm4688_vm1, %v14543_v12  ;;  %v17299_v53 = vld [vmem:[#allocation19_spill] sm:$0xff] }
 0x38d   : > { %v7238_v49 = vmax.f32 %v5044_v61, 0.0  ;;  %6162 = vmatpush1.bf16.msra.mxu0 %v17296_v54  ;;  %v7240_v47 = vmax.f32 %v5117_v46, 0.0  ;;  %6235 = vmatpush1.bf16.msra.mxu1 %v17298_v15 }
 0x38e   : > { %v14669_v26 = vpack.c.bf16 %v7237_v30, %v7173_v48  ;;  %6163 = vmatprep.subr.bf16.mxu0 %v17299_v53  ;;  %v14673_v3 = vpack.c.bf16 %v7239_v40, %v7175_v23  ;;  %6236 = vmatprep.subr.bf16.mxu1 %v17301_v21  ;;  %v17304_v23 = vld [vmem:[#allocation13_spill] sm:$0xff]  ;;  %v17306_v53 = vld [vmem:[#allocation23_spill] sm:$0xff] }
 0x38f   : > { %v5047_v7 = vpop.f32.mrb[40].mxu0  ;;  %6057 = vmatprep.mubr.bf16.mxu0 %v16988_v44  ;;  %v14677_v63 = vpack.c.bf16 %v7238_v49, %v7174_v38  ;;  %v5120_v61 = vpop.f32.mrb[40].mxu1  ;;  %6130 = vmatprep.mubr.bf16.mxu1 %v16988_v44  ;;  %v14681_v48 = vpack.c.bf16 %v7240_v47, %v7176_v1  ;;  %v17305_v38 = vld [vmem:[#allocation14_spill] sm:$0xff]  ;;  %v17307_v47 = vld [vmem:[#allocation24_spill] sm:$0xff] }
 0x390   : > { %17297 = vst [vmem:[#allocation9_spill] sm:$0xff] %v14669_v26  ;;  %17300 = vst [vmem:[#allocation10_spill] sm:$0xff] %v14673_v3  ;;  %v5048_v39 = vadd.f32 %v5047_v7, %v14433_v27  ;;  %v5049_v0 = vpop.f32.mrb[41].mxu0  ;;  %v5121_v30 = vadd.f32 %v5120_v61, %v14433_v27  ;;  %v5122_v46 = vpop.f32.mrb[41].mxu1 }
 0x391   : > { %17302 = vst [vmem:[#allocation19_spill] sm:$0xff] %v14677_v63  ;;  %17303 = vst [vmem:[#allocation20_spill] sm:$0xff] %v14681_v48  ;;  %v5050_v40 = vadd.f32 %v5049_v0, %v14433_v27  ;;  %6164 = vmatpush1.bf16.msra.mxu0 %v17304_v23  ;;  %v5051_v21 = vpop.f32.mrb[42].mxu0  ;;  %v5123_v54 = vadd.f32 %v5122_v46, %v14433_v27  ;;  %6237 = vmatpush1.bf16.msra.mxu1 %v17305_v38  ;;  %v5124_v15 = vpop.f32.mrb[42].mxu1  ;;  %v17313_v63 = vld [vmem:[#allocation28_spill] sm:$0xff] }
 0x392   : > { %v5052_v49 = vadd.f32 %v5051_v21, %v14439_v31  ;;  %6165 = vmatprep.subr.bf16.mxu0 %v17306_v53  ;;  %v5053_v7 = vpop.f32.mrb[43].mxu0  ;;  %v5125_v1 = vadd.f32 %v5124_v15, %v14439_v31  ;;  %6238 = vmatprep.subr.bf16.mxu1 %v17307_v47  ;;  %v5126_v0 = vpop.f32.mrb[43].mxu1  ;;  %v7301_v3 = vmax.f32 %v5048_v39, 0.0  ;;  %v7303_v46 = vmax.f32 %v5121_v30, 0.0  ;;  %v17308_v15 = vld [vmem:[#allocation17_spill] sm:$0xff]  ;;  %v17310_v39 = vld [vmem:[#allocation18_spill] sm:$0xff] }
 0x393   : > { %v5054_v61 = vadd.f32 %v5053_v7, %v14439_v31  ;;  %v5127_v26 = vadd.f32 %v5126_v0, %v14439_v31  ;;  %v7302_v21 = vmax.f32 %v5050_v40, 0.0  ;;  %v7304_v53 = vmax.f32 %v5123_v54, 0.0 }
 0x394   : > { %v7365_v23 = vmax.f32 %v5052_v49, 0.0  ;;  %11268 = vmatmul.mubr.msk.bf16.gmra.mrb[148].mxu0 %vm4688_vm1, %v14578_v16  ;;  %v7367_v38 = vmax.f32 %v5125_v1, 0.0  ;;  %11272 = vmatmul.mubr.msk.bf16.gmra.mrb[148].mxu1 %vm4688_vm1, %v14578_v16  ;;  %v17311_v49 = vld [vmem:[#allocation27_spill] sm:$0xff] }
 0x395   : > { %v7366_v48 = vmax.f32 %v5054_v61, 0.0  ;;  %6166 = vmatpush1.bf16.msra.mxu0 %v17308_v15  ;;  %v7368_v7 = vmax.f32 %v5127_v26, 0.0  ;;  %6239 = vmatpush1.bf16.msra.mxu1 %v17310_v39 }
 0x396   : > { %v14699_v47 = vpack.c.bf16 %v7365_v23, %v7301_v3  ;;  %6167 = vmatprep.subr.bf16.mxu0 %v17311_v49  ;;  %v14703_v0 = vpack.c.bf16 %v7367_v38, %v7303_v46  ;;  %6240 = vmatprep.subr.bf16.mxu1 %v17313_v63  ;;  %v17316_v38 = vld [vmem:[#allocation21_spill] sm:$0xff]  ;;  %v17318_v49 = vld [vmem:[#allocation31_spill] sm:$0xff] }
 0x397   : > { %v5057_v30 = vpop.f32.mrb[44].mxu0  ;;  %6067 = vmatprep.mubr.bf16.mxu0 %v16988_v44  ;;  %v14707_v40 = vpack.c.bf16 %v7366_v48, %v7302_v21  ;;  %v5130_v61 = vpop.f32.mrb[44].mxu1  ;;  %6140 = vmatprep.mubr.bf16.mxu1 %v16988_v44  ;;  %v14711_v26 = vpack.c.bf16 %v7368_v7, %v7304_v53  ;;  %v17317_v48 = vld [vmem:[#allocation22_spill] sm:$0xff]  ;;  %v17319_v7 = vld [vmem:[#allocation32_spill] sm:$0xff] }
 0x398   : > { %17309 = vst [vmem:[#allocation13_spill] sm:$0xff] %v14699_v47  ;;  %17312 = vst [vmem:[#allocation14_spill] sm:$0xff] %v14703_v0  ;;  %v5058_v1 = vadd.f32 %v5057_v30, %v14467_v60  ;;  %v5059_v54 = vpop.f32.mrb[45].mxu0  ;;  %v5131_v3 = vadd.f32 %v5130_v61, %v14467_v60  ;;  %v5132_v46 = vpop.f32.mrb[45].mxu1 }
 0x399   : > { %17314 = vst [vmem:[#allocation23_spill] sm:$0xff] %v14707_v40  ;;  %17315 = vst [vmem:[#allocation24_spill] sm:$0xff] %v14711_v26  ;;  %v5060_v23 = vadd.f32 %v5059_v54, %v14467_v60  ;;  %6168 = vmatpush1.bf16.msra.mxu0 %v17316_v38  ;;  %v5061_v63 = vpop.f32.mrb[46].mxu0  ;;  %v5133_v15 = vadd.f32 %v5132_v46, %v14467_v60  ;;  %6241 = vmatpush1.bf16.msra.mxu1 %v17317_v48  ;;  %v5134_v39 = vpop.f32.mrb[46].mxu1  ;;  %v17333_v40 = vld [vmem:[#allocation36_spill] sm:$0xff] }
 0x39a   : > { %v5062_v21 = vadd.f32 %v5061_v63, %v14473_v33  ;;  %6307 = vmatprep.subr.bf16.mxu0 %v17318_v49  ;;  %v5063_v30 = vpop.f32.mrb[47].mxu0  ;;  %v5135_v53 = vadd.f32 %v5134_v39, %v14473_v33  ;;  %6380 = vmatprep.subr.bf16.mxu1 %v17319_v7  ;;  %v5136_v54 = vpop.f32.mrb[47].mxu1  ;;  %v7429_v0 = vmax.f32 %v5058_v1, 0.0  ;;  %v7431_v46 = vmax.f32 %v5131_v3, 0.0 }
 0x39b   : > { %v5064_v61 = vadd.f32 %v5063_v30, %v14473_v33  ;;  %v5137_v47 = vadd.f32 %v5136_v54, %v14473_v33  ;;  %v7430_v63 = vmax.f32 %v5060_v23, 0.0  ;;  %v7432_v39 = vmax.f32 %v5133_v15, 0.0 }
 0x39c   : > { %v7493_v38 = vmax.f32 %v5062_v21, 0.0  ;;  %11269 = vmatmul.mubr.msk.bf16.gmra.mrb[152].mxu0 %vm4688_vm1, %v14613_v58  ;;  %v7495_v48 = vmax.f32 %v5135_v53, 0.0  ;;  %11273 = vmatmul.mubr.msk.bf16.gmra.mrb[152].mxu1 %vm4688_vm1, %v14613_v58 }
 0x39d   : > { %v7494_v26 = vmax.f32 %v5064_v61, 0.0  ;;  %6077 = vmatprep.mubr.bf16.mxu0 %v16988_v44  ;;  %v7496_v30 = vmax.f32 %v5137_v47, 0.0  ;;  %6150 = vmatprep.mubr.bf16.mxu1 %v16988_v44 }
 0x39e   : > { %v14729_v49 = vpack.c.bf16 %v7493_v38, %v7429_v0  ;;  %v14732_v1 = vpack.c.bf16 %v7495_v48, %v7431_v46 }
 0x39f   : > { %v5173_v21 = vpop.f32.mrb[48].mxu0  ;;  %v14734_v7 = vpack.c.bf16 %v7494_v26, %v7430_v63  ;;  %v5246_v23 = vpop.f32.mrb[48].mxu1  ;;  %v14737_v61 = vpack.c.bf16 %v7496_v30, %v7432_v39 }
 0x3a0   : > { %17320 = vst [vmem:[#allocation17_spill] sm:$0xff] %v14729_v49  ;;  %17321 = vst [vmem:[#allocation18_spill] sm:$0xff] %v14732_v1  ;;  %v5174_v3 = vadd.f32 %v5173_v21, %v14381_v41  ;;  %v5175_v53 = vpop.f32.mrb[49].mxu0  ;;  %v5247_v54 = vadd.f32 %v5246_v23, %v14381_v41  ;;  %v5248_v0 = vpop.f32.mrb[49].mxu1 }
 0x3a1   : > { %17322 = vst [vmem:[#allocation27_spill] sm:$0xff] %v14734_v7  ;;  %17323 = vst [vmem:[#allocation28_spill] sm:$0xff] %v14737_v61  ;;  %v5176_v15 = vadd.f32 %v5175_v53, %v14381_v41  ;;  %v5177_v38 = vpop.f32.mrb[50].mxu0  ;;  %v5249_v47 = vadd.f32 %v5248_v0, %v14381_v41  ;;  %v5250_v48 = vpop.f32.mrb[50].mxu1 }
 0x3a2   : > { %v5178_v46 = vadd.f32 %v5177_v38, %v14386_v35  ;;  %v5179_v1 = vpop.f32.mrb[51].mxu0  ;;  %v5251_v26 = vadd.f32 %v5250_v48, %v14386_v35  ;;  %v5252_v21 = vpop.f32.mrb[51].mxu1  ;;  %v7049_v49 = vmax.f32 %v5174_v3, 0.0  ;;  %v7051_v23 = vmax.f32 %v5247_v54, 0.0 }
 0x3a3   : > { %v5180_v63 = vadd.f32 %v5179_v1, %v14386_v35  ;;  %v5253_v30 = vadd.f32 %v5252_v21, %v14386_v35  ;;  %v7050_v53 = vmax.f32 %v5176_v15, 0.0  ;;  %v7052_v38 = vmax.f32 %v5249_v47, 0.0 }
 0x3a4   : > { %v7113_v39 = vmax.f32 %v5178_v46, 0.0  ;;  %11270 = vmatmul.mubr.msk.bf16.gmra.mrb[156].mxu0 %vm4688_vm1, %v14640_v52  ;;  %v7115_v61 = vmax.f32 %v5251_v26, 0.0  ;;  %11274 = vmatmul.mubr.msk.bf16.gmra.mrb[156].mxu1 %vm4688_vm1, %v14640_v52 }
 0x3a5   : > { %v7114_v0 = vmax.f32 %v5180_v63, 0.0  ;;  %6193 = vmatprep.mubr.bf16.mxu0 %v16988_v44  ;;  %v7116_v1 = vmax.f32 %v5253_v30, 0.0  ;;  %6266 = vmatprep.mubr.bf16.mxu1 %v16988_v44 }
 0x3a6   : > { %v14751_v48 = vpack.c.bf16 %v7113_v39, %v7049_v49  ;;  %v14754_v3 = vpack.c.bf16 %v7115_v61, %v7051_v23 }
 0x3a7   : > { %v5183_v46 = vpop.f32.mrb[52].mxu0  ;;  %v14756_v21 = vpack.c.bf16 %v7114_v0, %v7050_v53  ;;  %v5256_v15 = vpop.f32.mrb[52].mxu1  ;;  %v14759_v63 = vpack.c.bf16 %v7116_v1, %v7052_v38 }
 0x3a8   : > { %17324 = vst [vmem:[#allocation21_spill] sm:$0xff] %v14751_v48  ;;  %17325 = vst [vmem:[#allocation22_spill] sm:$0xff] %v14754_v3  ;;  %v5184_v54 = vadd.f32 %v5183_v46, %v14407_v32  ;;  %v5185_v26 = vpop.f32.mrb[53].mxu0  ;;  %v5257_v7 = vadd.f32 %v5256_v15, %v14407_v32  ;;  %v5258_v49 = vpop.f32.mrb[53].mxu1 }
 0x3a9   : > { %17326 = vst [vmem:[#allocation31_spill] sm:$0xff] %v14756_v21  ;;  %17327 = vst [vmem:[#allocation32_spill] sm:$0xff] %v14759_v63  ;;  %v5186_v47 = vadd.f32 %v5185_v26, %v14407_v32  ;;  %v5187_v39 = vpop.f32.mrb[54].mxu0  ;;  %v5259_v30 = vadd.f32 %v5258_v49, %v14407_v32  ;;  %v5260_v23 = vpop.f32.mrb[54].mxu1 }
 0x3aa   : > { %v5188_v61 = vadd.f32 %v5187_v39, %v14412_v29  ;;  %v5189_v3 = vpop.f32.mrb[55].mxu0  ;;  %v5261_v53 = vadd.f32 %v5260_v23, %v14412_v29  ;;  %v5262_v46 = vpop.f32.mrb[55].mxu1  ;;  %v7177_v48 = vmax.f32 %v5184_v54, 0.0  ;;  %v7179_v15 = vmax.f32 %v5257_v7, 0.0  ;;  %v17328_v39 = vld [vmem:[#allocation25_spill] sm:$0xff]  ;;  %v17330_v54 = vld [vmem:[#allocation26_spill] sm:$0xff] }
 0x3ab   : > { %v5190_v0 = vadd.f32 %v5189_v3, %v14412_v29  ;;  %v5263_v1 = vadd.f32 %v5262_v46, %v14412_v29  ;;  %v7178_v26 = vmax.f32 %v5186_v47, 0.0  ;;  %v7180_v23 = vmax.f32 %v5259_v30, 0.0 }
 0x3ac   : > { %v7241_v38 = vmax.f32 %v5188_v61, 0.0  ;;  %11275 = vmatmul.mubr.msk.bf16.vlgmr.msra.gmra.mrb[160].mxu0 %vm4688_vm1, %v14543_v12  ;;  %v7243_v63 = vmax.f32 %v5261_v53, 0.0  ;;  %11279 = vmatmul.mubr.msk.bf16.vlgmr.msra.gmra.mrb[160].mxu1 %vm4688_vm1, %v14543_v12  ;;  %v17331_v61 = vld [vmem:[#allocation35_spill] sm:$0xff] }
 0x3ad   : > { %v7242_v49 = vmax.f32 %v5190_v0, 0.0  ;;  %6308 = vmatpush1.bf16.msra.mxu0 %v17328_v39  ;;  %v7244_v3 = vmax.f32 %v5263_v1, 0.0  ;;  %6381 = vmatpush1.bf16.msra.mxu1 %v17330_v54 }
 0x3ae   : > { %v14773_v21 = vpack.c.bf16 %v7241_v38, %v7177_v48  ;;  %6309 = vmatprep.subr.bf16.mxu0 %v17331_v61  ;;  %v14777_v46 = vpack.c.bf16 %v7243_v63, %v7179_v15  ;;  %6382 = vmatprep.subr.bf16.mxu1 %v17333_v40  ;;  %v17336_v15 = vld [vmem:[#allocation29_spill] sm:$0xff]  ;;  %v17338_v61 = vld [vmem:[#allocation39_spill] sm:$0xff] }
 0x3af   : > { %v5193_v7 = vpop.f32.mrb[56].mxu0  ;;  %6203 = vmatprep.mubr.bf16.mxu0 %v16988_v44  ;;  %v14781_v47 = vpack.c.bf16 %v7242_v49, %v7178_v26  ;;  %v5266_v0 = vpop.f32.mrb[56].mxu1  ;;  %6276 = vmatprep.mubr.bf16.mxu1 %v16988_v44  ;;  %v14785_v48 = vpack.c.bf16 %v7244_v3, %v7180_v23  ;;  %v17337_v26 = vld [vmem:[#allocation30_spill] sm:$0xff]  ;;  %v17339_v3 = vld [vmem:[#allocation40_spill] sm:$0xff] }
 0x3b0   : > { %17329 = vst [vmem:[#allocation25_spill] sm:$0xff] %v14773_v21  ;;  %17332 = vst [vmem:[#allocation26_spill] sm:$0xff] %v14777_v46  ;;  %v5194_v53 = vadd.f32 %v5193_v7, %v14433_v27  ;;  %v5195_v30 = vpop.f32.mrb[57].mxu0  ;;  %v5267_v38 = vadd.f32 %v5266_v0, %v14433_v27  ;;  %v5268_v1 = vpop.f32.mrb[57].mxu1 }
 0x3b1   : > { %17334 = vst [vmem:[#allocation35_spill] sm:$0xff] %v14781_v47  ;;  %17335 = vst [vmem:[#allocation36_spill] sm:$0xff] %v14785_v48  ;;  %v5196_v63 = vadd.f32 %v5195_v30, %v14433_v27  ;;  %6310 = vmatpush1.bf16.msra.mxu0 %v17336_v15  ;;  %v5197_v40 = vpop.f32.mrb[58].mxu0  ;;  %v5269_v39 = vadd.f32 %v5268_v1, %v14433_v27  ;;  %6383 = vmatpush1.bf16.msra.mxu1 %v17337_v26  ;;  %v5270_v54 = vpop.f32.mrb[58].mxu1  ;;  %v17345_v47 = vld [vmem:[#allocation44_spill] sm:$0xff] }
 0x3b2   : > { %v5198_v49 = vadd.f32 %v5197_v40, %v14439_v31  ;;  %6311 = vmatprep.subr.bf16.mxu0 %v17338_v61  ;;  %v5199_v7 = vpop.f32.mrb[59].mxu0  ;;  %v5271_v23 = vadd.f32 %v5270_v54, %v14439_v31  ;;  %6384 = vmatprep.subr.bf16.mxu1 %v17339_v3  ;;  %v5272_v30 = vpop.f32.mrb[59].mxu1  ;;  %v7305_v46 = vmax.f32 %v5194_v53, 0.0  ;;  %v7307_v1 = vmax.f32 %v5267_v38, 0.0  ;;  %v17340_v54 = vld [vmem:[#allocation33_spill] sm:$0xff]  ;;  %v17342_v53 = vld [vmem:[#allocation34_spill] sm:$0xff] }
 0x3b3   : > { %v5200_v0 = vadd.f32 %v5199_v7, %v14439_v31  ;;  %v5273_v21 = vadd.f32 %v5272_v30, %v14439_v31  ;;  %v7306_v40 = vmax.f32 %v5196_v63, 0.0  ;;  %v7308_v61 = vmax.f32 %v5269_v39, 0.0 }
 0x3b4   : > { %v7369_v15 = vmax.f32 %v5198_v49, 0.0  ;;  %11276 = vmatmul.mubr.msk.bf16.gmra.mrb[164].mxu0 %vm4688_vm1, %v14578_v16  ;;  %v7371_v26 = vmax.f32 %v5271_v23, 0.0  ;;  %11280 = vmatmul.mubr.msk.bf16.gmra.mrb[164].mxu1 %vm4688_vm1, %v14578_v16  ;;  %v17343_v49 = vld [vmem:[#allocation43_spill] sm:$0xff] }
 0x3b5   : > { %v7370_v48 = vmax.f32 %v5200_v0, 0.0  ;;  %6312 = vmatpush1.bf16.msra.mxu0 %v17340_v54  ;;  %v7372_v7 = vmax.f32 %v5273_v21, 0.0  ;;  %6385 = vmatpush1.bf16.msra.mxu1 %v17342_v53 }
 0x3b6   : > { %v14803_v3 = vpack.c.bf16 %v7369_v15, %v7305_v46  ;;  %6313 = vmatprep.subr.bf16.mxu0 %v17343_v49  ;;  %v14807_v30 = vpack.c.bf16 %v7371_v26, %v7307_v1  ;;  %6386 = vmatprep.subr.bf16.mxu1 %v17345_v47  ;;  %v17347_v26 = vld [vmem:[#allocation37_spill] sm:$0xff]  ;;  %v17349_v49 = vld [vmem:[#allocation47_spill] sm:$0xff] }
 0x3b7   : > { %v5203_v38 = vpop.f32.mrb[60].mxu0  ;;  %6213 = vmatprep.mubr.bf16.mxu0 %v16988_v44  ;;  %v14811_v63 = vpack.c.bf16 %v7370_v48, %v7306_v40  ;;  %v5276_v0 = vpop.f32.mrb[60].mxu1  ;;  %6286 = vmatprep.mubr.bf16.mxu1 %v16988_v44  ;;  %v14815_v21 = vpack.c.bf16 %v7372_v7, %v7308_v61  ;;  %v17348_v48 = vld [vmem:[#allocation38_spill] sm:$0xff]  ;;  %v17350_v7 = vld [vmem:[#allocation48_spill] sm:$0xff] }
 0x3b8   : > { %17341 = vst [vmem:[#allocation29_spill] sm:$0xff] %v14803_v3  ;;  %17344 = vst [vmem:[#allocation30_spill] sm:$0xff] %v14807_v30  ;;  %v5204_v23 = vadd.f32 %v5203_v38, %v14467_v60  ;;  %v5205_v39 = vpop.f32.mrb[61].mxu0  ;;  %v5277_v46 = vadd.f32 %v5276_v0, %v14467_v60  ;;  %v5278_v1 = vpop.f32.mrb[61].mxu1 }
 0x3b9   : > { %17346 = vst [vmem:[#allocation39_spill] sm:$0xff] %v14815_v21  ;;  %v5206_v15 = vadd.f32 %v5205_v39, %v14467_v60  ;;  %6314 = vmatpush1.bf16.msra.mxu0 %v17347_v26  ;;  %v5207_v47 = vpop.f32.mrb[62].mxu0  ;;  %v5279_v54 = vadd.f32 %v5278_v1, %v14467_v60  ;;  %6387 = vmatpush1.bf16.msra.mxu1 %v17348_v48  ;;  %v5280_v53 = vpop.f32.mrb[62].mxu1 }
 0x3ba   : > { %v5208_v40 = vadd.f32 %v5207_v47, %v14473_v33  ;;  %6453 = vmatprep.subr.bf16.mxu0 %v17349_v49  ;;  %v5209_v38 = vpop.f32.mrb[63].mxu0  ;;  %v5281_v61 = vadd.f32 %v5280_v53, %v14473_v33  ;;  %6526 = vmatprep.subr.bf16.mxu1 %v17350_v7  ;;  %v5282_v39 = vpop.f32.mrb[63].mxu1  ;;  %v7433_v30 = vmax.f32 %v5204_v23, 0.0  ;;  %v7435_v1 = vmax.f32 %v5277_v46, 0.0 }
 0x3bb   : > { %v5210_v0 = vadd.f32 %v5209_v38, %v14473_v33  ;;  %v5283_v3 = vadd.f32 %v5282_v39, %v14473_v33  ;;  %v7434_v47 = vmax.f32 %v5206_v15, 0.0  ;;  %v7436_v53 = vmax.f32 %v5279_v54, 0.0 }
 0x3bc   : > { %v7497_v26 = vmax.f32 %v5208_v40, 0.0  ;;  %11277 = vmatmul.mubr.msk.bf16.gmra.mrb[168].mxu0 %vm4688_vm1, %v14613_v58  ;;  %v7499_v48 = vmax.f32 %v5281_v61, 0.0  ;;  %11281 = vmatmul.mubr.msk.bf16.gmra.mrb[168].mxu1 %vm4688_vm1, %v14613_v58 }
 0x3bd   : > { %v7498_v21 = vmax.f32 %v5210_v0, 0.0  ;;  %6223 = vmatprep.mubr.bf16.mxu0 %v16988_v44  ;;  %v7500_v38 = vmax.f32 %v5283_v3, 0.0  ;;  %6296 = vmatprep.mubr.bf16.mxu1 %v16988_v44 }
 0x3be   : > { %v14833_v49 = vpack.c.bf16 %v7497_v26, %v7433_v30  ;;  %v14836_v23 = vpack.c.bf16 %v7499_v48, %v7435_v1 }
 0x3bf   : > { %v5319_v40 = vpop.f32.mrb[64].mxu0  ;;  %v14838_v7 = vpack.c.bf16 %v7498_v21, %v7434_v47  ;;  %v5392_v15 = vpop.f32.mrb[64].mxu1  ;;  %v14841_v0 = vpack.c.bf16 %v7500_v38, %v7436_v53 }
 0x3c0   : > { %17351 = vst [vmem:[#allocation40_spill] sm:$0xff] %v14833_v49  ;;  %17352 = vst [vmem:[#allocation33_spill] sm:$0xff] %v14836_v23  ;;  %v5320_v46 = vadd.f32 %v5319_v40, %v14381_v41  ;;  %v5321_v61 = vpop.f32.mrb[65].mxu0  ;;  %v5393_v39 = vadd.f32 %v5392_v15, %v14381_v41  ;;  %v5394_v30 = vpop.f32.mrb[65].mxu1 }
 0x3c1   : > { %17353 = vst [vmem:[#allocation34_spill] sm:$0xff] %v14838_v7  ;;  %17354 = vst [vmem:[#allocation43_spill] sm:$0xff] %v14841_v0  ;;  %v5322_v54 = vadd.f32 %v5321_v61, %v14381_v41  ;;  %v5323_v26 = vpop.f32.mrb[66].mxu0  ;;  %v5395_v3 = vadd.f32 %v5394_v30, %v14381_v41  ;;  %v5396_v48 = vpop.f32.mrb[66].mxu1 }
 0x3c2   : > { %v5324_v1 = vadd.f32 %v5323_v26, %v14386_v35  ;;  %v5325_v23 = vpop.f32.mrb[67].mxu0  ;;  %v5397_v21 = vadd.f32 %v5396_v48, %v14386_v35  ;;  %v5398_v40 = vpop.f32.mrb[67].mxu1  ;;  %v7053_v49 = vmax.f32 %v5320_v46, 0.0  ;;  %v7055_v15 = vmax.f32 %v5393_v39, 0.0 }
 0x3c3   : > { %v5326_v47 = vadd.f32 %v5325_v23, %v14386_v35  ;;  %v5399_v38 = vadd.f32 %v5398_v40, %v14386_v35  ;;  %v7054_v61 = vmax.f32 %v5322_v54, 0.0  ;;  %v7056_v26 = vmax.f32 %v5395_v3, 0.0 }
 0x3c4   : > { %v7117_v53 = vmax.f32 %v5324_v1, 0.0  ;;  %11278 = vmatmul.mubr.msk.bf16.gmra.mrb[172].mxu0 %vm4688_vm1, %v14640_v52  ;;  %v7119_v0 = vmax.f32 %v5397_v21, 0.0  ;;  %11282 = vmatmul.mubr.msk.bf16.gmra.mrb[172].mxu1 %vm4688_vm1, %v14640_v52 }
 0x3c5   : > { %v7118_v30 = vmax.f32 %v5326_v47, 0.0  ;;  %6339 = vmatprep.mubr.bf16.mxu0 %v16988_v44  ;;  %v7120_v23 = vmax.f32 %v5399_v38, 0.0  ;;  %6412 = vmatprep.mubr.bf16.mxu1 %v16988_v44 }
 0x3c6   : > { %v14855_v48 = vpack.c.bf16 %v7117_v53, %v7053_v49  ;;  %v14858_v46 = vpack.c.bf16 %v7119_v0, %v7055_v15 }
 0x3c7   : > { %v14860_v1 = vpack.c.bf16 %v7118_v30, %v7054_v61  ;;  %v5329_v40 = vpop.f32.mrb[68].mxu0  ;;  %v14862_v39 = vpack.c.bf16 %v7120_v23, %v7056_v26  ;;  %v5402_v21 = vpop.f32.mrb[68].mxu1 }
 0x3c8   : > { %17355 = vst [vmem:[#allocation44_spill] sm:$0xff] %v14855_v48  ;;  %17356 = vst [vmem:[#allocation37_spill] sm:$0xff] %v14858_v46  ;;  %v5330_v54 = vadd.f32 %v5329_v40, %v14407_v32  ;;  %v5331_v47 = vpop.f32.mrb[69].mxu0  ;;  %v5403_v7 = vadd.f32 %v5402_v21, %v14407_v32  ;;  %v5404_v49 = vpop.f32.mrb[69].mxu1 }
 0x3c9   : > { %17357 = vst [vmem:[#allocation38_spill] sm:$0xff] %v14860_v1  ;;  %17358 = vst [vmem:[#allocation47_spill] sm:$0xff] %v14862_v39  ;;  %v5332_v3 = vadd.f32 %v5331_v47, %v14407_v32  ;;  %v5333_v53 = vpop.f32.mrb[70].mxu0  ;;  %v5405_v38 = vadd.f32 %v5404_v49, %v14407_v32  ;;  %v5406_v15 = vpop.f32.mrb[70].mxu1 }
 0x3ca   : > { %v5334_v0 = vadd.f32 %v5333_v53, %v14412_v29  ;;  %v5335_v61 = vpop.f32.mrb[71].mxu0  ;;  %v5407_v30 = vadd.f32 %v5406_v15, %v14412_v29  ;;  %v5408_v23 = vpop.f32.mrb[71].mxu1  ;;  %v7181_v40 = vmax.f32 %v5330_v54, 0.0  ;;  %v7183_v21 = vmax.f32 %v5403_v7, 0.0  ;;  %v17359_v53 = vld [vmem:[#allocation41_spill] sm:$0xff]  ;;  %v17361_v54 = vld [vmem:[#allocation42_spill] sm:$0xff] }
 0x3cb   : > { %v5336_v26 = vadd.f32 %v5335_v61, %v14412_v29  ;;  %v5409_v48 = vadd.f32 %v5408_v23, %v14412_v29  ;;  %v7182_v47 = vmax.f32 %v5332_v3, 0.0  ;;  %v7184_v15 = vmax.f32 %v5405_v38, 0.0  ;;  %v17364_v7 = vld [vmem:[#allocation51_spill] sm:$0xff] }
 0x3cc   : > { %v7245_v46 = vmax.f32 %v5334_v0, 0.0  ;;  %11283 = vmatmul.mubr.msk.bf16.vlgmr.msra.gmra.mrb[176].mxu0 %vm4688_vm1, %v14543_v12  ;;  %v7247_v39 = vmax.f32 %v5407_v30, 0.0  ;;  %11287 = vmatmul.mubr.msk.bf16.vlgmr.msra.gmra.mrb[176].mxu1 %vm4688_vm1, %v14543_v12 }
 0x3cd   : > { %v7246_v49 = vmax.f32 %v5336_v26, 0.0  ;;  %6454 = vmatpush1.bf16.msra.mxu0 %v17359_v53  ;;  %v7248_v61 = vmax.f32 %v5409_v48, 0.0  ;;  %6527 = vmatpush1.bf16.msra.mxu1 %v17361_v54  ;;  %v17366_v26 = vld [vmem:[#allocation45_spill] sm:$0xff] }
 0x3ce   : > { %v14877_v1 = vpack.c.bf16 %v7245_v46, %v7181_v40  ;;  %6455 = vmatprep.subr.bf16.mxu0 %v13997_v51  ;;  %v14881_v0 = vpack.c.bf16 %v7247_v39, %v7183_v21  ;;  %6528 = vmatprep.subr.bf16.mxu1 %v17364_v7  ;;  %v17369_v7 = vld [vmem:[#allocation55_spill] sm:$0xff] }
 0x3cf   : > { %v14883_v23 = vpack.c.bf16 %v7246_v49, %v7182_v47  ;;  %v5339_v3 = vpop.f32.mrb[72].mxu0  ;;  %6349 = vmatprep.mubr.bf16.mxu0 %v16988_v44  ;;  %v14887_v12 = vpack.c.bf16 %v7248_v61, %v7184_v15  ;;  %v5412_v46 = vpop.f32.mrb[72].mxu1  ;;  %6422 = vmatprep.mubr.bf16.mxu1 %v16988_v44  ;;  %v17367_v47 = vld [vmem:[#allocation46_spill] sm:$0xff] }
 0x3d0   : > { %17360 = vst [vmem:[#allocation48_spill] sm:$0xff] %v14877_v1  ;;  %17362 = vst [vmem:[#allocation41_spill] sm:$0xff] %v14881_v0  ;;  %v5340_v38 = vadd.f32 %v5339_v3, %v14433_v27  ;;  %v5341_v30 = vpop.f32.mrb[73].mxu0  ;;  %v5413_v48 = vadd.f32 %v5412_v46, %v14433_v27  ;;  %v5414_v39 = vpop.f32.mrb[73].mxu1  ;;  %v17368_v15 = vld [vmem:[#allocation50_spill] sm:$0xff] }
 0x3d1   : > { %17363 = vst [vmem:[#allocation42_spill] sm:$0xff] %v14883_v23  ;;  %17365 = vst [vmem:[#allocation51_spill] sm:$0xff] %v14887_v12  ;;  %v5342_v51 = vadd.f32 %v5341_v30, %v14433_v27  ;;  %6456 = vmatpush1.bf16.msra.mxu0 %v17366_v26  ;;  %v5343_v40 = vpop.f32.mrb[74].mxu0  ;;  %v5415_v21 = vadd.f32 %v5414_v39, %v14433_v27  ;;  %6529 = vmatpush1.bf16.msra.mxu1 %v17367_v47  ;;  %v5416_v53 = vpop.f32.mrb[74].mxu1 }
 0x3d2   : > { %v5344_v49 = vadd.f32 %v5343_v40, %v14439_v31  ;;  %6457 = vmatprep.subr.bf16.mxu0 %v17368_v15  ;;  %v5345_v61 = vpop.f32.mrb[75].mxu0  ;;  %v5417_v54 = vadd.f32 %v5416_v53, %v14439_v31  ;;  %6530 = vmatprep.subr.bf16.mxu1 %v17369_v7  ;;  %v5418_v46 = vpop.f32.mrb[75].mxu1  ;;  %v7309_v30 = vmax.f32 %v5340_v38, 0.0  ;;  %v7311_v39 = vmax.f32 %v5413_v48, 0.0  ;;  %v17370_v53 = vld [vmem:[#allocation52_spill] sm:$0xff]  ;;  %v17372_v38 = vld [vmem:[#allocation49_spill] sm:$0xff] }
 0x3d3   : > { %v5346_v3 = vadd.f32 %v5345_v61, %v14439_v31  ;;  %v5419_v0 = vadd.f32 %v5418_v46, %v14439_v31  ;;  %v7310_v40 = vmax.f32 %v5342_v51, 0.0  ;;  %v7312_v15 = vmax.f32 %v5415_v21, 0.0  ;;  %v17376_v48 = vld [vmem:[#allocation59_spill] sm:$0xff] }
 0x3d4   : > { %v7373_v26 = vmax.f32 %v5344_v49, 0.0  ;;  %11284 = vmatmul.mubr.msk.bf16.gmra.mrb[180].mxu0 %vm4688_vm1, %v14578_v16  ;;  %v7375_v47 = vmax.f32 %v5417_v54, 0.0  ;;  %11288 = vmatmul.mubr.msk.bf16.gmra.mrb[180].mxu1 %vm4688_vm1, %v14578_v16  ;;  %v17373_v49 = vld [vmem:[#allocation54_spill] sm:$0xff] }
 0x3d5   : > { %v7374_v1 = vmax.f32 %v5346_v3, 0.0  ;;  %6458 = vmatpush1.bf16.msra.mxu0 %v17370_v53  ;;  %v7376_v61 = vmax.f32 %v5419_v0, 0.0  ;;  %6531 = vmatpush1.bf16.msra.mxu1 %v17372_v38 }
 0x3d6   : > { %v14907_v7 = vpack.c.bf16 %v7373_v26, %v7309_v30  ;;  %6459 = vmatprep.subr.bf16.mxu0 %v17373_v49  ;;  %v14911_v46 = vpack.c.bf16 %v7375_v47, %v7311_v39  ;;  %6532 = vmatprep.subr.bf16.mxu1 %v17376_v48  ;;  %v17379_v47 = vld [vmem:[#allocation53_spill] sm:$0xff]  ;;  %v17381_v48 = vld [vmem:[#allocation63_spill] sm:$0xff] }
 0x3d7   : > { %v14913_v12 = vpack.c.bf16 %v7374_v1, %v7310_v40  ;;  %v5349_v51 = vpop.f32.mrb[76].mxu0  ;;  %6359 = vmatprep.mubr.bf16.mxu0 %v16988_v44  ;;  %v14917_v16 = vpack.c.bf16 %v7376_v61, %v7312_v15  ;;  %v5422_v54 = vpop.f32.mrb[76].mxu1  ;;  %6432 = vmatprep.mubr.bf16.mxu1 %v16988_v44  ;;  %v17378_v1 = vld [vmem:[#allocation56_spill] sm:$0xff]  ;;  %v17380_v61 = vld [vmem:[#allocation58_spill] sm:$0xff] }
 0x3d8   : > { %17371 = vst [vmem:[#allocation45_spill] sm:$0xff] %v14907_v7  ;;  %17374 = vst [vmem:[#allocation46_spill] sm:$0xff] %v14911_v46  ;;  %v5350_v21 = vadd.f32 %v5349_v51, %v14467_v60  ;;  %v5351_v3 = vpop.f32.mrb[77].mxu0  ;;  %v5423_v0 = vadd.f32 %v5422_v54, %v14467_v60  ;;  %v5424_v26 = vpop.f32.mrb[77].mxu1 }
 0x3d9   : > { %17375 = vst [vmem:[#allocation50_spill] sm:$0xff] %v14913_v12  ;;  %17377 = vst [vmem:[#allocation55_spill] sm:$0xff] %v14917_v16  ;;  %v5352_v30 = vadd.f32 %v5351_v3, %v14467_v60  ;;  %6460 = vmatpush1.bf16.msra.mxu0 %v17378_v1  ;;  %v5353_v39 = vpop.f32.mrb[78].mxu0  ;;  %v5425_v40 = vadd.f32 %v5424_v26, %v14467_v60  ;;  %6533 = vmatpush1.bf16.msra.mxu1 %v17379_v47  ;;  %v5426_v15 = vpop.f32.mrb[78].mxu1 }
 0x3da   : > { %v5354_v53 = vadd.f32 %v5353_v39, %v14473_v33  ;;  %6599 = vmatprep.subr.bf16.mxu0 %v17380_v61  ;;  %v5355_v38 = vpop.f32.mrb[79].mxu0  ;;  %v5427_v49 = vadd.f32 %v5426_v15, %v14473_v33  ;;  %6672 = vmatprep.subr.bf16.mxu1 %v17381_v48  ;;  %v5428_v54 = vpop.f32.mrb[79].mxu1  ;;  %v7437_v3 = vmax.f32 %v5350_v21, 0.0  ;;  %v7439_v26 = vmax.f32 %v5423_v0, 0.0 }
 0x3db   : > { %v5356_v51 = vadd.f32 %v5355_v38, %v14473_v33  ;;  %v5429_v46 = vadd.f32 %v5428_v54, %v14473_v33  ;;  %v7438_v39 = vmax.f32 %v5352_v30, 0.0  ;;  %v7440_v15 = vmax.f32 %v5425_v40, 0.0 }
 0x3dc   : > { %v7501_v1 = vmax.f32 %v5354_v53, 0.0  ;;  %11285 = vmatmul.mubr.msk.bf16.gmra.mrb[184].mxu0 %vm4688_vm1, %v14613_v58  ;;  %v7503_v47 = vmax.f32 %v5427_v49, 0.0  ;;  %11289 = vmatmul.mubr.msk.bf16.gmra.mrb[184].mxu1 %vm4688_vm1, %v14613_v58 }
 0x3dd   : > { %v7502_v7 = vmax.f32 %v5356_v51, 0.0  ;;  %6369 = vmatprep.mubr.bf16.mxu0 %v16988_v44  ;;  %v7504_v38 = vmax.f32 %v5429_v46, 0.0  ;;  %6442 = vmatprep.mubr.bf16.mxu1 %v16988_v44 }
 0x3de   : > { %v14937_v61 = vpack.c.bf16 %v7501_v1, %v7437_v3  ;;  %v14940_v21 = vpack.c.bf16 %v7503_v47, %v7439_v26 }
 0x3df   : > { %v14942_v53 = vpack.c.bf16 %v7502_v7, %v7438_v39  ;;  %v5465_v48 = vpop.f32.mrb[80].mxu0  ;;  %v14944_v0 = vpack.c.bf16 %v7504_v38, %v7440_v15  ;;  %v5538_v49 = vpop.f32.mrb[80].mxu1 }
 0x3e0   : > { %17382 = vst [vmem:[#allocation52_spill] sm:$0xff] %v14937_v61  ;;  %17383 = vst [vmem:[#allocation49_spill] sm:$0xff] %v14940_v21  ;;  %v5466_v30 = vadd.f32 %v5465_v48, %v14381_v41  ;;  %v5467_v51 = vpop.f32.mrb[81].mxu0  ;;  %v5539_v58 = vadd.f32 %v5538_v49, %v14381_v41  ;;  %v5540_v54 = vpop.f32.mrb[81].mxu1 }
 0x3e1   : > { %17384 = vst [vmem:[#allocation54_spill] sm:$0xff] %v14942_v53  ;;  %17385 = vst [vmem:[#allocation59_spill] sm:$0xff] %v14944_v0  ;;  %v5468_v40 = vadd.f32 %v5467_v51, %v14381_v41  ;;  %v5469_v3 = vpop.f32.mrb[82].mxu0  ;;  %v5541_v46 = vadd.f32 %v5540_v54, %v14381_v41  ;;  %v5542_v26 = vpop.f32.mrb[82].mxu1 }
 0x3e2   : > { %v5470_v1 = vadd.f32 %v5469_v3, %v14386_v35  ;;  %v5471_v7 = vpop.f32.mrb[83].mxu0  ;;  %v5543_v39 = vadd.f32 %v5542_v26, %v14386_v35  ;;  %v5544_v15 = vpop.f32.mrb[83].mxu1  ;;  %v7057_v38 = vmax.f32 %v5466_v30, 0.0  ;;  %v7059_v49 = vmax.f32 %v5539_v58, 0.0 }
 0x3e3   : > { %v5472_v47 = vadd.f32 %v5471_v7, %v14386_v35  ;;  %v5545_v21 = vadd.f32 %v5544_v15, %v14386_v35  ;;  %v7058_v51 = vmax.f32 %v5468_v40, 0.0  ;;  %v7060_v3 = vmax.f32 %v5541_v46, 0.0 }
 0x3e4   : > { %v7121_v48 = vmax.f32 %v5470_v1, 0.0  ;;  %11286 = vmatmul.mubr.msk.bf16.gmra.mrb[188].mxu0 %vm4688_vm1, %v14640_v52  ;;  %v7123_v61 = vmax.f32 %v5543_v39, 0.0  ;;  %11290 = vmatmul.mubr.msk.bf16.gmra.mrb[188].mxu1 %vm4688_vm1, %v14640_v52 }
 0x3e5   : > { %v7122_v54 = vmax.f32 %v5472_v47, 0.0  ;;  %6485 = vmatprep.mubr.bf16.mxu0 %v16988_v44  ;;  %v7124_v7 = vmax.f32 %v5545_v21, 0.0  ;;  %6558 = vmatprep.mubr.bf16.mxu1 %v16988_v44 }
 0x3e6   : > { %v14959_v26 = vpack.c.bf16 %v7121_v48, %v7057_v38  ;;  %v14962_v30 = vpack.c.bf16 %v7123_v61, %v7059_v49 }
 0x3e7   : > { %v14964_v1 = vpack.c.bf16 %v7122_v54, %v7058_v51  ;;  %v5475_v15 = vpop.f32.mrb[84].mxu0  ;;  %v14966_v58 = vpack.c.bf16 %v7124_v7, %v7060_v3  ;;  %v5548_v39 = vpop.f32.mrb[84].mxu1 }
 0x3e8   : > { %17386 = vst [vmem:[#allocation56_spill] sm:$0xff] %v14959_v26  ;;  %17387 = vst [vmem:[#allocation53_spill] sm:$0xff] %v14962_v30  ;;  %v5476_v40 = vadd.f32 %v5475_v15, %v14407_v32  ;;  %v5477_v47 = vpop.f32.mrb[85].mxu0  ;;  %v5549_v52 = vadd.f32 %v5548_v39, %v14407_v32  ;;  %v5550_v38 = vpop.f32.mrb[85].mxu1  ;;  %v14979_v39 = vld [vmem:[%s16971_s5] sm:$0xff]  }
 0x3e9   : > { %17388 = vst [vmem:[#allocation58_spill] sm:$0xff] %v14964_v1  ;;  %17389 = vst [vmem:[#allocation63_spill] sm:$0xff] %v14966_v58  ;;  %v5478_v46 = vadd.f32 %v5477_v47, %v14407_v32  ;;  %v5479_v48 = vpop.f32.mrb[86].mxu0  ;;  %v5551_v21 = vadd.f32 %v5550_v38, %v14407_v32  ;;  %v5552_v49 = vpop.f32.mrb[86].mxu1  ;;  %v17393_v1 = vld [vmem:[#allocation62_spill] sm:$0xff] }
 0x3ea   : > { %v5480_v61 = vadd.f32 %v5479_v48, %v14412_v29  ;;  %v5481_v51 = vpop.f32.mrb[87].mxu0  ;;  %v5553_v54 = vadd.f32 %v5552_v49, %v14412_v29  ;;  %v5554_v7 = vpop.f32.mrb[87].mxu1  ;;  %v7185_v15 = vmax.f32 %v5476_v40, 0.0  ;;  %v7187_v47 = vmax.f32 %v5549_v52, 0.0  ;;  %v17390_v49 = vld [vmem:[#allocation60_spill] sm:$0xff]  ;;  %v17396_v52 = vld [vmem:[#allocation67_spill] sm:$0xff] }
 0x3eb   : > { %v5482_v3 = vadd.f32 %v5481_v51, %v14412_v29  ;;  %v5555_v26 = vadd.f32 %v5554_v7, %v14412_v29  ;;  %v7186_v38 = vmax.f32 %v5478_v46, 0.0  ;;  %v7188_v40 = vmax.f32 %v5551_v21, 0.0  ;;  %v17392_v7 = vld [vmem:[#allocation57_spill] sm:$0xff] }
 0x3ec   : > { %v7249_v30 = vmax.f32 %v5480_v61, 0.0  ;;  %11291 = vmatmul.mubr.msk.bf16.vlgmr.msra.gmra.mrb[192].mxu0 %vm4688_vm1, %v14979_v39  ;;  %v7251_v48 = vmax.f32 %v5553_v54, 0.0  ;;  %11295 = vmatmul.mubr.msk.bf16.vlgmr.msra.gmra.mrb[192].mxu1 %vm4688_vm1, %v14979_v39 }
 0x3ed   : > { %v7250_v58 = vmax.f32 %v5482_v3, 0.0  ;;  %6600 = vmatpush1.bf16.msra.mxu0 %v17390_v49  ;;  %v7252_v51 = vmax.f32 %v5555_v26, 0.0  ;;  %6673 = vmatpush1.bf16.msra.mxu1 %v17392_v7 }
 0x3ee   : > { %v14986_v61 = vpack.c.bf16 %v7249_v30, %v7185_v15  ;;  %6601 = vmatprep.subr.bf16.mxu0 %v17393_v1  ;;  %v14990_v0 = vpack.c.bf16 %v7251_v48, %v7187_v47  ;;  %6674 = vmatprep.subr.bf16.mxu1 %v17396_v52  ;;  %v17399_v48 = vld [vmem:[#allocation61_spill] sm:$0xff] }
 0x3ef   : > { %v14992_v53 = vpack.c.bf16 %v7250_v58, %v7186_v38  ;;  %v5485_v46 = vpop.f32.mrb[88].mxu0  ;;  %6495 = vmatprep.mubr.bf16.mxu0 %v16988_v44  ;;  %v14996_v54 = vpack.c.bf16 %v7252_v51, %v7188_v40  ;;  %v5558_v30 = vpop.f32.mrb[88].mxu1  ;;  %6568 = vmatprep.mubr.bf16.mxu1 %v16988_v44  ;;  %v17398_v58 = vld [vmem:[#allocation64_spill] sm:$0xff]  ;;  %v17400_v51 = vld [vmem:[#allocation66_spill] sm:$0xff] }
 0x3f0   : > { %17391 = vst [vmem:[#allocation60_spill] sm:$0xff] %v14986_v61  ;;  %17394 = vst [vmem:[#allocation57_spill] sm:$0xff] %v14990_v0  ;;  %v5486_v21 = vadd.f32 %v5485_v46, %v14433_v27  ;;  %v5487_v3 = vpop.f32.mrb[89].mxu0  ;;  %v5559_v26 = vadd.f32 %v5558_v30, %v14433_v27  ;;  %v5560_v15 = vpop.f32.mrb[89].mxu1  ;;  %v17401_v46 = vld [vmem:[#allocation71_spill] sm:$0xff] }
 0x3f1   : > { %17395 = vst [vmem:[#allocation62_spill] sm:$0xff] %v14992_v53  ;;  %17397 = vst [vmem:[#allocation67_spill] sm:$0xff] %v14996_v54  ;;  %v5488_v1 = vadd.f32 %v5487_v3, %v14433_v27  ;;  %6602 = vmatpush1.bf16.msra.mxu0 %v17398_v58  ;;  %v5489_v47 = vpop.f32.mrb[90].mxu0  ;;  %v5561_v38 = vadd.f32 %v5560_v15, %v14433_v27  ;;  %6675 = vmatpush1.bf16.msra.mxu1 %v17399_v48  ;;  %v5562_v40 = vpop.f32.mrb[90].mxu1  ;;  %v15014_v15 = vld [vmem:[%s16971_s5 + $0x8] sm:$0xff]   ;;  %v17405_v54 = vld [vmem:[#allocation70_spill] sm:$0xff] }
 0x3f2   : > { %v5490_v49 = vadd.f32 %v5489_v47, %v14439_v31  ;;  %6603 = vmatprep.subr.bf16.mxu0 %v17400_v51  ;;  %v5491_v7 = vpop.f32.mrb[91].mxu0  ;;  %v5563_v52 = vadd.f32 %v5562_v40, %v14439_v31  ;;  %6676 = vmatprep.subr.bf16.mxu1 %v17401_v46  ;;  %v5564_v3 = vpop.f32.mrb[91].mxu1  ;;  %v7313_v0 = vmax.f32 %v5486_v21, 0.0  ;;  %v7315_v47 = vmax.f32 %v5559_v26, 0.0  ;;  %v17408_v26 = vld [vmem:[#allocation75_spill] sm:$0xff] }
 0x3f3   : > { %v5492_v30 = vadd.f32 %v5491_v7, %v14439_v31  ;;  %v5565_v61 = vadd.f32 %v5564_v3, %v14439_v31  ;;  %v7314_v48 = vmax.f32 %v5488_v1, 0.0  ;;  %v17402_v7 = vld [vmem:[#allocation68_spill] sm:$0xff]  ;;  %v7316_v21 = vmax.f32 %v5561_v38, 0.0  ;;  %v17404_v3 = vld [vmem:[#allocation65_spill] sm:$0xff] }
 0x3f4   : > { %v7377_v58 = vmax.f32 %v5490_v49, 0.0  ;;  %11292 = vmatmul.mubr.msk.bf16.gmra.mrb[196].mxu0 %vm4688_vm1, %v15014_v15  ;;  %v7379_v40 = vmax.f32 %v5563_v52, 0.0  ;;  %11296 = vmatmul.mubr.msk.bf16.gmra.mrb[196].mxu1 %vm4688_vm1, %v15014_v15 }
 0x3f5   : > { %v7378_v51 = vmax.f32 %v5492_v30, 0.0  ;;  %6604 = vmatpush1.bf16.msra.mxu0 %v17402_v7  ;;  %v7380_v46 = vmax.f32 %v5565_v61, 0.0  ;;  %6677 = vmatpush1.bf16.msra.mxu1 %v17404_v3 }
 0x3f6   : > { %v15021_v49 = vpack.c.bf16 %v7377_v58, %v7313_v0  ;;  %6605 = vmatprep.subr.bf16.mxu0 %v17405_v54  ;;  %v15025_v53 = vpack.c.bf16 %v7379_v40, %v7315_v47  ;;  %6678 = vmatprep.subr.bf16.mxu1 %v17408_v26  ;;  %v17410_v47 = vld [vmem:[#allocation72_spill] sm:$0xff] }
 0x3f7   : > { %v15027_v16 = vpack.c.bf16 %v7378_v51, %v7314_v48  ;;  %v5495_v1 = vpop.f32.mrb[92].mxu0  ;;  %6505 = vmatprep.mubr.bf16.mxu0 %v16988_v44  ;;  %v15031_v52 = vpack.c.bf16 %v7380_v46, %v7316_v21  ;;  %v5568_v0 = vpop.f32.mrb[92].mxu1  ;;  %6578 = vmatprep.mubr.bf16.mxu1 %v16988_v44  ;;  %v17411_v51 = vld [vmem:[#allocation69_spill] sm:$0xff]  ;;  %v17412_v46 = vld [vmem:[#allocation74_spill] sm:$0xff] }
 0x3f8   : > { %17403 = vst [vmem:[#allocation64_spill] sm:$0xff] %v15021_v49  ;;  %17406 = vst [vmem:[#allocation61_spill] sm:$0xff] %v15025_v53  ;;  %v5496_v38 = vadd.f32 %v5495_v1, %v14467_v60  ;;  %v5497_v30 = vpop.f32.mrb[93].mxu0  ;;  %v5569_v61 = vadd.f32 %v5568_v0, %v14467_v60  ;;  %v5570_v58 = vpop.f32.mrb[93].mxu1  ;;  %v17413_v1 = vld [vmem:[#allocation79_spill] sm:$0xff] }
 0x3f9   : > { %17407 = vst [vmem:[#allocation66_spill] sm:$0xff] %v15027_v16  ;;  %17409 = vst [vmem:[#allocation71_spill] sm:$0xff] %v15031_v52  ;;  %v5498_v54 = vadd.f32 %v5497_v30, %v14467_v60  ;;  %6606 = vmatpush1.bf16.msra.mxu0 %v17410_v47  ;;  %v5499_v48 = vpop.f32.mrb[94].mxu0  ;;  %v5571_v40 = vadd.f32 %v5570_v58, %v14467_v60  ;;  %6679 = vmatpush1.bf16.msra.mxu1 %v17411_v51  ;;  %v5572_v21 = vpop.f32.mrb[94].mxu1  ;;  %v15049_v58 = vld [vmem:[%s16971_s5 + $0x10] sm:$0xff]  }
 0x3fa   : > { %v5500_v7 = vadd.f32 %v5499_v48, %v14473_v33  ;;  %6745 = vmatprep.subr.bf16.mxu0 %v17412_v46  ;;  %v5501_v3 = vpop.f32.mrb[95].mxu0  ;;  %v5573_v26 = vadd.f32 %v5572_v21, %v14473_v33  ;;  %6818 = vmatprep.subr.bf16.mxu1 %v17413_v1  ;;  %v5574_v30 = vpop.f32.mrb[95].mxu1  ;;  %v7441_v53 = vmax.f32 %v5496_v38, 0.0  ;;  %v7443_v48 = vmax.f32 %v5569_v61, 0.0 }
 0x3fb   : > { %v5502_v0 = vadd.f32 %v5501_v3, %v14473_v33  ;;  %v5575_v49 = vadd.f32 %v5574_v30, %v14473_v33  ;;  %v7442_v51 = vmax.f32 %v5498_v54, 0.0  ;;  %v7444_v38 = vmax.f32 %v5571_v40, 0.0 }
 0x3fc   : > { %v7505_v47 = vmax.f32 %v5500_v7, 0.0  ;;  %11293 = vmatmul.mubr.msk.bf16.gmra.mrb[200].mxu0 %vm4688_vm1, %v15049_v58  ;;  %v7507_v21 = vmax.f32 %v5573_v26, 0.0  ;;  %11297 = vmatmul.mubr.msk.bf16.gmra.mrb[200].mxu1 %vm4688_vm1, %v15049_v58 }
 0x3fd   : > { %v7506_v46 = vmax.f32 %v5502_v0, 0.0  ;;  %6515 = vmatprep.mubr.bf16.mxu0 %v16988_v44  ;;  %v7508_v3 = vmax.f32 %v5575_v49, 0.0  ;;  %6588 = vmatprep.mubr.bf16.mxu1 %v16988_v44 }
 0x3fe   : > { %v15056_v7 = vpack.c.bf16 %v7505_v47, %v7441_v53  ;;  %v15059_v1 = vpack.c.bf16 %v7507_v21, %v7443_v48 }
 0x3ff   : > { %v15061_v30 = vpack.c.bf16 %v7506_v46, %v7442_v51  ;;  %v5611_v52 = vpop.f32.mrb[96].mxu0  ;;  %v15063_v61 = vpack.c.bf16 %v7508_v3, %v7444_v38  ;;  %v5684_v26 = vpop.f32.mrb[96].mxu1 }
 0x400   : > { %17414 = vst [vmem:[#allocation68_spill] sm:$0xff] %v15056_v7  ;;  %17415 = vst [vmem:[#allocation65_spill] sm:$0xff] %v15059_v1  ;;  %v5612_v54 = vadd.f32 %v5611_v52, %v14381_v41  ;;  %v5613_v0 = vpop.f32.mrb[97].mxu0  ;;  %v5685_v16 = vadd.f32 %v5684_v26, %v14381_v41  ;;  %v5686_v53 = vpop.f32.mrb[97].mxu1  ;;  %v15076_v26 = vld [vmem:[%s16971_s5 + $0x18] sm:$0xff]  }
 0x401   : > { %17416 = vst [vmem:[#allocation70_spill] sm:$0xff] %v15061_v30  ;;  %17417 = vst [vmem:[#allocation75_spill] sm:$0xff] %v15063_v61  ;;  %v5614_v40 = vadd.f32 %v5613_v0, %v14381_v41  ;;  %v5615_v47 = vpop.f32.mrb[98].mxu0  ;;  %v5687_v49 = vadd.f32 %v5686_v53, %v14381_v41  ;;  %v5688_v21 = vpop.f32.mrb[98].mxu1 }
 0x402   : > { %v5616_v48 = vadd.f32 %v5615_v47, %v14386_v35  ;;  %v5617_v51 = vpop.f32.mrb[99].mxu0  ;;  %v5689_v46 = vadd.f32 %v5688_v21, %v14386_v35  ;;  %v5690_v3 = vpop.f32.mrb[99].mxu1  ;;  %v7061_v52 = vmax.f32 %v5612_v54, 0.0  ;;  %v7063_v0 = vmax.f32 %v5685_v16, 0.0 }
 0x403   : > { %v5618_v38 = vadd.f32 %v5617_v51, %v14386_v35  ;;  %v5691_v7 = vadd.f32 %v5690_v3, %v14386_v35  ;;  %v7062_v53 = vmax.f32 %v5614_v40, 0.0  ;;  %v7064_v54 = vmax.f32 %v5687_v49, 0.0 }
 0x404   : > { %v7125_v1 = vmax.f32 %v5616_v48, 0.0  ;;  %11294 = vmatmul.mubr.msk.bf16.gmra.mrb[204].mxu0 %vm4688_vm1, %v15076_v26  ;;  %v7127_v47 = vmax.f32 %v5689_v46, 0.0  ;;  %11298 = vmatmul.mubr.msk.bf16.gmra.mrb[204].mxu1 %vm4688_vm1, %v15076_v26 }
 0x405   : > { %v7126_v61 = vmax.f32 %v5618_v38, 0.0  ;;  %6631 = vmatprep.mubr.bf16.mxu0 %v16988_v44  ;;  %v7128_v21 = vmax.f32 %v5691_v7, 0.0  ;;  %6704 = vmatprep.mubr.bf16.mxu1 %v16988_v44 }
 0x406   : > { %v15083_v48 = vpack.c.bf16 %v7125_v1, %v7061_v52  ;;  %v15086_v51 = vpack.c.bf16 %v7127_v47, %v7063_v0 }
 0x407   : > { %v15088_v3 = vpack.c.bf16 %v7126_v61, %v7062_v53  ;;  %v5621_v30 = vpop.f32.mrb[100].mxu0  ;;  %v15090_v16 = vpack.c.bf16 %v7128_v21, %v7064_v54  ;;  %v5694_v46 = vpop.f32.mrb[100].mxu1 }
 0x408   : > { %17418 = vst [vmem:[#allocation72_spill] sm:$0xff] %v15083_v48  ;;  %17419 = vst [vmem:[#allocation69_spill] sm:$0xff] %v15086_v51  ;;  %v5622_v40 = vadd.f32 %v5621_v30, %v14407_v32  ;;  %v5623_v38 = vpop.f32.mrb[101].mxu0  ;;  %v5695_v12 = vadd.f32 %v5694_v46, %v14407_v32  ;;  %v5696_v1 = vpop.f32.mrb[101].mxu1 }
 0x409   : > { %17420 = vst [vmem:[#allocation74_spill] sm:$0xff] %v15088_v3  ;;  %17421 = vst [vmem:[#allocation79_spill] sm:$0xff] %v15090_v16  ;;  %v5624_v49 = vadd.f32 %v5623_v38, %v14407_v32  ;;  %v5625_v52 = vpop.f32.mrb[102].mxu0  ;;  %v5697_v7 = vadd.f32 %v5696_v1, %v14407_v32  ;;  %v5698_v47 = vpop.f32.mrb[102].mxu1 }
 0x40a   : > { %v5626_v0 = vadd.f32 %v5625_v52, %v14412_v29  ;;  %v5627_v61 = vpop.f32.mrb[103].mxu0  ;;  %v5699_v53 = vadd.f32 %v5698_v47, %v14412_v29  ;;  %v5700_v21 = vpop.f32.mrb[103].mxu1  ;;  %v7189_v30 = vmax.f32 %v5622_v40, 0.0  ;;  %v7191_v46 = vmax.f32 %v5695_v12, 0.0  ;;  %v17422_v52 = vld [vmem:[#allocation76_spill] sm:$0xff]  ;;  %v17424_v40 = vld [vmem:[#allocation73_spill] sm:$0xff] }
 0x40b   : > { %v5628_v54 = vadd.f32 %v5627_v61, %v14412_v29  ;;  %v5701_v48 = vadd.f32 %v5700_v21, %v14412_v29  ;;  %v7190_v38 = vmax.f32 %v5624_v49, 0.0  ;;  %v7192_v47 = vmax.f32 %v5697_v7, 0.0  ;;  %v17427_v12 = vld [vmem:[#allocation83_spill] sm:$0xff] }
 0x40c   : > { %v7253_v51 = vmax.f32 %v5626_v0, 0.0  ;;  %11299 = vmatmul.mubr.msk.bf16.vlgmr.msra.gmra.mrb[208].mxu0 %vm4688_vm1, %v14979_v39  ;;  %v7255_v16 = vmax.f32 %v5699_v53, 0.0  ;;  %11303 = vmatmul.mubr.msk.bf16.vlgmr.msra.gmra.mrb[208].mxu1 %vm4688_vm1, %v14979_v39  ;;  %v17425_v0 = vld [vmem:[#allocation78_spill] sm:$0xff] }
 0x40d   : > { %v7254_v1 = vmax.f32 %v5628_v54, 0.0  ;;  %6746 = vmatpush1.bf16.msra.mxu0 %v17422_v52  ;;  %v7256_v61 = vmax.f32 %v5701_v48, 0.0  ;;  %6819 = vmatpush1.bf16.msra.mxu1 %v17424_v40  ;;  %v17429_v52 = vld [vmem:[#allocation77_spill] sm:$0xff] }
 0x40e   : > { %v15105_v3 = vpack.c.bf16 %v7253_v51, %v7189_v30  ;;  %6747 = vmatprep.subr.bf16.mxu0 %v17425_v0  ;;  %v15109_v21 = vpack.c.bf16 %v7255_v16, %v7191_v46  ;;  %6820 = vmatprep.subr.bf16.mxu1 %v17427_v12  ;;  %v17428_v46 = vld [vmem:[#allocation80_spill] sm:$0xff]  ;;  %v17430_v12 = vld [vmem:[#allocation86_spill] sm:$0xff] }
 0x40f   : > { %v15111_v23 = vpack.c.bf16 %v7254_v1, %v7190_v38  ;;  %v5631_v49 = vpop.f32.mrb[104].mxu0  ;;  %6641 = vmatprep.mubr.bf16.mxu0 %v16988_v44  ;;  %v15115_v53 = vpack.c.bf16 %v7256_v61, %v7192_v47  ;;  %v5704_v51 = vpop.f32.mrb[104].mxu1  ;;  %6714 = vmatprep.mubr.bf16.mxu1 %v16988_v44 }
 0x410   : > { %17423 = vst [vmem:[#allocation76_spill] sm:$0xff] %v15105_v3  ;;  %17426 = vst [vmem:[#allocation73_spill] sm:$0xff] %v15109_v21  ;;  %v5632_v7 = vadd.f32 %v5631_v49, %v14433_v27  ;;  %v5633_v54 = vpop.f32.mrb[105].mxu0  ;;  %v5705_v48 = vadd.f32 %v5704_v51, %v14433_v27  ;;  %v5706_v30 = vpop.f32.mrb[105].mxu1 }
 0x411   : > { %v5634_v16 = vadd.f32 %v5633_v54, %v14433_v27  ;;  %6748 = vmatpush1.bf16.msra.mxu0 %v17428_v46  ;;  %v5635_v38 = vpop.f32.mrb[106].mxu0  ;;  %v5707_v1 = vadd.f32 %v5706_v30, %v14433_v27  ;;  %6821 = vmatpush1.bf16.msra.mxu1 %v17429_v52  ;;  %v5708_v61 = vpop.f32.mrb[106].mxu1 }
 0x412   : > { %v5636_v47 = vadd.f32 %v5635_v38, %v14439_v31  ;;  %6749 = vmatprep.subr.bf16.mxu0 %v14255_v50  ;;  %v5637_v40 = vpop.f32.mrb[107].mxu0  ;;  %v5709_v0 = vadd.f32 %v5708_v61, %v14439_v31  ;;  %6822 = vmatprep.subr.bf16.mxu1 %v17430_v12  ;;  %v5710_v51 = vpop.f32.mrb[107].mxu1  ;;  %v7317_v54 = vmax.f32 %v5632_v7, 0.0  ;;  %v7319_v30 = vmax.f32 %v5705_v48, 0.0  ;;  %v17431_v50 = vld [vmem:[#allocation81_spill] sm:$0xff]  ;;  %v17432_v7 = vld [vmem:[#allocation82_spill] sm:$0xff] }
 0x413   : > { %v5638_v49 = vadd.f32 %v5637_v40, %v14439_v31  ;;  %v5711_v21 = vadd.f32 %v5710_v51, %v14439_v31  ;;  %v7318_v38 = vmax.f32 %v5634_v16, 0.0  ;;  %v7320_v61 = vmax.f32 %v5707_v1, 0.0  ;;  %v17434_v48 = vld [vmem:[#allocation85_spill] sm:$0xff] }
 0x414   : > { %v7381_v46 = vmax.f32 %v5636_v47, 0.0  ;;  %11300 = vmatmul.mubr.msk.bf16.gmra.mrb[212].mxu0 %vm4688_vm1, %v15014_v15  ;;  %v7383_v52 = vmax.f32 %v5709_v0, 0.0  ;;  %11304 = vmatmul.mubr.msk.bf16.gmra.mrb[212].mxu1 %vm4688_vm1, %v15014_v15 }
 0x415   : > { %v7382_v3 = vmax.f32 %v5638_v49, 0.0  ;;  %6750 = vmatpush1.bf16.msra.mxu0 %v17431_v50  ;;  %v7384_v40 = vmax.f32 %v5711_v21, 0.0  ;;  %6823 = vmatpush1.bf16.msra.mxu1 %v17432_v7 }
 0x416   : > { %v15135_v12 = vpack.c.bf16 %v7381_v46, %v7317_v54  ;;  %6751 = vmatprep.subr.bf16.mxu0 %v14282_v22  ;;  %v15139_v47 = vpack.c.bf16 %v7383_v52, %v7319_v30  ;;  %6824 = vmatprep.subr.bf16.mxu1 %v17434_v48  ;;  %v17436_v52 = vld [vmem:[#allocation84_spill] sm:$0xff] }
 0x417   : > { %v15141_v51 = vpack.c.bf16 %v7382_v3, %v7318_v38  ;;  %v5641_v16 = vpop.f32.mrb[108].mxu0  ;;  %6651 = vmatprep.mubr.bf16.mxu0 %v16988_v44  ;;  %v15145_v0 = vpack.c.bf16 %v7384_v40, %v7320_v61  ;;  %v5714_v49 = vpop.f32.mrb[108].mxu1  ;;  %6724 = vmatprep.mubr.bf16.mxu1 %v16988_v44  ;;  %v17435_v3 = vld [vmem:[#allocation87_spill] sm:$0xff] }
 0x418   : > { %17433 = vst [vmem:[#allocation78_spill] sm:$0xff] %v15139_v47  ;;  %v5642_v1 = vadd.f32 %v5641_v16, %v14467_v60  ;;  %v5643_v54 = vpop.f32.mrb[109].mxu0  ;;  %v5715_v21 = vadd.f32 %v5714_v49, %v14467_v60  ;;  %v5716_v46 = vpop.f32.mrb[109].mxu1 }
 0x419   : > { %v5644_v22 = vadd.f32 %v5643_v54, %v14467_v60  ;;  %6752 = vmatpush1.bf16.msra.mxu0 %v17435_v3  ;;  %v5645_v30 = vpop.f32.mrb[110].mxu0  ;;  %v5717_v38 = vadd.f32 %v5716_v46, %v14467_v60  ;;  %6825 = vmatpush1.bf16.msra.mxu1 %v17436_v52  ;;  %v5718_v61 = vpop.f32.mrb[110].mxu1 }
 0x41a   : > { %v5646_v50 = vadd.f32 %v5645_v30, %v14473_v33  ;;  %6891 = vmatprep.subr.bf16.mxu0 %v14304_v9  ;;  %v5647_v40 = vpop.f32.mrb[111].mxu0  ;;  %v5719_v7 = vadd.f32 %v5718_v61, %v14473_v33  ;;  %6964 = vmatprep.subr.bf16.mxu1 %v14307_v24  ;;  %v5720_v16 = vpop.f32.mrb[111].mxu1  ;;  %v7445_v49 = vmax.f32 %v5642_v1, 0.0  ;;  %v7447_v46 = vmax.f32 %v5715_v21, 0.0 }
 0x41b   : > { %v5648_v48 = vadd.f32 %v5647_v40, %v14473_v33  ;;  %v5721_v3 = vadd.f32 %v5720_v16, %v14473_v33  ;;  %v7446_v30 = vmax.f32 %v5644_v22, 0.0  ;;  %v7448_v9 = vmax.f32 %v5717_v38, 0.0 }
 0x41c   : > { %v7509_v54 = vmax.f32 %v5646_v50, 0.0  ;;  %11301 = vmatmul.mubr.msk.bf16.gmra.mrb[216].mxu0 %vm4688_vm1, %v15049_v58  ;;  %v7511_v52 = vmax.f32 %v5719_v7, 0.0  ;;  %11305 = vmatmul.mubr.msk.bf16.gmra.mrb[216].mxu1 %vm4688_vm1, %v15049_v58 }
 0x41d   : > { %v7510_v47 = vmax.f32 %v5648_v48, 0.0  ;;  %6661 = vmatprep.mubr.bf16.mxu0 %v16988_v44  ;;  %v7512_v61 = vmax.f32 %v5721_v3, 0.0  ;;  %6734 = vmatprep.mubr.bf16.mxu1 %v16988_v44 }
 0x41e   : > { %v15165_v24 = vpack.c.bf16 %v7509_v54, %v7445_v49  ;;  %v15168_v1 = vpack.c.bf16 %v7511_v52, %v7447_v46 }
 0x41f   : > { %v15170_v50 = vpack.c.bf16 %v7510_v47, %v7446_v30  ;;  %v5757_v40 = vpop.f32.mrb[112].mxu0  ;;  %v15172_v21 = vpack.c.bf16 %v7512_v61, %v7448_v9  ;;  %v5830_v7 = vpop.f32.mrb[112].mxu1 }
 0x420   : > { %17437 = vst [vmem:[#allocation83_spill] sm:$0xff] %v15165_v24  ;;  %17438 = vst [vmem:[#allocation80_spill] sm:$0xff] %v15168_v1  ;;  %v5758_v22 = vadd.f32 %v5757_v40, %v14381_v41  ;;  %v5759_v48 = vpop.f32.mrb[113].mxu0  ;;  %v5831_v16 = vadd.f32 %v5830_v7, %v14381_v41  ;;  %v5832_v49 = vpop.f32.mrb[113].mxu1 }
 0x421   : > { %17439 = vst [vmem:[#allocation77_spill] sm:$0xff] %v15170_v50  ;;  %17440 = vst [vmem:[#allocation86_spill] sm:$0xff] %v15172_v21  ;;  %v5760_v38 = vadd.f32 %v5759_v48, %v14381_v41  ;;  %v5761_v54 = vpop.f32.mrb[114].mxu0  ;;  %v5833_v3 = vadd.f32 %v5832_v49, %v14381_v41  ;;  %v5834_v52 = vpop.f32.mrb[114].mxu1 }
 0x422   : > { %v5762_v46 = vadd.f32 %v5761_v54, %v14386_v35  ;;  %v5763_v47 = vpop.f32.mrb[115].mxu0  ;;  %v5835_v30 = vadd.f32 %v5834_v52, %v14386_v35  ;;  %v5836_v61 = vpop.f32.mrb[115].mxu1  ;;  %v7065_v40 = vmax.f32 %v5758_v22, 0.0  ;;  %v7067_v7 = vmax.f32 %v5831_v16, 0.0 }
 0x423   : > { %v5764_v9 = vadd.f32 %v5763_v47, %v14386_v35  ;;  %v5837_v24 = vadd.f32 %v5836_v61, %v14386_v35  ;;  %v7066_v48 = vmax.f32 %v5760_v38, 0.0  ;;  %v7068_v54 = vmax.f32 %v5833_v3, 0.0 }
 0x424   : > { %v7129_v1 = vmax.f32 %v5762_v46, 0.0  ;;  %11302 = vmatmul.mubr.msk.bf16.gmra.mrb[220].mxu0 %vm4688_vm1, %v15076_v26  ;;  %v7131_v21 = vmax.f32 %v5835_v30, 0.0  ;;  %11306 = vmatmul.mubr.msk.bf16.gmra.mrb[220].mxu1 %vm4688_vm1, %v15076_v26 }
 0x425   : > { %v7130_v49 = vmax.f32 %v5764_v9, 0.0  ;;  %6777 = vmatprep.mubr.bf16.mxu0 %v16988_v44  ;;  %v7132_v47 = vmax.f32 %v5837_v24, 0.0  ;;  %6850 = vmatprep.mubr.bf16.mxu1 %v16988_v44 }
 0x426   : > { %v15187_v52 = vpack.c.bf16 %v7129_v1, %v7065_v40  ;;  %v15190_v22 = vpack.c.bf16 %v7131_v21, %v7067_v7 }
 0x427   : > { %v15192_v46 = vpack.c.bf16 %v7130_v49, %v7066_v48  ;;  %v5767_v61 = vpop.f32.mrb[116].mxu0  ;;  %v15194_v16 = vpack.c.bf16 %v7132_v47, %v7068_v54  ;;  %v5840_v30 = vpop.f32.mrb[116].mxu1 }
 0x428   : > { %17441 = vst [vmem:[#allocation81_spill] sm:$0xff] %v15187_v52  ;;  %17442 = vst [vmem:[#allocation82_spill] sm:$0xff] %v15190_v22  ;;  %v5768_v38 = vadd.f32 %v5767_v61, %v14407_v32  ;;  %v5769_v9 = vpop.f32.mrb[117].mxu0  ;;  %v5841_v50 = vadd.f32 %v5840_v30, %v14407_v32  ;;  %v5842_v1 = vpop.f32.mrb[117].mxu1 }
 0x429   : > { %17443 = vst [vmem:[#allocation85_spill] sm:$0xff] %v15192_v46  ;;  %17444 = vst [vmem:[#allocation87_spill] sm:$0xff] %v15194_v16  ;;  %v5770_v3 = vadd.f32 %v5769_v9, %v14407_v32  ;;  %v5771_v40 = vpop.f32.mrb[118].mxu0  ;;  %v5843_v24 = vadd.f32 %v5842_v1, %v14407_v32  ;;  %v5844_v7 = vpop.f32.mrb[118].mxu1 }
 0x42a   : > { %v5772_v21 = vadd.f32 %v5771_v40, %v14412_v29  ;;  %v5773_v48 = vpop.f32.mrb[119].mxu0  ;;  %v5845_v49 = vadd.f32 %v5844_v7, %v14412_v29  ;;  %v5846_v47 = vpop.f32.mrb[119].mxu1  ;;  %v7193_v61 = vmax.f32 %v5768_v38, 0.0  ;;  %v7195_v30 = vmax.f32 %v5841_v50, 0.0  ;;  %v17445_v40 = vld [vmem:[#allocation90_spill] sm:$0xff]  ;;  %v17446_v38 = vld [vmem:[#allocation91_spill] sm:$0xff] }
 0x42b   : > { %v5774_v54 = vadd.f32 %v5773_v48, %v14412_v29  ;;  %v5847_v52 = vadd.f32 %v5846_v47, %v14412_v29  ;;  %v7194_v9 = vmax.f32 %v5770_v3, 0.0  ;;  %v7196_v7 = vmax.f32 %v5843_v24, 0.0 }
 0x42c   : > { %v7257_v22 = vmax.f32 %v5772_v21, 0.0  ;;  %11307 = vmatmul.mubr.msk.bf16.vlgmr.msra.gmra.mrb[224].mxu0 %vm4688_vm1, %v14979_v39  ;;  %v7259_v16 = vmax.f32 %v5845_v49, 0.0  ;;  %11311 = vmatmul.mubr.msk.bf16.vlgmr.msra.gmra.mrb[224].mxu1 %vm4688_vm1, %v14979_v39 }
 0x42d   : > { %v7258_v1 = vmax.f32 %v5774_v54, 0.0  ;;  %6892 = vmatpush1.bf16.msra.mxu0 %v17445_v40  ;;  %v7260_v48 = vmax.f32 %v5847_v52, 0.0  ;;  %6965 = vmatpush1.bf16.msra.mxu1 %v17446_v38 }
 0x42e   : > { %v15209_v46 = vpack.c.bf16 %v7257_v22, %v7193_v61  ;;  %6893 = vmatprep.subr.bf16.mxu0 %v14329_v25  ;;  %v15213_v21 = vpack.c.bf16 %v7259_v16, %v7195_v30  ;;  %6966 = vmatprep.subr.bf16.mxu1 %v14333_v37 }
 0x42f   : > { %v15215_v47 = vpack.c.bf16 %v7258_v1, %v7194_v9  ;;  %v5777_v50 = vpop.f32.mrb[120].mxu0  ;;  %6787 = vmatprep.mubr.bf16.mxu0 %v16988_v44  ;;  %v15219_v3 = vpack.c.bf16 %v7260_v48, %v7196_v7  ;;  %v5850_v22 = vpop.f32.mrb[120].mxu1  ;;  %6860 = vmatprep.mubr.bf16.mxu1 %v16988_v44 }
 0x430   : > { %v5778_v24 = vadd.f32 %v5777_v50, %v14433_v27  ;;  %v5779_v49 = vpop.f32.mrb[121].mxu0  ;;  %v5851_v52 = vadd.f32 %v5850_v22, %v14433_v27  ;;  %v5852_v16 = vpop.f32.mrb[121].mxu1 }
 0x431   : > { %v5780_v25 = vadd.f32 %v5779_v49, %v14433_v27  ;;  %6894 = vmatpush1.bf16.msra.mxu0 %v14321_v13  ;;  %v5781_v54 = vpop.f32.mrb[122].mxu0  ;;  %v5853_v37 = vadd.f32 %v5852_v16, %v14433_v27  ;;  %6967 = vmatpush1.bf16.msra.mxu1 %v14325_v2  ;;  %v5854_v30 = vpop.f32.mrb[122].mxu1 }
 0x432   : > { %v5782_v61 = vadd.f32 %v5781_v54, %v14439_v31  ;;  %6895 = vmatprep.subr.bf16.mxu0 %v14359_v62  ;;  %v5783_v9 = vpop.f32.mrb[123].mxu0  ;;  %v5855_v1 = vadd.f32 %v5854_v30, %v14439_v31  ;;  %6968 = vmatprep.subr.bf16.mxu1 %v14363_v18  ;;  %v5856_v7 = vpop.f32.mrb[123].mxu1  ;;  %v7321_v48 = vmax.f32 %v5778_v24, 0.0  ;;  %v7323_v2 = vmax.f32 %v5851_v52, 0.0 }
 0x433   : > { %v5784_v40 = vadd.f32 %v5783_v9, %v14439_v31  ;;  %v5857_v38 = vadd.f32 %v5856_v7, %v14439_v31  ;;  %v7322_v50 = vmax.f32 %v5780_v25, 0.0  ;;  %v7324_v62 = vmax.f32 %v5853_v37, 0.0  ;;  %v17447_v7 = vld [vmem:[#allocation94_spill] sm:$0xff] }
 0x434   : > { %v7385_v13 = vmax.f32 %v5782_v61, 0.0  ;;  %11308 = vmatmul.mubr.msk.bf16.gmra.mrb[228].mxu0 %vm4688_vm1, %v15014_v15  ;;  %v7387_v22 = vmax.f32 %v5855_v1, 0.0  ;;  %11312 = vmatmul.mubr.msk.bf16.gmra.mrb[228].mxu1 %vm4688_vm1, %v15014_v15 }
 0x435   : > { %v7386_v49 = vmax.f32 %v5784_v40, 0.0  ;;  %6896 = vmatpush1.bf16.msra.mxu0 %v14351_v43  ;;  %v7388_v16 = vmax.f32 %v5857_v38, 0.0  ;;  %6969 = vmatpush1.bf16.msra.mxu1 %v14355_v56  ;;  %v17448_v38 = vld [vmem:[#allocation95_spill] sm:$0xff] }
 0x436   : > { %v15239_v18 = vpack.c.bf16 %v7385_v13, %v7321_v48  ;;  %6897 = vmatprep.subr.bf16.mxu0 %v14390_v59  ;;  %v15243_v24 = vpack.c.bf16 %v7387_v22, %v7323_v2  ;;  %6970 = vmatprep.subr.bf16.mxu1 %v14393_v11 }
 0x437   : > { %v15245_v54 = vpack.c.bf16 %v7386_v49, %v7322_v50  ;;  %v5787_v52 = vpop.f32.mrb[124].mxu0  ;;  %6797 = vmatprep.mubr.bf16.mxu0 %v16988_v44  ;;  %v15249_v25 = vpack.c.bf16 %v7388_v16, %v7324_v62  ;;  %v5860_v37 = vpop.f32.mrb[124].mxu1  ;;  %6870 = vmatprep.mubr.bf16.mxu1 %v16988_v44 }
 0x438   : > { %v5788_v43 = vadd.f32 %v5787_v52, %v14467_v60  ;;  %v5789_v61 = vpop.f32.mrb[125].mxu0  ;;  %v5861_v56 = vadd.f32 %v5860_v37, %v14467_v60  ;;  %v5862_v30 = vpop.f32.mrb[125].mxu1 }
 0x439   : > { %v5790_v59 = vadd.f32 %v5789_v61, %v14467_v60  ;;  %6898 = vmatpush1.bf16.msra.mxu0 %v14383_v10  ;;  %v5791_v9 = vpop.f32.mrb[126].mxu0  ;;  %v5863_v11 = vadd.f32 %v5862_v30, %v14467_v60  ;;  %6971 = vmatpush1.bf16.msra.mxu1 %v14388_v34  ;;  %v5864_v40 = vpop.f32.mrb[126].mxu1 }
 0x43a   : > { %v5792_v1 = vadd.f32 %v5791_v9, %v14473_v33  ;;  %7815 = vmatprep.subr.bf16.mxu0 %v17447_v7  ;;  %v5793_v48 = vpop.f32.mrb[127].mxu0  ;;  %v5865_v13 = vadd.f32 %v5864_v40, %v14473_v33  ;;  %7856 = vmatprep.subr.bf16.mxu1 %v17448_v38  ;;  %v5866_v50 = vpop.f32.mrb[127].mxu1  ;;  %v7449_v22 = vmax.f32 %v5788_v43, 0.0  ;;  %v7451_v34 = vmax.f32 %v5861_v56, 0.0 }
 0x43b   : > { %v5794_v2 = vadd.f32 %v5793_v48, %v14473_v33  ;;  %v5867_v49 = vadd.f32 %v5866_v50, %v14473_v33  ;;  %v7450_v62 = vmax.f32 %v5790_v59, 0.0  ;;  %v7452_v37 = vmax.f32 %v5863_v11, 0.0 }
 0x43c   : > { %v7513_v10 = vmax.f32 %v5792_v1, 0.0  ;;  %11309 = vmatmul.mubr.msk.bf16.gmra.mrb[232].mxu0 %vm4688_vm1, %v15049_v58  ;;  %v7515_v16 = vmax.f32 %v5865_v13, 0.0  ;;  %11313 = vmatmul.mubr.msk.bf16.gmra.mrb[232].mxu1 %vm4688_vm1, %v15049_v58 }
 0x43d   : > { %v7514_v52 = vmax.f32 %v5794_v2, 0.0  ;;  %6807 = vmatprep.mubr.bf16.mxu0 %v16988_v44  ;;  %v7516_v30 = vmax.f32 %v5867_v49, 0.0  ;;  %6880 = vmatprep.mubr.bf16.mxu1 %v16988_v44 }
 0x43e   : > { %v15269_v61 = vpack.c.bf16 %v7513_v10, %v7449_v22  ;;  %v15272_v43 = vpack.c.bf16 %v7515_v16, %v7451_v34 }
 0x43f   : > { %v15274_v9 = vpack.c.bf16 %v7514_v52, %v7450_v62  ;;  %v5903_v1 = vpop.f32.mrb[128].mxu0  ;;  %v15276_v56 = vpack.c.bf16 %v7516_v30, %v7452_v37  ;;  %v5976_v40 = vpop.f32.mrb[128].mxu1 }
 0x440   : > { %v5904_v59 = vadd.f32 %v5903_v1, %v14381_v41  ;;  %v5905_v7 = vpop.f32.mrb[129].mxu0  ;;  %v5977_v48 = vadd.f32 %v5976_v40, %v14381_v41  ;;  %v5978_v13 = vpop.f32.mrb[129].mxu1 }
 0x441   : > { %v5906_v11 = vadd.f32 %v5905_v7, %v14381_v41  ;;  %v5907_v38 = vpop.f32.mrb[130].mxu0  ;;  %v5979_v2 = vadd.f32 %v5978_v13, %v14381_v41  ;;  %v5980_v22 = vpop.f32.mrb[130].mxu1 }
 0x442   : > { %v5908_v50 = vadd.f32 %v5907_v38, %v14386_v35  ;;  %v5909_v10 = vpop.f32.mrb[131].mxu0  ;;  %v5981_v49 = vadd.f32 %v5980_v22, %v14386_v35  ;;  %v5982_v62 = vpop.f32.mrb[131].mxu1  ;;  %v7069_v16 = vmax.f32 %v5904_v59, 0.0  ;;  %v7071_v30 = vmax.f32 %v5977_v48, 0.0 }
 0x443   : > { %v5910_v34 = vadd.f32 %v5909_v10, %v14386_v35  ;;  %v5983_v37 = vadd.f32 %v5982_v62, %v14386_v35  ;;  %v7070_v1 = vmax.f32 %v5906_v11, 0.0  ;;  %v7072_v13 = vmax.f32 %v5979_v2, 0.0 }
 0x444   : > { %v7133_v52 = vmax.f32 %v5908_v50, 0.0  ;;  %11310 = vmatmul.mubr.msk.bf16.gmra.mrb[236].mxu0 %vm4688_vm1, %v15076_v26  ;;  %v7135_v40 = vmax.f32 %v5981_v49, 0.0  ;;  %11314 = vmatmul.mubr.msk.bf16.gmra.mrb[236].mxu1 %vm4688_vm1, %v15076_v26 }
 0x445   : > { %v7134_v7 = vmax.f32 %v5910_v34, 0.0  ;;  %6923 = vmatprep.mubr.bf16.mxu0 %v16988_v44  ;;  %v7136_v22 = vmax.f32 %v5983_v37, 0.0  ;;  %6996 = vmatprep.mubr.bf16.mxu1 %v16988_v44 }
 0x446   : > { %v15291_v38 = vpack.c.bf16 %v7133_v52, %v7069_v16  ;;  %v15294_v59 = vpack.c.bf16 %v7135_v40, %v7071_v30 }
 0x447   : > { %v15296_v50 = vpack.c.bf16 %v7134_v7, %v7070_v1  ;;  %v5913_v10 = vpop.f32.mrb[132].mxu0  ;;  %v15298_v48 = vpack.c.bf16 %v7136_v22, %v7072_v13  ;;  %v5986_v49 = vpop.f32.mrb[132].mxu1 }
 0x448   : > { %17449 = vst [vmem:[#allocation84_spill] sm:$0xff] %v15291_v38  ;;  %17450 = vst [vmem:[#allocation90_spill] sm:$0xff] %v15294_v59  ;;  %v5914_v11 = vadd.f32 %v5913_v10, %v14407_v32  ;;  %v5915_v34 = vpop.f32.mrb[133].mxu0  ;;  %v5987_v62 = vadd.f32 %v5986_v49, %v14407_v32  ;;  %v5988_v16 = vpop.f32.mrb[133].mxu1 }
 0x449   : > { %17451 = vst [vmem:[#allocation91_spill] sm:$0xff] %v15296_v50  ;;  %17452 = vst [vmem:[#allocation94_spill] sm:$0xff] %v15298_v48  ;;  %v5916_v2 = vadd.f32 %v5915_v34, %v14407_v32  ;;  %v5917_v52 = vpop.f32.mrb[134].mxu0  ;;  %v5989_v37 = vadd.f32 %v5988_v16, %v14407_v32  ;;  %v5990_v40 = vpop.f32.mrb[134].mxu1 }
 0x44a   : > { %v5918_v30 = vadd.f32 %v5917_v52, %v14412_v29  ;;  %v5919_v1 = vpop.f32.mrb[135].mxu0  ;;  %v5991_v7 = vadd.f32 %v5990_v40, %v14412_v29  ;;  %v5992_v22 = vpop.f32.mrb[135].mxu1  ;;  %v7197_v10 = vmax.f32 %v5914_v11, 0.0  ;;  %v7199_v49 = vmax.f32 %v5987_v62, 0.0  ;;  %v17453_v52 = vld [vmem:[#allocation88_spill] sm:$0xff]  ;;  %v17454_v11 = vld [vmem:[#allocation89_spill] sm:$0xff] }
 0x44b   : > { %v5920_v13 = vadd.f32 %v5919_v1, %v14412_v29  ;;  %v5993_v38 = vadd.f32 %v5992_v22, %v14412_v29  ;;  %v7198_v34 = vmax.f32 %v5916_v2, 0.0  ;;  %v7200_v40 = vmax.f32 %v5989_v37, 0.0 }
 0x44c   : > { %v7261_v59 = vmax.f32 %v5918_v30, 0.0  ;;  %11315 = vmatmul.mubr.msk.bf16.vlgmr.msra.gmra.mrb[240].mxu0 %vm4688_vm1, %v14979_v39  ;;  %v7263_v48 = vmax.f32 %v5991_v7, 0.0  ;;  %11319 = vmatmul.mubr.msk.bf16.vlgmr.msra.gmra.mrb[240].mxu1 %vm4688_vm1, %v14979_v39 }
 0x44d   : > { %v7262_v16 = vmax.f32 %v5920_v13, 0.0  ;;  %7816 = vmatpush1.bf16.msra.mxu0 %v17453_v52  ;;  %v7264_v1 = vmax.f32 %v5993_v38, 0.0  ;;  %7857 = vmatpush1.bf16.msra.mxu1 %v17454_v11 }
 0x44e   : > { %v15313_v50 = vpack.c.bf16 %v7261_v59, %v7197_v10  ;;  %7817 = vmatprep.subr.bf16.mxu0 %v14445_v45  ;;  %v15317_v30 = vpack.c.bf16 %v7263_v48, %v7199_v49  ;;  %7858 = vmatprep.subr.bf16.mxu1 %v14449_v36 }
 0x44f   : > { %v15319_v22 = vpack.c.bf16 %v7262_v16, %v7198_v34  ;;  %v5923_v62 = vpop.f32.mrb[136].mxu0  ;;  %6933 = vmatprep.mubr.bf16.mxu0 %v16988_v44  ;;  %v15323_v39 = vpack.c.bf16 %v7264_v1, %v7200_v40  ;;  %v5996_v59 = vpop.f32.mrb[136].mxu1  ;;  %7006 = vmatprep.mubr.bf16.mxu1 %v16988_v44 }
 0x450   : > { %v5924_v2 = vadd.f32 %v5923_v62, %v14433_v27  ;;  %v5925_v37 = vpop.f32.mrb[137].mxu0  ;;  %v5997_v38 = vadd.f32 %v5996_v59, %v14433_v27  ;;  %v5998_v48 = vpop.f32.mrb[137].mxu1 }
 0x451   : > { %v5926_v45 = vadd.f32 %v5925_v37, %v14433_v27  ;;  %7818 = vmatpush1.bf16.msra.mxu0 %v14435_v28  ;;  %v5927_v7 = vpop.f32.mrb[138].mxu0  ;;  %v5999_v36 = vadd.f32 %v5998_v48, %v14433_v27  ;;  %7859 = vmatpush1.bf16.msra.mxu1 %v14441_v57  ;;  %v6000_v10 = vpop.f32.mrb[138].mxu1 }
 0x452   : > { %v5928_v13 = vadd.f32 %v5927_v7, %v14439_v31  ;;  %7819 = vmatprep.subr.bf16.mxu0 %v14479_v20  ;;  %v5929_v49 = vpop.f32.mrb[139].mxu0  ;;  %v6001_v34 = vadd.f32 %v6000_v10, %v14439_v31  ;;  %7860 = vmatprep.subr.bf16.mxu1 %v14483_v55  ;;  %v6002_v52 = vpop.f32.mrb[139].mxu1  ;;  %v7325_v40 = vmax.f32 %v5924_v2, 0.0  ;;  %v7327_v57 = vmax.f32 %v5997_v38, 0.0 }
 0x453   : > { %v5930_v16 = vadd.f32 %v5929_v49, %v14439_v31  ;;  %v6003_v1 = vadd.f32 %v6002_v52, %v14439_v31  ;;  %v7326_v11 = vmax.f32 %v5926_v45, 0.0  ;;  %v7328_v20 = vmax.f32 %v5999_v36, 0.0 }
 0x454   : > { %v7389_v28 = vmax.f32 %v5928_v13, 0.0  ;;  %11316 = vmatmul.mubr.msk.bf16.gmra.mrb[244].mxu0 %vm4688_vm1, %v15014_v15  ;;  %v7391_v62 = vmax.f32 %v6001_v34, 0.0  ;;  %11320 = vmatmul.mubr.msk.bf16.gmra.mrb[244].mxu1 %vm4688_vm1, %v15014_v15 }
 0x455   : > { %v7390_v59 = vmax.f32 %v5930_v16, 0.0  ;;  %7820 = vmatpush1.bf16.msra.mxu0 %v14469_v6  ;;  %v7392_v37 = vmax.f32 %v6003_v1, 0.0  ;;  %7861 = vmatpush1.bf16.msra.mxu1 %v14475_v5 }
 0x456   : > { %v15343_v55 = vpack.c.bf16 %v7389_v28, %v7325_v40  ;;  %7821 = vmatprep.subr.bf16.mxu0 %v14506_v4  ;;  %v15347_v2 = vpack.c.bf16 %v7391_v62, %v7327_v57  ;;  %7862 = vmatprep.subr.bf16.mxu1 %v14509_v8 }
 0x457   : > { %v15349_v48 = vpack.c.bf16 %v7390_v59, %v7326_v11  ;;  %v5933_v38 = vpop.f32.mrb[140].mxu0  ;;  %6943 = vmatprep.mubr.bf16.mxu0 %v16988_v44  ;;  %v15353_v15 = vpack.c.bf16 %v7392_v37, %v7328_v20  ;;  %v6006_v45 = vpop.f32.mrb[140].mxu1  ;;  %7016 = vmatprep.mubr.bf16.mxu1 %v16988_v44 }
 0x458   : > { %v5934_v6 = vadd.f32 %v5933_v38, %v14467_v60  ;;  %v5935_v7 = vpop.f32.mrb[141].mxu0  ;;  %v6007_v5 = vadd.f32 %v6006_v45, %v14467_v60  ;;  %v6008_v36 = vpop.f32.mrb[141].mxu1 }
 0x459   : > { %v5936_v4 = vadd.f32 %v5935_v7, %v14467_v60  ;;  %7822 = vmatpush1.bf16.msra.mxu0 %v14501_v17  ;;  %v5937_v13 = vpop.f32.mrb[142].mxu0  ;;  %v6009_v8 = vadd.f32 %v6008_v36, %v14467_v60  ;;  %7863 = vmatpush1.bf16.msra.mxu1 %v14504_v42  ;;  %v6010_v49 = vpop.f32.mrb[142].mxu1 }
 0x45a   : > { %v5938_v10 = vadd.f32 %v5937_v13, %v14473_v33  ;;  %7897 = vmatprep.subr.bf16.mxu0 %v14528_v19  ;;  %v5939_v34 = vpop.f32.mrb[143].mxu0  ;;  %v6011_v16 = vadd.f32 %v6010_v49, %v14473_v33  ;;  %7938 = vmatprep.subr.bf16.mxu1 %v14531_v14  ;;  %v6012_v40 = vpop.f32.mrb[143].mxu1  ;;  %v7453_v28 = vmax.f32 %v5934_v6, 0.0  ;;  %v7455_v42 = vmax.f32 %v6007_v5, 0.0 }
 0x45b   : > { %v5940_v52 = vadd.f32 %v5939_v34, %v14473_v33  ;;  %v6013_v1 = vadd.f32 %v6012_v40, %v14473_v33  ;;  %v7454_v57 = vmax.f32 %v5936_v4, 0.0  ;;  %v7456_v19 = vmax.f32 %v6009_v8, 0.0 }
 0x45c   : > { %v7517_v17 = vmax.f32 %v5938_v10, 0.0  ;;  %11317 = vmatmul.mubr.msk.bf16.gmra.mrb[248].mxu0 %vm4688_vm1, %v15049_v58  ;;  %v7519_v11 = vmax.f32 %v6011_v16, 0.0  ;;  %11321 = vmatmul.mubr.msk.bf16.gmra.mrb[248].mxu1 %vm4688_vm1, %v15049_v58 }
 0x45d   : > { %v7518_v62 = vmax.f32 %v5940_v52, 0.0  ;;  %6953 = vmatprep.mubr.bf16.mxu0 %v16988_v44  ;;  %v7520_v59 = vmax.f32 %v6013_v1, 0.0  ;;  %7026 = vmatprep.mubr.bf16.mxu1 %v16988_v44 }
 0x45e   : > { %v15373_v14 = vpack.c.bf16 %v7517_v17, %v7453_v28  ;;  %v15376_v20 = vpack.c.bf16 %v7519_v11, %v7455_v42 }
 0x45f   : > { %v15378_v37 = vpack.c.bf16 %v7518_v62, %v7454_v57  ;;  %v6049_v38 = vpop.f32.mrb[144].mxu0  ;;  %v15380_v6 = vpack.c.bf16 %v7520_v59, %v7456_v19  ;;  %v6122_v7 = vpop.f32.mrb[144].mxu1 }
 0x460   : > { %v6050_v45 = vadd.f32 %v6049_v38, %v14381_v41  ;;  %v6051_v5 = vpop.f32.mrb[145].mxu0  ;;  %v6123_v58 = vadd.f32 %v6122_v7, %v14381_v41  ;;  %v6124_v36 = vpop.f32.mrb[145].mxu1 }
 0x461   : > { %v6052_v4 = vadd.f32 %v6051_v5, %v14381_v41  ;;  %v6053_v13 = vpop.f32.mrb[146].mxu0  ;;  %v6125_v8 = vadd.f32 %v6124_v36, %v14381_v41  ;;  %v6126_v49 = vpop.f32.mrb[146].mxu1 }
 0x462   : > { %v6054_v10 = vadd.f32 %v6053_v13, %v14386_v35  ;;  %v6055_v34 = vpop.f32.mrb[147].mxu0  ;;  %v6127_v16 = vadd.f32 %v6126_v49, %v14386_v35  ;;  %v6128_v40 = vpop.f32.mrb[147].mxu1  ;;  %v7073_v28 = vmax.f32 %v6050_v45, 0.0  ;;  %v7075_v42 = vmax.f32 %v6123_v58, 0.0 }
 0x463   : > { %v6056_v52 = vadd.f32 %v6055_v34, %v14386_v35  ;;  %v6129_v1 = vadd.f32 %v6128_v40, %v14386_v35  ;;  %v7074_v57 = vmax.f32 %v6052_v4, 0.0  ;;  %v7076_v19 = vmax.f32 %v6125_v8, 0.0  ;;  %v15410_v34 = vld [vmem:[%s16973_s7] sm:$0xf] }
 0x464   : > { %v7137_v17 = vmax.f32 %v6054_v10, 0.0  ;;  %11318 = vmatmul.mubr.msk.bf16.gmra.mrb[252].mxu0 %vm4688_vm1, %v15076_v26  ;;  %v7139_v11 = vmax.f32 %v6127_v16, 0.0  ;;  %11322 = vmatmul.mubr.msk.bf16.gmra.mrb[252].mxu1 %vm4688_vm1, %v15076_v26 }
 0x465   : > { %v7138_v62 = vmax.f32 %v6056_v52, 0.0  ;;  %7847 = vmatprep.mubr.bf16.mxu0 %v16988_v44  ;;  %v7140_v38 = vmax.f32 %v6129_v1, 0.0  ;;  %7888 = vmatprep.mubr.bf16.mxu1 %v16988_v44 }
 0x466   : > { %v15395_v59 = vpack.c.bf16 %v7137_v17, %v7073_v28  ;;  %v15398_v45 = vpack.c.bf16 %v7139_v11, %v7075_v42 }
 0x467   : > { %v15400_v7 = vpack.c.bf16 %v7138_v62, %v7074_v57  ;;  %v6059_v5 = vpop.f32.mrb[148].mxu0  ;;  %v15402_v58 = vpack.c.bf16 %v7140_v38, %v7076_v19  ;;  %v6132_v36 = vpop.f32.mrb[148].mxu1 }
 0x468   : > { %17455 = vst [vmem:[#allocation95_spill] sm:$0xff] %v15395_v59  ;;  %17456 = vst [vmem:[#allocation88_spill] sm:$0xff] %v15398_v45  ;;  %v6060_v4 = vadd.f32 %v6059_v5, %v14407_v32  ;;  %v6061_v13 = vpop.f32.mrb[149].mxu0  ;;  %v6133_v26 = vadd.f32 %v6132_v36, %v14407_v32  ;;  %v6134_v10 = vpop.f32.mrb[149].mxu1 }
 0x469   : > { %v6062_v8 = vadd.f32 %v6061_v13, %v14407_v32  ;;  %v6063_v49 = vpop.f32.mrb[150].mxu0  ;;  %v6135_v16 = vadd.f32 %v6134_v10, %v14407_v32  ;;  %v6136_v40 = vpop.f32.mrb[150].mxu1  ;;  %v17457_v13 = vld [vmem:[#allocation92_spill] sm:$0xff] }
 0x46a   : > { %v6064_v52 = vadd.f32 %v6063_v49, %v14412_v29  ;;  %v6065_v28 = vpop.f32.mrb[151].mxu0  ;;  %v6137_v17 = vadd.f32 %v6136_v40, %v14412_v29  ;;  %v6138_v42 = vpop.f32.mrb[151].mxu1  ;;  %v7201_v57 = vmax.f32 %v6060_v4, 0.0  ;;  %v7203_v19 = vmax.f32 %v6133_v26, 0.0  ;;  %v17459_v4 = vld [vmem:[#allocation93_spill] sm:$0xff] }
 0x46b   : > { %v6066_v1 = vadd.f32 %v6065_v28, %v14412_v29  ;;  %v6139_v62 = vadd.f32 %v6138_v42, %v14412_v29  ;;  %v7202_v38 = vmax.f32 %v6062_v8, 0.0  ;;  %v7204_v10 = vmax.f32 %v6135_v16, 0.0  ;;  %v17463_v26 = vld [vmem:[#allocation97_spill] sm:$0xff] }
 0x46c   : > { %v7265_v11 = vmax.f32 %v6064_v52, 0.0  ;;  %11323 = vmatmul.mubr.msk.bf16.vlgmr.msra.gmra.mrb[0].mxu0 %vm4688_vm1, %v15410_v34  ;;  %v7267_v5 = vmax.f32 %v6137_v17, 0.0  ;;  %11324 = vmatmul.mubr.msk.bf16.vlgmr.msra.gmra.mrb[0].mxu1 %vm4688_vm1, %v15410_v34  ;;  %v17460_v52 = vld [vmem:[#allocation100_spill] sm:$0xff] }
 0x46d   : > { %v7266_v36 = vmax.f32 %v6066_v1, 0.0  ;;  %7898 = vmatpush1.bf16.msra.mxu0 %v17457_v13  ;;  %v7268_v40 = vmax.f32 %v6139_v62, 0.0  ;;  %7939 = vmatpush1.bf16.msra.mxu1 %v17459_v4  ;;  %v17466_v13 = vld [vmem:[#allocation99_spill] sm:$0xff] }
 0x46e   : > { %v15422_v49 = vpack.c.bf16 %v7265_v11, %v7201_v57  ;;  %7899 = vmatprep.subr.bf16.mxu0 %v17460_v52  ;;  %v15426_v28 = vpack.c.bf16 %v7267_v5, %v7203_v19  ;;  %7940 = vmatprep.subr.bf16.mxu1 %v17463_v26  ;;  %v17467_v4 = vld [vmem:[#allocation7_spill] sm:$0xff] }
 0x46f   : > { %v15428_v42 = vpack.c.bf16 %v7266_v36, %v7202_v38  ;;  %v6069_v8 = vpop.f32.mrb[152].mxu0  ;;  %7929 = vmatprep.mubr.bf16.mxu0 %v16988_v44  ;;  %v15432_v17 = vpack.c.bf16 %v7268_v40, %v7204_v10  ;;  %v6142_v1 = vpop.f32.mrb[152].mxu1  ;;  %7970 = vmatprep.mubr.bf16.mxu1 %v16988_v44  ;;  %v17465_v38 = vld [vmem:[#allocation96_spill] sm:$0xff] }
 0x470   : > { %17458 = vst [vmem:[#allocation89_spill] sm:$0xff] %v15422_v49  ;;  %17461 = vst [vmem:[#allocation92_spill] sm:$0xff] %v15426_v28  ;;  %v6070_v16 = vadd.f32 %v6069_v8, %v14433_v27  ;;  %v6071_v57 = vpop.f32.mrb[153].mxu0  ;;  %v6143_v11 = vadd.f32 %v6142_v1, %v14433_v27  ;;  %v6144_v19 = vpop.f32.mrb[153].mxu1  ;;  %v17468_v8 = vld [vmem:[#allocation8_spill] sm:$0xff] }
 0x471   : > { %17462 = vst [vmem:[#allocation93_spill] sm:$0xff] %v15428_v42  ;;  %17464 = vst [vmem:[#allocation100_spill] sm:$0xff] %v15432_v17  ;;  %v6072_v62 = vadd.f32 %v6071_v57, %v14433_v27  ;;  %7900 = vmatpush1.bf16.msra.mxu0 %v17465_v38  ;;  %v6073_v5 = vpop.f32.mrb[154].mxu0  ;;  %v6145_v36 = vadd.f32 %v6144_v19, %v14433_v27  ;;  %7941 = vmatpush1.bf16.msra.mxu1 %v17466_v13  ;;  %v6146_v40 = vpop.f32.mrb[154].mxu1 }
 0x472   : > { %v6074_v10 = vadd.f32 %v6073_v5, %v14439_v31  ;;  %7901 = vmatprep.subr.bf16.mxu0 %v17467_v4  ;;  %v6075_v52 = vpop.f32.mrb[155].mxu0  ;;  %v6147_v26 = vadd.f32 %v6146_v40, %v14439_v31  ;;  %7942 = vmatprep.subr.bf16.mxu1 %v17468_v8  ;;  %v6148_v57 = vpop.f32.mrb[155].mxu1  ;;  %v7329_v28 = vmax.f32 %v6070_v16, 0.0  ;;  %v7331_v19 = vmax.f32 %v6143_v11, 0.0  ;;  %v17469_v5 = vld [vmem:[#allocation98_spill] sm:$0xff]  ;;  %v17471_v40 = vld [vmem:[#allocation101_spill] sm:$0xff] }
 0x473   : > { %v6076_v1 = vadd.f32 %v6075_v52, %v14439_v31  ;;  %v6149_v49 = vadd.f32 %v6148_v57, %v14439_v31  ;;  %v7330_v17 = vmax.f32 %v6072_v62, 0.0  ;;  %v7332_v45 = vmax.f32 %v6145_v36, 0.0  ;;  %v17472_v8 = vld [vmem:[#allocation11_spill] sm:$0xff] }
 0x474   : > { %v7393_v38 = vmax.f32 %v6074_v10, 0.0  ;;  %v7395_v13 = vmax.f32 %v6147_v26, 0.0  ;;  %v17475_v10 = vld [vmem:[#allocation12_spill] sm:$0xff] }
 0x475   : > { %v7394_v42 = vmax.f32 %v6076_v1, 0.0  ;;  %7902 = vmatpush1.bf16.msra.mxu0 %v17469_v5  ;;  %v7396_v59 = vmax.f32 %v6149_v49, 0.0  ;;  %7943 = vmatpush1.bf16.msra.mxu1 %v17471_v40 }
 0x476   : > { %v15448_v4 = vpack.c.bf16 %v7393_v38, %v7329_v28  ;;  %7903 = vmatprep.subr.bf16.mxu0 %v17472_v8  ;;  %v15452_v52 = vpack.c.bf16 %v7395_v13, %v7331_v19  ;;  %7944 = vmatprep.subr.bf16.mxu1 %v17475_v10  ;;  %v17477_v38 = vld [vmem:[#allocation3_spill] sm:$0xff]  ;;  %v17480_v8 = vld [vmem:[#allocation16_spill] sm:$0xff] }
 0x477   : > { %v15454_v16 = vpack.c.bf16 %v7394_v42, %v7330_v17  ;;  %v6079_v11 = vpop.f32.mrb[156].mxu0  ;;  %v15457_v62 = vpack.c.bf16 %v7396_v59, %v7332_v45  ;;  %v6152_v1 = vpop.f32.mrb[156].mxu1  ;;  %v17478_v17 = vld [vmem:[#allocation4_spill] sm:$0xff]  ;;  %v17479_v45 = vld [vmem:[#allocation15_spill] sm:$0xff] }
 0x478   : > { %17470 = vst [vmem:[#allocation97_spill] sm:$0xff] %v15448_v4  ;;  %17473 = vst [vmem:[#allocation96_spill] sm:$0xff] %v15452_v52  ;;  %v6080_v26 = vadd.f32 %v6079_v11, %v14467_v60  ;;  %v6081_v36 = vpop.f32.mrb[157].mxu0  ;;  %v6153_v28 = vadd.f32 %v6152_v1, %v14467_v60  ;;  %v6154_v57 = vpop.f32.mrb[157].mxu1 }
 0x479   : > { %17474 = vst [vmem:[#allocation99_spill] sm:$0xff] %v15454_v16  ;;  %17476 = vst [vmem:[#allocation7_spill] sm:$0xff] %v15457_v62  ;;  %v6082_v49 = vadd.f32 %v6081_v36, %v14467_v60  ;;  %7904 = vmatpush1.bf16.msra.mxu0 %v17477_v38  ;;  %v6083_v19 = vpop.f32.mrb[158].mxu0  ;;  %v6155_v42 = vadd.f32 %v6154_v57, %v14467_v60  ;;  %7945 = vmatpush1.bf16.msra.mxu1 %v17478_v17  ;;  %v6156_v59 = vpop.f32.mrb[158].mxu1 }
 0x47a   : > { %v6084_v13 = vadd.f32 %v6083_v19, %v14473_v33  ;;  %7979 = vmatprep.subr.bf16.mxu0 %v17479_v45  ;;  %v6085_v5 = vpop.f32.mrb[159].mxu0  ;;  %v6157_v40 = vadd.f32 %v6156_v59, %v14473_v33  ;;  %8020 = vmatprep.subr.bf16.mxu1 %v17480_v8  ;;  %v6158_v11 = vpop.f32.mrb[159].mxu1  ;;  %v7457_v1 = vmax.f32 %v6080_v26, 0.0  ;;  %v7459_v57 = vmax.f32 %v6153_v28, 0.0  ;;  %v17481_v59 = vld [vmem:[#allocation5_spill] sm:$0xff]  ;;  %v17483_v26 = vld [vmem:[#allocation6_spill] sm:$0xff] }
 0x47b   : > { %v6086_v10 = vadd.f32 %v6085_v5, %v14473_v33  ;;  %v6159_v38 = vadd.f32 %v6158_v11, %v14473_v33  ;;  %v7458_v19 = vmax.f32 %v6082_v49, 0.0  ;;  %v7460_v45 = vmax.f32 %v6155_v42, 0.0  ;;  %v17487_v28 = vld [vmem:[#allocation20_spill] sm:$0xff] }
 0x47c   : > { %v7521_v36 = vmax.f32 %v6084_v13, 0.0  ;;  %11325 = vmatmul.mubr.msk.bf16.vlgmr.msra.gmra.mrb[4].mxu0 %vm4688_vm1, %v15410_v34  ;;  %v7523_v17 = vmax.f32 %v6157_v40, 0.0  ;;  %11326 = vmatmul.mubr.msk.bf16.vlgmr.msra.gmra.mrb[4].mxu1 %vm4688_vm1, %v15410_v34  ;;  %v17484_v13 = vld [vmem:[#allocation19_spill] sm:$0xff] }
 0x47d   : > { %v7522_v52 = vmax.f32 %v6086_v10, 0.0  ;;  %7980 = vmatpush1.bf16.msra.mxu0 %v17481_v59  ;;  %v7524_v5 = vmax.f32 %v6159_v38, 0.0  ;;  %8021 = vmatpush1.bf16.msra.mxu1 %v17483_v26  ;;  %v17490_v59 = vld [vmem:[#allocation10_spill] sm:$0xff]  ;;  %v17491_v26 = vld [vmem:[#allocation23_spill] sm:$0xff] }
 0x47e   : > { %v15476_v8 = vpack.c.bf16 %v7521_v36, %v7457_v1  ;;  %7981 = vmatprep.subr.bf16.mxu0 %v17484_v13  ;;  %v15480_v11 = vpack.c.bf16 %v7523_v17, %v7459_v57  ;;  %8022 = vmatprep.subr.bf16.mxu1 %v17487_v28 }
 0x47f   : > { %v15482_v4 = vpack.c.bf16 %v7522_v52, %v7458_v19  ;;  %v6195_v49 = vpop.f32.mrb[160].mxu0  ;;  %8011 = vmatprep.mubr.bf16.mxu0 %v16988_v44  ;;  %v15486_v40 = vpack.c.bf16 %v7524_v5, %v7460_v45  ;;  %v6268_v10 = vpop.f32.mrb[160].mxu1  ;;  %8052 = vmatprep.mubr.bf16.mxu1 %v16988_v44  ;;  %v17489_v52 = vld [vmem:[#allocation9_spill] sm:$0xff] }
 0x480   : > { %17482 = vst [vmem:[#allocation8_spill] sm:$0xff] %v15476_v8  ;;  %17485 = vst [vmem:[#allocation98_spill] sm:$0xff] %v15480_v11  ;;  %v6196_v42 = vadd.f32 %v6195_v49, %v14381_v41  ;;  %v6197_v1 = vpop.f32.mrb[161].mxu0  ;;  %v6269_v36 = vadd.f32 %v6268_v10, %v14381_v41  ;;  %v6270_v57 = vpop.f32.mrb[161].mxu1  ;;  %v17492_v49 = vld [vmem:[#allocation24_spill] sm:$0xff] }
 0x481   : > { %17486 = vst [vmem:[#allocation101_spill] sm:$0xff] %v15482_v4  ;;  %17488 = vst [vmem:[#allocation11_spill] sm:$0xff] %v15486_v40  ;;  %v6198_v38 = vadd.f32 %v6197_v1, %v14381_v41  ;;  %7982 = vmatpush1.bf16.msra.mxu0 %v17489_v52  ;;  %v6199_v19 = vpop.f32.mrb[162].mxu0  ;;  %v6271_v17 = vadd.f32 %v6270_v57, %v14381_v41  ;;  %8023 = vmatpush1.bf16.msra.mxu1 %v17490_v59  ;;  %v6272_v5 = vpop.f32.mrb[162].mxu1 }
 0x482   : > { %v6200_v45 = vadd.f32 %v6199_v19, %v14386_v35  ;;  %7983 = vmatprep.subr.bf16.mxu0 %v17491_v26  ;;  %v6201_v13 = vpop.f32.mrb[163].mxu0  ;;  %v6273_v28 = vadd.f32 %v6272_v5, %v14386_v35  ;;  %8024 = vmatprep.subr.bf16.mxu1 %v17492_v49  ;;  %v6274_v1 = vpop.f32.mrb[163].mxu1  ;;  %v7077_v11 = vmax.f32 %v6196_v42, 0.0  ;;  %v7079_v57 = vmax.f32 %v6269_v36, 0.0  ;;  %v17493_v19 = vld [vmem:[#allocation13_spill] sm:$0xff]  ;;  %v17495_v5 = vld [vmem:[#allocation14_spill] sm:$0xff] }
 0x483   : > { %v6202_v10 = vadd.f32 %v6201_v13, %v14386_v35  ;;  %v6275_v8 = vadd.f32 %v6274_v1, %v14386_v35  ;;  %v7078_v40 = vmax.f32 %v6198_v38, 0.0  ;;  %v7080_v62 = vmax.f32 %v6271_v17, 0.0  ;;  %v17496_v49 = vld [vmem:[#allocation27_spill] sm:$0xff] }
 0x484   : > { %v7141_v52 = vmax.f32 %v6200_v45, 0.0  ;;  %v7143_v59 = vmax.f32 %v6273_v28, 0.0  ;;  %v17498_v45 = vld [vmem:[#allocation28_spill] sm:$0xff] }
 0x485   : > { %v7142_v4 = vmax.f32 %v6202_v10, 0.0  ;;  %7984 = vmatpush1.bf16.msra.mxu0 %v17493_v19  ;;  %v7144_v16 = vmax.f32 %v6275_v8, 0.0  ;;  %8025 = vmatpush1.bf16.msra.mxu1 %v17495_v5 }
 0x486   : > { %v15502_v26 = vpack.c.bf16 %v7141_v52, %v7077_v11  ;;  %7985 = vmatprep.subr.bf16.mxu0 %v17496_v49  ;;  %v15506_v13 = vpack.c.bf16 %v7143_v59, %v7079_v57  ;;  %8026 = vmatprep.subr.bf16.mxu1 %v17498_v45  ;;  %v17500_v52 = vld [vmem:[#allocation17_spill] sm:$0xff]  ;;  %v17503_v49 = vld [vmem:[#allocation32_spill] sm:$0xff] }
 0x487   : > { %v15508_v42 = vpack.c.bf16 %v7142_v4, %v7078_v40  ;;  %v6205_v36 = vpop.f32.mrb[164].mxu0  ;;  %v15511_v38 = vpack.c.bf16 %v7144_v16, %v7080_v62  ;;  %v6278_v10 = vpop.f32.mrb[164].mxu1  ;;  %v17501_v40 = vld [vmem:[#allocation18_spill] sm:$0xff]  ;;  %v17502_v62 = vld [vmem:[#allocation31_spill] sm:$0xff] }
 0x488   : > { %17494 = vst [vmem:[#allocation12_spill] sm:$0xff] %v15502_v26  ;;  %17497 = vst [vmem:[#allocation3_spill] sm:$0xff] %v15506_v13  ;;  %v6206_v28 = vadd.f32 %v6205_v36, %v14407_v32  ;;  %v6207_v17 = vpop.f32.mrb[165].mxu0  ;;  %v6279_v11 = vadd.f32 %v6278_v10, %v14407_v32  ;;  %v6280_v1 = vpop.f32.mrb[165].mxu1 }
 0x489   : > { %17499 = vst [vmem:[#allocation4_spill] sm:$0xff] %v15511_v38  ;;  %v6208_v8 = vadd.f32 %v6207_v17, %v14407_v32  ;;  %7986 = vmatpush1.bf16.msra.mxu0 %v17500_v52  ;;  %v6209_v57 = vpop.f32.mrb[166].mxu0  ;;  %v6281_v4 = vadd.f32 %v6280_v1, %v14407_v32  ;;  %8027 = vmatpush1.bf16.msra.mxu1 %v17501_v40  ;;  %v6282_v16 = vpop.f32.mrb[166].mxu1 }
 0x48a   : > { %v6210_v59 = vadd.f32 %v6209_v57, %v14412_v29  ;;  %8061 = vmatprep.subr.bf16.mxu0 %v17502_v62  ;;  %v6211_v19 = vpop.f32.mrb[167].mxu0  ;;  %v6283_v5 = vadd.f32 %v6282_v16, %v14412_v29  ;;  %8102 = vmatprep.subr.bf16.mxu1 %v17503_v49  ;;  %v6284_v36 = vpop.f32.mrb[167].mxu1  ;;  %v7205_v10 = vmax.f32 %v6206_v28, 0.0  ;;  %v7207_v1 = vmax.f32 %v6279_v11, 0.0  ;;  %v17504_v16 = vld [vmem:[#allocation21_spill] sm:$0xff]  ;;  %v17506_v28 = vld [vmem:[#allocation22_spill] sm:$0xff] }
 0x48b   : > { %v6212_v45 = vadd.f32 %v6211_v19, %v14412_v29  ;;  %v6285_v52 = vadd.f32 %v6284_v36, %v14412_v29  ;;  %v7206_v57 = vmax.f32 %v6208_v8, 0.0  ;;  %v7208_v62 = vmax.f32 %v6281_v4, 0.0  ;;  %v17510_v11 = vld [vmem:[#allocation36_spill] sm:$0xff] }
 0x48c   : > { %v7269_v17 = vmax.f32 %v6210_v59, 0.0  ;;  %11327 = vmatmul.mubr.msk.bf16.vlgmr.msra.gmra.mrb[8].mxu0 %vm4688_vm1, %v15410_v34  ;;  %v7271_v40 = vmax.f32 %v6283_v5, 0.0  ;;  %11328 = vmatmul.mubr.msk.bf16.vlgmr.msra.gmra.mrb[8].mxu1 %vm4688_vm1, %v15410_v34  ;;  %v17507_v59 = vld [vmem:[#allocation35_spill] sm:$0xff] }
 0x48d   : > { %v7270_v13 = vmax.f32 %v6212_v45, 0.0  ;;  %8062 = vmatpush1.bf16.msra.mxu0 %v17504_v16  ;;  %v7272_v19 = vmax.f32 %v6285_v52, 0.0  ;;  %8103 = vmatpush1.bf16.msra.mxu1 %v17506_v28  ;;  %v17513_v16 = vld [vmem:[#allocation26_spill] sm:$0xff] }
 0x48e   : > { %v15530_v49 = vpack.c.bf16 %v7269_v17, %v7205_v10  ;;  %8063 = vmatprep.subr.bf16.mxu0 %v17507_v59  ;;  %v15534_v36 = vpack.c.bf16 %v7271_v40, %v7207_v1  ;;  %8104 = vmatprep.subr.bf16.mxu1 %v17510_v11  ;;  %v17514_v11 = vld [vmem:[#allocation39_spill] sm:$0xff] }
 0x48f   : > { %v15536_v26 = vpack.c.bf16 %v7270_v13, %v7206_v57  ;;  %v6215_v8 = vpop.f32.mrb[168].mxu0  ;;  %8093 = vmatprep.mubr.bf16.mxu0 %v16988_v44  ;;  %v15540_v5 = vpack.c.bf16 %v7272_v19, %v7208_v62  ;;  %v6288_v45 = vpop.f32.mrb[168].mxu1  ;;  %8134 = vmatprep.mubr.bf16.mxu1 %v16988_v44  ;;  %v17512_v13 = vld [vmem:[#allocation25_spill] sm:$0xff] }
 0x490   : > { %17505 = vst [vmem:[#allocation15_spill] sm:$0xff] %v15530_v49  ;;  %17508 = vst [vmem:[#allocation16_spill] sm:$0xff] %v15534_v36  ;;  %v6216_v4 = vadd.f32 %v6215_v8, %v14433_v27  ;;  %v6217_v10 = vpop.f32.mrb[169].mxu0  ;;  %v6289_v17 = vadd.f32 %v6288_v45, %v14433_v27  ;;  %v6290_v1 = vpop.f32.mrb[169].mxu1 }
 0x491   : > { %17509 = vst [vmem:[#allocation5_spill] sm:$0xff] %v15536_v26  ;;  %17511 = vst [vmem:[#allocation6_spill] sm:$0xff] %v15540_v5  ;;  %v6218_v52 = vadd.f32 %v6217_v10, %v14433_v27  ;;  %8064 = vmatpush1.bf16.msra.mxu0 %v17512_v13  ;;  %v6219_v57 = vpop.f32.mrb[170].mxu0  ;;  %v6291_v40 = vadd.f32 %v6290_v1, %v14433_v27  ;;  %8105 = vmatpush1.bf16.msra.mxu1 %v17513_v16  ;;  %v6292_v19 = vpop.f32.mrb[170].mxu1 }
 0x492   : > { %v6220_v62 = vadd.f32 %v6219_v57, %v14439_v31  ;;  %8065 = vmatprep.subr.bf16.mxu0 %v14811_v63  ;;  %v6221_v28 = vpop.f32.mrb[171].mxu0  ;;  %v6293_v59 = vadd.f32 %v6292_v19, %v14439_v31  ;;  %8106 = vmatprep.subr.bf16.mxu1 %v17514_v11  ;;  %v6294_v45 = vpop.f32.mrb[171].mxu1  ;;  %v7333_v10 = vmax.f32 %v6216_v4, 0.0  ;;  %v7335_v1 = vmax.f32 %v6289_v17, 0.0  ;;  %v17515_v57 = vld [vmem:[#allocation29_spill] sm:$0xff]  ;;  %v17517_v19 = vld [vmem:[#allocation30_spill] sm:$0xff] }
 0x493   : > { %v6222_v8 = vadd.f32 %v6221_v28, %v14439_v31  ;;  %v6295_v36 = vadd.f32 %v6294_v45, %v14439_v31  ;;  %v7334_v49 = vmax.f32 %v6218_v52, 0.0  ;;  %v7336_v26 = vmax.f32 %v6291_v40, 0.0  ;;  %v17518_v11 = vld [vmem:[#allocation34_spill] sm:$0xff] }
 0x494   : > { %v7397_v13 = vmax.f32 %v6220_v62, 0.0  ;;  %v7399_v16 = vmax.f32 %v6293_v59, 0.0  ;;  %v17521_v62 = vld [vmem:[#allocation43_spill] sm:$0xff] }
 0x495   : > { %v7398_v5 = vmax.f32 %v6222_v8, 0.0  ;;  %8066 = vmatpush1.bf16.msra.mxu0 %v17515_v57  ;;  %v7400_v38 = vmax.f32 %v6295_v36, 0.0  ;;  %8107 = vmatpush1.bf16.msra.mxu1 %v17517_v19 }
 0x496   : > { %v15556_v63 = vpack.c.bf16 %v7397_v13, %v7333_v10  ;;  %8067 = vmatprep.subr.bf16.mxu0 %v17518_v11  ;;  %v15560_v28 = vpack.c.bf16 %v7399_v16, %v7335_v1  ;;  %8108 = vmatprep.subr.bf16.mxu1 %v17521_v62  ;;  %v17523_v13 = vld [vmem:[#allocation40_spill] sm:$0xff]  ;;  %v17526_v11 = vld [vmem:[#allocation47_spill] sm:$0xff] }
 0x497   : > { %v15562_v4 = vpack.c.bf16 %v7398_v5, %v7334_v49  ;;  %v6225_v17 = vpop.f32.mrb[172].mxu0  ;;  %v15565_v52 = vpack.c.bf16 %v7400_v38, %v7336_v26  ;;  %v6298_v8 = vpop.f32.mrb[172].mxu1  ;;  %v17524_v5 = vld [vmem:[#allocation33_spill] sm:$0xff]  ;;  %v17525_v38 = vld [vmem:[#allocation38_spill] sm:$0xff] }
 0x498   : > { %17516 = vst [vmem:[#allocation19_spill] sm:$0xff] %v15556_v63  ;;  %17519 = vst [vmem:[#allocation20_spill] sm:$0xff] %v15560_v28  ;;  %v6226_v59 = vadd.f32 %v6225_v17, %v14467_v60  ;;  %v6227_v40 = vpop.f32.mrb[173].mxu0  ;;  %v6299_v45 = vadd.f32 %v6298_v8, %v14467_v60  ;;  %v6300_v10 = vpop.f32.mrb[173].mxu1 }
 0x499   : > { %17520 = vst [vmem:[#allocation9_spill] sm:$0xff] %v15562_v4  ;;  %17522 = vst [vmem:[#allocation10_spill] sm:$0xff] %v15565_v52  ;;  %v6228_v36 = vadd.f32 %v6227_v40, %v14467_v60  ;;  %8068 = vmatpush1.bf16.msra.mxu0 %v17523_v13  ;;  %v6229_v1 = vpop.f32.mrb[174].mxu0  ;;  %v6301_v49 = vadd.f32 %v6300_v10, %v14467_v60  ;;  %8109 = vmatpush1.bf16.msra.mxu1 %v17524_v5  ;;  %v6302_v26 = vpop.f32.mrb[174].mxu1 }
 0x49a   : > { %v6230_v16 = vadd.f32 %v6229_v1, %v14473_v33  ;;  %8143 = vmatprep.subr.bf16.mxu0 %v17525_v38  ;;  %v6231_v57 = vpop.f32.mrb[175].mxu0  ;;  %v6303_v19 = vadd.f32 %v6302_v26, %v14473_v33  ;;  %8184 = vmatprep.subr.bf16.mxu1 %v17526_v11  ;;  %v6304_v17 = vpop.f32.mrb[175].mxu1  ;;  %v7461_v8 = vmax.f32 %v6226_v59, 0.0  ;;  %v7463_v10 = vmax.f32 %v6299_v45, 0.0  ;;  %v17527_v26 = vld [vmem:[#allocation44_spill] sm:$0xff]  ;;  %v17529_v59 = vld [vmem:[#allocation37_spill] sm:$0xff] }
 0x49b   : > { %v6232_v62 = vadd.f32 %v6231_v57, %v14473_v33  ;;  %v6305_v13 = vadd.f32 %v6304_v17, %v14473_v33  ;;  %v7462_v1 = vmax.f32 %v6228_v36, 0.0  ;;  %v7464_v38 = vmax.f32 %v6301_v49, 0.0  ;;  %v17533_v45 = vld [vmem:[#allocation51_spill] sm:$0xff] }
 0x49c   : > { %v7525_v40 = vmax.f32 %v6230_v16, 0.0  ;;  %11329 = vmatmul.mubr.msk.bf16.vlgmr.msra.gmra.mrb[12].mxu0 %vm4688_vm1, %v15410_v34  ;;  %v7527_v5 = vmax.f32 %v6303_v19, 0.0  ;;  %11330 = vmatmul.mubr.msk.bf16.vlgmr.msra.gmra.mrb[12].mxu1 %vm4688_vm1, %v15410_v34  ;;  %v17530_v16 = vld [vmem:[#allocation42_spill] sm:$0xff] }
 0x49d   : > { %v7526_v28 = vmax.f32 %v6232_v62, 0.0  ;;  %8144 = vmatpush1.bf16.msra.mxu0 %v17527_v26  ;;  %v7528_v57 = vmax.f32 %v6305_v13, 0.0  ;;  %8185 = vmatpush1.bf16.msra.mxu1 %v17529_v59  ;;  %v17536_v26 = vld [vmem:[#allocation41_spill] sm:$0xff]  ;;  %v17537_v59 = vld [vmem:[#allocation50_spill] sm:$0xff] }
 0x49e   : > { %v15584_v11 = vpack.c.bf16 %v7525_v40, %v7461_v8  ;;  %8145 = vmatprep.subr.bf16.mxu0 %v17530_v16  ;;  %v15588_v17 = vpack.c.bf16 %v7527_v5, %v7463_v10  ;;  %8186 = vmatprep.subr.bf16.mxu1 %v17533_v45 }
 0x49f   : > { %v15590_v63 = vpack.c.bf16 %v7526_v28, %v7462_v1  ;;  %v6341_v36 = vpop.f32.mrb[176].mxu0  ;;  %8175 = vmatprep.mubr.bf16.mxu0 %v16988_v44  ;;  %v15594_v19 = vpack.c.bf16 %v7528_v57, %v7464_v38  ;;  %v6414_v62 = vpop.f32.mrb[176].mxu1  ;;  %8216 = vmatprep.mubr.bf16.mxu1 %v16988_v44  ;;  %v17535_v28 = vld [vmem:[#allocation48_spill] sm:$0xff] }
 0x4a0   : > { %17528 = vst [vmem:[#allocation23_spill] sm:$0xff] %v15584_v11  ;;  %17531 = vst [vmem:[#allocation24_spill] sm:$0xff] %v15588_v17  ;;  %v6342_v49 = vadd.f32 %v6341_v36, %v14381_v41  ;;  %v6343_v8 = vpop.f32.mrb[177].mxu0  ;;  %v6415_v40 = vadd.f32 %v6414_v62, %v14381_v41  ;;  %v6416_v10 = vpop.f32.mrb[177].mxu1  ;;  %v17538_v36 = vld [vmem:[#allocation55_spill] sm:$0xff] }
 0x4a1   : > { %17532 = vst [vmem:[#allocation13_spill] sm:$0xff] %v15590_v63  ;;  %17534 = vst [vmem:[#allocation14_spill] sm:$0xff] %v15594_v19  ;;  %v6344_v13 = vadd.f32 %v6343_v8, %v14381_v41  ;;  %8146 = vmatpush1.bf16.msra.mxu0 %v17535_v28  ;;  %v6345_v1 = vpop.f32.mrb[178].mxu0  ;;  %v6417_v5 = vadd.f32 %v6416_v10, %v14381_v41  ;;  %8187 = vmatpush1.bf16.msra.mxu1 %v17536_v26  ;;  %v6418_v57 = vpop.f32.mrb[178].mxu1 }
 0x4a2   : > { %v6346_v38 = vadd.f32 %v6345_v1, %v14386_v35  ;;  %8147 = vmatprep.subr.bf16.mxu0 %v17537_v59  ;;  %v6347_v16 = vpop.f32.mrb[179].mxu0  ;;  %v6419_v45 = vadd.f32 %v6418_v57, %v14386_v35  ;;  %8188 = vmatprep.subr.bf16.mxu1 %v17538_v36  ;;  %v6420_v8 = vpop.f32.mrb[179].mxu1  ;;  %v7081_v17 = vmax.f32 %v6342_v49, 0.0  ;;  %v7083_v10 = vmax.f32 %v6415_v40, 0.0  ;;  %v17539_v1 = vld [vmem:[#allocation45_spill] sm:$0xff]  ;;  %v17541_v57 = vld [vmem:[#allocation46_spill] sm:$0xff] }
 0x4a3   : > { %v6348_v62 = vadd.f32 %v6347_v16, %v14386_v35  ;;  %v6421_v11 = vadd.f32 %v6420_v8, %v14386_v35  ;;  %v7082_v19 = vmax.f32 %v6344_v13, 0.0  ;;  %v7084_v52 = vmax.f32 %v6417_v5, 0.0  ;;  %v17542_v36 = vld [vmem:[#allocation54_spill] sm:$0xff] }
 0x4a4   : > { %v7145_v28 = vmax.f32 %v6346_v38, 0.0  ;;  %v7147_v26 = vmax.f32 %v6419_v45, 0.0  ;;  %v17545_v38 = vld [vmem:[#allocation59_spill] sm:$0xff] }
 0x4a5   : > { %v7146_v63 = vmax.f32 %v6348_v62, 0.0  ;;  %8148 = vmatpush1.bf16.msra.mxu0 %v17539_v1  ;;  %v7148_v4 = vmax.f32 %v6421_v11, 0.0  ;;  %8189 = vmatpush1.bf16.msra.mxu1 %v17541_v57 }
 0x4a6   : > { %v15610_v59 = vpack.c.bf16 %v7145_v28, %v7081_v17  ;;  %8149 = vmatprep.subr.bf16.mxu0 %v17542_v36  ;;  %v15614_v16 = vpack.c.bf16 %v7147_v26, %v7083_v10  ;;  %8190 = vmatprep.subr.bf16.mxu1 %v17545_v38  ;;  %v17547_v28 = vld [vmem:[#allocation52_spill] sm:$0xff]  ;;  %v17550_v36 = vld [vmem:[#allocation63_spill] sm:$0xff] }
 0x4a7   : > { %v15616_v49 = vpack.c.bf16 %v7146_v63, %v7082_v19  ;;  %v6351_v40 = vpop.f32.mrb[180].mxu0  ;;  %v15619_v13 = vpack.c.bf16 %v7148_v4, %v7084_v52  ;;  %v6424_v62 = vpop.f32.mrb[180].mxu1  ;;  %v17548_v19 = vld [vmem:[#allocation49_spill] sm:$0xff]  ;;  %v17549_v52 = vld [vmem:[#allocation58_spill] sm:$0xff] }
 0x4a8   : > { %17540 = vst [vmem:[#allocation27_spill] sm:$0xff] %v15610_v59  ;;  %17543 = vst [vmem:[#allocation28_spill] sm:$0xff] %v15614_v16  ;;  %v6352_v45 = vadd.f32 %v6351_v40, %v14407_v32  ;;  %v6353_v5 = vpop.f32.mrb[181].mxu0  ;;  %v6425_v17 = vadd.f32 %v6424_v62, %v14407_v32  ;;  %v6426_v8 = vpop.f32.mrb[181].mxu1 }
 0x4a9   : > { %17544 = vst [vmem:[#allocation17_spill] sm:$0xff] %v15616_v49  ;;  %17546 = vst [vmem:[#allocation18_spill] sm:$0xff] %v15619_v13  ;;  %v6354_v11 = vadd.f32 %v6353_v5, %v14407_v32  ;;  %8150 = vmatpush1.bf16.msra.mxu0 %v17547_v28  ;;  %v6355_v10 = vpop.f32.mrb[182].mxu0  ;;  %v6427_v63 = vadd.f32 %v6426_v8, %v14407_v32  ;;  %8191 = vmatpush1.bf16.msra.mxu1 %v17548_v19  ;;  %v6428_v4 = vpop.f32.mrb[182].mxu1 }
 0x4aa   : > { %v6356_v26 = vadd.f32 %v6355_v10, %v14412_v29  ;;  %8225 = vmatprep.subr.bf16.mxu0 %v17549_v52  ;;  %v6357_v1 = vpop.f32.mrb[183].mxu0  ;;  %v6429_v57 = vadd.f32 %v6428_v4, %v14412_v29  ;;  %8266 = vmatprep.subr.bf16.mxu1 %v17550_v36  ;;  %v6430_v40 = vpop.f32.mrb[183].mxu1  ;;  %v7209_v62 = vmax.f32 %v6352_v45, 0.0  ;;  %v7211_v8 = vmax.f32 %v6425_v17, 0.0  ;;  %v17551_v4 = vld [vmem:[#allocation56_spill] sm:$0xff]  ;;  %v17553_v45 = vld [vmem:[#allocation53_spill] sm:$0xff] }
 0x4ab   : > { %v6358_v38 = vadd.f32 %v6357_v1, %v14412_v29  ;;  %v6431_v28 = vadd.f32 %v6430_v40, %v14412_v29  ;;  %v7210_v10 = vmax.f32 %v6354_v11, 0.0  ;;  %v7212_v52 = vmax.f32 %v6427_v63, 0.0  ;;  %v17557_v17 = vld [vmem:[#allocation67_spill] sm:$0xff] }
 0x4ac   : > { %v7273_v5 = vmax.f32 %v6356_v26, 0.0  ;;  %11331 = vmatmul.mubr.msk.bf16.vlgmr.msra.gmra.mrb[16].mxu0 %vm4688_vm1, %v15410_v34  ;;  %v7275_v19 = vmax.f32 %v6429_v57, 0.0  ;;  %11332 = vmatmul.mubr.msk.bf16.vlgmr.msra.gmra.mrb[16].mxu1 %vm4688_vm1, %v15410_v34  ;;  %v17554_v26 = vld [vmem:[#allocation62_spill] sm:$0xff] }
 0x4ad   : > { %v7274_v16 = vmax.f32 %v6358_v38, 0.0  ;;  %8226 = vmatpush1.bf16.msra.mxu0 %v17551_v4  ;;  %v7276_v1 = vmax.f32 %v6431_v28, 0.0  ;;  %8267 = vmatpush1.bf16.msra.mxu1 %v17553_v45  ;;  %v17560_v4 = vld [vmem:[#allocation57_spill] sm:$0xff]  ;;  %v17561_v45 = vld [vmem:[#allocation66_spill] sm:$0xff] }
 0x4ae   : > { %v15638_v36 = vpack.c.bf16 %v7273_v5, %v7209_v62  ;;  %8227 = vmatprep.subr.bf16.mxu0 %v17554_v26  ;;  %v15642_v40 = vpack.c.bf16 %v7275_v19, %v7211_v8  ;;  %8268 = vmatprep.subr.bf16.mxu1 %v17557_v17 }
 0x4af   : > { %v15644_v59 = vpack.c.bf16 %v7274_v16, %v7210_v10  ;;  %v6361_v11 = vpop.f32.mrb[184].mxu0  ;;  %8257 = vmatprep.mubr.bf16.mxu0 %v16988_v44  ;;  %v15648_v57 = vpack.c.bf16 %v7276_v1, %v7212_v52  ;;  %v6434_v38 = vpop.f32.mrb[184].mxu1  ;;  %8298 = vmatprep.mubr.bf16.mxu1 %v16988_v44  ;;  %v17559_v16 = vld [vmem:[#allocation60_spill] sm:$0xff] }
 0x4b0   : > { %17552 = vst [vmem:[#allocation31_spill] sm:$0xff] %v15638_v36  ;;  %17555 = vst [vmem:[#allocation32_spill] sm:$0xff] %v15642_v40  ;;  %v6362_v63 = vadd.f32 %v6361_v11, %v14433_v27  ;;  %v6363_v62 = vpop.f32.mrb[185].mxu0  ;;  %v6435_v5 = vadd.f32 %v6434_v38, %v14433_v27  ;;  %v6436_v8 = vpop.f32.mrb[185].mxu1  ;;  %v17562_v11 = vld [vmem:[#allocation71_spill] sm:$0xff] }
 0x4b1   : > { %17556 = vst [vmem:[#allocation21_spill] sm:$0xff] %v15644_v59  ;;  %17558 = vst [vmem:[#allocation22_spill] sm:$0xff] %v15648_v57  ;;  %v6364_v28 = vadd.f32 %v6363_v62, %v14433_v27  ;;  %8228 = vmatpush1.bf16.msra.mxu0 %v17559_v16  ;;  %v6365_v10 = vpop.f32.mrb[186].mxu0  ;;  %v6437_v19 = vadd.f32 %v6436_v8, %v14433_v27  ;;  %8269 = vmatpush1.bf16.msra.mxu1 %v17560_v4  ;;  %v6438_v1 = vpop.f32.mrb[186].mxu1 }
 0x4b2   : > { %v6366_v52 = vadd.f32 %v6365_v10, %v14439_v31  ;;  %8229 = vmatprep.subr.bf16.mxu0 %v17561_v45  ;;  %v6367_v26 = vpop.f32.mrb[187].mxu0  ;;  %v6439_v17 = vadd.f32 %v6438_v1, %v14439_v31  ;;  %8270 = vmatprep.subr.bf16.mxu1 %v17562_v11  ;;  %v6440_v62 = vpop.f32.mrb[187].mxu1  ;;  %v7337_v40 = vmax.f32 %v6362_v63, 0.0  ;;  %v7339_v8 = vmax.f32 %v6435_v5, 0.0  ;;  %v17563_v10 = vld [vmem:[#allocation64_spill] sm:$0xff]  ;;  %v17564_v1 = vld [vmem:[#allocation61_spill] sm:$0xff] }
 0x4b3   : > { %v6368_v38 = vadd.f32 %v6367_v26, %v14439_v31  ;;  %v6441_v36 = vadd.f32 %v6440_v62, %v14439_v31  ;;  %v7338_v57 = vmax.f32 %v6364_v28, 0.0  ;;  %v7340_v13 = vmax.f32 %v6437_v19, 0.0  ;;  %v17565_v11 = vld [vmem:[#allocation70_spill] sm:$0xff] }
 0x4b4   : > { %v7401_v16 = vmax.f32 %v6366_v52, 0.0  ;;  %v7403_v4 = vmax.f32 %v6439_v17, 0.0  ;;  %v17567_v52 = vld [vmem:[#allocation75_spill] sm:$0xff] }
 0x4b5   : > { %v7402_v59 = vmax.f32 %v6368_v38, 0.0  ;;  %8230 = vmatpush1.bf16.msra.mxu0 %v17563_v10  ;;  %v7404_v49 = vmax.f32 %v6441_v36, 0.0  ;;  %8271 = vmatpush1.bf16.msra.mxu1 %v17564_v1 }
 0x4b6   : > { %v15664_v45 = vpack.c.bf16 %v7401_v16, %v7337_v40  ;;  %8231 = vmatprep.subr.bf16.mxu0 %v17565_v11  ;;  %v15668_v26 = vpack.c.bf16 %v7403_v4, %v7339_v8  ;;  %8272 = vmatprep.subr.bf16.mxu1 %v17567_v52  ;;  %v17568_v16 = vld [vmem:[#allocation68_spill] sm:$0xff]  ;;  %v17571_v11 = vld [vmem:[#allocation79_spill] sm:$0xff] }
 0x4b7   : > { %v15670_v63 = vpack.c.bf16 %v7402_v59, %v7338_v57  ;;  %v6371_v5 = vpop.f32.mrb[188].mxu0  ;;  %v15673_v28 = vpack.c.bf16 %v7404_v49, %v7340_v13  ;;  %v6444_v38 = vpop.f32.mrb[188].mxu1  ;;  %v17569_v57 = vld [vmem:[#allocation65_spill] sm:$0xff]  ;;  %v17570_v13 = vld [vmem:[#allocation74_spill] sm:$0xff] }
 0x4b8   : > { %17566 = vst [vmem:[#allocation35_spill] sm:$0xff] %v15668_v26  ;;  %v6372_v17 = vadd.f32 %v6371_v5, %v14467_v60  ;;  %v6373_v19 = vpop.f32.mrb[189].mxu0  ;;  %v6445_v40 = vadd.f32 %v6444_v38, %v14467_v60  ;;  %v6446_v62 = vpop.f32.mrb[189].mxu1 }
 0x4b9   : > { %v6374_v36 = vadd.f32 %v6373_v19, %v14467_v60  ;;  %8232 = vmatpush1.bf16.msra.mxu0 %v17568_v16  ;;  %v6375_v8 = vpop.f32.mrb[190].mxu0  ;;  %v6447_v59 = vadd.f32 %v6446_v62, %v14467_v60  ;;  %8273 = vmatpush1.bf16.msra.mxu1 %v17569_v57  ;;  %v6448_v49 = vpop.f32.mrb[190].mxu1 }
 0x4ba   : > { %v6376_v4 = vadd.f32 %v6375_v8, %v14473_v33  ;;  %8307 = vmatprep.subr.bf16.mxu0 %v17570_v13  ;;  %v6377_v10 = vpop.f32.mrb[191].mxu0  ;;  %v6449_v1 = vadd.f32 %v6448_v49, %v14473_v33  ;;  %8348 = vmatprep.subr.bf16.mxu1 %v17571_v11  ;;  %v6450_v5 = vpop.f32.mrb[191].mxu1  ;;  %v7465_v38 = vmax.f32 %v6372_v17, 0.0  ;;  %v7467_v62 = vmax.f32 %v6445_v40, 0.0  ;;  %v17572_v49 = vld [vmem:[#allocation72_spill] sm:$0xff]  ;;  %v17574_v17 = vld [vmem:[#allocation69_spill] sm:$0xff] }
 0x4bb   : > { %v6378_v52 = vadd.f32 %v6377_v10, %v14473_v33  ;;  %v6451_v16 = vadd.f32 %v6450_v5, %v14473_v33  ;;  %v7466_v8 = vmax.f32 %v6374_v36, 0.0  ;;  %v7468_v13 = vmax.f32 %v6447_v59, 0.0 }
 0x4bc   : > { %v7529_v19 = vmax.f32 %v6376_v4, 0.0  ;;  %11333 = vmatmul.mubr.msk.bf16.vlgmr.msra.gmra.mrb[20].mxu0 %vm4688_vm1, %v15410_v34  ;;  %v7531_v57 = vmax.f32 %v6449_v1, 0.0  ;;  %11334 = vmatmul.mubr.msk.bf16.vlgmr.msra.gmra.mrb[20].mxu1 %vm4688_vm1, %v15410_v34 }
 0x4bd   : > { %v7530_v26 = vmax.f32 %v6378_v52, 0.0  ;;  %8308 = vmatpush1.bf16.msra.mxu0 %v17572_v49  ;;  %v7532_v10 = vmax.f32 %v6451_v16, 0.0  ;;  %8349 = vmatpush1.bf16.msra.mxu1 %v17574_v17 }
 0x4be   : > { %v15692_v11 = vpack.c.bf16 %v7529_v19, %v7465_v38  ;;  %8309 = vmatprep.subr.bf16.mxu0 %v15111_v23  ;;  %v15696_v4 = vpack.c.bf16 %v7531_v57, %v7467_v62  ;;  %8350 = vmatprep.subr.bf16.mxu1 %v15115_v53  ;;  %v17577_v62 = vld [vmem:[#allocation73_spill] sm:$0xff] }
 0x4bf   : > { %v15698_v5 = vpack.c.bf16 %v7530_v26, %v7466_v8  ;;  %v6487_v40 = vpop.f32.mrb[192].mxu0  ;;  %8339 = vmatprep.mubr.bf16.mxu0 %v16988_v44  ;;  %v15702_v36 = vpack.c.bf16 %v7532_v10, %v7468_v13  ;;  %v6560_v1 = vpop.f32.mrb[192].mxu1  ;;  %8380 = vmatprep.mubr.bf16.mxu1 %v16988_v44  ;;  %v17576_v26 = vld [vmem:[#allocation76_spill] sm:$0xff] }
 0x4c0   : > { %17573 = vst [vmem:[#allocation36_spill] sm:$0xff] %v15692_v11  ;;  %17575 = vst [vmem:[#allocation25_spill] sm:$0xff] %v15696_v4  ;;  %v6488_v59 = vadd.f32 %v6487_v40, %v14381_v41  ;;  %v6489_v52 = vpop.f32.mrb[193].mxu0  ;;  %v6561_v38 = vadd.f32 %v6560_v1, %v14381_v41  ;;  %v6562_v19 = vpop.f32.mrb[193].mxu1 }
 0x4c1   : > { %v6490_v23 = vadd.f32 %v6489_v52, %v14381_v41  ;;  %8310 = vmatpush1.bf16.msra.mxu0 %v17576_v26  ;;  %v6491_v16 = vpop.f32.mrb[194].mxu0  ;;  %v6563_v53 = vadd.f32 %v6562_v19, %v14381_v41  ;;  %8351 = vmatpush1.bf16.msra.mxu1 %v17577_v62  ;;  %v6564_v57 = vpop.f32.mrb[194].mxu1 }
 0x4c2   : > { %v6492_v8 = vadd.f32 %v6491_v16, %v14386_v35  ;;  %8311 = vmatprep.subr.bf16.mxu0 %v15141_v51  ;;  %v6493_v49 = vpop.f32.mrb[195].mxu0  ;;  %v6565_v13 = vadd.f32 %v6564_v57, %v14386_v35  ;;  %8352 = vmatprep.subr.bf16.mxu1 %v15145_v0  ;;  %v6566_v17 = vpop.f32.mrb[195].mxu1  ;;  %v7085_v40 = vmax.f32 %v6488_v59, 0.0  ;;  %v7087_v19 = vmax.f32 %v6561_v38, 0.0  ;;  %v17578_v57 = vld [vmem:[#allocation78_spill] sm:$0xff]  ;;  %v17579_v0 = vld [vmem:[#allocation77_spill] sm:$0xff] }
 0x4c3   : > { %v6494_v10 = vadd.f32 %v6493_v49, %v14386_v35  ;;  %v6567_v52 = vadd.f32 %v6566_v17, %v14386_v35  ;;  %v7086_v26 = vmax.f32 %v6490_v23, 0.0  ;;  %v7088_v16 = vmax.f32 %v6563_v53, 0.0 }
 0x4c4   : > { %v7149_v1 = vmax.f32 %v6492_v8, 0.0  ;;  %v7151_v62 = vmax.f32 %v6565_v13, 0.0  ;;  %v17581_v8 = vld [vmem:[#allocation86_spill] sm:$0xff] }
 0x4c5   : > { %v7150_v4 = vmax.f32 %v6494_v10, 0.0  ;;  %8312 = vmatpush1.bf16.msra.mxu0 %v15135_v12  ;;  %v7152_v11 = vmax.f32 %v6567_v52, 0.0  ;;  %8353 = vmatpush1.bf16.msra.mxu1 %v17578_v57 }
 0x4c6   : > { %v15718_v51 = vpack.c.bf16 %v7149_v1, %v7085_v40  ;;  %8313 = vmatprep.subr.bf16.mxu0 %v17579_v0  ;;  %v15722_v49 = vpack.c.bf16 %v7151_v62, %v7087_v19  ;;  %8354 = vmatprep.subr.bf16.mxu1 %v17581_v8  ;;  %v17582_v1 = vld [vmem:[#allocation83_spill] sm:$0xff]  ;;  %v17583_v19 = vld [vmem:[#allocation80_spill] sm:$0xff]  ;;  %v17584_v62 = vld [vmem:[#allocation85_spill] sm:$0xff] }
 0x4c7   : > { %v15724_v59 = vpack.c.bf16 %v7150_v4, %v7086_v26  ;;  %v6497_v38 = vpop.f32.mrb[196].mxu0  ;;  %v15727_v23 = vpack.c.bf16 %v7152_v11, %v7088_v16  ;;  %v6570_v12 = vpop.f32.mrb[196].mxu1  ;;  %v17585_v0 = vld [vmem:[#allocation87_spill] sm:$0xff] }
 0x4c8   : > { %17580 = vst [vmem:[#allocation26_spill] sm:$0xff] %v15722_v49  ;;  %v6498_v13 = vadd.f32 %v6497_v38, %v14407_v32  ;;  %v6499_v53 = vpop.f32.mrb[197].mxu0  ;;  %v6571_v10 = vadd.f32 %v6570_v12, %v14407_v32  ;;  %v6572_v40 = vpop.f32.mrb[197].mxu1 }
 0x4c9   : > { %v6500_v17 = vadd.f32 %v6499_v53, %v14407_v32  ;;  %8314 = vmatpush1.bf16.msra.mxu0 %v17582_v1  ;;  %v6501_v52 = vpop.f32.mrb[198].mxu0  ;;  %v6573_v4 = vadd.f32 %v6572_v40, %v14407_v32  ;;  %8355 = vmatpush1.bf16.msra.mxu1 %v17583_v19  ;;  %v6574_v11 = vpop.f32.mrb[198].mxu1 }
 0x4ca   : > { %v6502_v26 = vadd.f32 %v6501_v52, %v14412_v29  ;;  %8389 = vmatprep.subr.bf16.mxu0 %v17584_v62  ;;  %v6503_v16 = vpop.f32.mrb[199].mxu0  ;;  %v6575_v57 = vadd.f32 %v6574_v11, %v14412_v29  ;;  %8430 = vmatprep.subr.bf16.mxu1 %v17585_v0  ;;  %v6576_v38 = vpop.f32.mrb[199].mxu1  ;;  %v7213_v12 = vmax.f32 %v6498_v13, 0.0  ;;  %v7215_v40 = vmax.f32 %v6571_v10, 0.0  ;;  %v17586_v11 = vld [vmem:[#allocation81_spill] sm:$0xff]  ;;  %v17587_v13 = vld [vmem:[#allocation82_spill] sm:$0xff] }
 0x4cb   : > { %v6504_v8 = vadd.f32 %v6503_v16, %v14412_v29  ;;  %v6577_v1 = vadd.f32 %v6576_v38, %v14412_v29  ;;  %v7214_v52 = vmax.f32 %v6500_v17, 0.0  ;;  %v7216_v62 = vmax.f32 %v6573_v4, 0.0 }
 0x4cc   : > { %v7277_v53 = vmax.f32 %v6502_v26, 0.0  ;;  %11335 = vmatmul.mubr.msk.bf16.vlgmr.msra.gmra.mrb[24].mxu0 %vm4688_vm1, %v15410_v34  ;;  %v7279_v19 = vmax.f32 %v6575_v57, 0.0  ;;  %11336 = vmatmul.mubr.msk.bf16.vlgmr.msra.gmra.mrb[24].mxu1 %vm4688_vm1, %v15410_v34 }
 0x4cd   : > { %v7278_v49 = vmax.f32 %v6504_v8, 0.0  ;;  %8390 = vmatpush1.bf16.msra.mxu0 %v17586_v11  ;;  %v7280_v16 = vmax.f32 %v6577_v1, 0.0  ;;  %8431 = vmatpush1.bf16.msra.mxu1 %v17587_v13 }
 0x4ce   : > { %v15746_v0 = vpack.c.bf16 %v7277_v53, %v7213_v12  ;;  %8391 = vmatprep.subr.bf16.mxu0 %v15215_v47  ;;  %v15750_v26 = vpack.c.bf16 %v7279_v19, %v7215_v40  ;;  %8432 = vmatprep.subr.bf16.mxu1 %v15219_v3 }
 0x4cf   : > { %v15752_v38 = vpack.c.bf16 %v7278_v49, %v7214_v52  ;;  %v6507_v10 = vpop.f32.mrb[200].mxu0  ;;  %8421 = vmatprep.mubr.bf16.mxu0 %v16988_v44  ;;  %v15756_v34 = vpack.c.bf16 %v7280_v16, %v7216_v62  ;;  %v6580_v4 = vpop.f32.mrb[200].mxu1  ;;  %8462 = vmatprep.mubr.bf16.mxu1 %v16988_v44 }
 0x4d0   : > { %v6508_v17 = vadd.f32 %v6507_v10, %v14433_v27  ;;  %v6509_v57 = vpop.f32.mrb[201].mxu0  ;;  %v6581_v8 = vadd.f32 %v6580_v4, %v14433_v27  ;;  %v6582_v12 = vpop.f32.mrb[201].mxu1 }
 0x4d1   : > { %v6510_v47 = vadd.f32 %v6509_v57, %v14433_v27  ;;  %8392 = vmatpush1.bf16.msra.mxu0 %v15209_v46  ;;  %v6511_v49 = vpop.f32.mrb[202].mxu0  ;;  %v6583_v3 = vadd.f32 %v6582_v12, %v14433_v27  ;;  %8433 = vmatpush1.bf16.msra.mxu1 %v15213_v21  ;;  %v6584_v1 = vpop.f32.mrb[202].mxu1 }
 0x4d2   : > { %v6512_v53 = vadd.f32 %v6511_v49, %v14439_v31  ;;  %8393 = vmatprep.subr.bf16.mxu0 %v15245_v54  ;;  %v6513_v40 = vpop.f32.mrb[203].mxu0  ;;  %v6585_v52 = vadd.f32 %v6584_v1, %v14439_v31  ;;  %8434 = vmatprep.subr.bf16.mxu1 %v15249_v25  ;;  %v6586_v11 = vpop.f32.mrb[203].mxu1  ;;  %v7341_v62 = vmax.f32 %v6508_v17, 0.0  ;;  %v7343_v13 = vmax.f32 %v6581_v8, 0.0 }
 0x4d3   : > { %v6514_v19 = vadd.f32 %v6513_v40, %v14439_v31  ;;  %v6587_v16 = vadd.f32 %v6586_v11, %v14439_v31  ;;  %v7342_v10 = vmax.f32 %v6510_v47, 0.0  ;;  %v7344_v57 = vmax.f32 %v6583_v3, 0.0 }
 0x4d4   : > { %v7405_v46 = vmax.f32 %v6512_v53, 0.0  ;;  %v7407_v21 = vmax.f32 %v6585_v52, 0.0 }
 0x4d5   : > { %v7406_v4 = vmax.f32 %v6514_v19, 0.0  ;;  %8394 = vmatpush1.bf16.msra.mxu0 %v15239_v18  ;;  %v7408_v12 = vmax.f32 %v6587_v16, 0.0  ;;  %8435 = vmatpush1.bf16.msra.mxu1 %v15243_v24  ;;  %v17588_v19 = vld [vmem:[#allocation91_spill] sm:$0xff] }
 0x4d6   : > { %v15772_v54 = vpack.c.bf16 %v7405_v46, %v7341_v62  ;;  %8395 = vmatprep.subr.bf16.mxu0 %v15274_v9  ;;  %v15776_v25 = vpack.c.bf16 %v7407_v21, %v7343_v13  ;;  %8436 = vmatprep.subr.bf16.mxu1 %v15276_v56  ;;  %v17589_v46 = vld [vmem:[#allocation94_spill] sm:$0xff] }
 0x4d7   : > { %v15778_v17 = vpack.c.bf16 %v7406_v4, %v7342_v10  ;;  %v6517_v8 = vpop.f32.mrb[204].mxu0  ;;  %v15781_v47 = vpack.c.bf16 %v7408_v12, %v7344_v57  ;;  %v6590_v18 = vpop.f32.mrb[204].mxu1 }
 0x4d8   : > { %v6518_v49 = vadd.f32 %v6517_v8, %v14467_v60  ;;  %v6519_v3 = vpop.f32.mrb[205].mxu0  ;;  %v6591_v53 = vadd.f32 %v6590_v18, %v14467_v60  ;;  %v6592_v24 = vpop.f32.mrb[205].mxu1  ;;  %v17590_v18 = vld [vmem:[#allocation84_spill] sm:$0xff] }
 0x4d9   : > { %v6520_v1 = vadd.f32 %v6519_v3, %v14467_v60  ;;  %8396 = vmatpush1.bf16.msra.mxu0 %v15269_v61  ;;  %v6521_v9 = vpop.f32.mrb[206].mxu0  ;;  %v6593_v40 = vadd.f32 %v6592_v24, %v14467_v60  ;;  %8437 = vmatpush1.bf16.msra.mxu1 %v15272_v43  ;;  %v6594_v52 = vpop.f32.mrb[206].mxu1  ;;  %v15798_v43 = vld [vmem:[%s16973_s7] sm:$0xf] }
 0x4da   : > { %v6522_v56 = vadd.f32 %v6521_v9, %v14473_v33  ;;  %8471 = vmatprep.subr.bf16.mxu0 %v17588_v19  ;;  %v6523_v11 = vpop.f32.mrb[207].mxu0  ;;  %v6595_v62 = vadd.f32 %v6594_v52, %v14473_v33  ;;  %8512 = vmatprep.subr.bf16.mxu1 %v17589_v46  ;;  %v6596_v13 = vpop.f32.mrb[207].mxu1  ;;  %v7469_v10 = vmax.f32 %v6518_v49, 0.0  ;;  %v7471_v4 = vmax.f32 %v6591_v53, 0.0  ;;  %v17591_v9 = vld [vmem:[#allocation90_spill] sm:$0xff] }
 0x4db   : > { %v6524_v16 = vadd.f32 %v6523_v11, %v14473_v33  ;;  %v6597_v21 = vadd.f32 %v6596_v13, %v14473_v33  ;;  %v7470_v57 = vmax.f32 %v6520_v1, 0.0  ;;  %v7472_v49 = vmax.f32 %v6593_v40, 0.0 }
 0x4dc   : > { %v7533_v61 = vmax.f32 %v6522_v56, 0.0  ;;  %11337 = vmatmul.mubr.msk.bf16.vlgmr.msra.gmra.mrb[28].mxu0 %vm4688_vm1, %v15798_v43  ;;  %v7535_v12 = vmax.f32 %v6595_v62, 0.0  ;;  %11338 = vmatmul.mubr.msk.bf16.vlgmr.msra.gmra.mrb[28].mxu1 %vm4688_vm1, %v15798_v43 }
 0x4dd   : > { %v7534_v8 = vmax.f32 %v6524_v16, 0.0  ;;  %8472 = vmatpush1.bf16.msra.mxu0 %v17590_v18  ;;  %v7536_v24 = vmax.f32 %v6597_v21, 0.0  ;;  %8513 = vmatpush1.bf16.msra.mxu1 %v17591_v9 }
 0x4de   : > { %v15805_v3 = vpack.c.bf16 %v7533_v61, %v7469_v10  ;;  %8473 = vmatprep.subr.bf16.mxu0 %v15319_v22  ;;  %v15809_v56 = vpack.c.bf16 %v7535_v12, %v7471_v4  ;;  %8514 = vmatprep.subr.bf16.mxu1 %v15323_v39 }
 0x4df   : > { %v15811_v52 = vpack.c.bf16 %v7534_v8, %v7470_v57  ;;  %v6633_v53 = vpop.f32.mrb[208].mxu0  ;;  %8503 = vmatprep.mubr.bf16.mxu0 %v16988_v44  ;;  %v15815_v1 = vpack.c.bf16 %v7536_v24, %v7472_v49  ;;  %v6706_v19 = vpop.f32.mrb[208].mxu1  ;;  %8544 = vmatprep.mubr.bf16.mxu1 %v16988_v44 }
 0x4e0   : > { %v6634_v40 = vadd.f32 %v6633_v53, %v14381_v41  ;;  %v6635_v11 = vpop.f32.mrb[209].mxu0  ;;  %v6707_v62 = vadd.f32 %v6706_v19, %v14381_v41  ;;  %v6708_v46 = vpop.f32.mrb[209].mxu1 }
 0x4e1   : > { %v6636_v22 = vadd.f32 %v6635_v11, %v14381_v41  ;;  %8474 = vmatpush1.bf16.msra.mxu0 %v15313_v50  ;;  %v6637_v16 = vpop.f32.mrb[210].mxu0  ;;  %v6709_v39 = vadd.f32 %v6708_v46, %v14381_v41  ;;  %8515 = vmatpush1.bf16.msra.mxu1 %v15317_v30  ;;  %v6710_v10 = vpop.f32.mrb[210].mxu1 }
 0x4e2   : > { %v6638_v13 = vadd.f32 %v6637_v16, %v14386_v35  ;;  %8475 = vmatprep.subr.bf16.mxu0 %v15349_v48  ;;  %v6639_v61 = vpop.f32.mrb[211].mxu0  ;;  %v6711_v21 = vadd.f32 %v6710_v10, %v14386_v35  ;;  %8516 = vmatprep.subr.bf16.mxu1 %v15353_v15  ;;  %v6712_v57 = vpop.f32.mrb[211].mxu1  ;;  %v7089_v12 = vmax.f32 %v6634_v40, 0.0  ;;  %v7091_v18 = vmax.f32 %v6707_v62, 0.0 }
 0x4e3   : > { %v6640_v4 = vadd.f32 %v6639_v61, %v14386_v35  ;;  %v6713_v8 = vadd.f32 %v6712_v57, %v14386_v35  ;;  %v7090_v49 = vmax.f32 %v6636_v22, 0.0  ;;  %v7092_v9 = vmax.f32 %v6709_v39, 0.0 }
 0x4e4   : > { %v7153_v50 = vmax.f32 %v6638_v13, 0.0  ;;  %v7155_v30 = vmax.f32 %v6711_v21, 0.0 }
 0x4e5   : > { %v7154_v24 = vmax.f32 %v6640_v4, 0.0  ;;  %8476 = vmatpush1.bf16.msra.mxu0 %v15343_v55  ;;  %v7156_v53 = vmax.f32 %v6713_v8, 0.0  ;;  %8517 = vmatpush1.bf16.msra.mxu1 %v15347_v2 }
 0x4e6   : > { %v15831_v48 = vpack.c.bf16 %v7153_v50, %v7089_v12  ;;  %8477 = vmatprep.subr.bf16.mxu0 %v15378_v37  ;;  %v15835_v15 = vpack.c.bf16 %v7155_v30, %v7091_v18  ;;  %8518 = vmatprep.subr.bf16.mxu1 %v15380_v6 }
 0x4e7   : > { %v15837_v40 = vpack.c.bf16 %v7154_v24, %v7090_v49  ;;  %v6643_v19 = vpop.f32.mrb[212].mxu0  ;;  %v15840_v11 = vpack.c.bf16 %v7156_v53, %v7092_v9  ;;  %v6716_v55 = vpop.f32.mrb[212].mxu1  ;;  %v17593_v24 = vld [vmem:[#allocation88_spill] sm:$0xff]  ;;  %v17594_v9 = vld [vmem:[#allocation93_spill] sm:$0xff] }
 0x4e8   : > { %v6644_v62 = vadd.f32 %v6643_v19, %v14407_v32  ;;  %v6645_v22 = vpop.f32.mrb[213].mxu0  ;;  %v6717_v46 = vadd.f32 %v6716_v55, %v14407_v32  ;;  %v6718_v2 = vpop.f32.mrb[213].mxu1 }
 0x4e9   : > { %v6646_v16 = vadd.f32 %v6645_v22, %v14407_v32  ;;  %8478 = vmatpush1.bf16.msra.mxu0 %v15373_v14  ;;  %v6647_v37 = vpop.f32.mrb[214].mxu0  ;;  %v6719_v39 = vadd.f32 %v6718_v2, %v14407_v32  ;;  %8519 = vmatpush1.bf16.msra.mxu1 %v15376_v20  ;;  %v6720_v13 = vpop.f32.mrb[214].mxu1 }
 0x4ea   : > { %v6648_v6 = vadd.f32 %v6647_v37, %v14412_v29  ;;  %8553 = vmatprep.subr.bf16.mxu0 %v15400_v7  ;;  %v6649_v10 = vpop.f32.mrb[215].mxu0  ;;  %v6721_v61 = vadd.f32 %v6720_v13, %v14412_v29  ;;  %8594 = vmatprep.subr.bf16.mxu1 %v15402_v58  ;;  %v6722_v4 = vpop.f32.mrb[215].mxu1  ;;  %v7217_v57 = vmax.f32 %v6644_v62, 0.0  ;;  %v7219_v20 = vmax.f32 %v6717_v46, 0.0  ;;  %v17592_v7 = vld [vmem:[#allocation95_spill] sm:$0xff]  ;;  %v17595_v62 = vld [vmem:[#allocation100_spill] sm:$0xff] }
 0x4eb   : > { %v6650_v21 = vadd.f32 %v6649_v10, %v14412_v29  ;;  %v6723_v12 = vadd.f32 %v6722_v4, %v14412_v29  ;;  %v7218_v50 = vmax.f32 %v6646_v16, 0.0  ;;  %v7220_v58 = vmax.f32 %v6719_v39, 0.0  ;;  %v17596_v13 = vld [vmem:[#allocation89_spill] sm:$0xff] }
 0x4ec   : > { %v7281_v14 = vmax.f32 %v6648_v6, 0.0  ;;  %11339 = vmatmul.mubr.msk.bf16.vlgmr.msra.gmra.mrb[32].mxu0 %vm4688_vm1, %v15798_v43  ;;  %v7283_v8 = vmax.f32 %v6721_v61, 0.0  ;;  %11340 = vmatmul.mubr.msk.bf16.vlgmr.msra.gmra.mrb[32].mxu1 %vm4688_vm1, %v15798_v43 }
 0x4ed   : > { %v7282_v18 = vmax.f32 %v6650_v21, 0.0  ;;  %8554 = vmatpush1.bf16.msra.mxu0 %v17592_v7  ;;  %v7284_v30 = vmax.f32 %v6723_v12, 0.0  ;;  %8595 = vmatpush1.bf16.msra.mxu1 %v17593_v24  ;;  %v17597_v21 = vld [vmem:[#allocation92_spill] sm:$0xff] }
 0x4ee   : > { %v15859_v49 = vpack.c.bf16 %v7281_v14, %v7217_v57  ;;  %8555 = vmatprep.subr.bf16.mxu0 %v17594_v9  ;;  %v15863_v53 = vpack.c.bf16 %v7283_v8, %v7219_v20  ;;  %8596 = vmatprep.subr.bf16.mxu1 %v17595_v62  ;;  %v17598_v14 = vld [vmem:[#allocation99_spill] sm:$0xff] }
 0x4ef   : > { %v15865_v19 = vpack.c.bf16 %v7282_v18, %v7218_v50  ;;  %v6653_v55 = vpop.f32.mrb[216].mxu0  ;;  %8585 = vmatprep.mubr.bf16.mxu0 %v16988_v44  ;;  %v15869_v22 = vpack.c.bf16 %v7284_v30, %v7220_v58  ;;  %v6726_v16 = vpop.f32.mrb[216].mxu1  ;;  %8626 = vmatprep.mubr.bf16.mxu1 %v16988_v44  ;;  %v17599_v50 = vld [vmem:[#allocation7_spill] sm:$0xff] }
 0x4f0   : > { %v6654_v46 = vadd.f32 %v6653_v55, %v14433_v27  ;;  %v6655_v2 = vpop.f32.mrb[217].mxu0  ;;  %v6727_v37 = vadd.f32 %v6726_v16, %v14433_v27  ;;  %v6728_v6 = vpop.f32.mrb[217].mxu1  ;;  %v17600_v16 = vld [vmem:[#allocation97_spill] sm:$0xff] }
 0x4f1   : > { %v6656_v39 = vadd.f32 %v6655_v2, %v14433_v27  ;;  %8556 = vmatpush1.bf16.msra.mxu0 %v17596_v13  ;;  %v6657_v10 = vpop.f32.mrb[218].mxu0  ;;  %v6729_v61 = vadd.f32 %v6728_v6, %v14433_v27  ;;  %8597 = vmatpush1.bf16.msra.mxu1 %v17597_v21  ;;  %v6730_v57 = vpop.f32.mrb[218].mxu1  ;;  %v17602_v21 = vld [vmem:[#allocation101_spill] sm:$0xff] }
 0x4f2   : > { %v6658_v4 = vadd.f32 %v6657_v10, %v14439_v31  ;;  %8557 = vmatprep.subr.bf16.mxu0 %v17598_v14  ;;  %v6659_v12 = vpop.f32.mrb[219].mxu0  ;;  %v6731_v20 = vadd.f32 %v6730_v57, %v14439_v31  ;;  %8598 = vmatprep.subr.bf16.mxu1 %v17599_v50  ;;  %v6732_v18 = vpop.f32.mrb[219].mxu1  ;;  %v7345_v7 = vmax.f32 %v6654_v46, 0.0  ;;  %v7347_v24 = vmax.f32 %v6727_v37, 0.0  ;;  %v17601_v10 = vld [vmem:[#allocation96_spill] sm:$0xff] }
 0x4f3   : > { %v6660_v8 = vadd.f32 %v6659_v12, %v14439_v31  ;;  %v6733_v30 = vadd.f32 %v6732_v18, %v14439_v31  ;;  %v7346_v9 = vmax.f32 %v6656_v39, 0.0  ;;  %v7348_v2 = vmax.f32 %v6729_v61, 0.0  ;;  %v17604_v18 = vld [vmem:[#allocation8_spill] sm:$0xff] }
 0x4f4   : > { %v7409_v58 = vmax.f32 %v6658_v4, 0.0  ;;  %v7411_v62 = vmax.f32 %v6731_v20, 0.0  ;;  %v17603_v4 = vld [vmem:[#allocation11_spill] sm:$0xff] }
 0x4f5   : > { %v7410_v55 = vmax.f32 %v6660_v8, 0.0  ;;  %8558 = vmatpush1.bf16.msra.mxu0 %v17600_v16  ;;  %v7412_v13 = vmax.f32 %v6733_v30, 0.0  ;;  %8599 = vmatpush1.bf16.msra.mxu1 %v17601_v10  ;;  %v17605_v30 = vld [vmem:[#allocation98_spill] sm:$0xff]  ;;  %v17606_v16 = vld [vmem:[#allocation4_spill] sm:$0xff] }
 0x4f6   : > { %v15885_v6 = vpack.c.bf16 %v7409_v58, %v7345_v7  ;;  %8559 = vmatprep.subr.bf16.mxu0 %v17602_v21  ;;  %v15889_v57 = vpack.c.bf16 %v7411_v62, %v7347_v24  ;;  %8600 = vmatprep.subr.bf16.mxu1 %v17603_v4 }
 0x4f7   : > { %v15891_v46 = vpack.c.bf16 %v7410_v55, %v7346_v9  ;;  %v6663_v37 = vpop.f32.mrb[220].mxu0  ;;  %v15894_v39 = vpack.c.bf16 %v7412_v13, %v7348_v2  ;;  %v6736_v12 = vpop.f32.mrb[220].mxu1 }
 0x4f8   : > { %v6664_v14 = vadd.f32 %v6663_v37, %v14467_v60  ;;  %v6665_v61 = vpop.f32.mrb[221].mxu0  ;;  %v6737_v20 = vadd.f32 %v6736_v12, %v14467_v60  ;;  %v6738_v8 = vpop.f32.mrb[221].mxu1 }
 0x4f9   : > { %v6666_v50 = vadd.f32 %v6665_v61, %v14467_v60  ;;  %8560 = vmatpush1.bf16.msra.mxu0 %v17604_v18  ;;  %v6667_v7 = vpop.f32.mrb[222].mxu0  ;;  %v6739_v58 = vadd.f32 %v6738_v8, %v14467_v60  ;;  %8601 = vmatpush1.bf16.msra.mxu1 %v17605_v30  ;;  %v6740_v9 = vpop.f32.mrb[222].mxu1 }
 0x4fa   : > { %v6668_v24 = vadd.f32 %v6667_v7, %v14473_v33  ;;  %8635 = vmatprep.subr.bf16.mxu0 %v15508_v42  ;;  %v6669_v62 = vpop.f32.mrb[223].mxu0  ;;  %v6741_v55 = vadd.f32 %v6740_v9, %v14473_v33  ;;  %8676 = vmatprep.subr.bf16.mxu1 %v17606_v16  ;;  %v6742_v13 = vpop.f32.mrb[223].mxu1  ;;  %v7473_v10 = vmax.f32 %v6664_v14, 0.0  ;;  %v7475_v37 = vmax.f32 %v6737_v20, 0.0  ;;  %v17607_v42 = vld [vmem:[#allocation12_spill] sm:$0xff]  ;;  %v17609_v14 = vld [vmem:[#allocation3_spill] sm:$0xff] }
 0x4fb   : > { %v6670_v2 = vadd.f32 %v6669_v62, %v14473_v33  ;;  %v6743_v4 = vadd.f32 %v6742_v13, %v14473_v33  ;;  %v7474_v12 = vmax.f32 %v6666_v50, 0.0  ;;  %v7476_v18 = vmax.f32 %v6739_v58, 0.0  ;;  %v17613_v20 = vld [vmem:[#allocation6_spill] sm:$0xff] }
 0x4fc   : > { %v7537_v21 = vmax.f32 %v6668_v24, 0.0  ;;  %11341 = vmatmul.mubr.msk.bf16.vlgmr.msra.gmra.mrb[36].mxu0 %vm4688_vm1, %v15798_v43  ;;  %v7539_v61 = vmax.f32 %v6741_v55, 0.0  ;;  %11342 = vmatmul.mubr.msk.bf16.vlgmr.msra.gmra.mrb[36].mxu1 %vm4688_vm1, %v15798_v43  ;;  %v17610_v24 = vld [vmem:[#allocation5_spill] sm:$0xff] }
 0x4fd   : > { %v7538_v8 = vmax.f32 %v6670_v2, 0.0  ;;  %8636 = vmatpush1.bf16.msra.mxu0 %v17607_v42  ;;  %v7540_v30 = vmax.f32 %v6743_v4, 0.0  ;;  %8677 = vmatpush1.bf16.msra.mxu1 %v17609_v14  ;;  %v17615_v4 = vld [vmem:[#allocation15_spill] sm:$0xff] }
 0x4fe   : > { %v15913_v7 = vpack.c.bf16 %v7537_v21, %v7473_v10  ;;  %8637 = vmatprep.subr.bf16.mxu0 %v17610_v24  ;;  %v15917_v9 = vpack.c.bf16 %v7539_v61, %v7475_v37  ;;  %8678 = vmatprep.subr.bf16.mxu1 %v17613_v20  ;;  %v17616_v61 = vld [vmem:[#allocation16_spill] sm:$0xff]  ;;  %v17618_v24 = vld [vmem:[#allocation10_spill] sm:$0xff] }
 0x4ff   : > { %v15919_v62 = vpack.c.bf16 %v7538_v8, %v7474_v12  ;;  %v6779_v50 = vpop.f32.mrb[224].mxu0  ;;  %8667 = vmatprep.mubr.bf16.mxu0 %v16988_v44  ;;  %v15923_v55 = vpack.c.bf16 %v7540_v30, %v7476_v18  ;;  %v6852_v16 = vpop.f32.mrb[224].mxu1  ;;  %8708 = vmatprep.mubr.bf16.mxu1 %v16988_v44  ;;  %v17617_v18 = vld [vmem:[#allocation9_spill] sm:$0xff] }
 0x500   : > { %17608 = vst [vmem:[#allocation39_spill] sm:$0xff] %v15913_v7  ;;  %17611 = vst [vmem:[#allocation29_spill] sm:$0xff] %v15917_v9  ;;  %v6780_v58 = vadd.f32 %v6779_v50, %v14381_v41  ;;  %v6781_v2 = vpop.f32.mrb[225].mxu0  ;;  %v6853_v13 = vadd.f32 %v6852_v16, %v14381_v41  ;;  %v6854_v21 = vpop.f32.mrb[225].mxu1 }
 0x501   : > { %17612 = vst [vmem:[#allocation30_spill] sm:$0xff] %v15919_v62  ;;  %17614 = vst [vmem:[#allocation34_spill] sm:$0xff] %v15923_v55  ;;  %v6782_v10 = vadd.f32 %v6781_v2, %v14381_v41  ;;  %8638 = vmatpush1.bf16.msra.mxu0 %v17615_v4  ;;  %v6783_v37 = vpop.f32.mrb[226].mxu0  ;;  %v6855_v12 = vadd.f32 %v6854_v21, %v14381_v41  ;;  %8679 = vmatpush1.bf16.msra.mxu1 %v17616_v61  ;;  %v6856_v42 = vpop.f32.mrb[226].mxu1 }
 0x502   : > { %v6784_v8 = vadd.f32 %v6783_v37, %v14386_v35  ;;  %8639 = vmatprep.subr.bf16.mxu0 %v17617_v18  ;;  %v6785_v30 = vpop.f32.mrb[227].mxu0  ;;  %v6857_v14 = vadd.f32 %v6856_v42, %v14386_v35  ;;  %8680 = vmatprep.subr.bf16.mxu1 %v17618_v24  ;;  %v6858_v50 = vpop.f32.mrb[227].mxu1  ;;  %v7093_v16 = vmax.f32 %v6780_v58, 0.0  ;;  %v7095_v21 = vmax.f32 %v6853_v13, 0.0  ;;  %v17619_v37 = vld [vmem:[#allocation19_spill] sm:$0xff]  ;;  %v17621_v42 = vld [vmem:[#allocation20_spill] sm:$0xff] }
 0x503   : > { %v6786_v20 = vadd.f32 %v6785_v30, %v14386_v35  ;;  %v6859_v4 = vadd.f32 %v6858_v50, %v14386_v35  ;;  %v7094_v9 = vmax.f32 %v6782_v10, 0.0  ;;  %v7096_v55 = vmax.f32 %v6855_v12, 0.0  ;;  %v17622_v24 = vld [vmem:[#allocation13_spill] sm:$0xff] }
 0x504   : > { %v7157_v2 = vmax.f32 %v6784_v8, 0.0  ;;  %v7159_v61 = vmax.f32 %v6857_v14, 0.0  ;;  %v17624_v8 = vld [vmem:[#allocation14_spill] sm:$0xff] }
 0x505   : > { %v7158_v7 = vmax.f32 %v6786_v20, 0.0  ;;  %8640 = vmatpush1.bf16.msra.mxu0 %v17619_v37  ;;  %v7160_v62 = vmax.f32 %v6859_v4, 0.0  ;;  %8681 = vmatpush1.bf16.msra.mxu1 %v17621_v42  ;;  %v17625_v4 = vld [vmem:[#allocation23_spill] sm:$0xff] }
 0x506   : > { %v15939_v18 = vpack.c.bf16 %v7157_v2, %v7093_v16  ;;  %8641 = vmatprep.subr.bf16.mxu0 %v17622_v24  ;;  %v15943_v30 = vpack.c.bf16 %v7159_v61, %v7095_v21  ;;  %8682 = vmatprep.subr.bf16.mxu1 %v17624_v8  ;;  %v17628_v24 = vld [vmem:[#allocation18_spill] sm:$0xff] }
 0x507   : > { %v15945_v58 = vpack.c.bf16 %v7158_v7, %v7094_v9  ;;  %v6789_v13 = vpop.f32.mrb[228].mxu0  ;;  %v15948_v10 = vpack.c.bf16 %v7160_v62, %v7096_v55  ;;  %v6862_v20 = vpop.f32.mrb[228].mxu1  ;;  %v17626_v9 = vld [vmem:[#allocation24_spill] sm:$0xff]  ;;  %v17627_v55 = vld [vmem:[#allocation17_spill] sm:$0xff] }
 0x508   : > { %17620 = vst [vmem:[#allocation43_spill] sm:$0xff] %v15939_v18  ;;  %17623 = vst [vmem:[#allocation40_spill] sm:$0xff] %v15943_v30  ;;  %v6790_v14 = vadd.f32 %v6789_v13, %v14407_v32  ;;  %v6791_v12 = vpop.f32.mrb[229].mxu0  ;;  %v6863_v50 = vadd.f32 %v6862_v20, %v14407_v32  ;;  %v6864_v2 = vpop.f32.mrb[229].mxu1 }
 0x509   : > { %v6792_v16 = vadd.f32 %v6791_v12, %v14407_v32  ;;  %8642 = vmatpush1.bf16.msra.mxu0 %v17625_v4  ;;  %v6793_v21 = vpop.f32.mrb[230].mxu0  ;;  %v6865_v7 = vadd.f32 %v6864_v2, %v14407_v32  ;;  %8683 = vmatpush1.bf16.msra.mxu1 %v17626_v9  ;;  %v6866_v62 = vpop.f32.mrb[230].mxu1 }
 0x50a   : > { %v6794_v61 = vadd.f32 %v6793_v21, %v14412_v29  ;;  %8717 = vmatprep.subr.bf16.mxu0 %v17627_v55  ;;  %v6795_v37 = vpop.f32.mrb[231].mxu0  ;;  %v6867_v42 = vadd.f32 %v6866_v62, %v14412_v29  ;;  %8758 = vmatprep.subr.bf16.mxu1 %v17628_v24  ;;  %v6868_v13 = vpop.f32.mrb[231].mxu1  ;;  %v7221_v20 = vmax.f32 %v6790_v14, 0.0  ;;  %v7223_v2 = vmax.f32 %v6863_v50, 0.0  ;;  %v17629_v62 = vld [vmem:[#allocation27_spill] sm:$0xff]  ;;  %v17631_v14 = vld [vmem:[#allocation28_spill] sm:$0xff] }
 0x50b   : > { %v6796_v8 = vadd.f32 %v6795_v37, %v14412_v29  ;;  %v6869_v4 = vadd.f32 %v6868_v13, %v14412_v29  ;;  %v7222_v21 = vmax.f32 %v6792_v16, 0.0  ;;  %v7224_v55 = vmax.f32 %v6865_v7, 0.0  ;;  %v17634_v50 = vld [vmem:[#allocation22_spill] sm:$0xff] }
 0x50c   : > { %v7285_v12 = vmax.f32 %v6794_v61, 0.0  ;;  %11343 = vmatmul.mubr.msk.bf16.vlgmr.msra.gmra.mrb[40].mxu0 %vm4688_vm1, %v15798_v43  ;;  %v7287_v9 = vmax.f32 %v6867_v42, 0.0  ;;  %11344 = vmatmul.mubr.msk.bf16.vlgmr.msra.gmra.mrb[40].mxu1 %vm4688_vm1, %v15798_v43  ;;  %v17632_v61 = vld [vmem:[#allocation21_spill] sm:$0xff] }
 0x50d   : > { %v7286_v30 = vmax.f32 %v6796_v8, 0.0  ;;  %8718 = vmatpush1.bf16.msra.mxu0 %v17629_v62  ;;  %v7288_v37 = vmax.f32 %v6869_v4, 0.0  ;;  %8759 = vmatpush1.bf16.msra.mxu1 %v17631_v14  ;;  %v17637_v62 = vld [vmem:[#allocation32_spill] sm:$0xff] }
 0x50e   : > { %v15967_v24 = vpack.c.bf16 %v7285_v12, %v7221_v20  ;;  %8719 = vmatprep.subr.bf16.mxu0 %v17632_v61  ;;  %v15971_v13 = vpack.c.bf16 %v7287_v9, %v7223_v2  ;;  %8760 = vmatprep.subr.bf16.mxu1 %v17634_v50 }
 0x50f   : > { %v15973_v18 = vpack.c.bf16 %v7286_v30, %v7222_v21  ;;  %v6799_v16 = vpop.f32.mrb[232].mxu0  ;;  %8749 = vmatprep.mubr.bf16.mxu0 %v16988_v44  ;;  %v15977_v42 = vpack.c.bf16 %v7288_v37, %v7224_v55  ;;  %v6872_v8 = vpop.f32.mrb[232].mxu1  ;;  %8790 = vmatprep.mubr.bf16.mxu1 %v16988_v44  ;;  %v17636_v30 = vld [vmem:[#allocation31_spill] sm:$0xff] }
 0x510   : > { %17630 = vst [vmem:[#allocation33_spill] sm:$0xff] %v15967_v24  ;;  %17633 = vst [vmem:[#allocation38_spill] sm:$0xff] %v15971_v13  ;;  %v6800_v7 = vadd.f32 %v6799_v16, %v14433_v27  ;;  %v6801_v20 = vpop.f32.mrb[233].mxu0  ;;  %v6873_v12 = vadd.f32 %v6872_v8, %v14433_v27  ;;  %v6874_v2 = vpop.f32.mrb[233].mxu1 }
 0x511   : > { %17635 = vst [vmem:[#allocation47_spill] sm:$0xff] %v15977_v42  ;;  %v6802_v4 = vadd.f32 %v6801_v20, %v14433_v27  ;;  %8720 = vmatpush1.bf16.msra.mxu0 %v17636_v30  ;;  %v6803_v21 = vpop.f32.mrb[234].mxu0  ;;  %v6875_v9 = vadd.f32 %v6874_v2, %v14433_v27  ;;  %8761 = vmatpush1.bf16.msra.mxu1 %v17637_v62  ;;  %v6876_v37 = vpop.f32.mrb[234].mxu1 }
 0x512   : > { %v6804_v55 = vadd.f32 %v6803_v21, %v14439_v31  ;;  %8721 = vmatprep.subr.bf16.mxu0 %v15670_v63  ;;  %v6805_v14 = vpop.f32.mrb[235].mxu0  ;;  %v6877_v61 = vadd.f32 %v6876_v37, %v14439_v31  ;;  %8762 = vmatprep.subr.bf16.mxu1 %v15673_v28  ;;  %v6878_v16 = vpop.f32.mrb[235].mxu1  ;;  %v7349_v8 = vmax.f32 %v6800_v7, 0.0  ;;  %v7351_v2 = vmax.f32 %v6873_v12, 0.0  ;;  %v17638_v37 = vld [vmem:[#allocation35_spill] sm:$0xff] }
 0x513   : > { %v6806_v50 = vadd.f32 %v6805_v14, %v14439_v31  ;;  %v6879_v30 = vadd.f32 %v6878_v16, %v14439_v31  ;;  %v7350_v13 = vmax.f32 %v6802_v4, 0.0  ;;  %v7352_v21 = vmax.f32 %v6875_v9, 0.0  ;;  %v17639_v16 = vld [vmem:[#allocation36_spill] sm:$0xff] }
 0x514   : > { %v7413_v20 = vmax.f32 %v6804_v55, 0.0  ;;  %v7415_v62 = vmax.f32 %v6877_v61, 0.0 }
 0x515   : > { %v7414_v24 = vmax.f32 %v6806_v50, 0.0  ;;  %8722 = vmatpush1.bf16.msra.mxu0 %v15664_v45  ;;  %v7416_v42 = vmax.f32 %v6879_v30, 0.0  ;;  %8763 = vmatpush1.bf16.msra.mxu1 %v17638_v37 }
 0x516   : > { %v15993_v63 = vpack.c.bf16 %v7413_v20, %v7349_v8  ;;  %8723 = vmatprep.subr.bf16.mxu0 %v15698_v5  ;;  %v15997_v28 = vpack.c.bf16 %v7415_v62, %v7351_v2  ;;  %8764 = vmatprep.subr.bf16.mxu1 %v15702_v36 }
 0x517   : > { %v15999_v7 = vpack.c.bf16 %v7414_v24, %v7350_v13  ;;  %v6809_v12 = vpop.f32.mrb[236].mxu0  ;;  %v16002_v4 = vpack.c.bf16 %v7416_v42, %v7352_v21  ;;  %v6882_v45 = vpop.f32.mrb[236].mxu1  ;;  %v17640_v13 = vld [vmem:[#allocation25_spill] sm:$0xff] }
 0x518   : > { %v6810_v55 = vadd.f32 %v6809_v12, %v14467_v60  ;;  %v6811_v9 = vpop.f32.mrb[237].mxu0  ;;  %v6883_v14 = vadd.f32 %v6882_v45, %v14467_v60  ;;  %v6884_v50 = vpop.f32.mrb[237].mxu1 }
 0x519   : > { %v6812_v61 = vadd.f32 %v6811_v9, %v14467_v60  ;;  %8724 = vmatpush1.bf16.msra.mxu0 %v17639_v16  ;;  %v6813_v5 = vpop.f32.mrb[238].mxu0  ;;  %v6885_v24 = vadd.f32 %v6884_v50, %v14467_v60  ;;  %8765 = vmatpush1.bf16.msra.mxu1 %v17640_v13  ;;  %v6886_v42 = vpop.f32.mrb[238].mxu1 }
 0x51a   : > { %v6814_v36 = vadd.f32 %v6813_v5, %v14473_v33  ;;  %8799 = vmatprep.subr.bf16.mxu0 %v15724_v59  ;;  %v6815_v8 = vpop.f32.mrb[239].mxu0  ;;  %v6887_v20 = vadd.f32 %v6886_v42, %v14473_v33  ;;  %8840 = vmatprep.subr.bf16.mxu1 %v15727_v23  ;;  %v6888_v2 = vpop.f32.mrb[239].mxu1  ;;  %v7477_v62 = vmax.f32 %v6810_v55, 0.0  ;;  %v7479_v12 = vmax.f32 %v6883_v14, 0.0  ;;  %v17641_v55 = vld [vmem:[#allocation26_spill] sm:$0xff] }
 0x51b   : > { %v6816_v30 = vadd.f32 %v6815_v8, %v14473_v33  ;;  %v6889_v37 = vadd.f32 %v6888_v2, %v14473_v33  ;;  %v7478_v45 = vmax.f32 %v6812_v61, 0.0  ;;  %v7480_v59 = vmax.f32 %v6885_v24, 0.0 }
 0x51c   : > { %v7541_v21 = vmax.f32 %v6814_v36, 0.0  ;;  %11345 = vmatmul.mubr.msk.bf16.vlgmr.msra.gmra.mrb[44].mxu0 %vm4688_vm1, %v15798_v43  ;;  %v7543_v9 = vmax.f32 %v6887_v20, 0.0  ;;  %11346 = vmatmul.mubr.msk.bf16.vlgmr.msra.gmra.mrb[44].mxu1 %vm4688_vm1, %v15798_v43 }
 0x51d   : > { %v7542_v50 = vmax.f32 %v6816_v30, 0.0  ;;  %8800 = vmatpush1.bf16.msra.mxu0 %v15718_v51  ;;  %v7544_v16 = vmax.f32 %v6889_v37, 0.0  ;;  %8841 = vmatpush1.bf16.msra.mxu1 %v17641_v55 }
 0x51e   : > { %v16021_v23 = vpack.c.bf16 %v7541_v21, %v7477_v62  ;;  %8801 = vmatprep.subr.bf16.mxu0 %v15752_v38  ;;  %v16025_v5 = vpack.c.bf16 %v7543_v9, %v7479_v12  ;;  %8842 = vmatprep.subr.bf16.mxu1 %v15756_v34 }
 0x51f   : > { %v16027_v13 = vpack.c.bf16 %v7542_v50, %v7478_v45  ;;  %v6925_v14 = vpop.f32.mrb[240].mxu0  ;;  %8831 = vmatprep.mubr.bf16.mxu0 %v16988_v44  ;;  %v16031_v61 = vpack.c.bf16 %v7544_v16, %v7480_v59  ;;  %v6998_v24 = vpop.f32.mrb[240].mxu1  ;;  %8872 = vmatprep.mubr.bf16.mxu1 %v16988_v44 }
 0x520   : > { %v6926_v51 = vadd.f32 %v6925_v14, %v14381_v41  ;;  %v6927_v36 = vpop.f32.mrb[241].mxu0  ;;  %v6999_v42 = vadd.f32 %v6998_v24, %v14381_v41  ;;  %v7000_v8 = vpop.f32.mrb[241].mxu1 }
 0x521   : > { %v6928_v38 = vadd.f32 %v6927_v36, %v14381_v41  ;;  %8802 = vmatpush1.bf16.msra.mxu0 %v15746_v0  ;;  %v6929_v20 = vpop.f32.mrb[242].mxu0  ;;  %v7001_v34 = vadd.f32 %v7000_v8, %v14381_v41  ;;  %8843 = vmatpush1.bf16.msra.mxu1 %v15750_v26  ;;  %v7002_v2 = vpop.f32.mrb[242].mxu1 }
 0x522   : > { %v6930_v30 = vadd.f32 %v6929_v20, %v14386_v35  ;;  %8803 = vmatprep.subr.bf16.mxu0 %v15778_v17  ;;  %v6931_v62 = vpop.f32.mrb[243].mxu0  ;;  %v7003_v21 = vadd.f32 %v7002_v2, %v14386_v35  ;;  %8844 = vmatprep.subr.bf16.mxu1 %v15781_v47  ;;  %v7004_v12 = vpop.f32.mrb[243].mxu1  ;;  %v7097_v45 = vmax.f32 %v6926_v51, 0.0  ;;  %v7099_v41 = vmax.f32 %v6999_v42, 0.0 }
 0x523   : > { %v6932_v37 = vadd.f32 %v6931_v62, %v14386_v35  ;;  %v7005_v9 = vadd.f32 %v7004_v12, %v14386_v35  ;;  %v7098_v50 = vmax.f32 %v6928_v38, 0.0  ;;  %v7100_v16 = vmax.f32 %v7001_v34, 0.0 }
 0x524   : > { %v7161_v0 = vmax.f32 %v6930_v30, 0.0  ;;  %v7163_v26 = vmax.f32 %v7003_v21, 0.0 }
 0x525   : > { %v7162_v59 = vmax.f32 %v6932_v37, 0.0  ;;  %8804 = vmatpush1.bf16.msra.mxu0 %v15772_v54  ;;  %v7164_v55 = vmax.f32 %v7005_v9, 0.0  ;;  %8845 = vmatpush1.bf16.msra.mxu1 %v15776_v25 }
 0x526   : > { %v16047_v17 = vpack.c.bf16 %v7161_v0, %v7097_v45  ;;  %8805 = vmatprep.subr.bf16.mxu0 %v15811_v52  ;;  %v16051_v47 = vpack.c.bf16 %v7163_v26, %v7099_v41  ;;  %8846 = vmatprep.subr.bf16.mxu1 %v15815_v1 }
 0x527   : > { %v16053_v14 = vpack.c.bf16 %v7162_v59, %v7098_v50  ;;  %v6935_v35 = vpop.f32.mrb[244].mxu0  ;;  %v16056_v51 = vpack.c.bf16 %v7164_v55, %v7100_v16  ;;  %v7008_v54 = vpop.f32.mrb[244].mxu1 }
 0x528   : > { %v6936_v24 = vadd.f32 %v6935_v35, %v14407_v32  ;;  %v6937_v36 = vpop.f32.mrb[245].mxu0  ;;  %v7009_v42 = vadd.f32 %v7008_v54, %v14407_v32  ;;  %v7010_v25 = vpop.f32.mrb[245].mxu1 }
 0x529   : > { %v6938_v38 = vadd.f32 %v6937_v36, %v14407_v32  ;;  %8806 = vmatpush1.bf16.msra.mxu0 %v15805_v3  ;;  %v6939_v52 = vpop.f32.mrb[246].mxu0  ;;  %v7011_v8 = vadd.f32 %v7010_v25, %v14407_v32  ;;  %8847 = vmatpush1.bf16.msra.mxu1 %v15809_v56  ;;  %v7012_v20 = vpop.f32.mrb[246].mxu1  ;;  %v9655_v36 = vlaneseq }
 0x52a   : > { %v6940_v1 = vadd.f32 %v6939_v52, %v14412_v29  ;;  %8881 = vmatprep.subr.bf16.mxu0 %v15837_v40  ;;  %v6941_v34 = vpop.f32.mrb[247].mxu0  ;;  %v7013_v30 = vadd.f32 %v7012_v20, %v14412_v29  ;;  %8922 = vmatprep.subr.bf16.mxu1 %v15840_v11  ;;  %v7014_v62 = vpop.f32.mrb[247].mxu1  ;;  %v7225_v3 = vmax.f32 %v6936_v24, 0.0  ;;  %v7227_v56 = vmax.f32 %v7009_v42, 0.0 }
 0x52b   : > { %v6942_v2 = vadd.f32 %v6941_v34, %v14412_v29  ;;  %v7015_v32 = vadd.f32 %v7014_v62, %v14412_v29  ;;  %v7226_v37 = vmax.f32 %v6938_v38, 0.0  ;;  %v7228_v11 = vmax.f32 %v7011_v8, 0.0 }
 0x52c   : > { %v7289_v21 = vmax.f32 %v6940_v1, 0.0  ;;  %11347 = vmatmul.mubr.msk.bf16.vlgmr.msra.gmra.mrb[48].mxu0 %vm4688_vm1, %v15798_v43  ;;  %v7291_v12 = vmax.f32 %v7013_v30, 0.0  ;;  %11348 = vmatmul.mubr.msk.bf16.vlgmr.msra.gmra.mrb[48].mxu1 %vm4688_vm1, %v15798_v43 }
 0x52d   : > { %v7290_v40 = vmax.f32 %v6942_v2, 0.0  ;;  %8882 = vmatpush1.bf16.msra.mxu0 %v15831_v48  ;;  %v7292_v29 = vmax.f32 %v7015_v32, 0.0  ;;  %8923 = vmatpush1.bf16.msra.mxu1 %v15835_v15  ;;  %v16113_v2 = vshrl.u32 %v9655_v36, 7 }
 0x52e   : > { %v16079_v45 = vpack.c.bf16 %v7289_v21, %v7225_v3  ;;  %8883 = vmatprep.subr.bf16.mxu0 %v15865_v19  ;;  %v16083_v0 = vpack.c.bf16 %v7291_v12, %v7227_v56  ;;  %8924 = vmatprep.subr.bf16.mxu1 %v15869_v22  ;;  %v17643_v3 = vld [vmem:[#allocation34_spill] sm:$0xff] }
 0x52f   : > { %v16085_v9 = vpack.c.bf16 %v7290_v40, %v7226_v37  ;;  %v6945_v41 = vpop.f32.mrb[248].mxu0  ;;  %8913 = vmatprep.mubr.bf16.mxu0 %v16988_v44  ;;  %v16089_v48 = vpack.c.bf16 %v7292_v29, %v7228_v11  ;;  %v7018_v26 = vpop.f32.mrb[248].mxu1  ;;  %8954 = vmatprep.mubr.bf16.mxu1 %v16988_v44  ;;  %v17644_v11 = vld [vmem:[#allocation39_spill] sm:$0xff] }
 0x530   : > { %v6946_v50 = vadd.f32 %v6945_v41, %v14433_v27  ;;  %v6947_v59 = vpop.f32.mrb[249].mxu0  ;;  %v7019_v15 = vadd.f32 %v7018_v26, %v14433_v27  ;;  %v7020_v16 = vpop.f32.mrb[249].mxu1 }
 0x531   : > { %v6948_v19 = vadd.f32 %v6947_v59, %v14433_v27  ;;  %8884 = vmatpush1.bf16.msra.mxu0 %v15859_v49  ;;  %v6949_v22 = vpop.f32.mrb[250].mxu0  ;;  %v7021_v55 = vadd.f32 %v7020_v16, %v14433_v27  ;;  %8925 = vmatpush1.bf16.msra.mxu1 %v15863_v53  ;;  %v7022_v24 = vpop.f32.mrb[250].mxu1 }
 0x532   : > { %v6950_v35 = vadd.f32 %v6949_v22, %v14439_v31  ;;  %8885 = vmatprep.subr.bf16.mxu0 %v15891_v46  ;;  %v6951_v54 = vpop.f32.mrb[251].mxu0  ;;  %v7023_v42 = vadd.f32 %v7022_v24, %v14439_v31  ;;  %8926 = vmatprep.subr.bf16.mxu1 %v15894_v39  ;;  %v7024_v38 = vpop.f32.mrb[251].mxu1  ;;  %v7353_v25 = vmax.f32 %v6946_v50, 0.0  ;;  %v7355_v53 = vmax.f32 %v7019_v15, 0.0  ;;  %v17642_v39 = vld [vmem:[#allocation30_spill] sm:$0xff]  ;;  %v17645_v50 = vld [vmem:[#allocation29_spill] sm:$0xff] }
 0x533   : > { %v6952_v49 = vadd.f32 %v6951_v54, %v14439_v31  ;;  %v7025_v27 = vadd.f32 %v7024_v38, %v14439_v31  ;;  %v7354_v8 = vmax.f32 %v6948_v19, 0.0  ;;  %v7356_v46 = vmax.f32 %v7021_v55, 0.0 }
 0x534   : > { %v7417_v52 = vmax.f32 %v6950_v35, 0.0  ;;  %v7419_v1 = vmax.f32 %v7023_v42, 0.0  ;;  %v16136_v19 = vsub.s32 0, %v16113_v2  ;;  %v16142_v35 = vld [vmem:[%s16126_s14] sm:$0xff]  ;;  %v16148_v24 = vsub.s32 2, %v16113_v2 }
 0x535   : > { %v7418_v20 = vmax.f32 %v6952_v49, 0.0  ;;  %8886 = vmatpush1.bf16.msra.mxu0 %v15885_v6  ;;  %v7420_v30 = vmax.f32 %v7025_v27, 0.0  ;;  %8927 = vmatpush1.bf16.msra.mxu1 %v15889_v57 }
 0x536   : > { %v16109_v34 = vpack.c.bf16 %v7417_v52, %v7353_v25  ;;  %8887 = vmatprep.subr.bf16.mxu0 %v17642_v39  ;;  %v16115_v62 = vpack.c.bf16 %v7419_v1, %v7355_v53  ;;  %8928 = vmatprep.subr.bf16.mxu1 %v17643_v3  ;;  %v17646_v52 = vld [vmem:[#allocation43_spill] sm:$0xff]  ;;  %v9658_v1 = vrot.slane %v16142_v35, %v16136_v19 }
 0x537   : > { %v16117_v31 = vpack.c.bf16 %v7418_v20, %v7354_v8  ;;  %v6955_v21 = vpop.f32.mrb[252].mxu0  ;;  %v16120_v32 = vpack.c.bf16 %v7420_v30, %v7356_v46  ;;  %v7028_v56 = vpop.f32.mrb[252].mxu1 }
 0x538   : > { %v6956_v6 = vadd.f32 %v6955_v21, %v14467_v60  ;;  %v6957_v37 = vpop.f32.mrb[253].mxu0  ;;  %v7029_v57 = vadd.f32 %v7028_v56, %v14467_v60  ;;  %v7030_v40 = vpop.f32.mrb[253].mxu1  ;;  %v9666_v56 = vrot.slane %v16142_v35, %v16148_v24 }
 0x539   : > { %v6958_v12 = vadd.f32 %v6957_v37, %v14467_v60  ;;  %8888 = vmatpush1.bf16.msra.mxu0 %v17644_v11  ;;  %v6959_v29 = vpop.f32.mrb[254].mxu0  ;;  %v7031_v41 = vadd.f32 %v7030_v40, %v14467_v60  ;;  %8929 = vmatpush1.bf16.msra.mxu1 %v17645_v50  ;;  %v7032_v59 = vpop.f32.mrb[254].mxu1  ;;  %v16145_v60 = vsub.s32 3, %v16113_v2  ;;  %v16187_v50 = vsub.s32 4, %v16113_v2 }
 0x53a   : > { %v6960_v26 = vadd.f32 %v6959_v29, %v14473_v33  ;;  %8963 = vmatprep.subr.bf16.mxu0 %v15945_v58  ;;  %v6961_v15 = vpop.f32.mrb[255].mxu0  ;;  %v7033_v16 = vadd.f32 %v7032_v59, %v14473_v33  ;;  %9004 = vmatprep.subr.bf16.mxu1 %v15948_v10  ;;  %v7034_v55 = vpop.f32.mrb[255].mxu1  ;;  %v7481_v58 = vmax.f32 %v6956_v6, 0.0  ;;  %v16154_v10 = vsub.s32 1, %v16113_v2  ;;  %v17649_v29 = vld [vmem:[#allocation33_spill] sm:$0xff] }
 0x53b   : > { %v6962_v22 = vadd.f32 %v6961_v15, %v14473_v33  ;;  %v7035_v36 = vadd.f32 %v7034_v55, %v14473_v33  ;;  %v7483_v42 = vmax.f32 %v7029_v57, 0.0  ;;  %v7482_v49 = vmax.f32 %v6958_v12, 0.0  ;;  %v17647_v33 = vld [vmem:[#allocation40_spill] sm:$0xff]  ;;  %v16165_v20 = vpop.permute.xlu0 %7809 }
 0x53c   : > { %v7545_v54 = vmax.f32 %v6960_v26, 0.0  ;;  %11349 = vmatmul.mubr.msk.bf16.vlgmr.msra.gmra.mrb[52].mxu0 %vm4688_vm1, %v15798_v43  ;;  %v7547_v38 = vmax.f32 %v7033_v16, 0.0  ;;  %11350 = vmatmul.mubr.msk.bf16.vlgmr.msra.gmra.mrb[52].mxu1 %vm4688_vm1, %v15798_v43  ;;  %v7484_v27 = vmax.f32 %v7031_v41, 0.0  ;;  %v17648_v43 = vld [vmem:[#allocation47_spill] sm:$0xff]  ;;  %v9670_v3 = vrot.slane %v16142_v35, %v16145_v60 }
 0x53d   : > { %v7546_v25 = vmax.f32 %v6962_v22, 0.0  ;;  %8964 = vmatpush1.bf16.msra.mxu0 %v17646_v52  ;;  %v7548_v8 = vmax.f32 %v7035_v36, 0.0  ;;  %9005 = vmatpush1.bf16.msra.mxu1 %v17647_v33  ;;  %v9662_v57 = vrot.slane %v16142_v35, %v16154_v10  ;;  %v16190_v26 = vsub.s32 6, %v16113_v2  ;;  %v17650_v22 = vld [vmem:[#allocation38_spill] sm:$0xff] }
 0x53e   : > { %v16159_v53 = vpack.c.bf16 %v7545_v54, %v7481_v58  ;;  %8965 = vmatprep.subr.bf16.mxu0 %v15973_v18  ;;  %v16167_v46 = vpack.c.bf16 %v7547_v38, %v7483_v42  ;;  %9006 = vmatprep.subr.bf16.mxu1 %v17648_v43  ;;  %v16196_v54 = vsub.s32 5, %v16113_v2 }
 0x53f   : > { %v16169_v30 = vpack.c.bf16 %v7546_v25, %v7482_v49  ;;  %v7849_v39 = vpop.f32.mrb[0].mxu0  ;;  %8995 = vmatprep.mubr.bf16.mxu0 %v16988_v44  ;;  %v16175_v21 = vpack.c.bf16 %v7548_v8, %v7484_v27  ;;  %v7890_v6 = vpop.f32.mrb[0].mxu1  ;;  %9036 = vmatprep.mubr.bf16.mxu1 %v16988_v44 }
 0x540   : > { %v7850_v18 = vadd.f32 %v7849_v39, %v16165_v20  ;;  %v7851_v37 = vpop.f32.mrb[1].mxu0  ;;  %v7891_v12 = vadd.f32 %v7890_v6, %v16165_v20  ;;  %v7892_v11 = vpop.f32.mrb[1].mxu1 }
 0x541   : > { %v7852_v40 = vadd.f32 %v7851_v37, %v16165_v20  ;;  %8966 = vmatpush1.bf16.msra.mxu0 %v17649_v29  ;;  %v7853_v41 = vpop.f32.mrb[2].mxu0  ;;  %v7893_v16 = vadd.f32 %v7892_v11, %v16165_v20  ;;  %9007 = vmatpush1.bf16.msra.mxu1 %v17650_v22  ;;  %v7894_v55 = vpop.f32.mrb[2].mxu1  ;;  %v16207_v37 = vld [vmem:[%s16126_s14 + $0x8] sm:$0xff]  ;;  %v16237_v29 = vld [vmem:[%s16973_s7] sm:$0xf] }
 0x542   : > { %v11355_v59 = vmul.f32 -1.442695, %v7850_v18  ;;  %v9511_v15 = vmax.f32 %v7850_v18, 0.0  ;;  %8967 = vmatprep.subr.bf16.mxu0 %v15999_v7  ;;  %v7854_v58 = vpop.f32.mrb[3].mxu0  ;;  %v11357_v36 = vmul.f32 -1.442695, %v7891_v12  ;;  %9008 = vmatprep.subr.bf16.mxu1 %v16002_v4  ;;  %v9694_v11 = vrot.slane %v16207_v37, %v16154_v10 }
 0x543   : > { %v9513_v42 = vmax.f32 %v7891_v12, 0.0  ;;  %v11356_v49 = vmul.f32 -1.442695, %v7852_v40  ;;  %v9512_v38 = vmax.f32 %v7852_v40, 0.0  ;;  %v11358_v52 = vmul.f32 -1.442695, %v7893_v16 }
 0x544   : > { %11458 = vpow2.f32 %v11355_v59  ;;  %v9575_v25 = vsub.f32 0.0, %v9511_v15  ;;  %v9514_v27 = vmax.f32 %v7893_v16, 0.0  ;;  %v7895_v8 = vpop.f32.mrb[3].mxu1  ;;  %v16201_v7 = vsub.s32 7, %v16113_v2  ;;  %v16248_v15 = vld [vmem:[%s16126_s14 + $0x18] sm:$0xff] }
 0x545   : > { %11460 = vpow2.f32 %v11357_v36  ;;  %v9577_v33 = vsub.f32 0.0, %v9513_v42  ;;  %v9576_v43 = vsub.f32 0.0, %v9512_v38  ;;  %8968 = vmatpush1.bf16.msra.mxu0 %v15993_v63  ;;  %9009 = vmatpush1.bf16.msra.mxu1 %v15997_v28  ;;  %v9674_v2 = vrot.slane %v16142_v35, %v16187_v50 }
 0x546   : > { %v9975_v39 = vmul.f32 %v9658_v1, %v9575_v25  ;;  %11462 = vpow2.f32 %v11356_v49  ;;  %v9578_v18 = vsub.f32 0.0, %v9514_v27  ;;  %8969 = vmatprep.subr.bf16.mxu0 %v16027_v13  ;;  %9010 = vmatprep.subr.bf16.mxu1 %v16031_v61  ;;  %v9682_v1 = vrot.slane %v16142_v35, %v16190_v26 }
 0x547   : > { %v9977_v4 = vmul.f32 %v9666_v56, %v9577_v33  ;;  %v9976_v6 = vmul.f32 %v9662_v57, %v9576_v43  ;;  %11464 = vpow2.f32 %v11358_v52  ;;  %v9678_v13 = vrot.slane %v16142_v35, %v16196_v54 }
 0x548   : > { %v10039_v12 = vmul.f32 1.442695, %v9975_v39  ;;  %v9978_v63 = vmul.f32 %v9670_v3, %v9578_v18  ;;  %v9686_v61 = vrot.slane %v16142_v35, %v16201_v7  ;;  %v9690_v3 = vrot.slane %v16207_v37, %v16136_v19 }
 0x549   : > { %v10043_v40 = vmul.f32 1.442695, %v9977_v4  ;;  %v10041_v28 = vmul.f32 1.442695, %v9976_v6  ;;  %8970 = vmatpush1.bf16.msra.mxu0 %v16021_v23  ;;  %9011 = vmatpush1.bf16.msra.mxu1 %v16025_v5  ;;  %v9698_v57 = vrot.slane %v16207_v37, %v16148_v24  ;;  %v16225_v23 = vld [vmem:[%s16126_s14 + $0x10] sm:$0xff]  ;;  %v9702_v5 = vrot.slane %v16207_v37, %v16145_v60 }
 0x54a   : > { %11466 = vpow2.f32 %v10039_v12  ;;  %v10045_v56 = vmul.f32 1.442695, %v9978_v63  ;;  %9045 = vmatprep.subr.bf16.mxu0 %v16053_v14  ;;  %9086 = vmatprep.subr.bf16.mxu1 %v16056_v51  ;;  %v9706_v14 = vrot.slane %v16207_v37, %v16187_v50  ;;  %v9714_v51 = vrot.slane %v16207_v37, %v16190_v26 }
 0x54b   : > { %11468 = vpow2.f32 %v10043_v40  ;;  %v9710_v41 = vrot.slane %v16207_v37, %v16196_v54  ;;  %v9718_v59 = vrot.slane %v16207_v37, %v16201_v7  ;;  %v9722_v16 = vrot.slane %v16225_v23, %v16136_v19 }
 0x54c   : > { %11470 = vpow2.f32 %v10041_v28  ;;  %11351 = vmatmul.mubr.msk.bf16.vlgmr.msra.gmra.mrb[56].mxu0 %vm4688_vm1, %v16237_v29  ;;  %11352 = vmatmul.mubr.msk.bf16.vlgmr.msra.gmra.mrb[56].mxu1 %vm4688_vm1, %v16237_v29  ;;  %v9730_v22 = vrot.slane %v16225_v23, %v16148_v24  ;;  %v9726_v55 = vrot.slane %v16225_v23, %v16154_v10  ;;  %v9734_v36 = vrot.slane %v16225_v23, %v16145_v60 }
 0x54d   : > { %11472 = vpow2.f32 %v10045_v56  ;;  %9046 = vmatpush1.bf16.msra.mxu0 %v16047_v17  ;;  %9087 = vmatpush1.bf16.msra.mxu1 %v16051_v47  ;;  %v9738_v17 = vrot.slane %v16225_v23, %v16187_v50  ;;  %v9746_v42 = vrot.slane %v16225_v23, %v16190_v26  ;;  %v9742_v47 = vrot.slane %v16225_v23, %v16196_v54 }
 0x54e   : > { %v11459_v58 = vpop.eup %11458  ;;  %9047 = vmatprep.subr.bf16.mxu0 %v16085_v9  ;;  %9088 = vmatprep.subr.bf16.mxu1 %v16089_v48  ;;  %v9750_v9 = vrot.slane %v16225_v23, %v16201_v7  ;;  %v9754_v52 = vrot.slane %v16248_v15, %v16136_v19  ;;  %v9762_v48 = vrot.slane %v16248_v15, %v16148_v24 }
 0x54f   : > { %v11461_v49 = vpop.eup %11460  ;;  %v9319_v38 = vadd.f32 1.0, %v11459_v58  ;;  %v7931_v25 = vpop.f32.mrb[4].mxu0  ;;  %9077 = vmatprep.mubr.bf16.mxu0 %v16988_v44  ;;  %9118 = vmatprep.mubr.bf16.mxu1 %v16988_v44  ;;  %v9758_v18 = vrot.slane %v16248_v15, %v16154_v10 }
 0x550   : > { %v11463_v27 = vpop.eup %11462  ;;  %v9321_v8 = vadd.f32 1.0, %v11461_v49  ;;  %v7932_v33 = vadd.f32 %v7931_v25, %v16165_v20  ;;  %v7972_v43 = vpop.f32.mrb[4].mxu1 }
 0x551   : > { %v7933_v39 = vpop.f32.mrb[5].mxu0  ;;  %v11465_v4 = vpop.eup %11464  ;;  %11474 = vrcp.f32 %v9319_v38  ;;  %v9320_v6 = vadd.f32 1.0, %v11463_v27  ;;  %v7973_v12 = vadd.f32 %v7972_v43, %v16165_v20  ;;  %9048 = vmatpush1.bf16.msra.mxu0 %v16079_v45  ;;  %9089 = vmatpush1.bf16.msra.mxu1 %v16083_v0 }
 0x552   : > { %v7934_v63 = vadd.f32 %v7933_v39, %v16165_v20  ;;  %v7974_v40 = vpop.f32.mrb[5].mxu1  ;;  %v7935_v28 = vpop.f32.mrb[6].mxu0  ;;  %11476 = vrcp.f32 %v9321_v8  ;;  %v9322_v56 = vadd.f32 1.0, %v11465_v4  ;;  %v11359_v44 = vmul.f32 -1.442695, %v7932_v33  ;;  %9049 = vmatprep.subr.bf16.mxu0 %v16117_v31  ;;  %9090 = vmatprep.subr.bf16.mxu1 %v16120_v32 }
 0x553   : > { %v9515_v58 = vmax.f32 %v7932_v33, 0.0  ;;  %v7936_v49 = vpop.f32.mrb[7].mxu0  ;;  %v7976_v25 = vpop.f32.mrb[6].mxu1  ;;  %11478 = vrcp.f32 %v9320_v6  ;;  %v11361_v38 = vmul.f32 -1.442695, %v7973_v12  ;;  %v9517_v27 = vmax.f32 %v7973_v12, 0.0 }
 0x554   : > { %v11360_v43 = vmul.f32 -1.442695, %v7934_v63  ;;  %v7977_v39 = vpop.f32.mrb[7].mxu1  ;;  %v11467_v28 = vpop.eup %11466  ;;  %11480 = vrcp.f32 %v9322_v56  ;;  %v9516_v8 = vmax.f32 %v7934_v63, 0.0  ;;  %v9766_v33 = vrot.slane %v16248_v15, %v16145_v60 }
 0x555   : > { %v9579_v45 = vsub.f32 0.0, %v9515_v58  ;;  %v11469_v4 = vpop.eup %11468  ;;  %v10167_v0 = vsub.f32 1.0, %v11467_v28  ;;  %11482 = vpow2.f32 %v11359_v44  ;;  %v9581_v49 = vsub.f32 0.0, %v9517_v27  ;;  %9050 = vmatpush1.bf16.msra.mxu0 %v16109_v34  ;;  %9091 = vmatpush1.bf16.msra.mxu1 %v16115_v62 }
 0x556   : > { %v7975_v31 = vadd.f32 %v7974_v40, %v16165_v20  ;;  %v11471_v6 = vpop.eup %11470  ;;  %v10169_v12 = vsub.f32 1.0, %v11469_v4  ;;  %v16291_v25 = vmul.f32 %v11469_v4, %v11467_v28  ;;  %11484 = vpow2.f32 %v11361_v38  ;;  %9051 = vmatprep.subr.bf16.mxu0 %v16169_v30  ;;  %9092 = vmatprep.subr.bf16.mxu1 %v16175_v21 }
 0x557   : > { %v9979_v32 = vmul.f32 %v9674_v2, %v9579_v45  ;;  %v11473_v63 = vpop.eup %11472  ;;  %v10168_v56 = vsub.f32 1.0, %v11471_v6  ;;  %v9981_v40 = vmul.f32 %v9682_v1, %v9581_v49  ;;  %11486 = vpow2.f32 %v11360_v43  ;;  %v16317_v49 = vld [vmem:[%s16126_s14 + $0x20] sm:$0xff] }
 0x558   : > { %v9770_v34 = vrot.slane %v16248_v15, %v16187_v50  ;;  %v10245_v44 = vmul.f32 %v11467_v28, %v10169_v12  ;;  %v10170_v58 = vsub.f32 1.0, %v11473_v63  ;;  %v16304_v2 = vmul.f32 %v11473_v63, %v11471_v6 }
 0x559   : > { %v10047_v38 = vmul.f32 1.442695, %v9979_v32  ;;  %v10234_v62 = vrot.slane %v10167_v0, %v16145_v60  ;;  %v10051_v30 = vmul.f32 1.442695, %v9981_v40  ;;  %v9580_v27 = vsub.f32 0.0, %v9516_v8  ;;  %9052 = vmatpush1.bf16.msra.mxu0 %v16159_v53  ;;  %9093 = vmatpush1.bf16.msra.mxu1 %v16167_v46 }
 0x55a   : > { %v11362_v39 = vmul.f32 -1.442695, %v7975_v31  ;;  %v10250_v1 = vrot.slane %v10245_v44, %v16145_v60  ;;  %v16309_v43 = vadd.f32 %v10245_v44, %v10167_v0  ;;  %v10246_v21 = vmul.f32 %v11471_v6, %v10170_v58 }
 0x55b   : > { %11488 = vpow2.f32 %v10047_v38  ;;  %v11475_v28 = vpop.eup %11474  ;;  %v10238_v45 = vrot.slane %v10168_v56, %v16145_v60  ;;  %v9980_v4 = vmul.f32 %v9678_v13, %v9580_v27  ;;  %v9518_v8 = vmax.f32 %v7975_v31, 0.0 }
 0x55c   : > { %11490 = vpow2.f32 %v10051_v30  ;;  %v11477_v53 = vpop.eup %11476  ;;  %v10239_v12 = vmul.f32 %v11475_v28, %v10234_v62  ;;  %v10254_v0 = vrot.slane %v10246_v21, %v16145_v60  ;;  %v16320_v32 = vadd.f32 %v10246_v21, %v10168_v56  ;;  %11353 = vmatmul.mubr.msk.bf16.vlgmr.msra.gmra.mrb[60].mxu0 %vm4688_vm1, %v16237_v29  ;;  %11354 = vmatmul.mubr.msk.bf16.vlgmr.msra.gmra.mrb[60].mxu1 %vm4688_vm1, %v16237_v29 }
 0x55d   : > { %11492 = vpow2.f32 %v11362_v39  ;;  %v11479_v46 = vpop.eup %11478  ;;  %v10255_v6 = vmul.f32 %v11477_v53, %v10250_v1  ;;  %v10049_v63 = vmul.f32 1.442695, %v9980_v4  ;;  %v9582_v40 = vsub.f32 0.0, %v9518_v8 }
 0x55e   : > { %v9778_v13 = vrot.slane %v16248_v15, %v16190_v26  ;;  %v11481_v31 = vpop.eup %11480  ;;  %v10240_v44 = vmul.f32 %v11479_v46, %v10238_v45 }
 0x55f   : > { %v11483_v62 = vpop.eup %11482  ;;  %v16334_v30 = vadd.f32 %v10255_v6, %v10239_v12  ;;  %v10256_v27 = vmul.f32 %v11481_v31, %v10254_v0  ;;  %11494 = vpow2.f32 %v10049_v63  ;;  %v9982_v29 = vmul.f32 %v9686_v61, %v9582_v40  ;;  %v8013_v39 = vpop.f32.mrb[8].mxu0 }
 0x560   : > { %v11485_v1 = vpop.eup %11484  ;;  %v9323_v21 = vadd.f32 1.0, %v11483_v62  ;;  %v8014_v28 = vadd.f32 %v8013_v39, %v16165_v20  ;;  %v8054_v45 = vpop.f32.mrb[8].mxu1 }
 0x561   : > { %v8015_v4 = vpop.f32.mrb[9].mxu0  ;;  %v11487_v12 = vpop.eup %11486  ;;  %v16344_v0 = vadd.f32 %v10256_v27, %v10240_v44  ;;  %v9325_v46 = vadd.f32 1.0, %v11485_v1  ;;  %v10053_v6 = vmul.f32 1.442695, %v9982_v29  ;;  %v8055_v35 = vadd.f32 %v8054_v45, %v16165_v20 }
 0x562   : > { %v8056_v61 = vpop.f32.mrb[9].mxu1  ;;  %v8017_v63 = vpop.f32.mrb[10].mxu0  ;;  %11496 = vrcp.f32 %v9323_v21  ;;  %v9324_v40 = vadd.f32 1.0, %v11487_v12  ;;  %v11363_v31 = vmul.f32 -1.442695, %v8014_v28  ;;  %v9519_v62 = vmax.f32 %v8014_v28, 0.0 }
 0x563   : > { %v8018_v39 = vpop.f32.mrb[11].mxu0  ;;  %v8058_v38 = vpop.f32.mrb[10].mxu1  ;;  %11498 = vrcp.f32 %v9325_v46  ;;  %v11365_v8 = vmul.f32 -1.442695, %v8055_v35  ;;  %v9521_v58 = vmax.f32 %v8055_v35, 0.0  ;;  %v8016_v53 = vadd.f32 %v8015_v4, %v16165_v20 }
 0x564   : > { %v8059_v56 = vpop.f32.mrb[11].mxu1  ;;  %11500 = vrcp.f32 %v9324_v40  ;;  %v9583_v27 = vsub.f32 0.0, %v9519_v62  ;;  %v8057_v29 = vadd.f32 %v8056_v61, %v16165_v20 }
 0x565   : > { %v11489_v44 = vpop.eup %11488  ;;  %11502 = vpow2.f32 %v10053_v6  ;;  %v9585_v38 = vsub.f32 0.0, %v9521_v58  ;;  %v11364_v4 = vmul.f32 -1.442695, %v8016_v53 }
 0x566   : > { %v11491_v21 = vpop.eup %11490  ;;  %v10171_v45 = vsub.f32 1.0, %v11489_v44  ;;  %v10279_v28 = vmul.f32 %v11489_v44, %v16291_v25  ;;  %11504 = vpow2.f32 %v11363_v31  ;;  %v9983_v56 = vmul.f32 %v9690_v3, %v9583_v27 }
 0x567   : > { %v11493_v12 = vpop.eup %11492  ;;  %v10173_v46 = vsub.f32 1.0, %v11491_v21  ;;  %11506 = vpow2.f32 %v11365_v8  ;;  %v9985_v58 = vmul.f32 %v9698_v57, %v9585_v38  ;;  %v9520_v3 = vmax.f32 %v8016_v53, 0.0 }
 0x568   : > { %v10263_v35 = vmul.f32 %v16291_v25, %v10171_v45  ;;  %v16356_v61 = vmul.f32 %v11491_v21, %v10279_v28  ;;  %v9326_v63 = vadd.f32 1.0, %v11493_v12  ;;  %v10055_v62 = vmul.f32 1.442695, %v9983_v56 }
 0x569   : > { %v10281_v40 = vmul.f32 %v10279_v28, %v10173_v46  ;;  %11508 = vpow2.f32 %v11364_v4  ;;  %v11495_v6 = vpop.eup %11494  ;;  %v10059_v21 = vmul.f32 1.442695, %v9985_v58  ;;  %v9584_v45 = vsub.f32 0.0, %v9520_v3 }
 0x56a   : > { %v10268_v31 = vrot.slane %v10263_v35, %v16145_v60  ;;  %v10277_v39 = vadd.f32 %v10263_v35, %v16309_v43  ;;  %11510 = vrcp.f32 %v9326_v63  ;;  %v10172_v44 = vsub.f32 1.0, %v11495_v6 }
 0x56b   : > { %v10286_v25 = vrot.slane %v10281_v40, %v16145_v60  ;;  %v10280_v27 = vmul.f32 %v11495_v6, %v16304_v2  ;;  %11512 = vpow2.f32 %v10055_v62  ;;  %v11366_v28 = vmul.f32 -1.442695, %v8057_v29 }
 0x56c   : > { %v16365_v8 = vadd.f32 %v10281_v40, %v10277_v39  ;;  %v11497_v57 = vpop.eup %11496  ;;  %v10264_v38 = vmul.f32 %v16304_v2, %v10172_v44  ;;  %v9522_v12 = vmax.f32 %v8057_v29, 0.0  ;;  %11514 = vpow2.f32 %v10059_v21 }
 0x56d   : > { %v11499_v46 = vpop.eup %11498  ;;  %v10273_v56 = vmul.f32 %v11497_v57, %v10268_v31  ;;  %v9984_v4 = vmul.f32 %v9694_v11, %v9584_v45  ;;  %11516 = vpow2.f32 %v11366_v28 }
 0x56e   : > { %v11501_v63 = vpop.eup %11500  ;;  %v10291_v40 = vmul.f32 %v11499_v46, %v10286_v25  ;;  %v10272_v2 = vrot.slane %v10264_v38, %v16145_v60  ;;  %v10278_v29 = vadd.f32 %v10264_v38, %v16320_v32  ;;  %v9586_v31 = vsub.f32 0.0, %v9522_v12 }
 0x56f   : > { %v11503_v62 = vpop.eup %11502  ;;  %v10275_v58 = vadd.f32 %v10273_v56, %v16334_v30  ;;  %v10057_v6 = vmul.f32 1.442695, %v9984_v4  ;;  %v8095_v39 = vpop.f32.mrb[12].mxu0 }
 0x570   : > { %v11505_v11 = vpop.eup %11504  ;;  %v10274_v44 = vmul.f32 %v11501_v63, %v10272_v2  ;;  %v10174_v21 = vsub.f32 1.0, %v11503_v62  ;;  %v16382_v45 = vmul.f32 %v11503_v62, %v10280_v27  ;;  %v8096_v25 = vadd.f32 %v8095_v39, %v16165_v20  ;;  %v8136_v57 = vpop.f32.mrb[12].mxu1 }
 0x571   : > { %v8097_v46 = vpop.f32.mrb[13].mxu0  ;;  %v11507_v32 = vpop.eup %11506  ;;  %v16385_v28 = vadd.f32 %v10291_v40, %v10275_v58  ;;  %v9327_v38 = vadd.f32 1.0, %v11505_v11  ;;  %11518 = vpow2.f32 %v10057_v6  ;;  %v9986_v30 = vmul.f32 %v9702_v5, %v9586_v31 }
 0x572   : > { %v8138_v12 = vpop.f32.mrb[13].mxu1  ;;  %v8099_v56 = vpop.f32.mrb[14].mxu0  ;;  %v10276_v63 = vadd.f32 %v10274_v44, %v16344_v0  ;;  %v10282_v2 = vmul.f32 %v10280_v27, %v10174_v21  ;;  %v9329_v62 = vadd.f32 1.0, %v11507_v32  ;;  %v11367_v3 = vmul.f32 -1.442695, %v8096_v25 }
 0x573   : > { %v11509_v4 = vpop.eup %11508  ;;  %v8100_v39 = vpop.f32.mrb[15].mxu0  ;;  %11520 = vrcp.f32 %v9327_v38  ;;  %v10061_v58 = vmul.f32 1.442695, %v9986_v30  ;;  %v9523_v11 = vmax.f32 %v8096_v25, 0.0  ;;  %v8137_v31 = vadd.f32 %v8136_v57, %v16165_v20 }
 0x574   : > { %v8140_v35 = vpop.f32.mrb[14].mxu1  ;;  %v11511_v53 = vpop.eup %11510  ;;  %v9328_v40 = vadd.f32 1.0, %v11509_v4  ;;  %v10290_v1 = vrot.slane %v10282_v2, %v16145_v60  ;;  %v10296_v5 = vadd.f32 %v10282_v2, %v10278_v29  ;;  %11522 = vrcp.f32 %v9329_v62 }
 0x575   : > { %v8141_v6 = vpop.f32.mrb[15].mxu1  ;;  %v11513_v43 = vpop.eup %11512  ;;  %v9587_v27 = vsub.f32 0.0, %v9523_v11  ;;  %v11369_v44 = vmul.f32 -1.442695, %v8137_v31  ;;  %v9525_v21 = vmax.f32 %v8137_v31, 0.0  ;;  %v8098_v57 = vadd.f32 %v8097_v46, %v16165_v20 }
 0x576   : > { %v10175_v56 = vsub.f32 1.0, %v11513_v43  ;;  %v10315_v0 = vmul.f32 %v11513_v43, %v16356_v61  ;;  %11524 = vrcp.f32 %v9328_v40  ;;  %v10292_v35 = vmul.f32 %v11511_v53, %v10290_v1  ;;  %v11515_v32 = vpop.eup %11514  ;;  %v16404_v1 = vld [vmem:[%s16126_s14 + $0x28] sm:$0xff] }
 0x577   : > { %11526 = vpow2.f32 %v10061_v58  ;;  %v9987_v29 = vmul.f32 %v9706_v14, %v9587_v27  ;;  %v11517_v38 = vpop.eup %11516  ;;  %v10177_v43 = vsub.f32 1.0, %v11515_v32  ;;  %v9589_v39 = vsub.f32 0.0, %v9525_v21 }
 0x578   : > { %v10299_v25 = vmul.f32 %v16356_v61, %v10175_v56  ;;  %11528 = vpow2.f32 %v11367_v3  ;;  %v16399_v30 = vadd.f32 %v10292_v35, %v10276_v63  ;;  %v16401_v4 = vmul.f32 %v11515_v32, %v10315_v0 }
 0x579   : > { %11530 = vpow2.f32 %v11369_v44  ;;  %v9330_v3 = vadd.f32 1.0, %v11517_v38  ;;  %v10063_v2 = vmul.f32 1.442695, %v9987_v29  ;;  %v10317_v62 = vmul.f32 %v10315_v0, %v10177_v43 }
 0x57a   : > { %v10304_v53 = vrot.slane %v10299_v25, %v16145_v60  ;;  %v10313_v61 = vadd.f32 %v10299_v25, %v16365_v8  ;;  %v11368_v14 = vmul.f32 -1.442695, %v8098_v57  ;;  %v9524_v40 = vmax.f32 %v8098_v57, 0.0 }
 0x57b   : > { %v11519_v46 = vpop.eup %11518  ;;  %11532 = vrcp.f32 %v9330_v3  ;;  %v8139_v63 = vadd.f32 %v8138_v12, %v16165_v20  ;;  %v9818_v58 = vrot.slane %v16404_v1, %v16136_v19  ;;  %v9826_v11 = vrot.slane %v16404_v1, %v16148_v24 }
 0x57c   : > { %v10322_v6 = vrot.slane %v10317_v62, %v16145_v60  ;;  %v16414_v31 = vadd.f32 %v10317_v62, %v10313_v61  ;;  %v10176_v8 = vsub.f32 1.0, %v11519_v46  ;;  %v10316_v56 = vmul.f32 %v11519_v46, %v16382_v45 }
 0x57d   : > { %v11521_v0 = vpop.eup %11520  ;;  %11534 = vpow2.f32 %v10063_v2  ;;  %v9989_v27 = vmul.f32 %v9714_v51, %v9589_v39  ;;  %v9588_v12 = vsub.f32 0.0, %v9524_v40  ;;  %v11370_v35 = vmul.f32 -1.442695, %v8139_v63 }
 0x57e   : > { %v11523_v44 = vpop.eup %11522  ;;  %v10309_v21 = vmul.f32 %v11521_v0, %v10304_v53  ;;  %v10300_v32 = vmul.f32 %v16382_v45, %v10176_v8  ;;  %11536 = vpow2.f32 %v11368_v14  ;;  %v9526_v25 = vmax.f32 %v8139_v63, 0.0 }
 0x57f   : > { %v10327_v57 = vmul.f32 %v11523_v44, %v10322_v6  ;;  %v10067_v38 = vmul.f32 1.442695, %v9989_v27  ;;  %v9988_v43 = vmul.f32 %v9710_v41, %v9588_v12  ;;  %11538 = vpow2.f32 %v11370_v35  ;;  %v8177_v61 = vpop.f32.mrb[16].mxu0  ;;  %v8218_v39 = vpop.f32.mrb[16].mxu1 }
 0x580   : > { %v11525_v29 = vpop.eup %11524  ;;  %v10311_v51 = vadd.f32 %v10309_v21, %v16385_v28  ;;  %v10308_v2 = vrot.slane %v10300_v32, %v16145_v60  ;;  %v10314_v62 = vadd.f32 %v10300_v32, %v10296_v5  ;;  %v9590_v53 = vsub.f32 0.0, %v9526_v25  ;;  %v8179_v45 = vpop.f32.mrb[17].mxu0 }
 0x581   : > { %v11527_v3 = vpop.eup %11526  ;;  %11540 = vpow2.f32 %v10067_v38  ;;  %v10065_v63 = vmul.f32 1.442695, %v9988_v43  ;;  %v8220_v6 = vpop.f32.mrb[17].mxu1  ;;  %v8178_v32 = vadd.f32 %v8177_v61, %v16165_v20 }
 0x582   : > { %v11529_v14 = vpop.eup %11528  ;;  %v10178_v40 = vsub.f32 1.0, %v11527_v3  ;;  %v16426_v46 = vmul.f32 %v11527_v3, %v10316_v56  ;;  %v8181_v8 = vpop.f32.mrb[18].mxu0  ;;  %v16428_v0 = vadd.f32 %v10327_v57, %v10311_v51  ;;  %v10310_v27 = vmul.f32 %v11525_v29, %v10308_v2 }
 0x583   : > { %v11531_v41 = vpop.eup %11530  ;;  %v9331_v12 = vadd.f32 1.0, %v11529_v14  ;;  %v9990_v28 = vmul.f32 %v9718_v59, %v9590_v53  ;;  %v8182_v5 = vpop.f32.mrb[19].mxu0  ;;  %11542 = vpow2.f32 %v10065_v63  ;;  %v8219_v57 = vadd.f32 %v8218_v39, %v16165_v20 }
 0x584   : > { %v8222_v35 = vpop.f32.mrb[18].mxu1  ;;  %v10318_v44 = vmul.f32 %v10316_v56, %v10178_v40  ;;  %v9333_v21 = vadd.f32 1.0, %v11531_v41  ;;  %v10312_v38 = vadd.f32 %v10310_v27, %v16399_v30  ;;  %v11371_v37 = vmul.f32 -1.442695, %v8178_v32 }
 0x585   : > { %v8223_v25 = vpop.f32.mrb[19].mxu1  ;;  %11544 = vrcp.f32 %v9331_v12  ;;  %v10069_v43 = vmul.f32 1.442695, %v9990_v28  ;;  %v11533_v29 = vpop.eup %11532  ;;  %v9527_v59 = vmax.f32 %v8178_v32, 0.0  ;;  %v11373_v56 = vmul.f32 -1.442695, %v8219_v57 }
 0x586   : > { %v10326_v3 = vrot.slane %v10318_v44, %v16145_v60  ;;  %v16437_v51 = vadd.f32 %v10318_v44, %v10314_v62  ;;  %11546 = vrcp.f32 %v9333_v21  ;;  %v9529_v2 = vmax.f32 %v8219_v57, 0.0 }
 0x587   : > { %11548 = vpow2.f32 %v10069_v43  ;;  %v11535_v53 = vpop.eup %11534  ;;  %v8180_v30 = vadd.f32 %v8179_v45, %v16165_v20  ;;  %v8221_v14 = vadd.f32 %v8220_v6, %v16165_v20  ;;  %v9591_v8 = vsub.f32 0.0, %v9527_v59 }
 0x588   : > { %v10328_v61 = vmul.f32 %v11533_v29, %v10326_v3  ;;  %11550 = vpow2.f32 %v11371_v37  ;;  %v11537_v40 = vpop.eup %11536  ;;  %v10179_v39 = vsub.f32 1.0, %v11535_v53  ;;  %v10351_v63 = vmul.f32 %v11535_v53, %v16401_v4 }
 0x589   : > { %11552 = vpow2.f32 %v11373_v56  ;;  %v11539_v62 = vpop.eup %11538  ;;  %v9332_v27 = vadd.f32 1.0, %v11537_v40  ;;  %v9593_v12 = vsub.f32 0.0, %v9529_v2  ;;  %v11372_v28 = vmul.f32 -1.442695, %v8180_v30 }
 0x58a   : > { %v16442_v41 = vadd.f32 %v10328_v61, %v10312_v38  ;;  %v10335_v5 = vmul.f32 %v16401_v4, %v10179_v39  ;;  %v9334_v35 = vadd.f32 1.0, %v11539_v62  ;;  %v9991_v45 = vmul.f32 %v9722_v16, %v9591_v8 }
 0x58b   : > { %v9528_v6 = vmax.f32 %v8180_v30, 0.0  ;;  %v11541_v44 = vpop.eup %11540  ;;  %11554 = vrcp.f32 %v9332_v27  ;;  %v9993_v21 = vmul.f32 %v9730_v22, %v9593_v12  ;;  %v11374_v32 = vmul.f32 -1.442695, %v8221_v14 }
 0x58c   : > { %v9530_v25 = vmax.f32 %v8221_v14, 0.0  ;;  %v10340_v38 = vrot.slane %v10335_v5, %v16145_v60  ;;  %v10349_v43 = vadd.f32 %v10335_v5, %v16414_v31  ;;  %v10181_v57 = vsub.f32 1.0, %v11541_v44 }
 0x58d   : > { %v16453_v4 = vmul.f32 %v11541_v44, %v10351_v63  ;;  %v11543_v29 = vpop.eup %11542  ;;  %11556 = vrcp.f32 %v9334_v35  ;;  %v10071_v3 = vmul.f32 1.442695, %v9991_v45  ;;  %v10075_v16 = vmul.f32 1.442695, %v9993_v21 }
 0x58e   : > { %v9592_v37 = vsub.f32 0.0, %v9528_v6  ;;  %v10353_v56 = vmul.f32 %v10351_v63, %v10181_v57  ;;  %v10180_v2 = vsub.f32 1.0, %v11543_v29  ;;  %v10352_v53 = vmul.f32 %v11543_v29, %v16426_v46 }
 0x58f   : > { %v11545_v59 = vpop.eup %11544  ;;  %11558 = vpow2.f32 %v11372_v28  ;;  %v9594_v30 = vsub.f32 0.0, %v9530_v25  ;;  %v8259_v14 = vpop.f32.mrb[20].mxu0 }
 0x590   : > { %v11547_v22 = vpop.eup %11546  ;;  %v10345_v61 = vmul.f32 %v11545_v59, %v10340_v38  ;;  %11560 = vpow2.f32 %v10071_v3  ;;  %v9992_v31 = vmul.f32 %v9726_v55, %v9592_v37  ;;  %v10358_v39 = vrot.slane %v10353_v56, %v16145_v60  ;;  %v8300_v62 = vpop.f32.mrb[20].mxu1 }
 0x591   : > { %v11549_v40 = vpop.eup %11548  ;;  %v16460_v8 = vadd.f32 %v10353_v56, %v10349_v43  ;;  %v10336_v63 = vmul.f32 %v16426_v46, %v10180_v2  ;;  %11562 = vpow2.f32 %v10075_v16  ;;  %v8261_v27 = vpop.f32.mrb[21].mxu0  ;;  %v8260_v59 = vadd.f32 %v8259_v14, %v16165_v20 }
 0x592   : > { %v11551_v12 = vpop.eup %11550  ;;  %v10347_v28 = vadd.f32 %v10345_v61, %v16428_v0  ;;  %v10182_v5 = vsub.f32 1.0, %v11549_v40  ;;  %v16464_v35 = vmul.f32 %v11549_v40, %v10352_v53  ;;  %v10073_v45 = vmul.f32 1.442695, %v9992_v31  ;;  %v8302_v55 = vpop.f32.mrb[21].mxu1 }
 0x593   : > { %v8263_v6 = vpop.f32.mrb[22].mxu0  ;;  %v11553_v44 = vpop.eup %11552  ;;  %v10363_v21 = vmul.f32 %v11547_v22, %v10358_v39  ;;  %v10344_v25 = vrot.slane %v10336_v63, %v16145_v60  ;;  %v10350_v38 = vadd.f32 %v10336_v63, %v16437_v51  ;;  %v9335_v43 = vadd.f32 1.0, %v11551_v12 }
 0x594   : > { %v8264_v46 = vpop.f32.mrb[23].mxu0  ;;  %v8304_v57 = vpop.f32.mrb[22].mxu1  ;;  %v10354_v29 = vmul.f32 %v10352_v53, %v10182_v5  ;;  %v9337_v3 = vadd.f32 1.0, %v11553_v44  ;;  %11564 = vpow2.f32 %v10073_v45  ;;  %v9994_v0 = vmul.f32 %v9734_v36, %v9594_v30 }
 0x595   : > { %v8305_v16 = vpop.f32.mrb[23].mxu1  ;;  %v16471_v37 = vadd.f32 %v10363_v21, %v10347_v28  ;;  %11566 = vrcp.f32 %v9335_v43  ;;  %v8301_v56 = vadd.f32 %v8300_v62, %v16165_v20  ;;  %v11555_v2 = vpop.eup %11554  ;;  %v11375_v31 = vmul.f32 -1.442695, %v8260_v59 }
 0x596   : > { %v10362_v51 = vrot.slane %v10354_v29, %v16145_v60  ;;  %v16476_v22 = vadd.f32 %v10354_v29, %v10350_v38  ;;  %11568 = vrcp.f32 %v9337_v3  ;;  %v10077_v53 = vmul.f32 1.442695, %v9994_v0 }
 0x597   : > { %v10346_v61 = vmul.f32 %v11555_v2, %v10344_v25  ;;  %11570 = vpow2.f32 %v11374_v32  ;;  %v9531_v40 = vmax.f32 %v8260_v59, 0.0  ;;  %v11557_v36 = vpop.eup %11556  ;;  %v11377_v30 = vmul.f32 -1.442695, %v8301_v56 }
 0x598   : > { %11572 = vpow2.f32 %v10077_v53  ;;  %v9533_v39 = vmax.f32 %v8301_v56, 0.0  ;;  %v8262_v63 = vadd.f32 %v8261_v27, %v16165_v20  ;;  %v10364_v12 = vmul.f32 %v11557_v36, %v10362_v51 }
 0x599   : > { %v11559_v14 = vpop.eup %11558  ;;  %v10348_v62 = vadd.f32 %v10346_v61, %v16442_v41  ;;  %11574 = vpow2.f32 %v11375_v31  ;;  %v9595_v28 = vsub.f32 0.0, %v9531_v40  ;;  %v8303_v2 = vadd.f32 %v8302_v55, %v16165_v20 }
 0x59a   : > { %v11561_v5 = vpop.eup %11560  ;;  %v9336_v45 = vadd.f32 1.0, %v11559_v14  ;;  %11576 = vpow2.f32 %v11377_v30  ;;  %v9597_v6 = vsub.f32 0.0, %v9533_v39  ;;  %v11376_v44 = vmul.f32 -1.442695, %v8262_v63 }
 0x59b   : > { %v11563_v32 = vpop.eup %11562  ;;  %v16480_v21 = vadd.f32 %v10364_v12, %v10348_v62  ;;  %v10183_v25 = vsub.f32 1.0, %v11561_v5  ;;  %v10387_v38 = vmul.f32 %v11561_v5, %v16453_v4  ;;  %v9995_v27 = vmul.f32 %v9738_v17, %v9595_v28 }
 0x59c   : > { %v10185_v43 = vsub.f32 1.0, %v11563_v32  ;;  %11578 = vrcp.f32 %v9336_v45  ;;  %v9997_v41 = vmul.f32 %v9746_v42, %v9597_v6  ;;  %v9532_v46 = vmax.f32 %v8262_v63, 0.0 }
 0x59d   : > { %v10371_v57 = vmul.f32 %v16453_v4, %v10183_v25  ;;  %v16490_v29 = vmul.f32 %v11563_v32, %v10387_v38  ;;  %v10079_v3 = vmul.f32 1.442695, %v9995_v27  ;;  %11580 = vpow2.f32 %v11376_v44 }
 0x59e   : > { %v11565_v0 = vpop.eup %11564  ;;  %v10389_v16 = vmul.f32 %v10387_v38, %v10185_v43  ;;  %v10083_v59 = vmul.f32 1.442695, %v9997_v41  ;;  %v9596_v56 = vsub.f32 0.0, %v9532_v46  ;;  %v11378_v36 = vmul.f32 -1.442695, %v8303_v2 }
 0x59f   : > { %v11567_v17 = vpop.eup %11566  ;;  %v10376_v51 = vrot.slane %v10371_v57, %v16145_v60  ;;  %v10385_v53 = vadd.f32 %v10371_v57, %v16460_v8  ;;  %v10184_v61 = vsub.f32 1.0, %v11565_v0  ;;  %v10388_v42 = vmul.f32 %v11565_v0, %v16464_v35  ;;  %v8341_v30 = vpop.f32.mrb[24].mxu0 }
 0x5a0   : > { %v11569_v31 = vpop.eup %11568  ;;  %v10394_v4 = vrot.slane %v10389_v16, %v16145_v60  ;;  %11582 = vpow2.f32 %v10079_v3  ;;  %v9996_v40 = vmul.f32 %v9742_v47, %v9596_v56  ;;  %v8382_v8 = vpop.f32.mrb[24].mxu1  ;;  %v9534_v3 = vmax.f32 %v8303_v2, 0.0 }
 0x5a1   : > { %v11571_v39 = vpop.eup %11570  ;;  %v10381_v55 = vmul.f32 %v11567_v17, %v10376_v51  ;;  %v16500_v63 = vadd.f32 %v10389_v16, %v10385_v53  ;;  %v10372_v14 = vmul.f32 %v16464_v35, %v10184_v61  ;;  %11584 = vpow2.f32 %v10083_v59  ;;  %v8343_v62 = vpop.f32.mrb[25].mxu0 }
 0x5a2   : > { %v11573_v12 = vpop.eup %11572  ;;  %v10399_v28 = vmul.f32 %v11569_v31, %v10394_v4  ;;  %v9338_v5 = vadd.f32 1.0, %v11571_v39  ;;  %v10081_v45 = vmul.f32 1.442695, %v9996_v40  ;;  %11586 = vpow2.f32 %v11378_v36  ;;  %v8384_v6 = vpop.f32.mrb[25].mxu1 }
 0x5a3   : > { %v8345_v44 = vpop.f32.mrb[26].mxu0  ;;  %v11575_v32 = vpop.eup %11574  ;;  %v10383_v47 = vadd.f32 %v10381_v55, %v16471_v37  ;;  %v10380_v25 = vrot.slane %v10372_v14, %v16145_v60  ;;  %v10386_v38 = vadd.f32 %v10372_v14, %v16476_v22  ;;  %v10186_v27 = vsub.f32 1.0, %v11573_v12 }
 0x5a4   : > { %v8346_v43 = vpop.f32.mrb[27].mxu0  ;;  %v8386_v35 = vpop.f32.mrb[26].mxu1  ;;  %11588 = vrcp.f32 %v9338_v5  ;;  %v16506_v46 = vmul.f32 %v11573_v12, %v10388_v42  ;;  %v9339_v57 = vadd.f32 1.0, %v11575_v32  ;;  %v9598_v17 = vsub.f32 0.0, %v9534_v3 }
 0x5a5   : > { %v11577_v41 = vpop.eup %11576  ;;  %v8387_v0 = vpop.f32.mrb[27].mxu1  ;;  %v16508_v16 = vadd.f32 %v10399_v28, %v10383_v47  ;;  %v10390_v59 = vmul.f32 %v10388_v42, %v10186_v27  ;;  %11590 = vpow2.f32 %v10081_v45  ;;  %v8342_v22 = vadd.f32 %v8341_v30, %v16165_v20 }
 0x5a6   : > { %v9341_v56 = vadd.f32 1.0, %v11577_v41  ;;  %v11579_v37 = vpop.eup %11578  ;;  %11592 = vrcp.f32 %v9339_v57  ;;  %v8383_v51 = vadd.f32 %v8382_v8, %v16165_v20  ;;  %v9998_v42 = vmul.f32 %v9750_v9, %v9598_v17 }
 0x5a7   : > { %v11581_v53 = vpop.eup %11580  ;;  %v10382_v61 = vmul.f32 %v11579_v37, %v10380_v25  ;;  %v10398_v31 = vrot.slane %v10390_v59, %v16145_v60  ;;  %v16513_v4 = vadd.f32 %v10390_v59, %v10386_v38  ;;  %v11379_v40 = vmul.f32 -1.442695, %v8342_v22 }
 0x5a8   : > { %11594 = vrcp.f32 %v9341_v56  ;;  %v9340_v2 = vadd.f32 1.0, %v11581_v53  ;;  %v9535_v36 = vmax.f32 %v8342_v22, 0.0  ;;  %v11381_v55 = vmul.f32 -1.442695, %v8383_v51 }
 0x5a9   : > { %v10384_v39 = vadd.f32 %v10382_v61, %v16480_v21  ;;  %v9537_v30 = vmax.f32 %v8383_v51, 0.0  ;;  %v8344_v14 = vadd.f32 %v8343_v62, %v16165_v20  ;;  %v10085_v12 = vmul.f32 1.442695, %v9998_v42 }
 0x5aa   : > { %v11583_v8 = vpop.eup %11582  ;;  %11596 = vrcp.f32 %v9340_v2  ;;  %v9599_v28 = vsub.f32 0.0, %v9535_v36  ;;  %v8385_v5 = vadd.f32 %v8384_v6, %v16165_v20 }
 0x5ab   : > { %v11585_v45 = vpop.eup %11584  ;;  %v10187_v44 = vsub.f32 1.0, %v11583_v8  ;;  %v10423_v32 = vmul.f32 %v11583_v8, %v16490_v29  ;;  %11598 = vpow2.f32 %v11379_v40  ;;  %v9601_v23 = vsub.f32 0.0, %v9537_v30 }
 0x5ac   : > { %v11587_v9 = vpop.eup %11586  ;;  %v10189_v47 = vsub.f32 1.0, %v11585_v45  ;;  %11600 = vpow2.f32 %v10085_v12  ;;  %v9999_v21 = vmul.f32 %v9754_v52, %v9599_v28  ;;  %v11380_v62 = vmul.f32 -1.442695, %v8344_v14 }
 0x5ad   : > { %v10407_v25 = vmul.f32 %v16490_v29, %v10187_v44  ;;  %v16526_v38 = vmul.f32 %v11585_v45, %v10423_v32  ;;  %v9342_v27 = vadd.f32 1.0, %v11587_v9  ;;  %11602 = vpow2.f32 %v11381_v55 }
 0x5ae   : > { %v11589_v6 = vpop.eup %11588  ;;  %v10425_v43 = vmul.f32 %v10423_v32, %v10189_v47  ;;  %v10087_v35 = vmul.f32 1.442695, %v9999_v21  ;;  %v10001_v41 = vmul.f32 %v9762_v48, %v9601_v23  ;;  %11604 = vpow2.f32 %v11380_v62 }
 0x5af   : > { %v11591_v57 = vpop.eup %11590  ;;  %v10400_v3 = vmul.f32 %v11589_v6, %v10398_v31  ;;  %v10412_v0 = vrot.slane %v10407_v25, %v16145_v60  ;;  %v10421_v52 = vadd.f32 %v10407_v25, %v16500_v63  ;;  %11606 = vrcp.f32 %v9342_v27  ;;  %v8423_v17 = vpop.f32.mrb[28].mxu0 }
 0x5b0   : > { %v11593_v29 = vpop.eup %11592  ;;  %v10430_v59 = vrot.slane %v10425_v43, %v16145_v60  ;;  %v10188_v56 = vsub.f32 1.0, %v11591_v57  ;;  %v10424_v37 = vmul.f32 %v11591_v57, %v16506_v46  ;;  %11608 = vpow2.f32 %v10087_v35  ;;  %v8464_v31 = vpop.f32.mrb[28].mxu1 }
 0x5b1   : > { %v10402_v51 = vadd.f32 %v10400_v3, %v10384_v39  ;;  %v10417_v53 = vmul.f32 %v11593_v29, %v10412_v0  ;;  %v16535_v48 = vadd.f32 %v10425_v43, %v10421_v52  ;;  %v10091_v61 = vmul.f32 1.442695, %v10001_v41  ;;  %v8425_v2 = vpop.f32.mrb[29].mxu0  ;;  %v16538_v55 = vpop.f32.mrb[29].mxu1 }
 0x5b2   : > { %v11595_v22 = vpop.eup %11594  ;;  %v10408_v63 = vmul.f32 %v16506_v46, %v10188_v56  ;;  %v9536_v40 = vmax.f32 %v8344_v14, 0.0  ;;  %v11382_v36 = vmul.f32 -1.442695, %v8385_v5  ;;  %v8427_v30 = vpop.f32.mrb[30].mxu0  ;;  %v9538_v12 = vmax.f32 %v8385_v5, 0.0 }
 0x5b3   : > { %v10435_v42 = vmul.f32 %v11595_v22, %v10430_v59  ;;  %v10419_v8 = vadd.f32 %v10417_v53, %v16508_v16  ;;  %11610 = vpow2.f32 %v10091_v61  ;;  %v8424_v39 = vadd.f32 %v8423_v17, %v16165_v20  ;;  %v8428_v28 = vpop.f32.mrb[31].mxu0  ;;  %v8468_v45 = vpop.f32.mrb[30].mxu1 }
 0x5b4   : > { %v11597_v44 = vpop.eup %11596  ;;  %v10416_v32 = vrot.slane %v10408_v63, %v16145_v60  ;;  %v10422_v23 = vadd.f32 %v10408_v63, %v16513_v4  ;;  %v9600_v9 = vsub.f32 0.0, %v9536_v40  ;;  %11612 = vpow2.f32 %v11382_v36  ;;  %v8469_v46 = vpop.f32.mrb[31].mxu1 }
 0x5b5   : > { %v11599_v14 = vpop.eup %11598  ;;  %v16544_v47 = vadd.f32 %v10435_v42, %v10419_v8  ;;  %v9602_v21 = vsub.f32 0.0, %v9538_v12  ;;  %v11383_v62 = vmul.f32 -1.442695, %v8424_v39  ;;  %v9539_v16 = vmax.f32 %v8424_v39, 0.0 }
 0x5b6   : > { %v11601_v25 = vpop.eup %11600  ;;  %v10418_v5 = vmul.f32 %v11597_v44, %v10416_v32  ;;  %v9343_v27 = vadd.f32 1.0, %v11599_v14  ;;  %v10000_v6 = vmul.f32 %v9758_v18, %v9600_v9  ;;  %v8465_v43 = vadd.f32 %v8464_v31, %v16165_v20 }
 0x5b7   : > { %v11603_v35 = vpop.eup %11602  ;;  %v10190_v4 = vsub.f32 1.0, %v11601_v25  ;;  %v16550_v41 = vmul.f32 %v11601_v25, %v10424_v37  ;;  %v10002_v57 = vmul.f32 %v9766_v33, %v9602_v21  ;;  %11614 = vpow2.f32 %v11383_v62 }
 0x5b8   : > { %v11605_v3 = vpop.eup %11604  ;;  %v10420_v0 = vadd.f32 %v10418_v5, %v10402_v51  ;;  %11616 = vrcp.f32 %v9343_v27  ;;  %v9345_v52 = vadd.f32 1.0, %v11603_v35  ;;  %v10089_v29 = vmul.f32 1.442695, %v10000_v6 }
 0x5b9   : > { %v11607_v59 = vpop.eup %11606  ;;  %v10426_v56 = vmul.f32 %v10424_v37, %v10190_v4  ;;  %v9344_v17 = vadd.f32 1.0, %v11605_v3  ;;  %v10093_v18 = vmul.f32 1.442695, %v10002_v57  ;;  %v9603_v22 = vsub.f32 0.0, %v9539_v16 }
 0x5ba   : > { %v11609_v53 = vpop.eup %11608  ;;  %11618 = vrcp.f32 %v9345_v52  ;;  %v11385_v61 = vmul.f32 -1.442695, %v8465_v43  ;;  %v9541_v31 = vmax.f32 %v8465_v43, 0.0  ;;  %v8426_v42 = vadd.f32 %v8425_v2, %v16165_v20 }
 0x5bb   : > { %v10434_v63 = vrot.slane %v10426_v56, %v16145_v60  ;;  %v16557_v33 = vadd.f32 %v10426_v56, %v10422_v23  ;;  %v10191_v40 = vsub.f32 1.0, %v11609_v53  ;;  %v10459_v51 = vmul.f32 %v11609_v53, %v16526_v38 }
 0x5bc   : > { %11620 = vrcp.f32 %v9344_v17  ;;  %v10003_v37 = vmul.f32 %v9770_v34, %v9603_v22  ;;  %v9605_v36 = vsub.f32 0.0, %v9541_v31  ;;  %v11384_v30 = vmul.f32 -1.442695, %v8426_v42 }
 0x5bd   : > { %v11611_v8 = vpop.eup %11610  ;;  %v10436_v12 = vmul.f32 %v11607_v59, %v10434_v63  ;;  %v10443_v39 = vmul.f32 %v16526_v38, %v10191_v40  ;;  %11622 = vpow2.f32 %v10089_v29  ;;  %v9540_v2 = vmax.f32 %v8426_v42, 0.0 }
 0x5be   : > { %v11613_v28 = vpop.eup %11612  ;;  %v10193_v45 = vsub.f32 1.0, %v11611_v8  ;;  %v16564_v44 = vmul.f32 %v11611_v8, %v10459_v51  ;;  %11624 = vpow2.f32 %v10093_v18  ;;  %v10095_v32 = vmul.f32 1.442695, %v10003_v37 }
 0x5bf   : > { %v16566_v23 = vadd.f32 %v10436_v12, %v10420_v0  ;;  %v10448_v9 = vrot.slane %v10443_v39, %v16145_v60  ;;  %v10457_v34 = vadd.f32 %v10443_v39, %v16535_v48  ;;  %v9346_v46 = vadd.f32 1.0, %v11613_v28  ;;  %v8505_v62 = vpop.f32.mrb[32].mxu0  ;;  %v8546_v27 = vpop.f32.mrb[32].mxu1 }
 0x5c0   : > { %v10461_v14 = vmul.f32 %v10459_v51, %v10193_v45  ;;  %11626 = vpow2.f32 %v10095_v32  ;;  %v10005_v38 = vmul.f32 %v9778_v13, %v9605_v36  ;;  %v9604_v21 = vsub.f32 0.0, %v9540_v2  ;;  %v8507_v6 = vpop.f32.mrb[33].mxu0  ;;  %v8548_v57 = vpop.f32.mrb[33].mxu1 }
 0x5c1   : > { %v11615_v16 = vpop.eup %11614  ;;  %11628 = vrcp.f32 %v9346_v46  ;;  %v8467_v25 = vadd.f32 %v16538_v55, %v16165_v20  ;;  %v8506_v5 = vadd.f32 %v8505_v62, %v16165_v20  ;;  %v9822_v48 = vrot.slane %v16404_v1, %v16154_v10  ;;  %v8509_v3 = vpop.f32.mrb[34].mxu0 }
 0x5c2   : > { %v11617_v43 = vpop.eup %11616  ;;  %v10466_v35 = vrot.slane %v10461_v14, %v16145_v60  ;;  %v16579_v4 = vadd.f32 %v10461_v14, %v10457_v34  ;;  %v9347_v13 = vadd.f32 1.0, %v11615_v16  ;;  %11630 = vpow2.f32 %v11385_v61  ;;  %v8510_v59 = vpop.f32.mrb[35].mxu0 }
 0x5c3   : > { %v10453_v0 = vmul.f32 %v11617_v43, %v10448_v9  ;;  %v10099_v52 = vmul.f32 1.442695, %v10005_v38  ;;  %11632 = vpow2.f32 %v11384_v30  ;;  %v17651_v55 = vrot.slane %v16248_v15, %v16196_v54  ;;  %v8550_v56 = vpop.f32.mrb[34].mxu1 }
 0x5c4   : > { %v11619_v17 = vpop.eup %11618  ;;  %11634 = vrcp.f32 %v9347_v13  ;;  %v11386_v18 = vmul.f32 -1.442695, %v8467_v25  ;;  %v9542_v22 = vmax.f32 %v8467_v25, 0.0  ;;  %v11387_v53 = vmul.f32 -1.442695, %v8506_v5  ;;  %v8551_v31 = vpop.f32.mrb[35].mxu1 }
 0x5c5   : > { %v10004_v29 = vmul.f32 %v17651_v55, %v9604_v21  ;;  %v10455_v42 = vadd.f32 %v10453_v0, %v16544_v47  ;;  %v10471_v61 = vmul.f32 %v11619_v17, %v10466_v35  ;;  %11636 = vpow2.f32 %v10099_v52 }
 0x5c6   : > { %v11621_v40 = vpop.eup %11620  ;;  %11638 = vpow2.f32 %v11386_v18  ;;  %v9606_v51 = vsub.f32 0.0, %v9542_v22  ;;  %v9543_v37 = vmax.f32 %v8506_v5, 0.0  ;;  %v8547_v36 = vadd.f32 %v8546_v27, %v16165_v20 }
 0x5c7   : > { %v10097_v63 = vmul.f32 1.442695, %v10004_v29  ;;  %v11623_v30 = vpop.eup %11622  ;;  %v16586_v8 = vadd.f32 %v10471_v61, %v10455_v42  ;;  %v16589_v12 = vadd.f32 %v8507_v6, %v16165_v20  ;;  %v16592_v39 = vadd.f32 %v8548_v57, %v16165_v20 }
 0x5c8   : > { %v11625_v47 = vpop.eup %11624  ;;  %v10192_v2 = vsub.f32 1.0, %v11623_v30  ;;  %v10460_v28 = vmul.f32 %v11623_v30, %v16550_v41  ;;  %v17652_v45 = vrot.slane %v16248_v15, %v16201_v7  ;;  %v9607_v34 = vsub.f32 0.0, %v9543_v37 }
 0x5c9   : > { %11640 = vpow2.f32 %v10097_v63  ;;  %v10194_v9 = vsub.f32 1.0, %v11625_v47  ;;  %v11389_v46 = vmul.f32 -1.442695, %v8547_v36  ;;  %v9545_v14 = vmax.f32 %v8547_v36, 0.0 }
 0x5ca   : > { %v10006_v32 = vmul.f32 %v17652_v45, %v9606_v51  ;;  %11642 = vpow2.f32 %v11387_v53  ;;  %v11627_v38 = vpop.eup %11626  ;;  %v10444_v21 = vmul.f32 %v16550_v41, %v10192_v2  ;;  %v10478_v62 = vmul.f32 %v11625_v47, %v10460_v28 }
 0x5cb   : > { %v11388_v25 = vmul.f32 -1.442695, %v16589_v12  ;;  %v11629_v5 = vpop.eup %11628  ;;  %v10462_v27 = vmul.f32 %v10460_v28, %v10194_v9  ;;  %v10195_v6 = vsub.f32 1.0, %v11627_v38  ;;  %v10495_v43 = vmul.f32 %v11627_v38, %v16564_v44 }
 0x5cc   : > { %v10101_v16 = vmul.f32 1.442695, %v10006_v32  ;;  %v17653_v15 = vrot.slane %v16317_v49, %v16136_v19  ;;  %v11631_v13 = vpop.eup %11630  ;;  %v10452_v57 = vrot.slane %v10444_v21, %v16145_v60  ;;  %v10458_v3 = vadd.f32 %v10444_v21, %v16557_v33 }
 0x5cd   : > { %v9609_v41 = vsub.f32 0.0, %v9545_v14  ;;  %v11633_v0 = vpop.eup %11632  ;;  %v10470_v52 = vrot.slane %v10462_v27, %v16145_v60  ;;  %v10479_v55 = vmul.f32 %v16564_v44, %v10195_v6  ;;  %v9349_v29 = vadd.f32 1.0, %v11631_v13 }
 0x5ce   : > { %v10007_v35 = vmul.f32 %v17653_v15, %v9607_v34  ;;  %11644 = vpow2.f32 %v10101_v16  ;;  %v11635_v56 = vpop.eup %11634  ;;  %v10454_v17 = vmul.f32 %v11621_v40, %v10452_v57  ;;  %v10476_v18 = vadd.f32 %v10462_v27, %v10458_v3 }
 0x5cf   : > { %v9348_v22 = vadd.f32 1.0, %v11633_v0  ;;  %11646 = vpow2.f32 %v11389_v46  ;;  %v11637_v53 = vpop.eup %11636  ;;  %v10472_v31 = vmul.f32 %v11629_v5, %v10470_v52  ;;  %v10484_v42 = vrot.slane %v10479_v55, %v16145_v60  ;;  %v8587_v44 = vpop.f32.mrb[36].mxu0 }
 0x5d0   : > { %v10103_v59 = vmul.f32 1.442695, %v10007_v35  ;;  %v10493_v33 = vadd.f32 %v10479_v55, %v16579_v4  ;;  %11648 = vrcp.f32 %v9349_v29  ;;  %v11639_v61 = vpop.eup %11638  ;;  %v10456_v63 = vadd.f32 %v10454_v17, %v16566_v23  ;;  %v8628_v28 = vpop.f32.mrb[36].mxu1 }
 0x5d1   : > { %v10197_v51 = vsub.f32 1.0, %v11637_v53  ;;  %v16611_v37 = vmul.f32 %v11637_v53, %v10495_v43  ;;  %11650 = vrcp.f32 %v9348_v22  ;;  %v10489_v40 = vmul.f32 %v11635_v56, %v10484_v42  ;;  %v8589_v45 = vpop.f32.mrb[37].mxu0  ;;  %v16616_v46 = vpop.f32.mrb[37].mxu1 }
 0x5d2   : > { %v9350_v30 = vadd.f32 1.0, %v11639_v61  ;;  %11652 = vpow2.f32 %v10103_v59  ;;  %v17654_v47 = vrot.slane %v16317_v49, %v16148_v24  ;;  %v10474_v32 = vadd.f32 %v10472_v31, %v10456_v63  ;;  %v8591_v14 = vpop.f32.mrb[38].mxu0  ;;  %v8632_v27 = vpop.f32.mrb[38].mxu1 }
 0x5d3   : > { %v11641_v36 = vpop.eup %11640  ;;  %v10497_v9 = vmul.f32 %v10495_v43, %v10197_v51  ;;  %v10491_v38 = vadd.f32 %v10489_v40, %v16586_v8  ;;  %v8592_v5 = vpop.f32.mrb[39].mxu0  ;;  %v9544_v43 = vmax.f32 %v16589_v12, 0.0  ;;  %v11390_v57 = vmul.f32 -1.442695, %v16592_v39 }
 0x5d4   : > { %v10009_v2 = vmul.f32 %v17654_v47, %v9609_v41  ;;  %v11643_v4 = vpop.eup %11642  ;;  %v10196_v34 = vsub.f32 1.0, %v11641_v36  ;;  %v10496_v23 = vmul.f32 %v11641_v36, %v10478_v62  ;;  %11654 = vrcp.f32 %v9350_v30  ;;  %v8633_v13 = vpop.f32.mrb[39].mxu1 }
 0x5d5   : > { %v9351_v21 = vadd.f32 1.0, %v11643_v4  ;;  %v10502_v6 = vrot.slane %v10497_v9, %v16145_v60  ;;  %v10511_v15 = vadd.f32 %v10497_v9, %v10493_v33  ;;  %11656 = vpow2.f32 %v11388_v25 }
 0x5d6   : > { %v10107_v16 = vmul.f32 1.442695, %v10009_v2  ;;  %v10480_v35 = vmul.f32 %v10478_v62, %v10196_v34  ;;  %v9546_v3 = vmax.f32 %v16592_v39, 0.0  ;;  %v8588_v52 = vadd.f32 %v8587_v44, %v16165_v20 }
 0x5d7   : > { %11658 = vrcp.f32 %v9351_v21  ;;  %v9608_v62 = vsub.f32 0.0, %v9544_v43  ;;  %v8629_v17 = vadd.f32 %v8628_v28, %v16165_v20  ;;  %v8590_v42 = vadd.f32 %v8589_v45, %v16165_v20 }
 0x5d8   : > { %v11645_v41 = vpop.eup %11644  ;;  %v10488_v8 = vrot.slane %v10480_v35, %v16145_v60  ;;  %v10494_v0 = vadd.f32 %v10480_v35, %v10476_v18  ;;  %11660 = vpow2.f32 %v10107_v16  ;;  %v9610_v59 = vsub.f32 0.0, %v9546_v3 }
 0x5d9   : > { %v10198_v55 = vsub.f32 1.0, %v11645_v41  ;;  %v16625_v29 = vmul.f32 %v11645_v41, %v10496_v23  ;;  %11662 = vpow2.f32 %v11390_v57  ;;  %v11647_v25 = vpop.eup %11646  ;;  %v11391_v56 = vmul.f32 -1.442695, %v8588_v52 }
 0x5da   : > { %v9547_v12 = vmax.f32 %v8588_v52, 0.0  ;;  %v11649_v22 = vpop.eup %11648  ;;  %v9353_v53 = vadd.f32 1.0, %v11647_v25  ;;  %v17655_v18 = vrot.slane %v16317_v49, %v16154_v10  ;;  %v17656_v63 = vrot.slane %v16317_v49, %v16145_v60 }
 0x5db   : > { %v10498_v39 = vmul.f32 %v10496_v23, %v10198_v55  ;;  %v11651_v33 = vpop.eup %11650  ;;  %v10507_v61 = vmul.f32 %v11649_v22, %v10502_v6  ;;  %11664 = vpow2.f32 %v11391_v56  ;;  %v17657_v14 = vrot.slane %v16317_v49, %v16187_v50 }
 0x5dc   : > { %v10008_v31 = vmul.f32 %v17655_v18, %v9608_v62  ;;  %v10010_v51 = vmul.f32 %v17656_v63, %v9610_v59  ;;  %v9611_v44 = vsub.f32 0.0, %v9547_v12  ;;  %v11653_v36 = vpop.eup %11652  ;;  %v10490_v40 = vmul.f32 %v11651_v33, %v10488_v8 }
 0x5dd   : > { %v10506_v30 = vrot.slane %v10498_v39, %v16145_v60  ;;  %v16636_v47 = vadd.f32 %v10498_v39, %v10494_v0  ;;  %11666 = vrcp.f32 %v9353_v53  ;;  %v10509_v2 = vadd.f32 %v10507_v61, %v10491_v38 }
 0x5de   : > { %v10199_v28 = vsub.f32 1.0, %v11653_v36  ;;  %v10531_v4 = vmul.f32 %v11653_v36, %v16611_v37  ;;  %v10105_v45 = vmul.f32 1.442695, %v10008_v31  ;;  %v11655_v9 = vpop.eup %11654  ;;  %v10492_v34 = vadd.f32 %v10490_v40, %v10474_v32 }
 0x5df   : > { %v10109_v23 = vmul.f32 1.442695, %v10010_v51  ;;  %v10011_v21 = vmul.f32 %v17657_v14, %v9611_v44  ;;  %v11393_v16 = vmul.f32 -1.442695, %v8629_v17  ;;  %v11657_v5 = vpop.eup %11656  ;;  %v10508_v27 = vmul.f32 %v11655_v9, %v10506_v30  ;;  %v8669_v0 = vpop.f32.mrb[40].mxu0 }
 0x5e0   : > { %v10515_v6 = vmul.f32 %v16611_v37, %v10199_v28  ;;  %11668 = vpow2.f32 %v10105_v45  ;;  %v9549_v35 = vmax.f32 %v8629_v17, 0.0  ;;  %v9352_v38 = vadd.f32 1.0, %v11657_v5  ;;  %v8710_v25 = vpop.f32.mrb[40].mxu1  ;;  %v8671_v59 = vpop.f32.mrb[41].mxu0 }
 0x5e1   : > { %v11659_v13 = vpop.eup %11658  ;;  %11670 = vpow2.f32 %v10109_v23  ;;  %v10111_v43 = vmul.f32 1.442695, %v10011_v21  ;;  %v11392_v57 = vmul.f32 -1.442695, %v8590_v42  ;;  %v16643_v41 = vadd.f32 %v10508_v27, %v10492_v34  ;;  %v16648_v22 = vpop.f32.mrb[41].mxu1 }
 0x5e2   : > { %v11661_v3 = vpop.eup %11660  ;;  %v10520_v32 = vrot.slane %v10515_v6, %v16145_v60  ;;  %v10529_v8 = vadd.f32 %v10515_v6, %v10511_v15  ;;  %11672 = vpow2.f32 %v11393_v16  ;;  %v9613_v37 = vsub.f32 0.0, %v9549_v35  ;;  %v8673_v39 = vpop.f32.mrb[42].mxu0 }
 0x5e3   : > { %v11663_v52 = vpop.eup %11662  ;;  %v10201_v55 = vsub.f32 1.0, %v11661_v3  ;;  %v16646_v62 = vmul.f32 %v11661_v3, %v10531_v4  ;;  %11674 = vrcp.f32 %v9352_v38  ;;  %v9548_v17 = vmax.f32 %v8590_v42, 0.0  ;;  %v8674_v33 = vpop.f32.mrb[43].mxu0 }
 0x5e4   : > { %v10525_v56 = vmul.f32 %v11659_v13, %v10520_v32  ;;  %v9354_v12 = vadd.f32 1.0, %v11663_v52  ;;  %11676 = vpow2.f32 %v10111_v43  ;;  %v17658_v15 = vrot.slane %v16317_v49, %v16190_v26  ;;  %v8714_v61 = vpop.f32.mrb[42].mxu1 }
 0x5e5   : > { %v10533_v53 = vmul.f32 %v10531_v4, %v10201_v55  ;;  %11678 = vpow2.f32 %v11392_v57  ;;  %v8631_v31 = vadd.f32 %v16616_v46, %v16165_v20  ;;  %v11665_v63 = vpop.eup %11664  ;;  %v9612_v44 = vsub.f32 0.0, %v9548_v17  ;;  %v8715_v36 = vpop.f32.mrb[43].mxu1 }
 0x5e6   : > { %v10013_v18 = vmul.f32 %v17658_v15, %v9613_v37  ;;  %v10527_v51 = vadd.f32 %v10525_v56, %v10509_v2  ;;  %11680 = vrcp.f32 %v9354_v12  ;;  %v8670_v42 = vadd.f32 %v8669_v0, %v16165_v20 }
 0x5e7   : > { %v11667_v40 = vpop.eup %11666  ;;  %v10538_v30 = vrot.slane %v10533_v53, %v16145_v60  ;;  %v10547_v28 = vadd.f32 %v10533_v53, %v10529_v8  ;;  %v9355_v4 = vadd.f32 1.0, %v11665_v63  ;;  %v17659_v9 = vrot.slane %v16317_v49, %v16196_v54 }
 0x5e8   : > { %v10115_v45 = vmul.f32 1.442695, %v10013_v18  ;;  %v11394_v46 = vmul.f32 -1.442695, %v8631_v31  ;;  %v9550_v23 = vmax.f32 %v8631_v31, 0.0  ;;  %v9551_v2 = vmax.f32 %v8670_v42, 0.0 }
 0x5e9   : > { %v10012_v34 = vmul.f32 %v17659_v9, %v9612_v44  ;;  %v11395_v14 = vmul.f32 -1.442695, %v8670_v42  ;;  %v10543_v21 = vmul.f32 %v11667_v40, %v10538_v30  ;;  %11682 = vrcp.f32 %v9355_v4 }
 0x5ea   : > { %v8711_v16 = vadd.f32 %v8710_v25, %v16165_v20  ;;  %v11669_v5 = vpop.eup %11668  ;;  %11684 = vpow2.f32 %v10115_v45  ;;  %v9614_v6 = vsub.f32 0.0, %v9550_v23  ;;  %v16662_v35 = vadd.f32 %v8671_v59, %v16165_v20 }
 0x5eb   : > { %v10113_v27 = vmul.f32 1.442695, %v10012_v34  ;;  %v11671_v13 = vpop.eup %11670  ;;  %v16664_v38 = vadd.f32 %v10543_v21, %v10527_v51  ;;  %v10200_v43 = vsub.f32 1.0, %v11669_v5  ;;  %v10532_v57 = vmul.f32 %v11669_v5, %v16625_v29 }
 0x5ec   : > { %11686 = vpow2.f32 %v11394_v46  ;;  %v11673_v3 = vpop.eup %11672  ;;  %v10202_v32 = vsub.f32 1.0, %v11671_v13  ;;  %v17660_v8 = vrot.slane %v16317_v49, %v16201_v7  ;;  %v9615_v52 = vsub.f32 0.0, %v9551_v2 }
 0x5ed   : > { %11688 = vpow2.f32 %v10113_v27  ;;  %v11675_v55 = vpop.eup %11674  ;;  %v10516_v37 = vmul.f32 %v16625_v29, %v10200_v43  ;;  %v16671_v25 = vmul.f32 %v11671_v13, %v10532_v57  ;;  %v9357_v59 = vadd.f32 1.0, %v11673_v3 }
 0x5ee   : > { %v10014_v0 = vmul.f32 %v17660_v8, %v9614_v6  ;;  %11690 = vpow2.f32 %v11395_v14  ;;  %v11677_v56 = vpop.eup %11676  ;;  %v10534_v12 = vmul.f32 %v10532_v57, %v10202_v32  ;;  %v10015_v39 = vmul.f32 %v9818_v58, %v9615_v52 }
 0x5ef   : > { %v11397_v53 = vmul.f32 -1.442695, %v8711_v16  ;;  %v11679_v15 = vpop.eup %11678  ;;  %v10524_v49 = vrot.slane %v10516_v37, %v16145_v60  ;;  %v10530_v18 = vadd.f32 %v10516_v37, %v16636_v47  ;;  %v10203_v31 = vsub.f32 1.0, %v11677_v56  ;;  %v8751_v47 = vpop.f32.mrb[44].mxu0 }
 0x5f0   : > { %v10117_v17 = vmul.f32 1.442695, %v10014_v0  ;;  %v10567_v29 = vmul.f32 %v11677_v56, %v16646_v62  ;;  %v11681_v33 = vpop.eup %11680  ;;  %v10542_v61 = vrot.slane %v10534_v12, %v16145_v60  ;;  %11692 = vrcp.f32 %v9357_v59  ;;  %v16684_v46 = vpop.f32.mrb[44].mxu1 }
 0x5f1   : > { %v9356_v63 = vadd.f32 1.0, %v11679_v15  ;;  %v10119_v51 = vmul.f32 1.442695, %v10015_v39  ;;  %v10526_v44 = vmul.f32 %v11675_v55, %v10524_v49  ;;  %v10548_v42 = vadd.f32 %v10534_v12, %v10530_v18  ;;  %v16686_v23 = vpop.f32.mrb[45].mxu0 }
 0x5f2   : > { %v10551_v36 = vmul.f32 %v16646_v62, %v10203_v31  ;;  %11694 = vpow2.f32 %v10117_v17  ;;  %v10544_v58 = vmul.f32 %v11681_v33, %v10542_v61  ;;  %v9553_v40 = vmax.f32 %v8711_v16, 0.0  ;;  %v16691_v16 = vpop.f32.mrb[45].mxu1  ;;  %v8755_v5 = vpop.f32.mrb[46].mxu0  ;;  %v16704_v31 = vld [vmem:[%s16126_s14 + $0x28] sm:$0xff] }
 0x5f3   : > { %11696 = vrcp.f32 %v9356_v63  ;;  %v11396_v30 = vmul.f32 -1.442695, %v16662_v35  ;;  %v11683_v4 = vpop.eup %11682  ;;  %v10528_v45 = vadd.f32 %v10526_v44, %v16643_v41  ;;  %v9552_v21 = vmax.f32 %v16662_v35, 0.0  ;;  %v8756_v43 = vpop.f32.mrb[47].mxu0 }
 0x5f4   : > { %v10556_v9 = vrot.slane %v10551_v36, %v16145_v60  ;;  %v10565_v34 = vadd.f32 %v10551_v36, %v10547_v28  ;;  %11698 = vpow2.f32 %v10119_v51  ;;  %v11685_v14 = vpop.eup %11684  ;;  %v9617_v62 = vsub.f32 0.0, %v9553_v40  ;;  %v8796_v57 = vpop.f32.mrb[46].mxu1 }
 0x5f5   : > { %11700 = vpow2.f32 %v11397_v53  ;;  %v8713_v2 = vadd.f32 %v16648_v22, %v16165_v20  ;;  %v10546_v27 = vadd.f32 %v10544_v58, %v10528_v45  ;;  %v10205_v28 = vsub.f32 1.0, %v11685_v14  ;;  %v8797_v0 = vpop.f32.mrb[47].mxu1 }
 0x5f6   : > { %v11687_v41 = vpop.eup %11686  ;;  %v10561_v6 = vmul.f32 %v11683_v4, %v10556_v9  ;;  %v10585_v13 = vmul.f32 %v11685_v14, %v10567_v29  ;;  %v10017_v8 = vmul.f32 %v9826_v11, %v9617_v62  ;;  %11702 = vpow2.f32 %v11396_v30 }
 0x5f7   : > { %v11689_v3 = vpop.eup %11688  ;;  %v9358_v32 = vadd.f32 1.0, %v11687_v41  ;;  %v9616_v35 = vsub.f32 0.0, %v9552_v21  ;;  %v10569_v55 = vmul.f32 %v10567_v29, %v10205_v28  ;;  %v11398_v15 = vmul.f32 -1.442695, %v8713_v2 }
 0x5f8   : > { %v11691_v22 = vpop.eup %11690  ;;  %v10563_v52 = vadd.f32 %v10561_v6, %v16664_v38  ;;  %v10204_v37 = vsub.f32 1.0, %v11689_v3  ;;  %v10568_v59 = vmul.f32 %v11689_v3, %v16671_v25  ;;  %v10123_v12 = vmul.f32 1.442695, %v10017_v8 }
 0x5f9   : > { %11704 = vrcp.f32 %v9358_v32  ;;  %v9359_v56 = vadd.f32 1.0, %v11691_v22  ;;  %v10016_v17 = vmul.f32 %v9822_v48, %v9616_v35  ;;  %v10574_v11 = vrot.slane %v10569_v55, %v16145_v60 }
 0x5fa   : > { %v10583_v39 = vadd.f32 %v10569_v55, %v10565_v34  ;;  %v10552_v53 = vmul.f32 %v16671_v25, %v10204_v37  ;;  %v11693_v49 = vpop.eup %11692  ;;  %v9554_v18 = vmax.f32 %v8713_v2, 0.0  ;;  %v9830_v29 = vrot.slane %v16704_v31, %v16145_v60 }
 0x5fb   : > { %11706 = vrcp.f32 %v9359_v56  ;;  %v10121_v38 = vmul.f32 1.442695, %v10016_v17  ;;  %v10579_v61 = vmul.f32 %v11693_v49, %v10574_v11  ;;  %v8752_v30 = vadd.f32 %v8751_v47, %v16165_v20 }
 0x5fc   : > { %v11695_v33 = vpop.eup %11694  ;;  %v10560_v1 = vrot.slane %v10552_v53, %v16145_v60  ;;  %v10566_v48 = vadd.f32 %v10552_v53, %v10548_v42  ;;  %11708 = vpow2.f32 %v10123_v12  ;;  %v9618_v25 = vsub.f32 0.0, %v9554_v18 }
 0x5fd   : > { %v11697_v63 = vpop.eup %11696  ;;  %v10206_v51 = vsub.f32 1.0, %v11695_v33  ;;  %v16709_v44 = vmul.f32 %v11695_v33, %v10568_v59  ;;  %11710 = vpow2.f32 %v10121_v38  ;;  %v10581_v58 = vadd.f32 %v10579_v61, %v10563_v52 }
 0x5fe   : > { %v11699_v36 = vpop.eup %11698  ;;  %v10562_v40 = vmul.f32 %v11697_v63, %v10560_v1  ;;  %11712 = vpow2.f32 %v11398_v15  ;;  %v10018_v14 = vmul.f32 %v9830_v29, %v9618_v25  ;;  %v11399_v21 = vmul.f32 -1.442695, %v8752_v30 }
 0x5ff   : > { %v11701_v4 = vpop.eup %11700  ;;  %v10570_v45 = vmul.f32 %v10568_v59, %v10206_v51  ;;  %v10207_v9 = vsub.f32 1.0, %v11699_v36  ;;  %v10603_v34 = vmul.f32 %v11699_v36, %v10585_v13  ;;  %v9555_v2 = vmax.f32 %v8752_v30, 0.0  ;;  %v8833_v0 = vpop.f32.mrb[48].mxu0 }
 0x600   : > { %v10564_v62 = vadd.f32 %v10562_v40, %v10546_v27  ;;  %v9361_v42 = vadd.f32 1.0, %v11701_v4  ;;  %v11703_v5 = vpop.eup %11702  ;;  %v10125_v43 = vmul.f32 1.442695, %v10018_v14  ;;  %v9834_v47 = vrot.slane %v16704_v31, %v16187_v50  ;;  %v16720_v55 = vpop.f32.mrb[48].mxu1 }
 0x601   : > { %v10578_v41 = vrot.slane %v10570_v45, %v16145_v60  ;;  %v10584_v6 = vadd.f32 %v10570_v45, %v10566_v48  ;;  %v10587_v28 = vmul.f32 %v10585_v13, %v10207_v9  ;;  %v9360_v57 = vadd.f32 1.0, %v11703_v5  ;;  %v16722_v37 = vpop.f32.mrb[49].mxu0  ;;  %v16726_v11 = vpop.f32.mrb[49].mxu1 }
 0x602   : > { %11714 = vrcp.f32 %v9361_v42  ;;  %v9619_v3 = vsub.f32 0.0, %v9555_v2  ;;  %v8793_v27 = vadd.f32 %v16684_v46, %v16165_v20  ;;  %v9842_v13 = vrot.slane %v16704_v31, %v16190_v26  ;;  %v8837_v46 = vpop.f32.mrb[50].mxu0  ;;  %v8878_v29 = vpop.f32.mrb[50].mxu1 }
 0x603   : > { %v11705_v32 = vpop.eup %11704  ;;  %v10592_v8 = vrot.slane %v10587_v28, %v16145_v60  ;;  %v10601_v35 = vadd.f32 %v10587_v28, %v10583_v39  ;;  %11716 = vpow2.f32 %v10125_v43  ;;  %v8754_v17 = vadd.f32 %v16686_v23, %v16165_v20  ;;  %v8838_v18 = vpop.f32.mrb[51].mxu0 }
 0x604   : > { %v10580_v22 = vmul.f32 %v11705_v32, %v10578_v41  ;;  %11718 = vrcp.f32 %v9360_v57  ;;  %v10019_v52 = vmul.f32 %v9834_v47, %v9619_v3  ;;  %v11401_v56 = vmul.f32 -1.442695, %v8793_v27  ;;  %v8879_v63 = vpop.f32.mrb[51].mxu1 }
 0x605   : > { %v11707_v59 = vpop.eup %11706  ;;  %11720 = vpow2.f32 %v11399_v21  ;;  %v9557_v12 = vmax.f32 %v8793_v27, 0.0  ;;  %v9838_v38 = vrot.slane %v16704_v31, %v16196_v54  ;;  %v11400_v45 = vmul.f32 -1.442695, %v8754_v17 }
 0x606   : > { %v11709_v39 = vpop.eup %11708  ;;  %v10582_v53 = vadd.f32 %v10580_v22, %v10564_v62  ;;  %v10597_v15 = vmul.f32 %v11707_v59, %v10592_v8  ;;  %v10127_v49 = vmul.f32 1.442695, %v10019_v52  ;;  %11722 = vpow2.f32 %v11401_v56 }
 0x607   : > { %v11711_v33 = vpop.eup %11710  ;;  %v10209_v61 = vsub.f32 1.0, %v11709_v39  ;;  %v16730_v1 = vmul.f32 %v11709_v39, %v10603_v34  ;;  %v9621_v48 = vsub.f32 0.0, %v9557_v12  ;;  %v9556_v14 = vmax.f32 %v8754_v17, 0.0 }
 0x608   : > { %v11713_v23 = vpop.eup %11712  ;;  %v10599_v51 = vadd.f32 %v10597_v15, %v10581_v58  ;;  %v10208_v25 = vsub.f32 1.0, %v11711_v33  ;;  %v10604_v36 = vmul.f32 %v11711_v33, %v16709_v44  ;;  %11724 = vpow2.f32 %v10127_v49 }
 0x609   : > { %v10605_v40 = vmul.f32 %v10603_v34, %v10209_v61  ;;  %v9362_v30 = vadd.f32 1.0, %v11713_v23  ;;  %v10021_v4 = vmul.f32 %v9842_v13, %v9621_v48  ;;  %v8795_v62 = vadd.f32 %v16691_v16, %v16165_v20 }
 0x60a   : > { %v10588_v9 = vmul.f32 %v16709_v44, %v10208_v25  ;;  %v9846_v42 = vrot.slane %v16704_v31, %v16201_v7  ;;  %v9620_v44 = vsub.f32 0.0, %v9556_v14  ;;  %v8834_v8 = vadd.f32 %v8833_v0, %v16165_v20 }
 0x60b   : > { %v10610_v21 = vrot.slane %v10605_v40, %v16145_v60  ;;  %v16739_v58 = vadd.f32 %v10605_v40, %v10601_v35  ;;  %11726 = vrcp.f32 %v9362_v30  ;;  %v10131_v2 = vmul.f32 1.442695, %v10021_v4  ;;  %v16746_v35 = vld [vmem:[%s16126_s14 + $0x30] sm:$0xff] }
 0x60c   : > { %v11715_v34 = vpop.eup %11714  ;;  %v10596_v5 = vrot.slane %v10588_v9, %v16145_v60  ;;  %v10602_v41 = vadd.f32 %v10588_v9, %v10584_v6  ;;  %11728 = vpow2.f32 %v11400_v45  ;;  %v11402_v16 = vmul.f32 -1.442695, %v8795_v62 }
 0x60d   : > { %v11717_v28 = vpop.eup %11716  ;;  %v10615_v43 = vmul.f32 %v11715_v34, %v10610_v21  ;;  %11730 = vpow2.f32 %v10131_v2  ;;  %v9558_v57 = vmax.f32 %v8795_v62, 0.0  ;;  %v10020_v32 = vmul.f32 %v9838_v38, %v9620_v44 }
 0x60e   : > { %v11719_v3 = vpop.eup %11718  ;;  %v10210_v31 = vsub.f32 1.0, %v11717_v28  ;;  %v16742_v47 = vmul.f32 %v11717_v28, %v10604_v36  ;;  %11732 = vpow2.f32 %v11402_v16  ;;  %v11403_v12 = vmul.f32 -1.442695, %v8834_v8 }
 0x60f   : > { %v11721_v27 = vpop.eup %11720  ;;  %v16748_v22 = vadd.f32 %v10615_v43, %v10599_v51  ;;  %v10598_v6 = vmul.f32 %v11719_v3, %v10596_v5  ;;  %v9622_v52 = vsub.f32 0.0, %v9558_v57  ;;  %v10129_v56 = vmul.f32 1.442695, %v10020_v32  ;;  %v16756_v63 = vpop.f32.mrb[52].mxu0 }
 0x610   : > { %v10606_v13 = vmul.f32 %v10604_v36, %v10210_v31  ;;  %v9363_v59 = vadd.f32 1.0, %v11721_v27  ;;  %v11723_v17 = vpop.eup %11722  ;;  %v9559_v15 = vmax.f32 %v8834_v8, 0.0  ;;  %v9850_v49 = vrot.slane %v16746_v35, %v16136_v19  ;;  %v16762_v25 = vpop.f32.mrb[52].mxu1 }
 0x611   : > { %v10600_v46 = vadd.f32 %v10598_v6, %v10582_v53  ;;  %v10022_v39 = vmul.f32 %v9846_v42, %v9622_v52  ;;  %v9365_v29 = vadd.f32 1.0, %v11723_v17  ;;  %v8875_v23 = vadd.f32 %v16720_v55, %v16165_v20  ;;  %v16764_v36 = vpop.f32.mrb[53].mxu0  ;;  %v16771_v9 = vpop.f32.mrb[53].mxu1 }
 0x612   : > { %v11725_v0 = vpop.eup %11724  ;;  %v10614_v38 = vrot.slane %v10606_v13, %v16145_v60  ;;  %v16753_v18 = vadd.f32 %v10606_v13, %v10602_v41  ;;  %11734 = vrcp.f32 %v9363_v59  ;;  %v9623_v53 = vsub.f32 0.0, %v9559_v15  ;;  %v8919_v55 = vpop.f32.mrb[54].mxu0 }
 0x613   : > { %v10211_v33 = vsub.f32 1.0, %v11725_v0  ;;  %v10639_v61 = vmul.f32 %v11725_v0, %v16730_v1  ;;  %11736 = vpow2.f32 %v10129_v56  ;;  %v10133_v48 = vmul.f32 1.442695, %v10022_v39  ;;  %v8920_v2 = vpop.f32.mrb[55].mxu0  ;;  %v8960_v34 = vpop.f32.mrb[54].mxu1 }
 0x614   : > { %11738 = vrcp.f32 %v9365_v29  ;;  %v9858_v51 = vrot.slane %v16746_v35, %v16148_v24  ;;  %v8836_v4 = vadd.f32 %v16722_v37, %v16165_v20  ;;  %v9854_v45 = vrot.slane %v16746_v35, %v16154_v10  ;;  %v8961_v28 = vpop.f32.mrb[55].mxu1 }
 0x615   : > { %v11727_v40 = vpop.eup %11726  ;;  %v10623_v30 = vmul.f32 %v16730_v1, %v10211_v33  ;;  %11740 = vpow2.f32 %v10133_v48  ;;  %v10023_v42 = vmul.f32 %v9850_v49, %v9623_v53  ;;  %v11405_v21 = vmul.f32 -1.442695, %v8875_v23 }
 0x616   : > { %v11729_v14 = vpop.eup %11728  ;;  %v10616_v62 = vmul.f32 %v11727_v40, %v10614_v38  ;;  %11742 = vpow2.f32 %v11403_v12  ;;  %v9561_v37 = vmax.f32 %v8875_v23, 0.0  ;;  %v11404_v8 = vmul.f32 -1.442695, %v8836_v4 }
 0x617   : > { %v11731_v5 = vpop.eup %11730  ;;  %v10628_v1 = vrot.slane %v10623_v30, %v16145_v60  ;;  %v10637_v41 = vadd.f32 %v10623_v30, %v16739_v58  ;;  %v9364_v44 = vadd.f32 1.0, %v11729_v14  ;;  %v10135_v3 = vmul.f32 1.442695, %v10023_v42 }
 0x618   : > { %v16775_v43 = vadd.f32 %v10616_v62, %v10600_v46  ;;  %v10213_v16 = vsub.f32 1.0, %v11731_v5  ;;  %v16777_v57 = vmul.f32 %v11731_v5, %v10639_v61  ;;  %v11733_v31 = vpop.eup %11732  ;;  %v9625_v32 = vsub.f32 0.0, %v9561_v37 }
 0x619   : > { %11744 = vrcp.f32 %v9364_v44  ;;  %v9560_v27 = vmax.f32 %v8836_v4, 0.0  ;;  %v9366_v52 = vadd.f32 1.0, %v11733_v31  ;;  %v8877_v58 = vadd.f32 %v16726_v11, %v16165_v20 }
 0x61a   : > { %v10641_v6 = vmul.f32 %v10639_v61, %v10213_v16  ;;  %11746 = vpow2.f32 %v10135_v3  ;;  %v10025_v13 = vmul.f32 %v9858_v51, %v9625_v32  ;;  %v9862_v56 = vrot.slane %v16746_v35, %v16145_v60 }
 0x61b   : > { %11748 = vpow2.f32 %v11405_v21  ;;  %v9624_v59 = vsub.f32 0.0, %v9560_v27  ;;  %v11406_v39 = vmul.f32 -1.442695, %v8877_v58  ;;  %v9562_v61 = vmax.f32 %v8877_v58, 0.0 }
 0x61c   : > { %v11735_v12 = vpop.eup %11734  ;;  %v10646_v17 = vrot.slane %v10641_v6, %v16145_v60  ;;  %v16784_v46 = vadd.f32 %v10641_v6, %v10637_v41  ;;  %11750 = vrcp.f32 %v9366_v52  ;;  %v10139_v0 = vmul.f32 1.442695, %v10025_v13 }
 0x61d   : > { %v11737_v15 = vpop.eup %11736  ;;  %v10633_v49 = vmul.f32 %v11735_v12, %v10628_v1  ;;  %11752 = vpow2.f32 %v11404_v8  ;;  %v10024_v38 = vmul.f32 %v9854_v45, %v9624_v59  ;;  %v9626_v14 = vsub.f32 0.0, %v9562_v61 }
 0x61e   : > { %v11739_v29 = vpop.eup %11738  ;;  %v10212_v11 = vsub.f32 1.0, %v11737_v15  ;;  %v10640_v33 = vmul.f32 %v11737_v15, %v16742_v47  ;;  %11754 = vpow2.f32 %v11406_v39  ;;  %v8916_v42 = vadd.f32 %v16756_v63, %v16165_v20 }
 0x61f   : > { %v11741_v48 = vpop.eup %11740  ;;  %v10635_v53 = vadd.f32 %v10633_v49, %v16748_v22  ;;  %v10651_v23 = vmul.f32 %v11739_v29, %v10646_v17  ;;  %11756 = vpow2.f32 %v10139_v0  ;;  %v10137_v51 = vmul.f32 1.442695, %v10024_v38  ;;  %v16799_v44 = vpop.f32.mrb[56].mxu0 }
 0x620   : > { %v11743_v40 = vpop.eup %11742  ;;  %v10624_v30 = vmul.f32 %v16742_v47, %v10212_v11  ;;  %v10214_v4 = vsub.f32 1.0, %v11741_v48  ;;  %v16789_v55 = vmul.f32 %v11741_v48, %v10640_v33  ;;  %v10026_v34 = vmul.f32 %v9862_v56, %v9626_v14  ;;  %v16804_v31 = vpop.f32.mrb[56].mxu1 }
 0x621   : > { %v16791_v45 = vadd.f32 %v10651_v23, %v10635_v53  ;;  %v9367_v62 = vadd.f32 1.0, %v11743_v40  ;;  %11758 = vpow2.f32 %v10137_v51  ;;  %v11407_v47 = vmul.f32 -1.442695, %v8916_v42  ;;  %v16809_v52 = vpop.f32.mrb[57].mxu1 }
 0x622   : > { %v10632_v21 = vrot.slane %v10624_v30, %v16145_v60  ;;  %v10638_v22 = vadd.f32 %v10624_v30, %v16753_v18  ;;  %v10642_v2 = vmul.f32 %v10640_v33, %v10214_v4  ;;  %v9563_v1 = vmax.f32 %v8916_v42, 0.0  ;;  %v16806_v18 = vpop.f32.mrb[57].mxu0  ;;  %v9042_v39 = vpop.f32.mrb[58].mxu1 }
 0x623   : > { %v11745_v5 = vpop.eup %11744  ;;  %11760 = vrcp.f32 %v9367_v62  ;;  %v9866_v41 = vrot.slane %v16746_v35, %v16187_v50  ;;  %v10141_v3 = vmul.f32 1.442695, %v10026_v34  ;;  %v9001_v58 = vpop.f32.mrb[58].mxu0  ;;  %v8957_v12 = vadd.f32 %v16762_v25, %v16165_v20 }
 0x624   : > { %v11747_v37 = vpop.eup %11746  ;;  %v10634_v28 = vmul.f32 %v11745_v5, %v10632_v21  ;;  %v10650_v16 = vrot.slane %v10642_v2, %v16145_v60  ;;  %v16802_v63 = vadd.f32 %v10642_v2, %v10638_v22  ;;  %11762 = vpow2.f32 %v11407_v47  ;;  %v9002_v17 = vpop.f32.mrb[59].mxu0 }
 0x625   : > { %v11749_v32 = vpop.eup %11748  ;;  %v10215_v8 = vsub.f32 1.0, %v11747_v37  ;;  %v10675_v27 = vmul.f32 %v11747_v37, %v16777_v57  ;;  %v9627_v6 = vsub.f32 0.0, %v9563_v1  ;;  %11764 = vpow2.f32 %v10141_v3  ;;  %v9043_v11 = vpop.f32.mrb[59].mxu1  ;;  %v16840_v17 = vld [vmem:[%s16126_s14 + $0x38] sm:$0xff] }
 0x626   : > { %v11751_v13 = vpop.eup %11750  ;;  %v10636_v59 = vadd.f32 %v10634_v28, %v16775_v43  ;;  %v9369_v56 = vadd.f32 1.0, %v11749_v32  ;;  %v9874_v29 = vrot.slane %v16746_v35, %v16190_v26  ;;  %v11409_v43 = vmul.f32 -1.442695, %v8957_v12 }
 0x627   : > { %v11753_v15 = vpop.eup %11752  ;;  %v10652_v49 = vmul.f32 %v11751_v13, %v10650_v16  ;;  %v10659_v0 = vmul.f32 %v16777_v57, %v10215_v8  ;;  %v10027_v38 = vmul.f32 %v9866_v41, %v9627_v6  ;;  %v9565_v48 = vmax.f32 %v8957_v12, 0.0 }
 0x628   : > { %v11755_v33 = vpop.eup %11754  ;;  %11766 = vrcp.f32 %v9369_v56  ;;  %v9368_v61 = vadd.f32 1.0, %v11753_v15  ;;  %v8918_v42 = vadd.f32 %v16764_v36, %v16165_v20  ;;  %v9870_v21 = vrot.slane %v16746_v35, %v16196_v54 }
 0x629   : > { %v11757_v53 = vpop.eup %11756  ;;  %v16817_v23 = vadd.f32 %v10652_v49, %v10636_v59  ;;  %v10664_v25 = vrot.slane %v10659_v0, %v16145_v60  ;;  %v10673_v51 = vadd.f32 %v10659_v0, %v16784_v46  ;;  %v9370_v40 = vadd.f32 1.0, %v11755_v33 }
 0x62a   : > { %v10217_v30 = vsub.f32 1.0, %v11757_v53  ;;  %v16821_v57 = vmul.f32 %v11757_v53, %v10675_v27  ;;  %11768 = vrcp.f32 %v9368_v61  ;;  %v10143_v4 = vmul.f32 1.442695, %v10027_v38 }
 0x62b   : > { %v11759_v14 = vpop.eup %11758  ;;  %11770 = vrcp.f32 %v9370_v40  ;;  %v9629_v62 = vsub.f32 0.0, %v9565_v48  ;;  %v11408_v47 = vmul.f32 -1.442695, %v8918_v42  ;;  %v9564_v1 = vmax.f32 %v8918_v42, 0.0 }
 0x62c   : > { %v10677_v22 = vmul.f32 %v10675_v27, %v10217_v30  ;;  %v10216_v2 = vsub.f32 1.0, %v11759_v14  ;;  %v10676_v34 = vmul.f32 %v11759_v14, %v16789_v55  ;;  %11772 = vpow2.f32 %v10143_v4 }
 0x62d   : > { %v11761_v46 = vpop.eup %11760  ;;  %11774 = vpow2.f32 %v11409_v43  ;;  %v10029_v5 = vmul.f32 %v9874_v29, %v9629_v62  ;;  %v9628_v32 = vsub.f32 0.0, %v9564_v1  ;;  %v8959_v8 = vadd.f32 %v16771_v9, %v16165_v20 }
 0x62e   : > { %v10669_v41 = vmul.f32 %v11761_v46, %v10664_v25  ;;  %v10682_v37 = vrot.slane %v10677_v22, %v16145_v60  ;;  %v16829_v28 = vadd.f32 %v10677_v22, %v10673_v51  ;;  %v10660_v36 = vmul.f32 %v16789_v55, %v10216_v2  ;;  %v11763_v16 = vpop.eup %11762 }
 0x62f   : > { %v10147_v3 = vmul.f32 1.442695, %v10029_v5  ;;  %11776 = vpow2.f32 %v11408_v47  ;;  %v11765_v27 = vpop.eup %11764  ;;  %v9371_v59 = vadd.f32 1.0, %v11763_v16  ;;  %v10028_v55 = vmul.f32 %v9870_v21, %v9628_v32  ;;  %v16846_v29 = vpop.f32.mrb[60].mxu0 }
 0x630   : > { %v10671_v6 = vadd.f32 %v10669_v41, %v16791_v45  ;;  %v10668_v58 = vrot.slane %v10660_v36, %v16145_v60  ;;  %v10674_v13 = vadd.f32 %v10660_v36, %v16802_v63  ;;  %v10218_v56 = vsub.f32 1.0, %v11765_v27  ;;  %v16852_v48 = vpop.f32.mrb[60].mxu1 }
 0x631   : > { %v16837_v12 = vmul.f32 %v11765_v27, %v10676_v34  ;;  %11778 = vpow2.f32 %v10147_v3  ;;  %v11410_v15 = vmul.f32 -1.442695, %v8959_v8  ;;  %v9566_v49 = vmax.f32 %v8959_v8, 0.0  ;;  %v16859_v30 = vpop.f32.mrb[61].mxu1 }
 0x632   : > { %v11767_v39 = vpop.eup %11766  ;;  %11780 = vrcp.f32 %v9371_v59  ;;  %v9878_v9 = vrot.slane %v16746_v35, %v16201_v7  ;;  %v10678_v0 = vmul.f32 %v10676_v34, %v10218_v56  ;;  %v10145_v38 = vmul.f32 1.442695, %v10028_v55  ;;  %v16854_v35 = vpop.f32.mrb[61].mxu0 }
 0x633   : > { %v10687_v45 = vmul.f32 %v11767_v39, %v10682_v37  ;;  %v8998_v63 = vadd.f32 %v16799_v44, %v16165_v20  ;;  %11782 = vpow2.f32 %v11410_v15  ;;  %v9630_v33 = vsub.f32 0.0, %v9566_v49  ;;  %v9083_v4 = vpop.f32.mrb[62].mxu0 }
 0x634   : > { %v11769_v11 = vpop.eup %11768  ;;  %v9882_v61 = vrot.slane %v16840_v17, %v16136_v19  ;;  %v9039_v43 = vadd.f32 %v16804_v31, %v16165_v20  ;;  %v10686_v44 = vrot.slane %v10678_v0, %v16145_v60  ;;  %v16857_v40 = vadd.f32 %v10678_v0, %v10674_v13  ;;  %v9124_v31 = vpop.f32.mrb[62].mxu1 }
 0x635   : > { %v11771_v53 = vpop.eup %11770  ;;  %v10689_v25 = vadd.f32 %v10687_v45, %v10671_v6  ;;  %v10670_v51 = vmul.f32 %v11769_v11, %v10668_v58  ;;  %11784 = vpow2.f32 %v10145_v38  ;;  %v10030_v19 = vmul.f32 %v9878_v9, %v9630_v33  ;;  %v9084_v21 = vpop.f32.mrb[63].mxu0 }
 0x636   : > { %v11773_v14 = vpop.eup %11772  ;;  %v11411_v62 = vmul.f32 -1.442695, %v8998_v63  ;;  %v9567_v42 = vmax.f32 %v8998_v63, 0.0  ;;  %v10688_v34 = vmul.f32 %v11771_v53, %v10686_v44  ;;  %v9125_v47 = vpop.f32.mrb[63].mxu1  ;;  %v11413_v32 = vmul.f32 -1.442695, %v9039_v43 }
 0x637   : > { %v11775_v22 = vpop.eup %11774  ;;  %v10672_v2 = vadd.f32 %v10670_v51, %v16817_v23  ;;  %v10219_v46 = vsub.f32 1.0, %v11773_v14  ;;  %v10711_v5 = vmul.f32 %v11773_v14, %v16821_v57  ;;  %v10149_v41 = vmul.f32 1.442695, %v10030_v19 }
 0x638   : > { %v9373_v1 = vadd.f32 1.0, %v11775_v22  ;;  %11786 = vpow2.f32 %v11411_v62  ;;  %v9631_v37 = vsub.f32 0.0, %v9567_v42  ;;  %v9569_v8 = vmax.f32 %v9039_v43, 0.0 }
 0x639   : > { %v11777_v36 = vpop.eup %11776  ;;  %v16863_v16 = vadd.f32 %v10688_v34, %v10672_v2  ;;  %v10695_v3 = vmul.f32 %v16821_v57, %v10219_v46  ;;  %v9890_v23 = vrot.slane %v16840_v17, %v16148_v24  ;;  %v9000_v24 = vadd.f32 %v16806_v18, %v16165_v20 }
 0x63a   : > { %11788 = vrcp.f32 %v9373_v1  ;;  %v9372_v27 = vadd.f32 1.0, %v11777_v36  ;;  %v10031_v6 = vmul.f32 %v9882_v61, %v9631_v37  ;;  %v9633_v56 = vsub.f32 0.0, %v9569_v8 }
 0x63b   : > { %v11779_v58 = vpop.eup %11778  ;;  %v10700_v13 = vrot.slane %v10695_v3, %v16145_v60  ;;  %v16870_v59 = vadd.f32 %v10695_v3, %v16829_v28  ;;  %11790 = vpow2.f32 %v10149_v41  ;;  %v9886_v28 = vrot.slane %v16840_v17, %v16154_v10 }
 0x63c   : > { %v11781_v55 = vpop.eup %11780  ;;  %v10221_v39 = vsub.f32 1.0, %v11779_v58  ;;  %v16872_v15 = vmul.f32 %v11779_v58, %v10711_v5  ;;  %11792 = vrcp.f32 %v9372_v27  ;;  %v10151_v57 = vmul.f32 1.442695, %v10031_v6 }
 0x63d   : > { %v10705_v49 = vmul.f32 %v11781_v55, %v10700_v13  ;;  %11794 = vpow2.f32 %v11413_v32  ;;  %v10033_v9 = vmul.f32 %v9890_v23, %v9633_v56  ;;  %v11783_v45 = vpop.eup %11782  ;;  %v9041_v38 = vadd.f32 %v16809_v52, %v16165_v20 }
 0x63e   : > { %v16876_v0 = vmul.f32 %v10711_v5, %v10221_v39  ;;  %11796 = vpow2.f32 %v10151_v57  ;;  %v9374_v11 = vadd.f32 1.0, %v11783_v45  ;;  %v11412_v61 = vmul.f32 -1.442695, %v9000_v24 }
 0x63f   : > { %v10707_v63 = vadd.f32 %v10705_v49, %v10689_v25  ;;  %v10155_v33 = vmul.f32 1.442695, %v10033_v9  ;;  %v11785_v43 = vpop.eup %11784  ;;  %v9568_v51 = vmax.f32 %v9000_v24, 0.0  ;;  %v11414_v18 = vmul.f32 -1.442695, %v9041_v38 }
 0x640   : > { %v10718_v53 = vrot.slane %v16876_v0, %v16145_v60  ;;  %v9570_v44 = vmax.f32 %v9041_v38, 0.0  ;;  %v10220_v4 = vsub.f32 1.0, %v11785_v43  ;;  %v10712_v14 = vmul.f32 %v11785_v43, %v16837_v12 }
 0x641   : > { %11798 = vrcp.f32 %v9374_v11  ;;  %v9894_v10 = vrot.slane %v16840_v17, %v16145_v60  ;;  %v9632_v52 = vsub.f32 0.0, %v9568_v51  ;;  %v9080_v62 = vadd.f32 %v16846_v29, %v16165_v20 }
 0x642   : > { %v11787_v19 = vpop.eup %11786  ;;  %11800 = vpow2.f32 %v10155_v33  ;;  %v9634_v25 = vsub.f32 0.0, %v9570_v44  ;;  %v10696_v42 = vmul.f32 %v16837_v12, %v10220_v4  ;;  %v9898_v21 = vrot.slane %v16840_v17, %v16187_v50 }
 0x643   : > { %v9375_v31 = vadd.f32 1.0, %v11787_v19  ;;  %11802 = vpow2.f32 %v11412_v61  ;;  %v10032_v2 = vmul.f32 %v9886_v28, %v9632_v52  ;;  %v11415_v46 = vmul.f32 -1.442695, %v9080_v62 }
 0x644   : > { %v11789_v22 = vpop.eup %11788  ;;  %11804 = vpow2.f32 %v11414_v18  ;;  %v10034_v34 = vmul.f32 %v9894_v10, %v9634_v25  ;;  %v10704_v1 = vrot.slane %v10696_v42, %v16145_v60  ;;  %v16894_v41 = vadd.f32 %v10696_v42, %v16857_v40 }
 0x645   : > { %v11791_v5 = vpop.eup %11790  ;;  %v10723_v47 = vmul.f32 %v11789_v22, %v10718_v53  ;;  %11806 = vrcp.f32 %v9375_v31  ;;  %v10153_v36 = vmul.f32 1.442695, %v10032_v2  ;;  %v9571_v27 = vmax.f32 %v9080_v62, 0.0 }
 0x646   : > { %v11793_v29 = vpop.eup %11792  ;;  %v10222_v12 = vsub.f32 1.0, %v11791_v5  ;;  %v16896_v37 = vmul.f32 %v11791_v5, %v10712_v14  ;;  %v10157_v3 = vmul.f32 1.442695, %v10034_v34  ;;  %11808 = vpow2.f32 %v11415_v46 }
 0x647   : > { %v11795_v50 = vpop.eup %11794  ;;  %v10725_v32 = vadd.f32 %v10723_v47, %v10707_v63  ;;  %v10706_v8 = vmul.f32 %v11793_v29, %v10704_v1  ;;  %11810 = vpow2.f32 %v10153_v36  ;;  %v9121_v40 = vadd.f32 %v16852_v48, %v16165_v20 }
 0x648   : > { %v11797_v6 = vpop.eup %11796  ;;  %v16898_v23 = vmul.f32 %v10712_v14, %v10222_v12  ;;  %v9377_v58 = vadd.f32 1.0, %v11795_v50  ;;  %11812 = vpow2.f32 %v10157_v3  ;;  %v9635_v55 = vsub.f32 0.0, %v9571_v27 }
 0x649   : > { %v10708_v13 = vadd.f32 %v10706_v8, %v16863_v16  ;;  %v10223_v56 = vsub.f32 1.0, %v11797_v6  ;;  %v11417_v57 = vmul.f32 -1.442695, %v9121_v40  ;;  %v9573_v49 = vmax.f32 %v9121_v40, 0.0 }
 0x64a   : > { %v10722_v39 = vrot.slane %v16898_v23, %v16145_v60  ;;  %11814 = vrcp.f32 %v9377_v58  ;;  %v10035_v45 = vmul.f32 %v9898_v21, %v9635_v55  ;;  %v9906_v28 = vrot.slane %v16840_v17, %v16190_v26 }
 0x64b   : > { %v11799_v9 = vpop.eup %11798  ;;  %v10731_v24 = vmul.f32 %v16872_v15, %v10223_v56  ;;  %v10727_v48 = vadd.f32 %v16876_v0, %v16870_v59  ;;  %11816 = vpow2.f32 %v11417_v57  ;;  %v9637_v63 = vsub.f32 0.0, %v9573_v49 }
 0x64c   : > { %v11801_v16 = vpop.eup %11800  ;;  %v10724_v38 = vmul.f32 %v11799_v9, %v10722_v39  ;;  %v10747_v11 = vmul.f32 %v11797_v6, %v16872_v15  ;;  %v10159_v53 = vmul.f32 1.442695, %v10035_v45  ;;  %v9082_v22 = vadd.f32 %v16854_v35, %v16165_v20 }
 0x64d   : > { %v11803_v33 = vpop.eup %11802  ;;  %v10736_v61 = vrot.slane %v10731_v24, %v16145_v60  ;;  %v10225_v43 = vsub.f32 1.0, %v11801_v16  ;;  %v10745_v51 = vadd.f32 %v10731_v24, %v10727_v48  ;;  %v10037_v26 = vmul.f32 %v9906_v28, %v9637_v63 }
 0x64e   : > { %v11805_v18 = vpop.eup %11804  ;;  %v16912_v44 = vadd.f32 %v10724_v38, %v10708_v13  ;;  %v9376_v4 = vadd.f32 1.0, %v11803_v33  ;;  %v10765_v14 = vmul.f32 %v11801_v16, %v10747_v11  ;;  %11818 = vpow2.f32 %v10159_v53 }
 0x64f   : > { %v11807_v10 = vpop.eup %11806  ;;  %v9378_v59 = vadd.f32 1.0, %v11805_v18  ;;  %v10749_v0 = vmul.f32 %v10747_v11, %v10225_v43  ;;  %v10163_v52 = vmul.f32 1.442695, %v10037_v26  ;;  %v9902_v46 = vrot.slane %v16840_v17, %v16196_v54 }
 0x650   : > { %v10741_v19 = vmul.f32 %v11807_v10, %v10736_v61  ;;  %11820 = vrcp.f32 %v9376_v4  ;;  %v11809_v15 = vpop.eup %11808  ;;  %v9123_v5 = vadd.f32 %v16859_v30, %v16165_v20  ;;  %v9910_v47 = vrot.slane %v16840_v17, %v16201_v7 }
 0x651   : > { %11822 = vrcp.f32 %v9378_v59  ;;  %v10754_v25 = vrot.slane %v10749_v0, %v16145_v60  ;;  %v10763_v62 = vadd.f32 %v10749_v0, %v10745_v51  ;;  %v11811_v42 = vpop.eup %11810  ;;  %v9379_v21 = vadd.f32 1.0, %v11809_v15  ;;  %v10801_v15 = vld [vmem:[%s642_s20] sm:$0x77] }
 0x652   : > { %v10743_v31 = vadd.f32 %v10741_v19, %v10725_v32  ;;  %11824 = vpow2.f32 %v10163_v52  ;;  %v11813_v2 = vpop.eup %11812  ;;  %v10224_v34 = vsub.f32 1.0, %v11811_v42  ;;  %v11416_v12 = vmul.f32 -1.442695, %v9082_v22 }
 0x653   : > { %v10226_v29 = vsub.f32 1.0, %v11813_v2  ;;  %11826 = vrcp.f32 %v9379_v21  ;;  %v9572_v35 = vmax.f32 %v9082_v22, 0.0  ;;  %v11418_v50 = vmul.f32 -1.442695, %v9123_v5 }
 0x654   : > { %v11815_v1 = vpop.eup %11814  ;;  %v10732_v36 = vmul.f32 %v16896_v37, %v10224_v34  ;;  %v9574_v54 = vmax.f32 %v9123_v5, 0.0  ;;  %11828 = vpow2.f32 %v11416_v12  ;;  %v10728_v7 = vadd.f32 %v16898_v23, %v16894_v41 }
 0x655   : > { %v10759_v3 = vmul.f32 %v11815_v1, %v10754_v25  ;;  %v11817_v32 = vpop.eup %11816  ;;  %v9636_v20 = vsub.f32 0.0, %v9572_v35  ;;  %v10748_v17 = vmul.f32 %v11811_v42, %v16896_v37  ;;  %11830 = vpow2.f32 %v11418_v50 }
 0x656   : > { %v10740_v30 = vrot.slane %v10732_v36, %v16145_v60  ;;  %v9381_v8 = vadd.f32 1.0, %v11817_v32  ;;  %v9638_v58 = vsub.f32 0.0, %v9574_v54  ;;  %v10746_v40 = vadd.f32 %v10732_v36, %v10728_v7 }
 0x657   : > { %v10761_v27 = vadd.f32 %v10759_v3, %v10743_v31  ;;  %v10036_v6 = vmul.f32 %v9902_v46, %v9636_v20  ;;  %v10750_v13 = vmul.f32 %v10748_v17, %v10226_v29  ;;  %v10766_v55 = vmul.f32 %v11813_v2, %v10748_v17 }
 0x658   : > { %v11819_v56 = vpop.eup %11818  ;;  %11832 = vrcp.f32 %v9381_v8  ;;  %v10038_v37 = vmul.f32 %v9910_v47, %v9638_v58 }
 0x659   : > { %v10227_v57 = vsub.f32 1.0, %v11819_v56  ;;  %v10783_v41 = vmul.f32 %v11819_v56, %v10765_v14  ;;  %v10161_v23 = vmul.f32 1.442695, %v10036_v6  ;;  %v10758_v24 = vrot.slane %v10750_v13, %v16145_v60 }
 0x65a   : > { %v11821_v39 = vpop.eup %11820  ;;  %v10764_v45 = vadd.f32 %v10750_v13, %v10746_v40  ;;  %v10165_v16 = vmul.f32 1.442695, %v10038_v37 }
 0x65b   : > { %v11823_v49 = vpop.eup %11822  ;;  %v10742_v9 = vmul.f32 %v11821_v39, %v10740_v30  ;;  %v10767_v48 = vmul.f32 %v10765_v14, %v10227_v57  ;;  %11834 = vpow2.f32 %v10161_v23  ;;  %v10803_v30 = vcombine.high %v10801_v15, %v10801_v15 }
 0x65c   : > { %v11825_v28 = vpop.eup %11824  ;;  %v10760_v11 = vmul.f32 %v11823_v49, %v10758_v24  ;;  %11836 = vpow2.f32 %v10165_v16 }
 0x65d   : > { %v10744_v38 = vadd.f32 %v10742_v9, %v16912_v44  ;;  %v10229_v63 = vsub.f32 1.0, %v11825_v28  ;;  %v11827_v33 = vpop.eup %11826  ;;  %v10772_v61 = vrot.slane %v10767_v48, %v16145_v60  ;;  %v10781_v43 = vadd.f32 %v10767_v48, %v10763_v62 }
 0x65e   : > { %v11829_v18 = vpop.eup %11828 }
 0x65f   : > { %v10785_v53 = vmul.f32 %v10783_v41, %v10229_v63  ;;  %v10762_v51 = vadd.f32 %v10760_v11, %v10744_v38  ;;  %v10777_v4 = vmul.f32 %v11827_v33, %v10772_v61  ;;  %v11831_v26 = vpop.eup %11830  ;;  %v9380_v59 = vadd.f32 1.0, %v11829_v18 }
 0x660   : > { %v9382_v0 = vadd.f32 1.0, %v11831_v26 }
 0x661   : > { %v10790_v10 = vrot.slane %v10785_v53, %v16145_v60  ;;  %v10799_v14 = vadd.f32 %v10785_v53, %v10781_v43  ;;  %v10779_v44 = vadd.f32 %v10777_v4, %v10761_v27  ;;  %11838 = vrcp.f32 %v9380_v59 }
 0x662   : > { %v11833_v19 = vpop.eup %11832  ;;  %11840 = vrcp.f32 %v9382_v0 }
 0x663   : > { %v10795_v52 = vmul.f32 %v11833_v19, %v10790_v10 }
 0x665   : > { %v11835_v25 = vpop.eup %11834  ;;  %v10797_v62 = vadd.f32 %v10795_v52, %v10779_v44 }
 0x666   : > { %v10228_v42 = vsub.f32 1.0, %v11835_v25  ;;  %v10784_v31 = vmul.f32 %v11835_v25, %v10766_v55  ;;  %v11837_v21 = vpop.eup %11836 }
 0x667   : > { %v10805_v22 = vsub.f32 %v10797_v62, %v10801_v15  ;;  %v10824_v2 = vsel %vm10809_vm2, %v10797_v62, %v10799_v14  ;;  %v10230_v34 = vsub.f32 1.0, %v11837_v21 }
 0x668   : > { %v10768_v46 = vmul.f32 %v10766_v55, %v10228_v42 }
 0x669   : > { %v10807_v5 = vmul.f32 %v10805_v22, %v10805_v22  ;;  %v10786_v29 = vmul.f32 %v10784_v31, %v10230_v34 }
 0x66a   : > { %v10776_v47 = vrot.slane %v10768_v46, %v16145_v60  ;;  %v10782_v1 = vadd.f32 %v10768_v46, %v10764_v45 }
 0x66b   : > { %v10810_v12 = vsel %vm10809_vm2, %v10807_v5, 0.0  ;;  %v11839_v35 = vpop.eup %11838  ;;  %v10794_v3 = vrot.slane %v10786_v29, %v16145_v60 }
 0x66c   : > { %v10811_v36 = vrot.slane %v10810_v12, 4  ;;  %v10800_v50 = vadd.f32 %v10786_v29, %v10782_v1  ;;  %v11841_v54 = vpop.eup %11840  ;;  %v10778_v32 = vmul.f32 %v11839_v35, %v10776_v47 }
 0x66d   : > { %v10796_v7 = vmul.f32 %v11841_v54, %v10794_v3 }
 0x66e   : > { %v10812_v20 = vadd.f32 %v10811_v36, %v10810_v12  ;;  %v10780_v17 = vadd.f32 %v10778_v32, %v10762_v51 }
 0x670   : > { %v10813_v8 = vrot.slane %v10812_v20, 2  ;;  %v10798_v27 = vadd.f32 %v10796_v7, %v10780_v17 }
 0x672   : > { %v10814_v6 = vadd.f32 %v10813_v8, %v10812_v20  ;;  %v10806_v58 = vsub.f32 %v10798_v27, %v10803_v30  ;;  %v10825_v40 = vsel %vm10809_vm2, %v10798_v27, %v10800_v50 }
 0x674   : > { %v10815_v13 = vrot.slane %v10814_v6, 1  ;;  %v10808_v56 = vmul.f32 %v10806_v58, %v10806_v58 }
 0x676   : > { %v10816_v55 = vadd.f32 %v10815_v13, %v10814_v6  ;;  %v10817_v60 = vsel %vm10809_vm2, %v10808_v56, 0.0 }
 0x677   : > { %v10818_v57 = vrot.slane %v10817_v60, 4 }
 0x678   : > { %v10827_v39 = vsel %vm10826_vm3, %v10824_v2, %v10816_v55 }
 0x679   : > { %v10830_v41 = vsel %vm10829_vm4, %v10827_v39, 0.0  ;;  %v10819_v23 = vadd.f32 %v10818_v57, %v10817_v60 }
 0x67a   : > { %10832 = vst [vmem:[%s648_s26] sm:$0xff] %v10830_v41 }
 0x67b   : > { %v10820_v37 = vrot.slane %v10819_v23, 2 }
 0x67d   : > { %v10821_v49 = vadd.f32 %v10820_v37, %v10819_v23 }
 0x67f   : > { %v10822_v9 = vrot.slane %v10821_v49, 1 }
 0x681   : > { %v10823_v24 = vadd.f32 %v10822_v9, %v10821_v49 }
 0x683   : > { %v10828_v45 = vsel %vm10826_vm3, %v10825_v40, %v10823_v24 }
 0x684   : > { %v10831_v28 = vsel %vm10829_vm4, %v10828_v45, 0.0 }
 0x685   : > { %10833 = vst [vmem:[%s648_s26 + $0x8] sm:$0xff] %v10831_v28 }
 0x686 PF: > { %p16_p10 = scmp.ge.s32.totalorder %s11957_s13, 6   ;;  %s17661_s30 = smov %s11883_s10 }
 0x687   : > { %s17662_s10 = smov %s11966_s16  ;;  %s17663_s11 = smov %s11957_s13 }
 0x688   :  { %18 = sbr.rel (!%p16_p10) target bundleno = 2 (0x2), region = 120 }

</bundles_post_ra>
